<compile_context>
chip_gen: v6e
topology: v6e:2x2x1
jax: 0.10.0
libtpu: 0.0.40
codegen_flags: <defaults>
</compile_context>

<pallas_src>
import functools

import jax
import jax.numpy as jnp
from jax.experimental import pallas as pl
from jax.experimental.pallas import tpu as pltpu

MASKP = 0.5      # ME-Net masking probability
SVDPROB = 0.8    # fraction of singular values retained (ME-Net default)


# ---------------- Pallas kernels ----------------

def _usvt_recon_kernel(u_ref, svt_ref, pobs_ref, o_ref):
    # W = (U_k @ (S_k V_k^T)) / p_obs ; clip to [-1, 1] ; map back to [0, 1]
    # Batched MXU matmul over the whole image block; lane-dense (128) output.
    w = jnp.einsum('bhk,bkw->bhw', u_ref[...], svt_ref[...],
                   preferred_element_type=jnp.float32)
    w = w * pl.reciprocal(pobs_ref[...], approx=True)   # EUP slot, free next to MXU
    w = jnp.clip(w, -1.0, 1.0)
    o_ref[...] = (w + 1.0) * 0.5


def _conv_pool_fc_kernel(xpad_ref, cw_ref, cb_ref, fcw_ref, fcb_ref, out_ref,
                         *, C, H, W, F, ncls):
    # Fused Conv3x3(pad=1) + bias + ReLU + global-avg-pool + Linear for ONE image
    # (grid over batch, "parallel").  The conv window extraction happens in-kernel:
    # 9*C shifted windows as static slices of the padded VMEM tile (direct conv via
    # scalar-broadcast FMAs -- fine at this C/F; an MXU im2col formulation would be
    # used for large channel counts).  Nothing intermediate touches HBM.
    slabs = []
    for c in range(C):
        for dy in range(3):
            for dx in range(3):
                slabs.append(xpad_ref[0, c, dy:dy + H, dx:dx + W])   # (H, W) in VMEM

    inv_hw = 1.0 / float(H * W)
    logits = fcb_ref[...]                                            # (1, ncls)
    for f in range(F):
        base = f * C * 9
        acc = slabs[0] * cw_ref[base]
        for t in range(1, C * 9):
            acc = acc + slabs[t] * cw_ref[base + t]                  # direct conv (VPU)
        acc = jnp.maximum(acc + cb_ref[f], 0.0)                      # bias + ReLU
        pooled = jnp.sum(acc) * inv_hw                               # global avg pool
        logits = logits + pooled * fcw_ref[f:f + 1, :]               # fused FC accumulate
    out_ref[0, :, :] = logits


# ---------------- USVT preprocessing (ME-Net defense) ----------------

def usvt(x, mask_key):
    B, C, H, W = x.shape
    CW = C * W
    k = max(1, int(SVDPROB * H))
    CWP = ((CW + 127) // 128) * 128        # lane-dense (multiple of 128) recon width

    # channel-concat along width: (B, C, H, W) -> (B, H, C*W)
    xc = jnp.transpose(x, (0, 2, 1, 3)).reshape(B, H, CW)
    mask = jax.random.bernoulli(mask_key, MASKP, (B, H, CW)).astype(jnp.float32)

    # Elementwise masking + per-image observation rate: left to XLA fusion
    # (a pallas_call here is dispatch overhead >> the ns of VPU work).
    masked = (xc * 2.0 - 1.0) * mask
    p_obs = jnp.maximum(jnp.mean(mask, axis=(1, 2)), 1e-3)   # clamp: avoid 1/0 -> NaN

    # TODO(synk): SVD has no clean Pallas equivalent (iterative decomposition); plain JAX.
    u, s, vt = jnp.linalg.svd(masked, full_matrices=False)
    u_k = u[:, :, :k]                                         # (B, H, k)
    svt_k = s[:, :k, None] * vt[:, :k, :]                     # (B, k, CW)
    svt_k = jnp.pad(svt_k, ((0, 0), (0, 0), (0, CWP - CW)))   # pad lanes to 128

    bg = B                                                    # whole batch per grid step
    est = pl.pallas_call(
        _usvt_recon_kernel,
        grid=(B // bg,),
        in_specs=[
            pl.BlockSpec((bg, H, k), lambda i: (i, 0, 0)),
            pl.BlockSpec((bg, k, CWP), lambda i: (i, 0, 0)),
            pl.BlockSpec((bg, 1, 1), lambda i: (i, 0, 0)),
        ],
        out_specs=pl.BlockSpec((bg, H, CWP), lambda i: (i, 0, 0)),
        out_shape=jax.ShapeDtypeStruct((B, H, CWP), jnp.float32),
        compiler_params=pltpu.CompilerParams(dimension_semantics=("parallel",)),
    )(u_k, svt_k, p_obs.reshape(B, 1, 1))

    est = est[:, :, :CW]
    # split channels back (assumes H == W, as ME-Net's channel-concat slicing does)
    x_rec = est.reshape(B, H, C, W).transpose(0, 2, 1, 3)     # (B, C, H, W)
    return x_rec


# ---------------- synthetic inner model ----------------
# MENet.__init__ only stores an external model; here we use a small deterministic
# CNN: Conv3x3(C->F, pad=1) + ReLU + GlobalAvgPool + Linear(F->10).

def init_model_params(key, C=3, F=8, num_classes=10):
    k1, k2, k3, k4 = jax.random.split(key, 4)
    conv_w = jax.random.normal(k1, (F, C, 3, 3), jnp.float32) * 0.1   # PyTorch (out,in,kh,kw)
    conv_b = jax.random.normal(k2, (F,), jnp.float32) * 0.1
    fc_w = jax.random.normal(k3, (F, num_classes), jnp.float32) * 0.1
    fc_b = jax.random.normal(k4, (num_classes,), jnp.float32) * 0.1
    return conv_w, conv_b, fc_w, fc_b


def model_forward(x, params):
    conv_w, conv_b, fc_w, fc_b = params
    B, C, H, W = x.shape
    F = conv_w.shape[0]
    ncls = fc_w.shape[1]

    xpad = jnp.pad(x, ((0, 0), (0, 0), (1, 1), (1, 1)))       # (B, C, H+2, W+2), read once
    cw_flat = conv_w.reshape(F * C * 9)                       # conv weights as SMEM scalars

    kernel = functools.partial(_conv_pool_fc_kernel, C=C, H=H, W=W, F=F, ncls=ncls)
    out = pl.pallas_call(
        kernel,
        grid=(B,),
        in_specs=[
            pl.BlockSpec((1, C, H + 2, W + 2), lambda b: (b, 0, 0, 0)),
            pl.BlockSpec(memory_space=pltpu.MemorySpace.SMEM),   # conv weights (flat)
            pl.BlockSpec(memory_space=pltpu.MemorySpace.SMEM),   # conv bias
            pl.BlockSpec((F, ncls), lambda b: (0, 0)),           # fc weight
            pl.BlockSpec((1, ncls), lambda b: (0, 0)),           # fc bias
        ],
        out_specs=pl.BlockSpec((1, 1, ncls), lambda b: (b, 0, 0)),
        out_shape=jax.ShapeDtypeStruct((B, 1, ncls), jnp.float32),
        compiler_params=pltpu.CompilerParams(dimension_semantics=("parallel",)),
    )(xpad, cw_flat, conv_b, fc_w, fc_b.reshape(1, ncls))
    return out[:, 0, :]                                       # (B, num_classes)


def menet_forward(x, params, mask_key):
    # MENet.forward: x = usvt.apply(input); return self.model(x)
    return model_forward(usvt(x, mask_key), params)


if __name__ == "__main__":
    key = jax.random.PRNGKey(0)
    k_x, k_mask, k_params = jax.random.split(key, 3)

    B, C, H, W = 2, 3, 16, 16
    x = jax.random.uniform(k_x, (B, C, H, W), dtype=jnp.float32)  # images in [0, 1]
    params = init_model_params(k_params)

    out = jax.jit(menet_forward)(x, params, k_mask)
    out = jax.block_until_ready(out)

    assert out.shape == (B, 10)
    assert bool(jnp.all(jnp.isfinite(out)))
    print("KERNEL_OK")
</pallas_src>

<mosaic_0001>
module attributes {stable_mosaic.version = 11 : i64} {
  func.func @_usvt_recon_kernel(%arg0: i32, %arg1: memref<2x16x12xf32, #tpu.memory_space<vmem>>, %arg2: memref<2x12x128xf32, #tpu.memory_space<vmem>>, %arg3: memref<2x1x1xf32, #tpu.memory_space<vmem>>, %arg4: memref<2x16x128xf32, #tpu.memory_space<vmem>>) attributes {dimension_semantics = [#tpu.dimension_semantics<parallel>], iteration_bounds = array<i64: 1>, scalar_prefetch = 0 : i64, scratch_operands = 0 : i64, tpu.core_type = #tpu.core_type<tc>, window_params = [{transform_indices = @transform_0, window_bounds = array<i64: 2, 16, 12>}, {transform_indices = @transform_1, window_bounds = array<i64: 2, 12, 128>}, {transform_indices = @transform_2, window_bounds = array<i64: 2, 1, 1>}, {transform_indices = @transform_3, window_bounds = array<i64: 2, 16, 128>}]} {
    %c0 = arith.constant 0 : index
    %c0_0 = arith.constant 0 : index
    %c0_1 = arith.constant 0 : index
    %0 = vector.load %arg1[%c0, %c0_0, %c0_1] : memref<2x16x12xf32, #tpu.memory_space<vmem>>, vector<2x16x12xf32>
    %c0_2 = arith.constant 0 : index
    %c0_3 = arith.constant 0 : index
    %c0_4 = arith.constant 0 : index
    %1 = vector.load %arg2[%c0_2, %c0_3, %c0_4] : memref<2x12x128xf32, #tpu.memory_space<vmem>>, vector<2x12x128xf32>
    "tpu.trace_start"() <{level = 10 : i32, message = "bhk,bkw->bhw"}> : () -> ()
    %cst = arith.constant dense<0.000000e+00> : vector<2x16x128xf32>
    %2 = tpu.matmul %0, %1, %cst {dimension_numbers = #tpu.dot_dimension_numbers<[2], [1], [1], [2], [0, 0, 0, 1, 1, 2], [0], [0]>} : vector<2x16x12xf32>, vector<2x12x128xf32>, vector<2x16x128xf32> -> vector<2x16x128xf32>
    "tpu.trace_stop"() : () -> ()
    %c0_5 = arith.constant 0 : index
    %c0_6 = arith.constant 0 : index
    %c0_7 = arith.constant 0 : index
    %3 = vector.load %arg3[%c0_5, %c0_6, %c0_7] : memref<2x1x1xf32, #tpu.memory_space<vmem>>, vector<2x1x1xf32>
    %4 = tpu.reciprocal %3 {approx = true} : vector<2x1x1xf32> -> vector<2x1x1xf32>
    %5 = vector.broadcast %4 : vector<2x1x1xf32> to vector<2x16x128xf32>
    %6 = arith.mulf %2, %5 : vector<2x16x128xf32>
    %cst_8 = arith.constant -1.000000e+00 : f32
    %cst_9 = arith.constant 1.000000e+00 : f32
    %7 = vector.broadcast %cst_8 : f32 to vector<2x16x128xf32>
    %8 = arith.maximumf %7, %6 : vector<2x16x128xf32>
    %9 = vector.broadcast %cst_9 : f32 to vector<2x16x128xf32>
    %10 = arith.minimumf %9, %8 : vector<2x16x128xf32>
    %cst_10 = arith.constant 1.000000e+00 : f32
    %11 = vector.broadcast %cst_10 : f32 to vector<2x16x128xf32>
    %12 = arith.addf %10, %11 : vector<2x16x128xf32>
    %cst_11 = arith.constant 5.000000e-01 : f32
    %13 = vector.broadcast %cst_11 : f32 to vector<2x16x128xf32>
    %14 = arith.mulf %12, %13 : vector<2x16x128xf32>
    %c0_12 = arith.constant 0 : index
    %c0_13 = arith.constant 0 : index
    %c0_14 = arith.constant 0 : index
    %15 = vector.load %arg4[%c0_12, %c0_13, %c0_14] : memref<2x16x128xf32, #tpu.memory_space<vmem>>, vector<2x16x128xf32>
    tpu.vector_store %arg4[%c0_12, %c0_13, %c0_14], %14 {strides = array<i32>} : memref<2x16x128xf32, #tpu.memory_space<vmem>>, vector<2x16x128xf32>,
    return
  }
  func.func @transform_0(%arg0: i32) -> (i32, i32, i32) {
    %c0_i32 = arith.constant 0 : i32
    %c0_i32_0 = arith.constant 0 : i32
    %c0_i32_1 = arith.constant 0 : i32
    return %arg0, %c0_i32, %c0_i32_0 : i32, i32, i32
  }
  func.func @transform_1(%arg0: i32) -> (i32, i32, i32) {
    %c0_i32 = arith.constant 0 : i32
    %c0_i32_0 = arith.constant 0 : i32
    %c0_i32_1 = arith.constant 0 : i32
    return %arg0, %c0_i32, %c0_i32_0 : i32, i32, i32
  }
  func.func @transform_2(%arg0: i32) -> (i32, i32, i32) {
    %c0_i32 = arith.constant 0 : i32
    %c0_i32_0 = arith.constant 0 : i32
    %c0_i32_1 = arith.constant 0 : i32
    return %arg0, %c0_i32, %c0_i32_0 : i32, i32, i32
  }
  func.func @transform_3(%arg0: i32) -> (i32, i32, i32) {
    %c0_i32 = arith.constant 0 : i32
    %c0_i32_0 = arith.constant 0 : i32
    %c0_i32_1 = arith.constant 0 : i32
    return %arg0, %c0_i32, %c0_i32_0 : i32, i32, i32
  }
}

module attributes {stable_mosaic.version = 11 : i64} {
  func.func @_conv_pool_fc_kernel(%arg0: i32, %arg1: memref<1x3x18x18xf32, #tpu.memory_space<vmem>>, %arg2: memref<216xf32, #tpu.memory_space<smem>>, %arg3: memref<8xf32, #tpu.memory_space<smem>>, %arg4: memref<8x10xf32, #tpu.memory_space<vmem>>, %arg5: memref<1x10xf32, #tpu.memory_space<vmem>>, %arg6: memref<1x1x10xf32, #tpu.memory_space<vmem>>) attributes {dimension_semantics = [#tpu.dimension_semantics<parallel>], iteration_bounds = array<i64: 2>, scalar_prefetch = 0 : i64, scratch_operands = 0 : i64, tpu.core_type = #tpu.core_type<tc>, window_params = [{transform_indices = @transform_0, window_bounds = array<i64: 1, 3, 18, 18>}, {transform_indices = @transform_1, window_bounds = array<i64: 216>}, {transform_indices = @transform_2, window_bounds = array<i64: 8>}, {pipeline_mode = #tpu.pipeline_mode<synchronous>, transform_indices = @transform_3, window_bounds = array<i64: 8, 10>}, {pipeline_mode = #tpu.pipeline_mode<synchronous>, transform_indices = @transform_4, window_bounds = array<i64: 1, 10>}, {transform_indices = @transform_5, window_bounds = array<i64: 1, 1, 10>}]} {
    %c0 = arith.constant 0 : index
    %c0_0 = arith.constant 0 : index
    %c0_1 = arith.constant 0 : index
    %c0_2 = arith.constant 0 : index
    %0 = vector.load %arg1[%c0, %c0_0, %c0_1, %c0_2] : memref<1x3x18x18xf32, #tpu.memory_space<vmem>>, vector<1x1x16x16xf32>
    %1 = vector.shape_cast %0 : vector<1x1x16x16xf32> to vector<16x16xf32>
    %c0_3 = arith.constant 0 : index
    %c0_4 = arith.constant 0 : index
    %c0_5 = arith.constant 0 : index
    %c1 = arith.constant 1 : index
    %2 = vector.load %arg1[%c0_3, %c0_4, %c0_5, %c1] : memref<1x3x18x18xf32, #tpu.memory_space<vmem>>, vector<1x1x16x16xf32>
    %3 = vector.shape_cast %2 : vector<1x1x16x16xf32> to vector<16x16xf32>
    %c0_6 = arith.constant 0 : index
    %c0_7 = arith.constant 0 : index
    %c0_8 = arith.constant 0 : index
    %c2 = arith.constant 2 : index
    %4 = vector.load %arg1[%c0_6, %c0_7, %c0_8, %c2] : memref<1x3x18x18xf32, #tpu.memory_space<vmem>>, vector<1x1x16x16xf32>
    %5 = vector.shape_cast %4 : vector<1x1x16x16xf32> to vector<16x16xf32>
    %c0_9 = arith.constant 0 : index
    %c0_10 = arith.constant 0 : index
    %c1_11 = arith.constant 1 : index
    %c0_12 = arith.constant 0 : index
    %6 = vector.load %arg1[%c0_9, %c0_10, %c1_11, %c0_12] : memref<1x3x18x18xf32, #tpu.memory_space<vmem>>, vector<1x1x16x16xf32>
    %7 = vector.shape_cast %6 : vector<1x1x16x16xf32> to vector<16x16xf32>
    %c0_13 = arith.constant 0 : index
    %c0_14 = arith.constant 0 : index
    %c1_15 = arith.constant 1 : index
    %c1_16 = arith.constant 1 : index
    %8 = vector.load %arg1[%c0_13, %c0_14, %c1_15, %c1_16] : memref<1x3x18x18xf32, #tpu.memory_space<vmem>>, vector<1x1x16x16xf32>
    %9 = vector.shape_cast %8 : vector<1x1x16x16xf32> to vector<16x16xf32>
    %c0_17 = arith.constant 0 : index
    %c0_18 = arith.constant 0 : index
    %c1_19 = arith.constant 1 : index
    %c2_20 = arith.constant 2 : index
    %10 = vector.load %arg1[%c0_17, %c0_18, %c1_19, %c2_20] : memref<1x3x18x18xf32, #tpu.memory_space<vmem>>, vector<1x1x16x16xf32>
    %11 = vector.shape_cast %10 : vector<1x1x16x16xf32> to vector<16x16xf32>
    %c0_21 = arith.constant 0 : index
    %c0_22 = arith.constant 0 : index
    %c2_23 = arith.constant 2 : index
    %c0_24 = arith.constant 0 : index
    %12 = vector.load %arg1[%c0_21, %c0_22, %c2_23, %c0_24] : memref<1x3x18x18xf32, #tpu.memory_space<vmem>>, vector<1x1x16x16xf32>
    %13 = vector.shape_cast %12 : vector<1x1x16x16xf32> to vector<16x16xf32>
    %c0_25 = arith.constant 0 : index
    %c0_26 = arith.constant 0 : index
    %c2_27 = arith.constant 2 : index
    %c1_28 = arith.constant 1 : index
    %14 = vector.load %arg1[%c0_25, %c0_26, %c2_27, %c1_28] : memref<1x3x18x18xf32, #tpu.memory_space<vmem>>, vector<1x1x16x16xf32>
    %15 = vector.shape_cast %14 : vector<1x1x16x16xf32> to vector<16x16xf32>
    %c0_29 = arith.constant 0 : index
    %c0_30 = arith.constant 0 : index
    %c2_31 = arith.constant 2 : index
    %c2_32 = arith.constant 2 : index
    %16 = vector.load %arg1[%c0_29, %c0_30, %c2_31, %c2_32] : memref<1x3x18x18xf32, #tpu.memory_space<vmem>>, vector<1x1x16x16xf32>
    %17 = vector.shape_cast %16 : vector<1x1x16x16xf32> to vector<16x16xf32>
    %c0_33 = arith.constant 0 : index
    %c1_34 = arith.constant 1 : index
    %c0_35 = arith.constant 0 : index
    %c0_36 = arith.constant 0 : index
    %18 = vector.load %arg1[%c0_33, %c1_34, %c0_35, %c0_36] : memref<1x3x18x18xf32, #tpu.memory_space<vmem>>, vector<1x1x16x16xf32>
    %19 = vector.shape_cast %18 : vector<1x1x16x16xf32> to vector<16x16xf32>
    %c0_37 = arith.constant 0 : index
    %c1_38 = arith.constant 1 : index
    %c0_39 = arith.constant 0 : index
    %c1_40 = arith.constant 1 : index
    %20 = vector.load %arg1[%c0_37, %c1_38, %c0_39, %c1_40] : memref<1x3x18x18xf32, #tpu.memory_space<vmem>>, vector<1x1x16x16xf32>
    %21 = vector.shape_cast %20 : vector<1x1x16x16xf32> to vector<16x16xf32>
    %c0_41 = arith.constant 0 : index
    %c1_42 = arith.constant 1 : index
    %c0_43 = arith.constant 0 : index
    %c2_44 = arith.constant 2 : index
    %22 = vector.load %arg1[%c0_41, %c1_42, %c0_43, %c2_44] : memref<1x3x18x18xf32, #tpu.memory_space<vmem>>, vector<1x1x16x16xf32>
    %23 = vector.shape_cast %22 : vector<1x1x16x16xf32> to vector<16x16xf32>
    %c0_45 = arith.constant 0 : index
    %c1_46 = arith.constant 1 : index
    %c1_47 = arith.constant 1 : index
    %c0_48 = arith.constant 0 : index
    %24 = vector.load %arg1[%c0_45, %c1_46, %c1_47, %c0_48] : memref<1x3x18x18xf32, #tpu.memory_space<vmem>>, vector<1x1x16x16xf32>
    %25 = vector.shape_cast %24 : vector<1x1x16x16xf32> to vector<16x16xf32>
    %c0_49 = arith.constant 0 : index
    %c1_50 = arith.constant 1 : index
    %c1_51 = arith.constant 1 : index
    %c1_52 = arith.constant 1 : index
    %26 = vector.load %arg1[%c0_49, %c1_50, %c1_51, %c1_52] : memref<1x3x18x18xf32, #tpu.memory_space<vmem>>, vector<1x1x16x16xf32>
    %27 = vector.shape_cast %26 : vector<1x1x16x16xf32> to vector<16x16xf32>
    %c0_53 = arith.constant 0 : index
    %c1_54 = arith.constant 1 : index
    %c1_55 = arith.constant 1 : index
    %c2_56 = arith.constant 2 : index
    %28 = vector.load %arg1[%c0_53, %c1_54, %c1_55, %c2_56] : memref<1x3x18x18xf32, #tpu.memory_space<vmem>>, vector<1x1x16x16xf32>
    %29 = vector.shape_cast %28 : vector<1x1x16x16xf32> to vector<16x16xf32>
    %c0_57 = arith.constant 0 : index
    %c1_58 = arith.constant 1 : index
    %c2_59 = arith.constant 2 : index
    %c0_60 = arith.constant 0 : index
    %30 = vector.load %arg1[%c0_57, %c1_58, %c2_59, %c0_60] : memref<1x3x18x18xf32, #tpu.memory_space<vmem>>, vector<1x1x16x16xf32>
    %31 = vector.shape_cast %30 : vector<1x1x16x16xf32> to vector<16x16xf32>
    %c0_61 = arith.constant 0 : index
    %c1_62 = arith.constant 1 : index
    %c2_63 = arith.constant 2 : index
    %c1_64 = arith.constant 1 : index
    %32 = vector.load %arg1[%c0_61, %c1_62, %c2_63, %c1_64] : memref<1x3x18x18xf32, #tpu.memory_space<vmem>>, vector<1x1x16x16xf32>
    %33 = vector.shape_cast %32 : vector<1x1x16x16xf32> to vector<16x16xf32>
    %c0_65 = arith.constant 0 : index
    %c1_66 = arith.constant 1 : index
    %c2_67 = arith.constant 2 : index
    %c2_68 = arith.constant 2 : index
    %34 = vector.load %arg1[%c0_65, %c1_66, %c2_67, %c2_68] : memref<1x3x18x18xf32, #tpu.memory_space<vmem>>, vector<1x1x16x16xf32>
    %35 = vector.shape_cast %34 : vector<1x1x16x16xf32> to vector<16x16xf32>
    %c0_69 = arith.constant 0 : index
    %c2_70 = arith.constant 2 : index
    %c0_71 = arith.constant 0 : index
    %c0_72 = arith.constant 0 : index
    %36 = vector.load %arg1[%c0_69, %c2_70, %c0_71, %c0_72] : memref<1x3x18x18xf32, #tpu.memory_space<vmem>>, vector<1x1x16x16xf32>
    %37 = vector.shape_cast %36 : vector<1x1x16x16xf32> to vector<16x16xf32>
    %c0_73 = arith.constant 0 : index
    %c2_74 = arith.constant 2 : index
    %c0_75 = arith.constant 0 : index
    %c1_76 = arith.constant 1 : index
    %38 = vector.load %arg1[%c0_73, %c2_74, %c0_75, %c1_76] : memref<1x3x18x18xf32, #tpu.memory_space<vmem>>, vector<1x1x16x16xf32>
    %39 = vector.shape_cast %38 : vector<1x1x16x16xf32> to vector<16x16xf32>
    %c0_77 = arith.constant 0 : index
    %c2_78 = arith.constant 2 : index
    %c0_79 = arith.constant 0 : index
    %c2_80 = arith.constant 2 : index
    %40 = vector.load %arg1[%c0_77, %c2_78, %c0_79, %c2_80] : memref<1x3x18x18xf32, #tpu.memory_space<vmem>>, vector<1x1x16x16xf32>
    %41 = vector.shape_cast %40 : vector<1x1x16x16xf32> to vector<16x16xf32>
    %c0_81 = arith.constant 0 : index
    %c2_82 = arith.constant 2 : index
    %c1_83 = arith.constant 1 : index
    %c0_84 = arith.constant 0 : index
    %42 = vector.load %arg1[%c0_81, %c2_82, %c1_83, %c0_84] : memref<1x3x18x18xf32, #tpu.memory_space<vmem>>, vector<1x1x16x16xf32>
    %43 = vector.shape_cast %42 : vector<1x1x16x16xf32> to vector<16x16xf32>
    %c0_85 = arith.constant 0 : index
    %c2_86 = arith.constant 2 : index
    %c1_87 = arith.constant 1 : index
    %c1_88 = arith.constant 1 : index
    %44 = vector.load %arg1[%c0_85, %c2_86, %c1_87, %c1_88] : memref<1x3x18x18xf32, #tpu.memory_space<vmem>>, vector<1x1x16x16xf32>
    %45 = vector.shape_cast %44 : vector<1x1x16x16xf32> to vector<16x16xf32>
    %c0_89 = arith.constant 0 : index
    %c2_90 = arith.constant 2 : index
    %c1_91 = arith.constant 1 : index
    %c2_92 = arith.constant 2 : index
    %46 = vector.load %arg1[%c0_89, %c2_90, %c1_91, %c2_92] : memref<1x3x18x18xf32, #tpu.memory_space<vmem>>, vector<1x1x16x16xf32>
    %47 = vector.shape_cast %46 : vector<1x1x16x16xf32> to vector<16x16xf32>
    %c0_93 = arith.constant 0 : index
    %c2_94 = arith.constant 2 : index
    %c2_95 = arith.constant 2 : index
    %c0_96 = arith.constant 0 : index
    %48 = vector.load %arg1[%c0_93, %c2_94, %c2_95, %c0_96] : memref<1x3x18x18xf32, #tpu.memory_space<vmem>>, vector<1x1x16x16xf32>
    %49 = vector.shape_cast %48 : vector<1x1x16x16xf32> to vector<16x16xf32>
    %c0_97 = arith.constant 0 : index
    %c2_98 = arith.constant 2 : index
    %c2_99 = arith.constant 2 : index
    %c1_100 = arith.constant 1 : index
    %50 = vector.load %arg1[%c0_97, %c2_98, %c2_99, %c1_100] : memref<1x3x18x18xf32, #tpu.memory_space<vmem>>, vector<1x1x16x16xf32>
    %51 = vector.shape_cast %50 : vector<1x1x16x16xf32> to vector<16x16xf32>
    %c0_101 = arith.constant 0 : index
    %c2_102 = arith.constant 2 : index
    %c2_103 = arith.constant 2 : index
    %c2_104 = arith.constant 2 : index
    %52 = vector.load %arg1[%c0_101, %c2_102, %c2_103, %c2_104] : memref<1x3x18x18xf32, #tpu.memory_space<vmem>>, vector<1x1x16x16xf32>
    %53 = vector.shape_cast %52 : vector<1x1x16x16xf32> to vector<16x16xf32>
    %c0_105 = arith.constant 0 : index
    %c0_106 = arith.constant 0 : index
    %54 = vector.load %arg5[%c0_105, %c0_106] : memref<1x10xf32, #tpu.memory_space<vmem>>, vector<1x10xf32>
    %c0_107 = arith.constant 0 : index
    %55 = memref.load %arg2[%c0_107] : memref<216xf32, #tpu.memory_space<smem>>
    %56 = vector.broadcast %55 : f32 to vector<16x16xf32>
    %57 = arith.mulf %1, %56 : vector<16x16xf32>
    %c1_108 = arith.constant 1 : index
    %58 = memref.load %arg2[%c1_108] : memref<216xf32, #tpu.memory_space<smem>>
    %59 = vector.broadcast %58 : f32 to vector<16x16xf32>
    %60 = arith.mulf %3, %59 : vector<16x16xf32>
    %61 = arith.addf %57, %60 : vector<16x16xf32>
    %c2_109 = arith.constant 2 : index
    %62 = memref.load %arg2[%c2_109] : memref<216xf32, #tpu.memory_space<smem>>
    %63 = vector.broadcast %62 : f32 to vector<16x16xf32>
    %64 = arith.mulf %5, %63 : vector<16x16xf32>
    %65 = arith.addf %61, %64 : vector<16x16xf32>
    %c3 = arith.constant 3 : index
    %66 = memref.load %arg2[%c3] : memref<216xf32, #tpu.memory_space<smem>>
    %67 = vector.broadcast %66 : f32 to vector<16x16xf32>
    %68 = arith.mulf %7, %67 : vector<16x16xf32>
    %69 = arith.addf %65, %68 : vector<16x16xf32>
    %c4 = arith.constant 4 : index
    %70 = memref.load %arg2[%c4] : memref<216xf32, #tpu.memory_space<smem>>
    %71 = vector.broadcast %70 : f32 to vector<16x16xf32>
    %72 = arith.mulf %9, %71 : vector<16x16xf32>
    %73 = arith.addf %69, %72 : vector<16x16xf32>
    %c5 = arith.constant 5 : index
    %74 = memref.load %arg2[%c5] : memref<216xf32, #tpu.memory_space<smem>>
    %75 = vector.broadcast %74 : f32 to vector<16x16xf32>
    %76 = arith.mulf %11, %75 : vector<16x16xf32>
    %77 = arith.addf %73, %76 : vector<16x16xf32>
    %c6 = arith.constant 6 : index
    %78 = memref.load %arg2[%c6] : memref<216xf32, #tpu.memory_space<smem>>
    %79 = vector.broadcast %78 : f32 to vector<16x16xf32>
    %80 = arith.mulf %13, %79 : vector<16x16xf32>
    %81 = arith.addf %77, %80 : vector<16x16xf32>
    %c7 = arith.constant 7 : index
    %82 = memref.load %arg2[%c7] : memref<216xf32, #tpu.memory_space<smem>>
    %83 = vector.broadcast %82 : f32 to vector<16x16xf32>
    %84 = arith.mulf %15, %83 : vector<16x16xf32>
    %85 = arith.addf %81, %84 : vector<16x16xf32>
    %c8 = arith.constant 8 : index
    %86 = memref.load %arg2[%c8] : memref<216xf32, #tpu.memory_space<smem>>
    %87 = vector.broadcast %86 : f32 to vector<16x16xf32>
    %88 = arith.mulf %17, %87 : vector<16x16xf32>
    %89 = arith.addf %85, %88 : vector<16x16xf32>
    %c9 = arith.constant 9 : index
    %90 = memref.load %arg2[%c9] : memref<216xf32, #tpu.memory_space<smem>>
    %91 = vector.broadcast %90 : f32 to vector<16x16xf32>
    %92 = arith.mulf %19, %91 : vector<16x16xf32>
    %93 = arith.addf %89, %92 : vector<16x16xf32>
    %c10 = arith.constant 10 : index
    %94 = memref.load %arg2[%c10] : memref<216xf32, #tpu.memory_space<smem>>
    %95 = vector.broadcast %94 : f32 to vector<16x16xf32>
    %96 = arith.mulf %21, %95 : vector<16x16xf32>
    %97 = arith.addf %93, %96 : vector<16x16xf32>
    %c11 = arith.constant 11 : index
    %98 = memref.load %arg2[%c11] : memref<216xf32, #tpu.memory_space<smem>>
    %99 = vector.broadcast %98 : f32 to vector<16x16xf32>
    %100 = arith.mulf %23, %99 : vector<16x16xf32>
    %101 = arith.addf %97, %100 : vector<16x16xf32>
    %c12 = arith.constant 12 : index
    %102 = memref.load %arg2[%c12] : memref<216xf32, #tpu.memory_space<smem>>
    %103 = vector.broadcast %102 : f32 to vector<16x16xf32>
    %104 = arith.mulf %25, %103 : vector<16x16xf32>
    %105 = arith.addf %101, %104 : vector<16x16xf32>
    %c13 = arith.constant 13 : index
    %106 = memref.load %arg2[%c13] : memref<216xf32, #tpu.memory_space<smem>>
    %107 = vector.broadcast %106 : f32 to vector<16x16xf32>
    %108 = arith.mulf %27, %107 : vector<16x16xf32>
    %109 = arith.addf %105, %108 : vector<16x16xf32>
    %c14 = arith.constant 14 : index
    %110 = memref.load %arg2[%c14] : memref<216xf32, #tpu.memory_space<smem>>
    %111 = vector.broadcast %110 : f32 to vector<16x16xf32>
    %112 = arith.mulf %29, %111 : vector<16x16xf32>
    %113 = arith.addf %109, %112 : vector<16x16xf32>
    %c15 = arith.constant 15 : index
    %114 = memref.load %arg2[%c15] : memref<216xf32, #tpu.memory_space<smem>>
    %115 = vector.broadcast %114 : f32 to vector<16x16xf32>
    %116 = arith.mulf %31, %115 : vector<16x16xf32>
    %117 = arith.addf %113, %116 : vector<16x16xf32>
    %c16 = arith.constant 16 : index
    %118 = memref.load %arg2[%c16] : memref<216xf32, #tpu.memory_space<smem>>
    %119 = vector.broadcast %118 : f32 to vector<16x16xf32>
    %120 = arith.mulf %33, %119 : vector<16x16xf32>
    %121 = arith.addf %117, %120 : vector<16x16xf32>
    %c17 = arith.constant 17 : index
    %122 = memref.load %arg2[%c17] : memref<216xf32, #tpu.memory_space<smem>>
    %123 = vector.broadcast %122 : f32 to vector<16x16xf32>
    %124 = arith.mulf %35, %123 : vector<16x16xf32>
    %125 = arith.addf %121, %124 : vector<16x16xf32>
    %c18 = arith.constant 18 : index
    %126 = memref.load %arg2[%c18] : memref<216xf32, #tpu.memory_space<smem>>
    %127 = vector.broadcast %126 : f32 to vector<16x16xf32>
    %128 = arith.mulf %37, %127 : vector<16x16xf32>
    %129 = arith.addf %125, %128 : vector<16x16xf32>
    %c19 = arith.constant 19 : index
    %130 = memref.load %arg2[%c19] : memref<216xf32, #tpu.memory_space<smem>>
    %131 = vector.broadcast %130 : f32 to vector<16x16xf32>
    %132 = arith.mulf %39, %131 : vector<16x16xf32>
    %133 = arith.addf %129, %132 : vector<16x16xf32>
    %c20 = arith.constant 20 : index
    %134 = memref.load %arg2[%c20] : memref<216xf32, #tpu.memory_space<smem>>
    %135 = vector.broadcast %134 : f32 to vector<16x16xf32>
    %136 = arith.mulf %41, %135 : vector<16x16xf32>
    %137 = arith.addf %133, %136 : vector<16x16xf32>
    %c21 = arith.constant 21 : index
    %138 = memref.load %arg2[%c21] : memref<216xf32, #tpu.memory_space<smem>>
    %139 = vector.broadcast %138 : f32 to vector<16x16xf32>
    %140 = arith.mulf %43, %139 : vector<16x16xf32>
    %141 = arith.addf %137, %140 : vector<16x16xf32>
    %c22 = arith.constant 22 : index
    %142 = memref.load %arg2[%c22] : memref<216xf32, #tpu.memory_space<smem>>
    %143 = vector.broadcast %142 : f32 to vector<16x16xf32>
    %144 = arith.mulf %45, %143 : vector<16x16xf32>
    %145 = arith.addf %141, %144 : vector<16x16xf32>
    %c23 = arith.constant 23 : index
    %146 = memref.load %arg2[%c23] : memref<216xf32, #tpu.memory_space<smem>>
    %147 = vector.broadcast %146 : f32 to vector<16x16xf32>
    %148 = arith.mulf %47, %147 : vector<16x16xf32>
    %149 = arith.addf %145, %148 : vector<16x16xf32>
    %c24 = arith.constant 24 : index
    %150 = memref.load %arg2[%c24] : memref<216xf32, #tpu.memory_space<smem>>
    %151 = vector.broadcast %150 : f32 to vector<16x16xf32>
    %152 = arith.mulf %49, %151 : vector<16x16xf32>
    %153 = arith.addf %149, %152 : vector<16x16xf32>
    %c25 = arith.constant 25 : index
    %154 = memref.load %arg2[%c25] : memref<216xf32, #tpu.memory_space<smem>>
    %155 = vector.broadcast %154 : f32 to vector<16x16xf32>
    %156 = arith.mulf %51, %155 : vector<16x16xf32>
    %157 = arith.addf %153, %156 : vector<16x16xf32>
    %c26 = arith.constant 26 : index
    %158 = memref.load %arg2[%c26] : memref<216xf32, #tpu.memory_space<smem>>
    %159 = vector.broadcast %158 : f32 to vector<16x16xf32>
    %160 = arith.mulf %53, %159 : vector<16x16xf32>
    %161 = arith.addf %157, %160 : vector<16x16xf32>
    %c0_110 = arith.constant 0 : index
    %162 = memref.load %arg3[%c0_110] : memref<8xf32, #tpu.memory_space<smem>>
    %163 = vector.broadcast %162 : f32 to vector<16x16xf32>
    %164 = arith.addf %161, %163 : vector<16x16xf32>
    %cst = arith.constant 0.000000e+00 : f32
    %165 = vector.broadcast %cst : f32 to vector<16x16xf32>
    %166 = arith.maximumf %164, %165 : vector<16x16xf32>
    %167 = vector.shape_cast %166 : vector<16x16xf32> to vector<1x16x16xf32>
    %cst_111 = arith.constant dense<0.000000e+00> : vector<1xf32>
    %168 = vector.multi_reduction <add>, %167, %cst_111 [1, 2] : vector<1x16x16xf32> to vector<1xf32>
    %169 = vector.shape_cast %168 : vector<1xf32> to vector<1x1x1xf32>
    %170 = vector.extract %169[0, 0, 0] : f32 from vector<1x1x1xf32>
    %cst_112 = arith.constant 3.906250e-03 : f32
    %171 = arith.mulf %170, %cst_112 : f32
    %c0_113 = arith.constant 0 : index
    %c0_114 = arith.constant 0 : index
    %172 = vector.load %arg4[%c0_113, %c0_114] : memref<8x10xf32, #tpu.memory_space<vmem>>, vector<1x10xf32>
    %173 = vector.broadcast %171 : f32 to vector<1x10xf32>
    %174 = arith.mulf %173, %172 : vector<1x10xf32>
    %175 = arith.addf %54, %174 : vector<1x10xf32>
    %c27 = arith.constant 27 : index
    %176 = memref.load %arg2[%c27] : memref<216xf32, #tpu.memory_space<smem>>
    %177 = vector.broadcast %176 : f32 to vector<16x16xf32>
    %178 = arith.mulf %1, %177 : vector<16x16xf32>
    %c28 = arith.constant 28 : index
    %179 = memref.load %arg2[%c28] : memref<216xf32, #tpu.memory_space<smem>>
    %180 = vector.broadcast %179 : f32 to vector<16x16xf32>
    %181 = arith.mulf %3, %180 : vector<16x16xf32>
    %182 = arith.addf %178, %181 : vector<16x16xf32>
    %c29 = arith.constant 29 : index
    %183 = memref.load %arg2[%c29] : memref<216xf32, #tpu.memory_space<smem>>
    %184 = vector.broadcast %183 : f32 to vector<16x16xf32>
    %185 = arith.mulf %5, %184 : vector<16x16xf32>
    %186 = arith.addf %182, %185 : vector<16x16xf32>
    %c30 = arith.constant 30 : index
    %187 = memref.load %arg2[%c30] : memref<216xf32, #tpu.memory_space<smem>>
    %188 = vector.broadcast %187 : f32 to vector<16x16xf32>
    %189 = arith.mulf %7, %188 : vector<16x16xf32>
    %190 = arith.addf %186, %189 : vector<16x16xf32>
    %c31 = arith.constant 31 : index
    %191 = memref.load %arg2[%c31] : memref<216xf32, #tpu.memory_space<smem>>
    %192 = vector.broadcast %191 : f32 to vector<16x16xf32>
    %193 = arith.mulf %9, %192 : vector<16x16xf32>
    %194 = arith.addf %190, %193 : vector<16x16xf32>
    %c32 = arith.constant 32 : index
    %195 = memref.load %arg2[%c32] : memref<216xf32, #tpu.memory_space<smem>>
    %196 = vector.broadcast %195 : f32 to vector<16x16xf32>
    %197 = arith.mulf %11, %196 : vector<16x16xf32>
    %198 = arith.addf %194, %197 : vector<16x16xf32>
    %c33 = arith.constant 33 : index
    %199 = memref.load %arg2[%c33] : memref<216xf32, #tpu.memory_space<smem>>
    %200 = vector.broadcast %199 : f32 to vector<16x16xf32>
    %201 = arith.mulf %13, %200 : vector<16x16xf32>
    %202 = arith.addf %198, %201 : vector<16x16xf32>
    %c34 = arith.constant 34 : index
    %203 = memref.load %arg2[%c34] : memref<216xf32, #tpu.memory_space<smem>>
    %204 = vector.broadcast %203 : f32 to vector<16x16xf32>
    %205 = arith.mulf %15, %204 : vector<16x16xf32>
    %206 = arith.addf %202, %205 : vector<16x16xf32>
    %c35 = arith.constant 35 : index
    %207 = memref.load %arg2[%c35] : memref<216xf32, #tpu.memory_space<smem>>
    %208 = vector.broadcast %207 : f32 to vector<16x16xf32>
    %209 = arith.mulf %17, %208 : vector<16x16xf32>
    %210 = arith.addf %206, %209 : vector<16x16xf32>
    %c36 = arith.constant 36 : index
    %211 = memref.load %arg2[%c36] : memref<216xf32, #tpu.memory_space<smem>>
    %212 = vector.broadcast %211 : f32 to vector<16x16xf32>
    %213 = arith.mulf %19, %212 : vector<16x16xf32>
    %214 = arith.addf %210, %213 : vector<16x16xf32>
    %c37 = arith.constant 37 : index
    %215 = memref.load %arg2[%c37] : memref<216xf32, #tpu.memory_space<smem>>
    %216 = vector.broadcast %215 : f32 to vector<16x16xf32>
    %217 = arith.mulf %21, %216 : vector<16x16xf32>
    %218 = arith.addf %214, %217 : vector<16x16xf32>
    %c38 = arith.constant 38 : index
    %219 = memref.load %arg2[%c38] : memref<216xf32, #tpu.memory_space<smem>>
    %220 = vector.broadcast %219 : f32 to vector<16x16xf32>
    %221 = arith.mulf %23, %220 : vector<16x16xf32>
    %222 = arith.addf %218, %221 : vector<16x16xf32>
    %c39 = arith.constant 39 : index
    %223 = memref.load %arg2[%c39] : memref<216xf32, #tpu.memory_space<smem>>
    %224 = vector.broadcast %223 : f32 to vector<16x16xf32>
    %225 = arith.mulf %25, %224 : vector<16x16xf32>
    %226 = arith.addf %222, %225 : vector<16x16xf32>
    %c40 = arith.constant 40 : index
    %227 = memref.load %arg2[%c40] : memref<216xf32, #tpu.memory_space<smem>>
    %228 = vector.broadcast %227 : f32 to vector<16x16xf32>
    %229 = arith.mulf %27, %228 : vector<16x16xf32>
    %230 = arith.addf %226, %229 : vector<16x16xf32>
    %c41 = arith.constant 41 : index
    %231 = memref.load %arg2[%c41] : memref<216xf32, #tpu.memory_space<smem>>
    %232 = vector.broadcast %231 : f32 to vector<16x16xf32>
    %233 = arith.mulf %29, %232 : vector<16x16xf32>
    %234 = arith.addf %230, %233 : vector<16x16xf32>
    %c42 = arith.constant 42 : index
    %235 = memref.load %arg2[%c42] : memref<216xf32, #tpu.memory_space<smem>>
    %236 = vector.broadcast %235 : f32 to vector<16x16xf32>
    %237 = arith.mulf %31, %236 : vector<16x16xf32>
    %238 = arith.addf %234, %237 : vector<16x16xf32>
    %c43 = arith.constant 43 : index
    %239 = memref.load %arg2[%c43] : memref<216xf32, #tpu.memory_space<smem>>
    %240 = vector.broadcast %239 : f32 to vector<16x16xf32>
    %241 = arith.mulf %33, %240 : vector<16x16xf32>
    %242 = arith.addf %238, %241 : vector<16x16xf32>
    %c44 = arith.constant 44 : index
    %243 = memref.load %arg2[%c44] : memref<216xf32, #tpu.memory_space<smem>>
    %244 = vector.broadcast %243 : f32 to vector<16x16xf32>
    %245 = arith.mulf %35, %244 : vector<16x16xf32>
    %246 = arith.addf %242, %245 : vector<16x16xf32>
    %c45 = arith.constant 45 : index
    %247 = memref.load %arg2[%c45] : memref<216xf32, #tpu.memory_space<smem>>
    %248 = vector.broadcast %247 : f32 to vector<16x16xf32>
    %249 = arith.mulf %37, %248 : vector<16x16xf32>
    %250 = arith.addf %246, %249 : vector<16x16xf32>
    %c46 = arith.constant 46 : index
    %251 = memref.load %arg2[%c46] : memref<216xf32, #tpu.memory_space<smem>>
    %252 = vector.broadcast %251 : f32 to vector<16x16xf32>
    %253 = arith.mulf %39, %252 : vector<16x16xf32>
    %254 = arith.addf %250, %253 : vector<16x16xf32>
    %c47 = arith.constant 47 : index
    %255 = memref.load %arg2[%c47] : memref<216xf32, #tpu.memory_space<smem>>
    %256 = vector.broadcast %255 : f32 to vector<16x16xf32>
    %257 = arith.mulf %41, %256 : vector<16x16xf32>
    %258 = arith.addf %254, %257 : vector<16x16xf32>
    %c48 = arith.constant 48 : index
    %259 = memref.load %arg2[%c48] : memref<216xf32, #tpu.memory_space<smem>>
    %260 = vector.broadcast %259 : f32 to vector<16x16xf32>
    %261 = arith.mulf %43, %260 : vector<16x16xf32>
    %262 = arith.addf %258, %261 : vector<16x16xf32>
    %c49 = arith.constant 49 : index
    %263 = memref.load %arg2[%c49] : memref<216xf32, #tpu.memory_space<smem>>
    %264 = vector.broadcast %263 : f32 to vector<16x16xf32>
    %265 = arith.mulf %45, %264 : vector<16x16xf32>
    %266 = arith.addf %262, %265 : vector<16x16xf32>
    %c50 = arith.constant 50 : index
    %267 = memref.load %arg2[%c50] : memref<216xf32, #tpu.memory_space<smem>>
    %268 = vector.broadcast %267 : f32 to vector<16x16xf32>
    %269 = arith.mulf %47, %268 : vector<16x16xf32>
    %270 = arith.addf %266, %269 : vector<16x16xf32>
    %c51 = arith.constant 51 : index
    %271 = memref.load %arg2[%c51] : memref<216xf32, #tpu.memory_space<smem>>
    %272 = vector.broadcast %271 : f32 to vector<16x16xf32>
    %273 = arith.mulf %49, %272 : vector<16x16xf32>
    %274 = arith.addf %270, %273 : vector<16x16xf32>
    %c52 = arith.constant 52 : index
    %275 = memref.load %arg2[%c52] : memref<216xf32, #tpu.memory_space<smem>>
    %276 = vector.broadcast %275 : f32 to vector<16x16xf32>
    %277 = arith.mulf %51, %276 : vector<16x16xf32>
    %278 = arith.addf %274, %277 : vector<16x16xf32>
    %c53 = arith.constant 53 : index
    %279 = memref.load %arg2[%c53] : memref<216xf32, #tpu.memory_space<smem>>
    %280 = vector.broadcast %279 : f32 to vector<16x16xf32>
    %281 = arith.mulf %53, %280 : vector<16x16xf32>
    %282 = arith.addf %278, %281 : vector<16x16xf32>
    %c1_115 = arith.constant 1 : index
    %283 = memref.load %arg3[%c1_115] : memref<8xf32, #tpu.memory_space<smem>>
    %284 = vector.broadcast %283 : f32 to vector<16x16xf32>
    %285 = arith.addf %282, %284 : vector<16x16xf32>
    %cst_116 = arith.constant 0.000000e+00 : f32
    %286 = vector.broadcast %cst_116 : f32 to vector<16x16xf32>
    %287 = arith.maximumf %285, %286 : vector<16x16xf32>
    %288 = vector.shape_cast %287 : vector<16x16xf32> to vector<1x16x16xf32>
    %cst_117 = arith.constant dense<0.000000e+00> : vector<1xf32>
    %289 = vector.multi_reduction <add>, %288, %cst_117 [1, 2] : vector<1x16x16xf32> to vector<1xf32>
    %290 = vector.shape_cast %289 : vector<1xf32> to vector<1x1x1xf32>
    %291 = vector.extract %290[0, 0, 0] : f32 from vector<1x1x1xf32>
    %cst_118 = arith.constant 3.906250e-03 : f32
    %292 = arith.mulf %291, %cst_118 : f32
    %c1_119 = arith.constant 1 : index
    %c0_120 = arith.constant 0 : index
    %293 = vector.load %arg4[%c1_119, %c0_120] : memref<8x10xf32, #tpu.memory_space<vmem>>, vector<1x10xf32>
    %294 = vector.broadcast %292 : f32 to vector<1x10xf32>
    %295 = arith.mulf %294, %293 : vector<1x10xf32>
    %296 = arith.addf %175, %295 : vector<1x10xf32>
    %c54 = arith.constant 54 : index
    %297 = memref.load %arg2[%c54] : memref<216xf32, #tpu.memory_space<smem>>
    %298 = vector.broadcast %297 : f32 to vector<16x16xf32>
    %299 = arith.mulf %1, %298 : vector<16x16xf32>
    %c55 = arith.constant 55 : index
    %300 = memref.load %arg2[%c55] : memref<216xf32, #tpu.memory_space<smem>>
    %301 = vector.broadcast %300 : f32 to vector<16x16xf32>
    %302 = arith.mulf %3, %301 : vector<16x16xf32>
    %303 = arith.addf %299, %302 : vector<16x16xf32>
    %c56 = arith.constant 56 : index
    %304 = memref.load %arg2[%c56] : memref<216xf32, #tpu.memory_space<smem>>
    %305 = vector.broadcast %304 : f32 to vector<16x16xf32>
    %306 = arith.mulf %5, %305 : vector<16x16xf32>
    %307 = arith.addf %303, %306 : vector<16x16xf32>
    %c57 = arith.constant 57 : index
    %308 = memref.load %arg2[%c57] : memref<216xf32, #tpu.memory_space<smem>>
    %309 = vector.broadcast %308 : f32 to vector<16x16xf32>
    %310 = arith.mulf %7, %309 : vector<16x16xf32>
    %311 = arith.addf %307, %310 : vector<16x16xf32>
    %c58 = arith.constant 58 : index
    %312 = memref.load %arg2[%c58] : memref<216xf32, #tpu.memory_space<smem>>
    %313 = vector.broadcast %312 : f32 to vector<16x16xf32>
    %314 = arith.mulf %9, %313 : vector<16x16xf32>
    %315 = arith.addf %311, %314 : vector<16x16xf32>
    %c59 = arith.constant 59 : index
    %316 = memref.load %arg2[%c59] : memref<216xf32, #tpu.memory_space<smem>>
    %317 = vector.broadcast %316 : f32 to vector<16x16xf32>
    %318 = arith.mulf %11, %317 : vector<16x16xf32>
    %319 = arith.addf %315, %318 : vector<16x16xf32>
    %c60 = arith.constant 60 : index
    %320 = memref.load %arg2[%c60] : memref<216xf32, #tpu.memory_space<smem>>
    %321 = vector.broadcast %320 : f32 to vector<16x16xf32>
    %322 = arith.mulf %13, %321 : vector<16x16xf32>
    %323 = arith.addf %319, %322 : vector<16x16xf32>
    %c61 = arith.constant 61 : index
    %324 = memref.load %arg2[%c61] : memref<216xf32, #tpu.memory_space<smem>>
    %325 = vector.broadcast %324 : f32 to vector<16x16xf32>
    %326 = arith.mulf %15, %325 : vector<16x16xf32>
    %327 = arith.addf %323, %326 : vector<16x16xf32>
    %c62 = arith.constant 62 : index
    %328 = memref.load %arg2[%c62] : memref<216xf32, #tpu.memory_space<smem>>
    %329 = vector.broadcast %328 : f32 to vector<16x16xf32>
    %330 = arith.mulf %17, %329 : vector<16x16xf32>
    %331 = arith.addf %327, %330 : vector<16x16xf32>
    %c63 = arith.constant 63 : index
    %332 = memref.load %arg2[%c63] : memref<216xf32, #tpu.memory_space<smem>>
    %333 = vector.broadcast %332 : f32 to vector<16x16xf32>
    %334 = arith.mulf %19, %333 : vector<16x16xf32>
    %335 = arith.addf %331, %334 : vector<16x16xf32>
    %c64 = arith.constant 64 : index
    %336 = memref.load %arg2[%c64] : memref<216xf32, #tpu.memory_space<smem>>
    %337 = vector.broadcast %336 : f32 to vector<16x16xf32>
    %338 = arith.mulf %21, %337 : vector<16x16xf32>
    %339 = arith.addf %335, %338 : vector<16x16xf32>
    %c65 = arith.constant 65 : index
    %340 = memref.load %arg2[%c65] : memref<216xf32, #tpu.memory_space<smem>>
    %341 = vector.broadcast %340 : f32 to vector<16x16xf32>
    %342 = arith.mulf %23, %341 : vector<16x16xf32>
    %343 = arith.addf %339, %342 : vector<16x16xf32>
    %c66 = arith.constant 66 : index
    %344 = memref.load %arg2[%c66] : memref<216xf32, #tpu.memory_space<smem>>
    %345 = vector.broadcast %344 : f32 to vector<16x16xf32>
    %346 = arith.mulf %25, %345 : vector<16x16xf32>
    %347 = arith.addf %343, %346 : vector<16x16xf32>
    %c67 = arith.constant 67 : index
    %348 = memref.load %arg2[%c67] : memref<216xf32, #tpu.memory_space<smem>>
    %349 = vector.broadcast %348 : f32 to vector<16x16xf32>
    %350 = arith.mulf %27, %349 : vector<16x16xf32>
    %351 = arith.addf %347, %350 : vector<16x16xf32>
    %c68 = arith.constant 68 : index
    %352 = memref.load %arg2[%c68] : memref<216xf32, #tpu.memory_space<smem>>
    %353 = vector.broadcast %352 : f32 to vector<16x16xf32>
    %354 = arith.mulf %29, %353 : vector<16x16xf32>
    %355 = arith.addf %351, %354 : vector<16x16xf32>
    %c69 = arith.constant 69 : index
    %356 = memref.load %arg2[%c69] : memref<216xf32, #tpu.memory_space<smem>>
    %357 = vector.broadcast %356 : f32 to vector<16x16xf32>
    %358 = arith.mulf %31, %357 : vector<16x16xf32>
    %359 = arith.addf %355, %358 : vector<16x16xf32>
    %c70 = arith.constant 70 : index
    %360 = memref.load %arg2[%c70] : memref<216xf32, #tpu.memory_space<smem>>
    %361 = vector.broadcast %360 : f32 to vector<16x16xf32>
    %362 = arith.mulf %33, %361 : vector<16x16xf32>
    %363 = arith.addf %359, %362 : vector<16x16xf32>
    %c71 = arith.constant 71 : index
    %364 = memref.load %arg2[%c71] : memref<216xf32, #tpu.memory_space<smem>>
    %365 = vector.broadcast %364 : f32 to vector<16x16xf32>
    %366 = arith.mulf %35, %365 : vector<16x16xf32>
    %367 = arith.addf %363, %366 : vector<16x16xf32>
    %c72 = arith.constant 72 : index
    %368 = memref.load %arg2[%c72] : memref<216xf32, #tpu.memory_space<smem>>
    %369 = vector.broadcast %368 : f32 to vector<16x16xf32>
    %370 = arith.mulf %37, %369 : vector<16x16xf32>
    %371 = arith.addf %367, %370 : vector<16x16xf32>
    %c73 = arith.constant 73 : index
    %372 = memref.load %arg2[%c73] : memref<216xf32, #tpu.memory_space<smem>>
    %373 = vector.broadcast %372 : f32 to vector<16x16xf32>
    %374 = arith.mulf %39, %373 : vector<16x16xf32>
    %375 = arith.addf %371, %374 : vector<16x16xf32>
    %c74 = arith.constant 74 : index
    %376 = memref.load %arg2[%c74] : memref<216xf32, #tpu.memory_space<smem>>
    %377 = vector.broadcast %376 : f32 to vector<16x16xf32>
    %378 = arith.mulf %41, %377 : vector<16x16xf32>
    %379 = arith.addf %375, %378 : vector<16x16xf32>
    %c75 = arith.constant 75 : index
    %380 = memref.load %arg2[%c75] : memref<216xf32, #tpu.memory_space<smem>>
    %381 = vector.broadcast %380 : f32 to vector<16x16xf32>
    %382 = arith.mulf %43, %381 : vector<16x16xf32>
    %383 = arith.addf %379, %382 : vector<16x16xf32>
    %c76 = arith.constant 76 : index
    %384 = memref.load %arg2[%c76] : memref<216xf32, #tpu.memory_space<smem>>
    %385 = vector.broadcast %384 : f32 to vector<16x16xf32>
    %386 = arith.mulf %45, %385 : vector<16x16xf32>
    %387 = arith.addf %383, %386 : vector<16x16xf32>
    %c77 = arith.constant 77 : index
    %388 = memref.load %arg2[%c77] : memref<216xf32, #tpu.memory_space<smem>>
    %389 = vector.broadcast %388 : f32 to vector<16x16xf32>
    %390 = arith.mulf %47, %389 : vector<16x16xf32>
    %391 = arith.addf %387, %390 : vector<16x16xf32>
    %c78 = arith.constant 78 : index
    %392 = memref.load %arg2[%c78] : memref<216xf32, #tpu.memory_space<smem>>
    %393 = vector.broadcast %392 : f32 to vector<16x16xf32>
    %394 = arith.mulf %49, %393 : vector<16x16xf32>
    %395 = arith.addf %391, %394 : vector<16x16xf32>
    %c79 = arith.constant 79 : index
    %396 = memref.load %arg2[%c79] : memref<216xf32, #tpu.memory_space<smem>>
    %397 = vector.broadcast %396 : f32 to vector<16x16xf32>
    %398 = arith.mulf %51, %397 : vector<16x16xf32>
    %399 = arith.addf %395, %398 : vector<16x16xf32>
    %c80 = arith.constant 80 : index
    %400 = memref.load %arg2[%c80] : memref<216xf32, #tpu.memory_space<smem>>
    %401 = vector.broadcast %400 : f32 to vector<16x16xf32>
    %402 = arith.mulf %53, %401 : vector<16x16xf32>
    %403 = arith.addf %399, %402 : vector<16x16xf32>
    %c2_121 = arith.constant 2 : index
    %404 = memref.load %arg3[%c2_121] : memref<8xf32, #tpu.memory_space<smem>>
    %405 = vector.broadcast %404 : f32 to vector<16x16xf32>
    %406 = arith.addf %403, %405 : vector<16x16xf32>
    %cst_122 = arith.constant 0.000000e+00 : f32
    %407 = vector.broadcast %cst_122 : f32 to vector<16x16xf32>
    %408 = arith.maximumf %406, %407 : vector<16x16xf32>
    %409 = vector.shape_cast %408 : vector<16x16xf32> to vector<1x16x16xf32>
    %cst_123 = arith.constant dense<0.000000e+00> : vector<1xf32>
    %410 = vector.multi_reduction <add>, %409, %cst_123 [1, 2] : vector<1x16x16xf32> to vector<1xf32>
    %411 = vector.shape_cast %410 : vector<1xf32> to vector<1x1x1xf32>
    %412 = vector.extract %411[0, 0, 0] : f32 from vector<1x1x1xf32>
    %cst_124 = arith.constant 3.906250e-03 : f32
    %413 = arith.mulf %412, %cst_124 : f32
    %c2_125 = arith.constant 2 : index
    %c0_126 = arith.constant 0 : index
    %414 = vector.load %arg4[%c2_125, %c0_126] : memref<8x10xf32, #tpu.memory_space<vmem>>, vector<1x10xf32>
    %415 = vector.broadcast %413 : f32 to vector<1x10xf32>
    %416 = arith.mulf %415, %414 : vector<1x10xf32>
    %417 = arith.addf %296, %416 : vector<1x10xf32>
    %c81 = arith.constant 81 : index
    %418 = memref.load %arg2[%c81] : memref<216xf32, #tpu.memory_space<smem>>
    %419 = vector.broadcast %418 : f32 to vector<16x16xf32>
    %420 = arith.mulf %1, %419 : vector<16x16xf32>
    %c82 = arith.constant 82 : index
    %421 = memref.load %arg2[%c82] : memref<216xf32, #tpu.memory_space<smem>>
    %422 = vector.broadcast %421 : f32 to vector<16x16xf32>
    %423 = arith.mulf %3, %422 : vector<16x16xf32>
    %424 = arith.addf %420, %423 : vector<16x16xf32>
    %c83 = arith.constant 83 : index
    %425 = memref.load %arg2[%c83] : memref<216xf32, #tpu.memory_space<smem>>
    %426 = vector.broadcast %425 : f32 to vector<16x16xf32>
    %427 = arith.mulf %5, %426 : vector<16x16xf32>
    %428 = arith.addf %424, %427 : vector<16x16xf32>
    %c84 = arith.constant 84 : index
    %429 = memref.load %arg2[%c84] : memref<216xf32, #tpu.memory_space<smem>>
    %430 = vector.broadcast %429 : f32 to vector<16x16xf32>
    %431 = arith.mulf %7, %430 : vector<16x16xf32>
    %432 = arith.addf %428, %431 : vector<16x16xf32>
    %c85 = arith.constant 85 : index
    %433 = memref.load %arg2[%c85] : memref<216xf32, #tpu.memory_space<smem>>
    %434 = vector.broadcast %433 : f32 to vector<16x16xf32>
    %435 = arith.mulf %9, %434 : vector<16x16xf32>
    %436 = arith.addf %432, %435 : vector<16x16xf32>
    %c86 = arith.constant 86 : index
    %437 = memref.load %arg2[%c86] : memref<216xf32, #tpu.memory_space<smem>>
    %438 = vector.broadcast %437 : f32 to vector<16x16xf32>
    %439 = arith.mulf %11, %438 : vector<16x16xf32>
    %440 = arith.addf %436, %439 : vector<16x16xf32>
    %c87 = arith.constant 87 : index
    %441 = memref.load %arg2[%c87] : memref<216xf32, #tpu.memory_space<smem>>
    %442 = vector.broadcast %441 : f32 to vector<16x16xf32>
    %443 = arith.mulf %13, %442 : vector<16x16xf32>
    %444 = arith.addf %440, %443 : vector<16x16xf32>
    %c88 = arith.constant 88 : index
    %445 = memref.load %arg2[%c88] : memref<216xf32, #tpu.memory_space<smem>>
    %446 = vector.broadcast %445 : f32 to vector<16x16xf32>
    %447 = arith.mulf %15, %446 : vector<16x16xf32>
    %448 = arith.addf %444, %447 : vector<16x16xf32>
    %c89 = arith.constant 89 : index
    %449 = memref.load %arg2[%c89] : memref<216xf32, #tpu.memory_space<smem>>
    %450 = vector.broadcast %449 : f32 to vector<16x16xf32>
    %451 = arith.mulf %17, %450 : vector<16x16xf32>
    %452 = arith.addf %448, %451 : vector<16x16xf32>
    %c90 = arith.constant 90 : index
    %453 = memref.load %arg2[%c90] : memref<216xf32, #tpu.memory_space<smem>>
    %454 = vector.broadcast %453 : f32 to vector<16x16xf32>
    %455 = arith.mulf %19, %454 : vector<16x16xf32>
    %456 = arith.addf %452, %455 : vector<16x16xf32>
    %c91 = arith.constant 91 : index
    %457 = memref.load %arg2[%c91] : memref<216xf32, #tpu.memory_space<smem>>
    %458 = vector.broadcast %457 : f32 to vector<16x16xf32>
    %459 = arith.mulf %21, %458 : vector<16x16xf32>
    %460 = arith.addf %456, %459 : vector<16x16xf32>
    %c92 = arith.constant 92 : index
    %461 = memref.load %arg2[%c92] : memref<216xf32, #tpu.memory_space<smem>>
    %462 = vector.broadcast %461 : f32 to vector<16x16xf32>
    %463 = arith.mulf %23, %462 : vector<16x16xf32>
    %464 = arith.addf %460, %463 : vector<16x16xf32>
    %c93 = arith.constant 93 : index
    %465 = memref.load %arg2[%c93] : memref<216xf32, #tpu.memory_space<smem>>
    %466 = vector.broadcast %465 : f32 to vector<16x16xf32>
    %467 = arith.mulf %25, %466 : vector<16x16xf32>
    %468 = arith.addf %464, %467 : vector<16x16xf32>
    %c94 = arith.constant 94 : index
    %469 = memref.load %arg2[%c94] : memref<216xf32, #tpu.memory_space<smem>>
    %470 = vector.broadcast %469 : f32 to vector<16x16xf32>
    %471 = arith.mulf %27, %470 : vector<16x16xf32>
    %472 = arith.addf %468, %471 : vector<16x16xf32>
    %c95 = arith.constant 95 : index
    %473 = memref.load %arg2[%c95] : memref<216xf32, #tpu.memory_space<smem>>
    %474 = vector.broadcast %473 : f32 to vector<16x16xf32>
    %475 = arith.mulf %29, %474 : vector<16x16xf32>
    %476 = arith.addf %472, %475 : vector<16x16xf32>
    %c96 = arith.constant 96 : index
    %477 = memref.load %arg2[%c96] : memref<216xf32, #tpu.memory_space<smem>>
    %478 = vector.broadcast %477 : f32 to vector<16x16xf32>
    %479 = arith.mulf %31, %478 : vector<16x16xf32>
    %480 = arith.addf %476, %479 : vector<16x16xf32>
    %c97 = arith.constant 97 : index
    %481 = memref.load %arg2[%c97] : memref<216xf32, #tpu.memory_space<smem>>
    %482 = vector.broadcast %481 : f32 to vector<16x16xf32>
    %483 = arith.mulf %33, %482 : vector<16x16xf32>
    %484 = arith.addf %480, %483 : vector<16x16xf32>
    %c98 = arith.constant 98 : index
    %485 = memref.load %arg2[%c98] : memref<216xf32, #tpu.memory_space<smem>>
    %486 = vector.broadcast %485 : f32 to vector<16x16xf32>
    %487 = arith.mulf %35, %486 : vector<16x16xf32>
    %488 = arith.addf %484, %487 : vector<16x16xf32>
    %c99 = arith.constant 99 : index
    %489 = memref.load %arg2[%c99] : memref<216xf32, #tpu.memory_space<smem>>
    %490 = vector.broadcast %489 : f32 to vector<16x16xf32>
    %491 = arith.mulf %37, %490 : vector<16x16xf32>
    %492 = arith.addf %488, %491 : vector<16x16xf32>
    %c100 = arith.constant 100 : index
    %493 = memref.load %arg2[%c100] : memref<216xf32, #tpu.memory_space<smem>>
    %494 = vector.broadcast %493 : f32 to vector<16x16xf32>
    %495 = arith.mulf %39, %494 : vector<16x16xf32>
    %496 = arith.addf %492, %495 : vector<16x16xf32>
    %c101 = arith.constant 101 : index
    %497 = memref.load %arg2[%c101] : memref<216xf32, #tpu.memory_space<smem>>
    %498 = vector.broadcast %497 : f32 to vector<16x16xf32>
    %499 = arith.mulf %41, %498 : vector<16x16xf32>
    %500 = arith.addf %496, %499 : vector<16x16xf32>
    %c102 = arith.constant 102 : index
    %501 = memref.load %arg2[%c102] : memref<216xf32, #tpu.memory_space<smem>>
    %502 = vector.broadcast %501 : f32 to vector<16x16xf32>
    %503 = arith.mulf %43, %502 : vector<16x16xf32>
    %504 = arith.addf %500, %503 : vector<16x16xf32>
    %c103 = arith.constant 103 : index
    %505 = memref.load %arg2[%c103] : memref<216xf32, #tpu.memory_space<smem>>
    %506 = vector.broadcast %505 : f32 to vector<16x16xf32>
    %507 = arith.mulf %45, %506 : vector<16x16xf32>
    %508 = arith.addf %504, %507 : vector<16x16xf32>
    %c104 = arith.constant 104 : index
    %509 = memref.load %arg2[%c104] : memref<216xf32, #tpu.memory_space<smem>>
    %510 = vector.broadcast %509 : f32 to vector<16x16xf32>
    %511 = arith.mulf %47, %510 : vector<16x16xf32>
    %512 = arith.addf %508, %511 : vector<16x16xf32>
    %c105 = arith.constant 105 : index
    %513 = memref.load %arg2[%c105] : memref<216xf32, #tpu.memory_space<smem>>
    %514 = vector.broadcast %513 : f32 to vector<16x16xf32>
    %515 = arith.mulf %49, %514 : vector<16x16xf32>
    %516 = arith.addf %512, %515 : vector<16x16xf32>
    %c106 = arith.constant 106 : index
    %517 = memref.load %arg2[%c106] : memref<216xf32, #tpu.memory_space<smem>>
    %518 = vector.broadcast %517 : f32 to vector<16x16xf32>
    %519 = arith.mulf %51, %518 : vector<16x16xf32>
    %520 = arith.addf %516, %519 : vector<16x16xf32>
    %c107 = arith.constant 107 : index
    %521 = memref.load %arg2[%c107] : memref<216xf32, #tpu.memory_space<smem>>
    %522 = vector.broadcast %521 : f32 to vector<16x16xf32>
    %523 = arith.mulf %53, %522 : vector<16x16xf32>
    %524 = arith.addf %520, %523 : vector<16x16xf32>
    %c3_127 = arith.constant 3 : index
    %525 = memref.load %arg3[%c3_127] : memref<8xf32, #tpu.memory_space<smem>>
    %526 = vector.broadcast %525 : f32 to vector<16x16xf32>
    %527 = arith.addf %524, %526 : vector<16x16xf32>
    %cst_128 = arith.constant 0.000000e+00 : f32
    %528 = vector.broadcast %cst_128 : f32 to vector<16x16xf32>
    %529 = arith.maximumf %527, %528 : vector<16x16xf32>
    %530 = vector.shape_cast %529 : vector<16x16xf32> to vector<1x16x16xf32>
    %cst_129 = arith.constant dense<0.000000e+00> : vector<1xf32>
    %531 = vector.multi_reduction <add>, %530, %cst_129 [1, 2] : vector<1x16x16xf32> to vector<1xf32>
    %532 = vector.shape_cast %531 : vector<1xf32> to vector<1x1x1xf32>
    %533 = vector.extract %532[0, 0, 0] : f32 from vector<1x1x1xf32>
    %cst_130 = arith.constant 3.906250e-03 : f32
    %534 = arith.mulf %533, %cst_130 : f32
    %c3_131 = arith.constant 3 : index
    %c0_132 = arith.constant 0 : index
    %535 = vector.load %arg4[%c3_131, %c0_132] : memref<8x10xf32, #tpu.memory_space<vmem>>, vector<1x10xf32>
    %536 = vector.broadcast %534 : f32 to vector<1x10xf32>
    %537 = arith.mulf %536, %535 : vector<1x10xf32>
    %538 = arith.addf %417, %537 : vector<1x10xf32>
    %c108 = arith.constant 108 : index
    %539 = memref.load %arg2[%c108] : memref<216xf32, #tpu.memory_space<smem>>
    %540 = vector.broadcast %539 : f32 to vector<16x16xf32>
    %541 = arith.mulf %1, %540 : vector<16x16xf32>
    %c109 = arith.constant 109 : index
    %542 = memref.load %arg2[%c109] : memref<216xf32, #tpu.memory_space<smem>>
    %543 = vector.broadcast %542 : f32 to vector<16x16xf32>
    %544 = arith.mulf %3, %543 : vector<16x16xf32>
    %545 = arith.addf %541, %544 : vector<16x16xf32>
    %c110 = arith.constant 110 : index
    %546 = memref.load %arg2[%c110] : memref<216xf32, #tpu.memory_space<smem>>
    %547 = vector.broadcast %546 : f32 to vector<16x16xf32>
    %548 = arith.mulf %5, %547 : vector<16x16xf32>
    %549 = arith.addf %545, %548 : vector<16x16xf32>
    %c111 = arith.constant 111 : index
    %550 = memref.load %arg2[%c111] : memref<216xf32, #tpu.memory_space<smem>>
    %551 = vector.broadcast %550 : f32 to vector<16x16xf32>
    %552 = arith.mulf %7, %551 : vector<16x16xf32>
    %553 = arith.addf %549, %552 : vector<16x16xf32>
    %c112 = arith.constant 112 : index
    %554 = memref.load %arg2[%c112] : memref<216xf32, #tpu.memory_space<smem>>
    %555 = vector.broadcast %554 : f32 to vector<16x16xf32>
    %556 = arith.mulf %9, %555 : vector<16x16xf32>
    %557 = arith.addf %553, %556 : vector<16x16xf32>
    %c113 = arith.constant 113 : index
    %558 = memref.load %arg2[%c113] : memref<216xf32, #tpu.memory_space<smem>>
    %559 = vector.broadcast %558 : f32 to vector<16x16xf32>
    %560 = arith.mulf %11, %559 : vector<16x16xf32>
    %561 = arith.addf %557, %560 : vector<16x16xf32>
    %c114 = arith.constant 114 : index
    %562 = memref.load %arg2[%c114] : memref<216xf32, #tpu.memory_space<smem>>
    %563 = vector.broadcast %562 : f32 to vector<16x16xf32>
    %564 = arith.mulf %13, %563 : vector<16x16xf32>
    %565 = arith.addf %561, %564 : vector<16x16xf32>
    %c115 = arith.constant 115 : index
    %566 = memref.load %arg2[%c115] : memref<216xf32, #tpu.memory_space<smem>>
    %567 = vector.broadcast %566 : f32 to vector<16x16xf32>
    %568 = arith.mulf %15, %567 : vector<16x16xf32>
    %569 = arith.addf %565, %568 : vector<16x16xf32>
    %c116 = arith.constant 116 : index
    %570 = memref.load %arg2[%c116] : memref<216xf32, #tpu.memory_space<smem>>
    %571 = vector.broadcast %570 : f32 to vector<16x16xf32>
    %572 = arith.mulf %17, %571 : vector<16x16xf32>
    %573 = arith.addf %569, %572 : vector<16x16xf32>
    %c117 = arith.constant 117 : index
    %574 = memref.load %arg2[%c117] : memref<216xf32, #tpu.memory_space<smem>>
    %575 = vector.broadcast %574 : f32 to vector<16x16xf32>
    %576 = arith.mulf %19, %575 : vector<16x16xf32>
    %577 = arith.addf %573, %576 : vector<16x16xf32>
    %c118 = arith.constant 118 : index
    %578 = memref.load %arg2[%c118] : memref<216xf32, #tpu.memory_space<smem>>
    %579 = vector.broadcast %578 : f32 to vector<16x16xf32>
    %580 = arith.mulf %21, %579 : vector<16x16xf32>
    %581 = arith.addf %577, %580 : vector<16x16xf32>
    %c119 = arith.constant 119 : index
    %582 = memref.load %arg2[%c119] : memref<216xf32, #tpu.memory_space<smem>>
    %583 = vector.broadcast %582 : f32 to vector<16x16xf32>
    %584 = arith.mulf %23, %583 : vector<16x16xf32>
    %585 = arith.addf %581, %584 : vector<16x16xf32>
    %c120 = arith.constant 120 : index
    %586 = memref.load %arg2[%c120] : memref<216xf32, #tpu.memory_space<smem>>
    %587 = vector.broadcast %586 : f32 to vector<16x16xf32>
    %588 = arith.mulf %25, %587 : vector<16x16xf32>
    %589 = arith.addf %585, %588 : vector<16x16xf32>
    %c121 = arith.constant 121 : index
    %590 = memref.load %arg2[%c121] : memref<216xf32, #tpu.memory_space<smem>>
    %591 = vector.broadcast %590 : f32 to vector<16x16xf32>
    %592 = arith.mulf %27, %591 : vector<16x16xf32>
    %593 = arith.addf %589, %592 : vector<16x16xf32>
    %c122 = arith.constant 122 : index
    %594 = memref.load %arg2[%c122] : memref<216xf32, #tpu.memory_space<smem>>
    %595 = vector.broadcast %594 : f32 to vector<16x16xf32>
    %596 = arith.mulf %29, %595 : vector<16x16xf32>
    %597 = arith.addf %593, %596 : vector<16x16xf32>
    %c123 = arith.constant 123 : index
    %598 = memref.load %arg2[%c123] : memref<216xf32, #tpu.memory_space<smem>>
    %599 = vector.broadcast %598 : f32 to vector<16x16xf32>
    %600 = arith.mulf %31, %599 : vector<16x16xf32>
    %601 = arith.addf %597, %600 : vector<16x16xf32>
    %c124 = arith.constant 124 : index
    %602 = memref.load %arg2[%c124] : memref<216xf32, #tpu.memory_space<smem>>
    %603 = vector.broadcast %602 : f32 to vector<16x16xf32>
    %604 = arith.mulf %33, %603 : vector<16x16xf32>
    %605 = arith.addf %601, %604 : vector<16x16xf32>
    %c125 = arith.constant 125 : index
    %606 = memref.load %arg2[%c125] : memref<216xf32, #tpu.memory_space<smem>>
    %607 = vector.broadcast %606 : f32 to vector<16x16xf32>
    %608 = arith.mulf %35, %607 : vector<16x16xf32>
    %609 = arith.addf %605, %608 : vector<16x16xf32>
    %c126 = arith.constant 126 : index
    %610 = memref.load %arg2[%c126] : memref<216xf32, #tpu.memory_space<smem>>
    %611 = vector.broadcast %610 : f32 to vector<16x16xf32>
    %612 = arith.mulf %37, %611 : vector<16x16xf32>
    %613 = arith.addf %609, %612 : vector<16x16xf32>
    %c127 = arith.constant 127 : index
    %614 = memref.load %arg2[%c127] : memref<216xf32, #tpu.memory_space<smem>>
    %615 = vector.broadcast %614 : f32 to vector<16x16xf32>
    %616 = arith.mulf %39, %615 : vector<16x16xf32>
    %617 = arith.addf %613, %616 : vector<16x16xf32>
    %c128 = arith.constant 128 : index
    %618 = memref.load %arg2[%c128] : memref<216xf32, #tpu.memory_space<smem>>
    %619 = vector.broadcast %618 : f32 to vector<16x16xf32>
    %620 = arith.mulf %41, %619 : vector<16x16xf32>
    %621 = arith.addf %617, %620 : vector<16x16xf32>
    %c129 = arith.constant 129 : index
    %622 = memref.load %arg2[%c129] : memref<216xf32, #tpu.memory_space<smem>>
    %623 = vector.broadcast %622 : f32 to vector<16x16xf32>
    %624 = arith.mulf %43, %623 : vector<16x16xf32>
    %625 = arith.addf %621, %624 : vector<16x16xf32>
    %c130 = arith.constant 130 : index
    %626 = memref.load %arg2[%c130] : memref<216xf32, #tpu.memory_space<smem>>
    %627 = vector.broadcast %626 : f32 to vector<16x16xf32>
    %628 = arith.mulf %45, %627 : vector<16x16xf32>
    %629 = arith.addf %625, %628 : vector<16x16xf32>
    %c131 = arith.constant 131 : index
    %630 = memref.load %arg2[%c131] : memref<216xf32, #tpu.memory_space<smem>>
    %631 = vector.broadcast %630 : f32 to vector<16x16xf32>
    %632 = arith.mulf %47, %631 : vector<16x16xf32>
    %633 = arith.addf %629, %632 : vector<16x16xf32>
    %c132 = arith.constant 132 : index
    %634 = memref.load %arg2[%c132] : memref<216xf32, #tpu.memory_space<smem>>
    %635 = vector.broadcast %634 : f32 to vector<16x16xf32>
    %636 = arith.mulf %49, %635 : vector<16x16xf32>
    %637 = arith.addf %633, %636 : vector<16x16xf32>
    %c133 = arith.constant 133 : index
    %638 = memref.load %arg2[%c133] : memref<216xf32, #tpu.memory_space<smem>>
    %639 = vector.broadcast %638 : f32 to vector<16x16xf32>
    %640 = arith.mulf %51, %639 : vector<16x16xf32>
    %641 = arith.addf %637, %640 : vector<16x16xf32>
    %c134 = arith.constant 134 : index
    %642 = memref.load %arg2[%c134] : memref<216xf32, #tpu.memory_space<smem>>
    %643 = vector.broadcast %642 : f32 to vector<16x16xf32>
    %644 = arith.mulf %53, %643 : vector<16x16xf32>
    %645 = arith.addf %641, %644 : vector<16x16xf32>
    %c4_133 = arith.constant 4 : index
    %646 = memref.load %arg3[%c4_133] : memref<8xf32, #tpu.memory_space<smem>>
    %647 = vector.broadcast %646 : f32 to vector<16x16xf32>
    %648 = arith.addf %645, %647 : vector<16x16xf32>
    %cst_134 = arith.constant 0.000000e+00 : f32
    %649 = vector.broadcast %cst_134 : f32 to vector<16x16xf32>
    %650 = arith.maximumf %648, %649 : vector<16x16xf32>
    %651 = vector.shape_cast %650 : vector<16x16xf32> to vector<1x16x16xf32>
    %cst_135 = arith.constant dense<0.000000e+00> : vector<1xf32>
    %652 = vector.multi_reduction <add>, %651, %cst_135 [1, 2] : vector<1x16x16xf32> to vector<1xf32>
    %653 = vector.shape_cast %652 : vector<1xf32> to vector<1x1x1xf32>
    %654 = vector.extract %653[0, 0, 0] : f32 from vector<1x1x1xf32>
    %cst_136 = arith.constant 3.906250e-03 : f32
    %655 = arith.mulf %654, %cst_136 : f32
    %c4_137 = arith.constant 4 : index
    %c0_138 = arith.constant 0 : index
    %656 = vector.load %arg4[%c4_137, %c0_138] : memref<8x10xf32, #tpu.memory_space<vmem>>, vector<1x10xf32>
    %657 = vector.broadcast %655 : f32 to vector<1x10xf32>
    %658 = arith.mulf %657, %656 : vector<1x10xf32>
    %659 = arith.addf %538, %658 : vector<1x10xf32>
    %c135 = arith.constant 135 : index
    %660 = memref.load %arg2[%c135] : memref<216xf32, #tpu.memory_space<smem>>
    %661 = vector.broadcast %660 : f32 to vector<16x16xf32>
    %662 = arith.mulf %1, %661 : vector<16x16xf32>
    %c136 = arith.constant 136 : index
    %663 = memref.load %arg2[%c136] : memref<216xf32, #tpu.memory_space<smem>>
    %664 = vector.broadcast %663 : f32 to vector<16x16xf32>
    %665 = arith.mulf %3, %664 : vector<16x16xf32>
    %666 = arith.addf %662, %665 : vector<16x16xf32>
    %c137 = arith.constant 137 : index
    %667 = memref.load %arg2[%c137] : memref<216xf32, #tpu.memory_space<smem>>
    %668 = vector.broadcast %667 : f32 to vector<16x16xf32>
    %669 = arith.mulf %5, %668 : vector<16x16xf32>
    %670 = arith.addf %666, %669 : vector<16x16xf32>
    %c138 = arith.constant 138 : index
    %671 = memref.load %arg2[%c138] : memref<216xf32, #tpu.memory_space<smem>>
    %672 = vector.broadcast %671 : f32 to vector<16x16xf32>
    %673 = arith.mulf %7, %672 : vector<16x16xf32>
    %674 = arith.addf %670, %673 : vector<16x16xf32>
    %c139 = arith.constant 139 : index
    %675 = memref.load %arg2[%c139] : memref<216xf32, #tpu.memory_space<smem>>
    %676 = vector.broadcast %675 : f32 to vector<16x16xf32>
    %677 = arith.mulf %9, %676 : vector<16x16xf32>
    %678 = arith.addf %674, %677 : vector<16x16xf32>
    %c140 = arith.constant 140 : index
    %679 = memref.load %arg2[%c140] : memref<216xf32, #tpu.memory_space<smem>>
    %680 = vector.broadcast %679 : f32 to vector<16x16xf32>
    %681 = arith.mulf %11, %680 : vector<16x16xf32>
    %682 = arith.addf %678, %681 : vector<16x16xf32>
    %c141 = arith.constant 141 : index
    %683 = memref.load %arg2[%c141] : memref<216xf32, #tpu.memory_space<smem>>
    %684 = vector.broadcast %683 : f32 to vector<16x16xf32>
    %685 = arith.mulf %13, %684 : vector<16x16xf32>
    %686 = arith.addf %682, %685 : vector<16x16xf32>
    %c142 = arith.constant 142 : index
    %687 = memref.load %arg2[%c142] : memref<216xf32, #tpu.memory_space<smem>>
    %688 = vector.broadcast %687 : f32 to vector<16x16xf32>
    %689 = arith.mulf %15, %688 : vector<16x16xf32>
    %690 = arith.addf %686, %689 : vector<16x16xf32>
    %c143 = arith.constant 143 : index
    %691 = memref.load %arg2[%c143] : memref<216xf32, #tpu.memory_space<smem>>
    %692 = vector.broadcast %691 : f32 to vector<16x16xf32>
    %693 = arith.mulf %17, %692 : vector<16x16xf32>
    %694 = arith.addf %690, %693 : vector<16x16xf32>
    %c144 = arith.constant 144 : index
    %695 = memref.load %arg2[%c144] : memref<216xf32, #tpu.memory_space<smem>>
    %696 = vector.broadcast %695 : f32 to vector<16x16xf32>
    %697 = arith.mulf %19, %696 : vector<16x16xf32>
    %698 = arith.addf %694, %697 : vector<16x16xf32>
    %c145 = arith.constant 145 : index
    %699 = memref.load %arg2[%c145] : memref<216xf32, #tpu.memory_space<smem>>
    %700 = vector.broadcast %699 : f32 to vector<16x16xf32>
    %701 = arith.mulf %21, %700 : vector<16x16xf32>
    %702 = arith.addf %698, %701 : vector<16x16xf32>
    %c146 = arith.constant 146 : index
    %703 = memref.load %arg2[%c146] : memref<216xf32, #tpu.memory_space<smem>>
    %704 = vector.broadcast %703 : f32 to vector<16x16xf32>
    %705 = arith.mulf %23, %704 : vector<16x16xf32>
    %706 = arith.addf %702, %705 : vector<16x16xf32>
    %c147 = arith.constant 147 : index
    %707 = memref.load %arg2[%c147] : memref<216xf32, #tpu.memory_space<smem>>
    %708 = vector.broadcast %707 : f32 to vector<16x16xf32>
    %709 = arith.mulf %25, %708 : vector<16x16xf32>
    %710 = arith.addf %706, %709 : vector<16x16xf32>
    %c148 = arith.constant 148 : index
    %711 = memref.load %arg2[%c148] : memref<216xf32, #tpu.memory_space<smem>>
    %712 = vector.broadcast %711 : f32 to vector<16x16xf32>
    %713 = arith.mulf %27, %712 : vector<16x16xf32>
    %714 = arith.addf %710, %713 : vector<16x16xf32>
    %c149 = arith.constant 149 : index
    %715 = memref.load %arg2[%c149] : memref<216xf32, #tpu.memory_space<smem>>
    %716 = vector.broadcast %715 : f32 to vector<16x16xf32>
    %717 = arith.mulf %29, %716 : vector<16x16xf32>
    %718 = arith.addf %714, %717 : vector<16x16xf32>
    %c150 = arith.constant 150 : index
    %719 = memref.load %arg2[%c150] : memref<216xf32, #tpu.memory_space<smem>>
    %720 = vector.broadcast %719 : f32 to vector<16x16xf32>
    %721 = arith.mulf %31, %720 : vector<16x16xf32>
    %722 = arith.addf %718, %721 : vector<16x16xf32>
    %c151 = arith.constant 151 : index
    %723 = memref.load %arg2[%c151] : memref<216xf32, #tpu.memory_space<smem>>
    %724 = vector.broadcast %723 : f32 to vector<16x16xf32>
    %725 = arith.mulf %33, %724 : vector<16x16xf32>
    %726 = arith.addf %722, %725 : vector<16x16xf32>
    %c152 = arith.constant 152 : index
    %727 = memref.load %arg2[%c152] : memref<216xf32, #tpu.memory_space<smem>>
    %728 = vector.broadcast %727 : f32 to vector<16x16xf32>
    %729 = arith.mulf %35, %728 : vector<16x16xf32>
    %730 = arith.addf %726, %729 : vector<16x16xf32>
    %c153 = arith.constant 153 : index
    %731 = memref.load %arg2[%c153] : memref<216xf32, #tpu.memory_space<smem>>
    %732 = vector.broadcast %731 : f32 to vector<16x16xf32>
    %733 = arith.mulf %37, %732 : vector<16x16xf32>
    %734 = arith.addf %730, %733 : vector<16x16xf32>
    %c154 = arith.constant 154 : index
    %735 = memref.load %arg2[%c154] : memref<216xf32, #tpu.memory_space<smem>>
    %736 = vector.broadcast %735 : f32 to vector<16x16xf32>
    %737 = arith.mulf %39, %736 : vector<16x16xf32>
    %738 = arith.addf %734, %737 : vector<16x16xf32>
    %c155 = arith.constant 155 : index
    %739 = memref.load %arg2[%c155] : memref<216xf32, #tpu.memory_space<smem>>
    %740 = vector.broadcast %739 : f32 to vector<16x16xf32>
    %741 = arith.mulf %41, %740 : vector<16x16xf32>
    %742 = arith.addf %738, %741 : vector<16x16xf32>
    %c156 = arith.constant 156 : index
    %743 = memref.load %arg2[%c156] : memref<216xf32, #tpu.memory_space<smem>>
    %744 = vector.broadcast %743 : f32 to vector<16x16xf32>
    %745 = arith.mulf %43, %744 : vector<16x16xf32>
    %746 = arith.addf %742, %745 : vector<16x16xf32>
    %c157 = arith.constant 157 : index
    %747 = memref.load %arg2[%c157] : memref<216xf32, #tpu.memory_space<smem>>
    %748 = vector.broadcast %747 : f32 to vector<16x16xf32>
    %749 = arith.mulf %45, %748 : vector<16x16xf32>
    %750 = arith.addf %746, %749 : vector<16x16xf32>
    %c158 = arith.constant 158 : index
    %751 = memref.load %arg2[%c158] : memref<216xf32, #tpu.memory_space<smem>>
    %752 = vector.broadcast %751 : f32 to vector<16x16xf32>
    %753 = arith.mulf %47, %752 : vector<16x16xf32>
    %754 = arith.addf %750, %753 : vector<16x16xf32>
    %c159 = arith.constant 159 : index
    %755 = memref.load %arg2[%c159] : memref<216xf32, #tpu.memory_space<smem>>
    %756 = vector.broadcast %755 : f32 to vector<16x16xf32>
    %757 = arith.mulf %49, %756 : vector<16x16xf32>
    %758 = arith.addf %754, %757 : vector<16x16xf32>
    %c160 = arith.constant 160 : index
    %759 = memref.load %arg2[%c160] : memref<216xf32, #tpu.memory_space<smem>>
    %760 = vector.broadcast %759 : f32 to vector<16x16xf32>
    %761 = arith.mulf %51, %760 : vector<16x16xf32>
    %762 = arith.addf %758, %761 : vector<16x16xf32>
    %c161 = arith.constant 161 : index
    %763 = memref.load %arg2[%c161] : memref<216xf32, #tpu.memory_space<smem>>
    %764 = vector.broadcast %763 : f32 to vector<16x16xf32>
    %765 = arith.mulf %53, %764 : vector<16x16xf32>
    %766 = arith.addf %762, %765 : vector<16x16xf32>
    %c5_139 = arith.constant 5 : index
    %767 = memref.load %arg3[%c5_139] : memref<8xf32, #tpu.memory_space<smem>>
    %768 = vector.broadcast %767 : f32 to vector<16x16xf32>
    %769 = arith.addf %766, %768 : vector<16x16xf32>
    %cst_140 = arith.constant 0.000000e+00 : f32
    %770 = vector.broadcast %cst_140 : f32 to vector<16x16xf32>
    %771 = arith.maximumf %769, %770 : vector<16x16xf32>
    %772 = vector.shape_cast %771 : vector<16x16xf32> to vector<1x16x16xf32>
    %cst_141 = arith.constant dense<0.000000e+00> : vector<1xf32>
    %773 = vector.multi_reduction <add>, %772, %cst_141 [1, 2] : vector<1x16x16xf32> to vector<1xf32>
    %774 = vector.shape_cast %773 : vector<1xf32> to vector<1x1x1xf32>
    %775 = vector.extract %774[0, 0, 0] : f32 from vector<1x1x1xf32>
    %cst_142 = arith.constant 3.906250e-03 : f32
    %776 = arith.mulf %775, %cst_142 : f32
    %c5_143 = arith.constant 5 : index
    %c0_144 = arith.constant 0 : index
    %777 = vector.load %arg4[%c5_143, %c0_144] : memref<8x10xf32, #tpu.memory_space<vmem>>, vector<1x10xf32>
    %778 = vector.broadcast %776 : f32 to vector<1x10xf32>
    %779 = arith.mulf %778, %777 : vector<1x10xf32>
    %780 = arith.addf %659, %779 : vector<1x10xf32>
    %c162 = arith.constant 162 : index
    %781 = memref.load %arg2[%c162] : memref<216xf32, #tpu.memory_space<smem>>
    %782 = vector.broadcast %781 : f32 to vector<16x16xf32>
    %783 = arith.mulf %1, %782 : vector<16x16xf32>
    %c163 = arith.constant 163 : index
    %784 = memref.load %arg2[%c163] : memref<216xf32, #tpu.memory_space<smem>>
    %785 = vector.broadcast %784 : f32 to vector<16x16xf32>
    %786 = arith.mulf %3, %785 : vector<16x16xf32>
    %787 = arith.addf %783, %786 : vector<16x16xf32>
    %c164 = arith.constant 164 : index
    %788 = memref.load %arg2[%c164] : memref<216xf32, #tpu.memory_space<smem>>
    %789 = vector.broadcast %788 : f32 to vector<16x16xf32>
    %790 = arith.mulf %5, %789 : vector<16x16xf32>
    %791 = arith.addf %787, %790 : vector<16x16xf32>
    %c165 = arith.constant 165 : index
    %792 = memref.load %arg2[%c165] : memref<216xf32, #tpu.memory_space<smem>>
    %793 = vector.broadcast %792 : f32 to vector<16x16xf32>
    %794 = arith.mulf %7, %793 : vector<16x16xf32>
    %795 = arith.addf %791, %794 : vector<16x16xf32>
    %c166 = arith.constant 166 : index
    %796 = memref.load %arg2[%c166] : memref<216xf32, #tpu.memory_space<smem>>
    %797 = vector.broadcast %796 : f32 to vector<16x16xf32>
    %798 = arith.mulf %9, %797 : vector<16x16xf32>
    %799 = arith.addf %795, %798 : vector<16x16xf32>
    %c167 = arith.constant 167 : index
    %800 = memref.load %arg2[%c167] : memref<216xf32, #tpu.memory_space<smem>>
    %801 = vector.broadcast %800 : f32 to vector<16x16xf32>
    %802 = arith.mulf %11, %801 : vector<16x16xf32>
    %803 = arith.addf %799, %802 : vector<16x16xf32>
    %c168 = arith.constant 168 : index
    %804 = memref.load %arg2[%c168] : memref<216xf32, #tpu.memory_space<smem>>
    %805 = vector.broadcast %804 : f32 to vector<16x16xf32>
    %806 = arith.mulf %13, %805 : vector<16x16xf32>
    %807 = arith.addf %803, %806 : vector<16x16xf32>
    %c169 = arith.constant 169 : index
    %808 = memref.load %arg2[%c169] : memref<216xf32, #tpu.memory_space<smem>>
    %809 = vector.broadcast %808 : f32 to vector<16x16xf32>
    %810 = arith.mulf %15, %809 : vector<16x16xf32>
    %811 = arith.addf %807, %810 : vector<16x16xf32>
    %c170 = arith.constant 170 : index
    %812 = memref.load %arg2[%c170] : memref<216xf32, #tpu.memory_space<smem>>
    %813 = vector.broadcast %812 : f32 to vector<16x16xf32>
    %814 = arith.mulf %17, %813 : vector<16x16xf32>
    %815 = arith.addf %811, %814 : vector<16x16xf32>
    %c171 = arith.constant 171 : index
    %816 = memref.load %arg2[%c171] : memref<216xf32, #tpu.memory_space<smem>>
    %817 = vector.broadcast %816 : f32 to vector<16x16xf32>
    %818 = arith.mulf %19, %817 : vector<16x16xf32>
    %819 = arith.addf %815, %818 : vector<16x16xf32>
    %c172 = arith.constant 172 : index
    %820 = memref.load %arg2[%c172] : memref<216xf32, #tpu.memory_space<smem>>
    %821 = vector.broadcast %820 : f32 to vector<16x16xf32>
    %822 = arith.mulf %21, %821 : vector<16x16xf32>
    %823 = arith.addf %819, %822 : vector<16x16xf32>
    %c173 = arith.constant 173 : index
    %824 = memref.load %arg2[%c173] : memref<216xf32, #tpu.memory_space<smem>>
    %825 = vector.broadcast %824 : f32 to vector<16x16xf32>
    %826 = arith.mulf %23, %825 : vector<16x16xf32>
    %827 = arith.addf %823, %826 : vector<16x16xf32>
    %c174 = arith.constant 174 : index
    %828 = memref.load %arg2[%c174] : memref<216xf32, #tpu.memory_space<smem>>
    %829 = vector.broadcast %828 : f32 to vector<16x16xf32>
    %830 = arith.mulf %25, %829 : vector<16x16xf32>
    %831 = arith.addf %827, %830 : vector<16x16xf32>
    %c175 = arith.constant 175 : index
    %832 = memref.load %arg2[%c175] : memref<216xf32, #tpu.memory_space<smem>>
    %833 = vector.broadcast %832 : f32 to vector<16x16xf32>
    %834 = arith.mulf %27, %833 : vector<16x16xf32>
    %835 = arith.addf %831, %834 : vector<16x16xf32>
    %c176 = arith.constant 176 : index
    %836 = memref.load %arg2[%c176] : memref<216xf32, #tpu.memory_space<smem>>
    %837 = vector.broadcast %836 : f32 to vector<16x16xf32>
    %838 = arith.mulf %29, %837 : vector<16x16xf32>
    %839 = arith.addf %835, %838 : vector<16x16xf32>
    %c177 = arith.constant 177 : index
    %840 = memref.load %arg2[%c177] : memref<216xf32, #tpu.memory_space<smem>>
    %841 = vector.broadcast %840 : f32 to vector<16x16xf32>
    %842 = arith.mulf %31, %841 : vector<16x16xf32>
    %843 = arith.addf %839, %842 : vector<16x16xf32>
    %c178 = arith.constant 178 : index
    %844 = memref.load %arg2[%c178] : memref<216xf32, #tpu.memory_space<smem>>
    %845 = vector.broadcast %844 : f32 to vector<16x16xf32>
    %846 = arith.mulf %33, %845 : vector<16x16xf32>
    %847 = arith.addf %843, %846 : vector<16x16xf32>
    %c179 = arith.constant 179 : index
    %848 = memref.load %arg2[%c179] : memref<216xf32, #tpu.memory_space<smem>>
    %849 = vector.broadcast %848 : f32 to vector<16x16xf32>
    %850 = arith.mulf %35, %849 : vector<16x16xf32>
    %851 = arith.addf %847, %850 : vector<16x16xf32>
    %c180 = arith.constant 180 : index
    %852 = memref.load %arg2[%c180] : memref<216xf32, #tpu.memory_space<smem>>
    %853 = vector.broadcast %852 : f32 to vector<16x16xf32>
    %854 = arith.mulf %37, %853 : vector<16x16xf32>
    %855 = arith.addf %851, %854 : vector<16x16xf32>
    %c181 = arith.constant 181 : index
    %856 = memref.load %arg2[%c181] : memref<216xf32, #tpu.memory_space<smem>>
    %857 = vector.broadcast %856 : f32 to vector<16x16xf32>
    %858 = arith.mulf %39, %857 : vector<16x16xf32>
    %859 = arith.addf %855, %858 : vector<16x16xf32>
    %c182 = arith.constant 182 : index
    %860 = memref.load %arg2[%c182] : memref<216xf32, #tpu.memory_space<smem>>
    %861 = vector.broadcast %860 : f32 to vector<16x16xf32>
    %862 = arith.mulf %41, %861 : vector<16x16xf32>
    %863 = arith.addf %859, %862 : vector<16x16xf32>
    %c183 = arith.constant 183 : index
    %864 = memref.load %arg2[%c183] : memref<216xf32, #tpu.memory_space<smem>>
    %865 = vector.broadcast %864 : f32 to vector<16x16xf32>
    %866 = arith.mulf %43, %865 : vector<16x16xf32>
    %867 = arith.addf %863, %866 : vector<16x16xf32>
    %c184 = arith.constant 184 : index
    %868 = memref.load %arg2[%c184] : memref<216xf32, #tpu.memory_space<smem>>
    %869 = vector.broadcast %868 : f32 to vector<16x16xf32>
    %870 = arith.mulf %45, %869 : vector<16x16xf32>
    %871 = arith.addf %867, %870 : vector<16x16xf32>
    %c185 = arith.constant 185 : index
    %872 = memref.load %arg2[%c185] : memref<216xf32, #tpu.memory_space<smem>>
    %873 = vector.broadcast %872 : f32 to vector<16x16xf32>
    %874 = arith.mulf %47, %873 : vector<16x16xf32>
    %875 = arith.addf %871, %874 : vector<16x16xf32>
    %c186 = arith.constant 186 : index
    %876 = memref.load %arg2[%c186] : memref<216xf32, #tpu.memory_space<smem>>
    %877 = vector.broadcast %876 : f32 to vector<16x16xf32>
    %878 = arith.mulf %49, %877 : vector<16x16xf32>
    %879 = arith.addf %875, %878 : vector<16x16xf32>
    %c187 = arith.constant 187 : index
    %880 = memref.load %arg2[%c187] : memref<216xf32, #tpu.memory_space<smem>>
    %881 = vector.broadcast %880 : f32 to vector<16x16xf32>
    %882 = arith.mulf %51, %881 : vector<16x16xf32>
    %883 = arith.addf %879, %882 : vector<16x16xf32>
    %c188 = arith.constant 188 : index
    %884 = memref.load %arg2[%c188] : memref<216xf32, #tpu.memory_space<smem>>
    %885 = vector.broadcast %884 : f32 to vector<16x16xf32>
    %886 = arith.mulf %53, %885 : vector<16x16xf32>
    %887 = arith.addf %883, %886 : vector<16x16xf32>
    %c6_145 = arith.constant 6 : index
    %888 = memref.load %arg3[%c6_145] : memref<8xf32, #tpu.memory_space<smem>>
    %889 = vector.broadcast %888 : f32 to vector<16x16xf32>
    %890 = arith.addf %887, %889 : vector<16x16xf32>
    %cst_146 = arith.constant 0.000000e+00 : f32
    %891 = vector.broadcast %cst_146 : f32 to vector<16x16xf32>
    %892 = arith.maximumf %890, %891 : vector<16x16xf32>
    %893 = vector.shape_cast %892 : vector<16x16xf32> to vector<1x16x16xf32>
    %cst_147 = arith.constant dense<0.000000e+00> : vector<1xf32>
    %894 = vector.multi_reduction <add>, %893, %cst_147 [1, 2] : vector<1x16x16xf32> to vector<1xf32>
    %895 = vector.shape_cast %894 : vector<1xf32> to vector<1x1x1xf32>
    %896 = vector.extract %895[0, 0, 0] : f32 from vector<1x1x1xf32>
    %cst_148 = arith.constant 3.906250e-03 : f32
    %897 = arith.mulf %896, %cst_148 : f32
    %c6_149 = arith.constant 6 : index
    %c0_150 = arith.constant 0 : index
    %898 = vector.load %arg4[%c6_149, %c0_150] : memref<8x10xf32, #tpu.memory_space<vmem>>, vector<1x10xf32>
    %899 = vector.broadcast %897 : f32 to vector<1x10xf32>
    %900 = arith.mulf %899, %898 : vector<1x10xf32>
    %901 = arith.addf %780, %900 : vector<1x10xf32>
    %c189 = arith.constant 189 : index
    %902 = memref.load %arg2[%c189] : memref<216xf32, #tpu.memory_space<smem>>
    %903 = vector.broadcast %902 : f32 to vector<16x16xf32>
    %904 = arith.mulf %1, %903 : vector<16x16xf32>
    %c190 = arith.constant 190 : index
    %905 = memref.load %arg2[%c190] : memref<216xf32, #tpu.memory_space<smem>>
    %906 = vector.broadcast %905 : f32 to vector<16x16xf32>
    %907 = arith.mulf %3, %906 : vector<16x16xf32>
    %908 = arith.addf %904, %907 : vector<16x16xf32>
    %c191 = arith.constant 191 : index
    %909 = memref.load %arg2[%c191] : memref<216xf32, #tpu.memory_space<smem>>
    %910 = vector.broadcast %909 : f32 to vector<16x16xf32>
    %911 = arith.mulf %5, %910 : vector<16x16xf32>
    %912 = arith.addf %908, %911 : vector<16x16xf32>
    %c192 = arith.constant 192 : index
    %913 = memref.load %arg2[%c192] : memref<216xf32, #tpu.memory_space<smem>>
    %914 = vector.broadcast %913 : f32 to vector<16x16xf32>
    %915 = arith.mulf %7, %914 : vector<16x16xf32>
    %916 = arith.addf %912, %915 : vector<16x16xf32>
    %c193 = arith.constant 193 : index
    %917 = memref.load %arg2[%c193] : memref<216xf32, #tpu.memory_space<smem>>
    %918 = vector.broadcast %917 : f32 to vector<16x16xf32>
    %919 = arith.mulf %9, %918 : vector<16x16xf32>
    %920 = arith.addf %916, %919 : vector<16x16xf32>
    %c194 = arith.constant 194 : index
    %921 = memref.load %arg2[%c194] : memref<216xf32, #tpu.memory_space<smem>>
    %922 = vector.broadcast %921 : f32 to vector<16x16xf32>
    %923 = arith.mulf %11, %922 : vector<16x16xf32>
    %924 = arith.addf %920, %923 : vector<16x16xf32>
    %c195 = arith.constant 195 : index
    %925 = memref.load %arg2[%c195] : memref<216xf32, #tpu.memory_space<smem>>
    %926 = vector.broadcast %925 : f32 to vector<16x16xf32>
    %927 = arith.mulf %13, %926 : vector<16x16xf32>
    %928 = arith.addf %924, %927 : vector<16x16xf32>
    %c196 = arith.constant 196 : index
    %929 = memref.load %arg2[%c196] : memref<216xf32, #tpu.memory_space<smem>>
    %930 = vector.broadcast %929 : f32 to vector<16x16xf32>
    %931 = arith.mulf %15, %930 : vector<16x16xf32>
    %932 = arith.addf %928, %931 : vector<16x16xf32>
    %c197 = arith.constant 197 : index
    %933 = memref.load %arg2[%c197] : memref<216xf32, #tpu.memory_space<smem>>
    %934 = vector.broadcast %933 : f32 to vector<16x16xf32>
    %935 = arith.mulf %17, %934 : vector<16x16xf32>
    %936 = arith.addf %932, %935 : vector<16x16xf32>
    %c198 = arith.constant 198 : index
    %937 = memref.load %arg2[%c198] : memref<216xf32, #tpu.memory_space<smem>>
    %938 = vector.broadcast %937 : f32 to vector<16x16xf32>
    %939 = arith.mulf %19, %938 : vector<16x16xf32>
    %940 = arith.addf %936, %939 : vector<16x16xf32>
    %c199 = arith.constant 199 : index
    %941 = memref.load %arg2[%c199] : memref<216xf32, #tpu.memory_space<smem>>
    %942 = vector.broadcast %941 : f32 to vector<16x16xf32>
    %943 = arith.mulf %21, %942 : vector<16x16xf32>
    %944 = arith.addf %940, %943 : vector<16x16xf32>
    %c200 = arith.constant 200 : index
    %945 = memref.load %arg2[%c200] : memref<216xf32, #tpu.memory_space<smem>>
    %946 = vector.broadcast %945 : f32 to vector<16x16xf32>
    %947 = arith.mulf %23, %946 : vector<16x16xf32>
    %948 = arith.addf %944, %947 : vector<16x16xf32>
    %c201 = arith.constant 201 : index
    %949 = memref.load %arg2[%c201] : memref<216xf32, #tpu.memory_space<smem>>
    %950 = vector.broadcast %949 : f32 to vector<16x16xf32>
    %951 = arith.mulf %25, %950 : vector<16x16xf32>
    %952 = arith.addf %948, %951 : vector<16x16xf32>
    %c202 = arith.constant 202 : index
    %953 = memref.load %arg2[%c202] : memref<216xf32, #tpu.memory_space<smem>>
    %954 = vector.broadcast %953 : f32 to vector<16x16xf32>
    %955 = arith.mulf %27, %954 : vector<16x16xf32>
    %956 = arith.addf %952, %955 : vector<16x16xf32>
    %c203 = arith.constant 203 : index
    %957 = memref.load %arg2[%c203] : memref<216xf32, #tpu.memory_space<smem>>
    %958 = vector.broadcast %957 : f32 to vector<16x16xf32>
    %959 = arith.mulf %29, %958 : vector<16x16xf32>
    %960 = arith.addf %956, %959 : vector<16x16xf32>
    %c204 = arith.constant 204 : index
    %961 = memref.load %arg2[%c204] : memref<216xf32, #tpu.memory_space<smem>>
    %962 = vector.broadcast %961 : f32 to vector<16x16xf32>
    %963 = arith.mulf %31, %962 : vector<16x16xf32>
    %964 = arith.addf %960, %963 : vector<16x16xf32>
    %c205 = arith.constant 205 : index
    %965 = memref.load %arg2[%c205] : memref<216xf32, #tpu.memory_space<smem>>
    %966 = vector.broadcast %965 : f32 to vector<16x16xf32>
    %967 = arith.mulf %33, %966 : vector<16x16xf32>
    %968 = arith.addf %964, %967 : vector<16x16xf32>
    %c206 = arith.constant 206 : index
    %969 = memref.load %arg2[%c206] : memref<216xf32, #tpu.memory_space<smem>>
    %970 = vector.broadcast %969 : f32 to vector<16x16xf32>
    %971 = arith.mulf %35, %970 : vector<16x16xf32>
    %972 = arith.addf %968, %971 : vector<16x16xf32>
    %c207 = arith.constant 207 : index
    %973 = memref.load %arg2[%c207] : memref<216xf32, #tpu.memory_space<smem>>
    %974 = vector.broadcast %973 : f32 to vector<16x16xf32>
    %975 = arith.mulf %37, %974 : vector<16x16xf32>
    %976 = arith.addf %972, %975 : vector<16x16xf32>
    %c208 = arith.constant 208 : index
    %977 = memref.load %arg2[%c208] : memref<216xf32, #tpu.memory_space<smem>>
    %978 = vector.broadcast %977 : f32 to vector<16x16xf32>
    %979 = arith.mulf %39, %978 : vector<16x16xf32>
    %980 = arith.addf %976, %979 : vector<16x16xf32>
    %c209 = arith.constant 209 : index
    %981 = memref.load %arg2[%c209] : memref<216xf32, #tpu.memory_space<smem>>
    %982 = vector.broadcast %981 : f32 to vector<16x16xf32>
    %983 = arith.mulf %41, %982 : vector<16x16xf32>
    %984 = arith.addf %980, %983 : vector<16x16xf32>
    %c210 = arith.constant 210 : index
    %985 = memref.load %arg2[%c210] : memref<216xf32, #tpu.memory_space<smem>>
    %986 = vector.broadcast %985 : f32 to vector<16x16xf32>
    %987 = arith.mulf %43, %986 : vector<16x16xf32>
    %988 = arith.addf %984, %987 : vector<16x16xf32>
    %c211 = arith.constant 211 : index
    %989 = memref.load %arg2[%c211] : memref<216xf32, #tpu.memory_space<smem>>
    %990 = vector.broadcast %989 : f32 to vector<16x16xf32>
    %991 = arith.mulf %45, %990 : vector<16x16xf32>
    %992 = arith.addf %988, %991 : vector<16x16xf32>
    %c212 = arith.constant 212 : index
    %993 = memref.load %arg2[%c212] : memref<216xf32, #tpu.memory_space<smem>>
    %994 = vector.broadcast %993 : f32 to vector<16x16xf32>
    %995 = arith.mulf %47, %994 : vector<16x16xf32>
    %996 = arith.addf %992, %995 : vector<16x16xf32>
    %c213 = arith.constant 213 : index
    %997 = memref.load %arg2[%c213] : memref<216xf32, #tpu.memory_space<smem>>
    %998 = vector.broadcast %997 : f32 to vector<16x16xf32>
    %999 = arith.mulf %49, %998 : vector<16x16xf32>
    %1000 = arith.addf %996, %999 : vector<16x16xf32>
    %c214 = arith.constant 214 : index
    %1001 = memref.load %arg2[%c214] : memref<216xf32, #tpu.memory_space<smem>>
    %1002 = vector.broadcast %1001 : f32 to vector<16x16xf32>
    %1003 = arith.mulf %51, %1002 : vector<16x16xf32>
    %1004 = arith.addf %1000, %1003 : vector<16x16xf32>
    %c215 = arith.constant 215 : index
    %1005 = memref.load %arg2[%c215] : memref<216xf32, #tpu.memory_space<smem>>
    %1006 = vector.broadcast %1005 : f32 to vector<16x16xf32>
    %1007 = arith.mulf %53, %1006 : vector<16x16xf32>
    %1008 = arith.addf %1004, %1007 : vector<16x16xf32>
    %c7_151 = arith.constant 7 : index
    %1009 = memref.load %arg3[%c7_151] : memref<8xf32, #tpu.memory_space<smem>>
    %1010 = vector.broadcast %1009 : f32 to vector<16x16xf32>
    %1011 = arith.addf %1008, %1010 : vector<16x16xf32>
    %cst_152 = arith.constant 0.000000e+00 : f32
    %1012 = vector.broadcast %cst_152 : f32 to vector<16x16xf32>
    %1013 = arith.maximumf %1011, %1012 : vector<16x16xf32>
    %1014 = vector.shape_cast %1013 : vector<16x16xf32> to vector<1x16x16xf32>
    %cst_153 = arith.constant dense<0.000000e+00> : vector<1xf32>
    %1015 = vector.multi_reduction <add>, %1014, %cst_153 [1, 2] : vector<1x16x16xf32> to vector<1xf32>
    %1016 = vector.shape_cast %1015 : vector<1xf32> to vector<1x1x1xf32>
    %1017 = vector.extract %1016[0, 0, 0] : f32 from vector<1x1x1xf32>
    %cst_154 = arith.constant 3.906250e-03 : f32
    %1018 = arith.mulf %1017, %cst_154 : f32
    %c7_155 = arith.constant 7 : index
    %c0_156 = arith.constant 0 : index
    %1019 = vector.load %arg4[%c7_155, %c0_156] : memref<8x10xf32, #tpu.memory_space<vmem>>, vector<1x10xf32>
    %1020 = vector.broadcast %1018 : f32 to vector<1x10xf32>
    %1021 = arith.mulf %1020, %1019 : vector<1x10xf32>
    %1022 = arith.addf %901, %1021 : vector<1x10xf32>
    %c0_157 = arith.constant 0 : index
    %c0_158 = arith.constant 0 : index
    %c0_159 = arith.constant 0 : index
    %1023 = vector.load %arg6[%c0_157, %c0_158, %c0_159] : memref<1x1x10xf32, #tpu.memory_space<vmem>>, vector<1x1x10xf32>
    %1024 = vector.shape_cast %1023 : vector<1x1x10xf32> to vector<1x10xf32>
    %1025 = vector.shape_cast %1022 : vector<1x10xf32> to vector<1x1x10xf32>
    tpu.vector_store %arg6[%c0_157, %c0_158, %c0_159], %1025 {strides = array<i32>} : memref<1x1x10xf32, #tpu.memory_space<vmem>>, vector<1x1x10xf32>,
    return
  }
  func.func @transform_0(%arg0: i32) -> (i32, i32, i32, i32) {
    %c0_i32 = arith.constant 0 : i32
    %c0_i32_0 = arith.constant 0 : i32
    %c0_i32_1 = arith.constant 0 : i32
    %c0_i32_2 = arith.constant 0 : i32
    return %arg0, %c0_i32, %c0_i32_0, %c0_i32_1 : i32, i32, i32, i32
  }
  func.func @transform_1(%arg0: i32) -> i32 {
    %c0_i32 = arith.constant 0 : i32
    %c0_i32_0 = arith.constant 0 : i32
    return %c0_i32 : i32
  }
  func.func @transform_2(%arg0: i32) -> i32 {
    %c0_i32 = arith.constant 0 : i32
    %c0_i32_0 = arith.constant 0 : i32
    return %c0_i32 : i32
  }
  func.func @transform_3(%arg0: i32) -> (i32, i32) {
    %c0_i32 = arith.constant 0 : i32
    %c0_i32_0 = arith.constant 0 : i32
    %c0_i32_1 = arith.constant 0 : i32
    return %c0_i32, %c0_i32_0 : i32, i32
  }
  func.func @transform_4(%arg0: i32) -> (i32, i32) {
    %c0_i32 = arith.constant 0 : i32
    %c0_i32_0 = arith.constant 0 : i32
    %c0_i32_1 = arith.constant 0 : i32
    return %c0_i32, %c0_i32_0 : i32, i32
  }
  func.func @transform_5(%arg0: i32) -> (i32, i32, i32) {
    %c0_i32 = arith.constant 0 : i32
    %c0_i32_0 = arith.constant 0 : i32
    %c0_i32_1 = arith.constant 0 : i32
    return %arg0, %c0_i32, %c0_i32_0 : i32, i32, i32
  }
}

</mosaic_0001>

<bundles_post_ra>
// kernel: custom-call.31
= control target key start
LH: loop header
LB: loop body
LE: loop exit
PB: predicated region body
PF: predicated region fallthrough
CT: control target
= control target key end

     0   :  { %s1046_s9 = smov 0   ;;  %s1048_s10 = smov 0   ;;  %s1376_s0 = inlined_call_operand.vmem [shape: f32[2,48,16], index: 0, kind: input, shape index: {}]   ;;  %s1377_s1 = inlined_call_operand.vmem [shape: f32[2,48,16], index: 1, kind: output, shape index: {0}]   ;;  %s1378_s2 = inlined_call_operand.vmem [shape: f32[2,16], index: 2, kind: output, shape index: {1}]  }
   0x1   :  { %s1050_s11 = smov 0   ;;  %s1052_s12 = smov 0  }
   0x2   :  { %s1054_s13 = smov 0  }
   0x3 LB: > { %s28_s14 = sadd.s32 1, %s1019_s12  ;;  %s856_s15 = sadd.s32 4294967295, %s1023_s13   ;;  %s1023_s13 = sphi %s1054_s13, %s9_s13   ;;  %s1019_s12 = sphi %s1052_s12, %s1399_s12   ;;  %s1015_s11 = sphi %s1050_s11, %s1398_s11   ;;  %s1011_s10 = sphi %s1048_s10, %s1397_s10   ;;  %s1007_s9 = sphi %s1046_s9, %s1396_s9  }
   0x4   : > { %p30_p0 = scmp.ge.s32.totalorder %s28_s14, 2  ;;  %s33_s16 = ssub.s32 0, %s1019_s12 }
   0x5   : > { %s858_s17 = smin.u32 %s1019_s12, %s33_s16  ;;  %p57_p1 = scmp.ne.s32.totalorder %s1011_s10, %s1007_s9 }
   0x6   : > { %s1401_s14 = smov (%p30_p0, %s28_s14), 0  ;;  %s35_s18 = sshrl.u32 %s858_s17, 3 }
   0x7   : > { %s39_s19 = ssub.s32 0, %s1401_s14  ;;  %p58_p2 = scmp.eq.s32.totalorder %s856_s15, 1 }
   0x8   : > { %s859_s20 = smin.u32 %s39_s19, %s1401_s14  ;;  %s47_s24 = sadd.s32 1, %s1011_s10 }
   0x9   : > { %s41_s21 = sshrl.u32 %s859_s20, 3  ;;  %p1083_p3 = por %p58_p2, %p57_p1 }
   0xa   : > { %s44_s23 = ssub.s32 %s35_s18, %s41_s21  ;;  %p861_p5 = scmp.ge.s32.totalorder %s1023_s13, 2 }
   0xb   : > { %p45_p4 = scmp.eq.s32.totalorder %s44_s23, 0  ;;  %s82_s26 = sand.u32 (!%p861_p5), 1, %s1023_s13  }
   0xc   : > { %80 = sbr.rel (%p861_p5) target bundleno = 21 (0x15), region = 16 }
   0xd   : > { %s1089_s25 = scalar_select %p45_p4, %s1011_s10, %s47_s24  }
   0xe   : > { %s918_s27 = smul.u32 (!%p861_p5), 48, %s1019_s12 }
   0xf   : > { %s917_s28 = smul.u32 (!%p861_p5), 48, %s82_s26 }
  0x10   : > { %s90_s3 = scalar_lea.vmem (!%p861_p5), %s1376_s0, %s918_s27 }
  0x11   : > { %v129_v0 = vld [vmem:[%s90_s3] sm:$0xff]  ;;  %v131_v1 = vld [vmem:[%s90_s3 + $0x8] sm:$0xff]  ;;  %v133_v2 = vld [vmem:[%s90_s3 + $0x10] sm:$0xff]  ;;  %s84_s4 = scalar_lea.vmem [#allocation0], %s917_s28 }
  0x12   : > { %130 = vst [vmem:[%s84_s4] sm:$0xff] %v129_v0  ;;  %132 = vst [vmem:[%s84_s4 + $0x8] sm:$0xff] %v131_v1  ;;  %v135_v3 = vld [vmem:[%s90_s3 + $0x18] sm:$0xff]  ;;  %v137_v4 = vld [vmem:[%s90_s3 + $0x20] sm:$0xff] }
  0x13   : > { %134 = vst [vmem:[%s84_s4 + $0x10] sm:$0xff] %v133_v2  ;;  %v139_v5 = vld [vmem:[%s90_s3 + $0x28] sm:$0xff]  ;;  %136 = vst [vmem:[%s84_s4 + $0x18] sm:$0xff] %v135_v3 }
  0x14   : > { %138 = vst [vmem:[%s84_s4 + $0x20] sm:$0xff] %v137_v4  ;;  %140 = vst [vmem:[%s84_s4 + $0x28] sm:$0xff] %v139_v5 }
  0x15 PF: > { %p863_p6 = scmp.ge.s32.totalorder %s1023_s13, 1  ;;  %p145_p7 = scmp.lt.s32.totalorder %s1023_s13, 3 }
  0x17   : > { %p146_p8 = pnand %p863_p6, %p145_p7 }
  0x19   : > { %149 = sbr.rel (%p146_p8) target bundleno = 374 (0x176), region = 54 }
  0x1e   : > { %s152_s5 = sand.u32 1, %s856_s15   ;;  %s166_s6 = sand.u32 1, %s1007_s9   ;;  %v1029_v12 = vmov 0.0  }
  0x1f   : > { %s919_s7 = smul.u32 48, %s152_s5  ;;  %s1102_s8 = sshll.u32 %s166_s6, 1 }
  0x20   : > { %s177_s16 = sand.u32 7, %s1015_s11   ;;  %s168_s15 = scalar_lea.vmem [#allocation3], %s1102_s8 }
  0x21   : > { %s154_s17 = scalar_lea.vmem [#allocation0], %s919_s7  ;;  %s1105_s18 = scalar_lea.vmem [#allocation1], %s919_s7 }
  0x22   : > { %v179_v6 = vld [vmem:[%s154_s17] sm:$0xff]  ;;  %v865_v7 = vld [vmem:[%s154_s17 + $0x8] sm:$0xff]  ;;  %v867_v8 = vld [vmem:[%s154_s17 + $0x10] sm:$0xff]  ;;  %s1110_s9 = scalar_lea.vmem [#allocation2], %s177_s16  ;;  %s1117_s19 = smov 0  }
  0x23   : > { %180 = vst [vmem:[%s1105_s18] sm:$0xff] %v179_v6  ;;  %866 = vst [vmem:[%s1105_s18 + $0x8] sm:$0xff] %v865_v7  ;;  %v869_v9 = vld [vmem:[%s154_s17 + $0x18] sm:$0xff]  ;;  %v871_v10 = vld [vmem:[%s154_s17 + $0x20] sm:$0xff] }
  0x24   : > { %868 = vst [vmem:[%s1105_s18 + $0x10] sm:$0xff] %v867_v8  ;;  %v873_v11 = vld [vmem:[%s154_s17 + $0x28] sm:$0xff]  ;;  %201 = vst [vmem:[%s1110_s9] sm:$0x1] %v1029_v12 }
  0x25   : > { %870 = vst [vmem:[%s1105_s18 + $0x18] sm:$0xff] %v869_v9  ;;  %872 = vst [vmem:[%s1105_s18 + $0x20] sm:$0xff] %v871_v10 }
  0x26   : > { %874 = vst [vmem:[%s1105_s18 + $0x28] sm:$0xff] %v873_v11 }
  0x27 LB: >> { %v209_v13 = vlaneseq  ;;  %v1127_v16 = vstv %s1027_s19  ;;  %s286_s20 = scalar_lea.vmem %s1105_s18, %s1027_s19 [#allocation1]  ;;  %s434_s21 = scalar_lea.vmem [#allocation4], %s1027_s19  ;;  %s1027_s19 = sphi %s1117_s19, %s207_s19  }
  0x28   : >> { %s1222_s23 = smov [#allocation4] }
  0x29   : >> { %v1124_v15 = vshrl.u32 %v209_v13, 7 }
  0x2a   : >> { %v208_v14 = vld [vmem:[%s1105_s18] sm:$0xff]  ;;  %v875_v17 = vld [vmem:[%s1105_s18 + $0x8] sm:$0xff] }
  0x2b   : >> { %vm213_vm0 = vcmp.gt.s32.totalorder %v1124_v15, %v1127_v16  ;;  %v220_v18 = vadd.s32 8, %v1124_v15  ;;  %v876_v19 = vld [vmem:[%s1105_s18 + $0x10] sm:$0xff]  ;;  %v230_v20 = vadd.s32 16, %v1124_v15  ;;  %v240_v22 = vadd.s32 24, %v1124_v15 }
  0x2c   : >> { %v877_v21 = vld [vmem:[%s1105_s18 + $0x18] sm:$0xff]  ;;  %v214_v23 = vsel %vm213_vm0, %v208_v14, 0.0  ;;  %v250_v24 = vadd.s32 32, %v1124_v15  ;;  %v260_v25 = vadd.s32 40, %v1124_v15  ;;  %v878_v27 = vld [vmem:[%s1105_s18 + $0x20] sm:$0xff]  ;;  %v325_v15 = vmov %v1124_v15 }
  0x2d   : >> { %v215_v26 = vmul.f32 %v214_v23, %v214_v23  ;;  %vm222_vm1 = vcmp.gt.s32.totalorder %v220_v18, %v1127_v16  ;;  %vm232_vm2 = vcmp.gt.s32.totalorder %v230_v20, %v1127_v16  ;;  %vm242_vm3 = vcmp.gt.s32.totalorder %v240_v22, %v1127_v16  ;;  %v879_v33 = vld [vmem:[%s1105_s18 + $0x28] sm:$0xff]  ;;  %v1151_v50 = vld [vmem:[%s286_s20] ss:$0 sm:$0xff]  ;;  %s322_s18 = smov %s1105_s18 }
  0x2e   : >> { %v223_v28 = vsel %vm222_vm1, %v875_v17, 0.0  ;;  %v233_v29 = vsel %vm232_vm2, %v876_v19, 0.0  ;;  %v243_v30 = vsel %vm242_vm3, %v877_v21, 0.0  ;;  %vm252_vm4 = vcmp.gt.s32.totalorder %v250_v24, %v1127_v16  ;;  %v882_v24 = vld [vmem:[%s322_s18 + $0x10] sm:$0xff] }
  0x2f   : >> { %v224_v31 = vmul.f32 %v223_v28, %v223_v28  ;;  %v234_v32 = vmul.f32 %v233_v29, %v233_v29  ;;  %v253_v34 = vsel %vm252_vm4, %v878_v27, 0.0  ;;  %vm262_vm5 = vcmp.gt.s32.totalorder %v260_v25, %v1127_v16  ;;  %v326_v25 = vld [vmem:[%s322_s18] sm:$0xff]  ;;  %v881_v27 = vld [vmem:[%s322_s18 + $0x8] sm:$0xff] }
  0x30   : >> { %v244_v36 = vmul.f32 %v243_v30, %v243_v30  ;;  %v265_v37 = vsel %vm262_vm5, %v879_v33, 0.0  ;;  %v254_v39 = vmul.f32 %v253_v34, %v253_v34  ;;  %v288_v51 = vand.u32 2147483647, %v1151_v50  ;;  %v885_v29 = vld [vmem:[%s322_s18 + $0x28] sm:$0xff]  ;;  %v884_v30 = vld [vmem:[%s322_s18 + $0x20] sm:$0xff] }
  0x31   : >> { %v225_v35 = vadd.f32 %v224_v31, %v215_v26  ;;  %v266_v41 = vmul.f32 %v265_v37, %v265_v37  ;;  %vm313_vm11 = vcmp.lt.f32.partialorder %v1151_v50, 0.0  ;;  %v416_v19 = vadd.s32 40, %v325_v15  ;;  %v883_v26 = vld [vmem:[%s322_s18 + $0x18] sm:$0xff]  ;;  %s1218_s18 = smov %s1105_s18 }
  0x32   : >> { %v289_v56 = vmax.f32 %v288_v51, 0.0  ;;  %v362_v20 = vadd.s32 16, %v325_v15  ;;  %v380_v21 = vadd.s32 24, %v325_v15  ;;  %v344_v22 = vadd.s32 8, %v325_v15 }
  0x33   : >> { %v235_v38 = vadd.f32 %v234_v32, %v225_v35  ;;  %v398_v23 = vadd.s32 32, %v325_v15  ;;  %vm418_vm12 = vcmp.gt.s32.totalorder %v416_v19, %v1127_v16  ;;  %vm419_vm13 = vcmp.lt.s32.totalorder %v416_v19, 48 }
  0x34   : >> { %vm364_vm14 = vcmp.gt.s32.totalorder %v362_v20, %v1127_v16  ;;  %vm329_vm15 = vcmp.gt.s32.totalorder %v325_v15, %v1127_v16  ;;  %vm382_vm0 = vcmp.gt.s32.totalorder %v380_v21, %v1127_v16  ;;  %vm346_vm1 = vcmp.gt.s32.totalorder %v344_v22, %v1127_v16  ;;  %vm420_vm2 = vmand %vm418_vm12, %vm419_vm13  ;;  %v891_v20 = vld [vmem:[%s1218_s18 + $0x18] sm:$0xff] }
  0x35   : >> { %v245_v40 = vadd.f32 %v244_v36, %v235_v38  ;;  %v1177_v28 = vand.u32 127, %v209_v13  ;;  %vm400_vm3 = vcmp.gt.s32.totalorder %v398_v23, %v1127_v16  ;;  %v365_v31 = vsel %vm364_vm14, %v882_v24, 0.0 }
  0x36   : >> { %v330_v32 = vsel %vm329_vm15, %v326_v25, 0.0  ;;  %v383_v33 = vsel %vm382_vm0, %v883_v26, 0.0  ;;  %v347_v34 = vsel %vm346_vm1, %v881_v27, 0.0  ;;  %v421_v35 = vsel %vm420_vm2, %v885_v29, 0.0  ;;  %v895_v25 = vld [vmem:[%s1218_s18 + $0x28] sm:$0xff]  ;;  %v893_v27 = vld [vmem:[%s1218_s18 + $0x20] sm:$0xff] }
  0x37   : >> { %v255_v42 = vadd.f32 %v254_v39, %v245_v40  ;;  %v401_v36 = vsel %vm400_vm3, %v884_v30, 0.0  ;;  %vm1182_vm4 = vcmp.eq.s32.totalorder %v1177_v28, %v1127_v16  ;;  %v454_v15 = vmov %v1124_v15 }
  0x38   : >> { %v487_v23 = vadd.s32 40, %v454_v15  ;;  %v506_v15 = vmov %v1124_v15  ;;  %vm1268_vm13 = vcmp.gt.s32.totalorder %v1177_v28, %v1127_v16 }
  0x39   : >> { %v267_v43 = vadd.f32 %v266_v41, %v255_v42 }
  0x3a   : >> { %vm493_vm5 = vcmp.lt.s32.totalorder %v487_v23, 48 }
  0x3b   : >> { %v268_v44 = vrot.slane %v267_v43, 4 }
  0x3d   : >> { %v269_v45 = vadd.f32 %v268_v44, %v267_v43 }
  0x3f   : >> { %v270_v46 = vrot.slane %v269_v45, 2 }
  0x41   : >> { %v271_v47 = vadd.f32 %v270_v46, %v269_v45 }
  0x43   : >> { %v272_v48 = vrot.slane %v271_v47, 1 }
  0x45   : >> { %v1146_v49 = vadd.f32 %v272_v48, %v271_v47 }
  0x47   : >> { %971 = vrsqrt.f32 %v1146_v49  ;;  %vm276_vm6 = vcmp.eq.f32.partialorder %v1146_v49, inf  ;;  %v279_v53 = vand.u32 2147483648, %v1146_v49  ;;  %vm278_vm7 = vcmp.eq.f32.partialorder %v1146_v49, 0.0 }
  0x54   : >> { %v972_v52 = vpop.eup %971 }
  0x55   : >> { %v275_v54 = vmul.f32 %v972_v52, %v1146_v49 }
  0x57   : >> { %v277_v55 = vsel %vm276_vm6, %v1146_v49, %v275_v54  ;;  %vm523_vm6 = vcmp.ge.s32.totalorder %v506_v15, %v1127_v16 }
  0x58   : >> { %v280_v57 = vsel %vm278_vm7, %v279_v53, %v277_v55 }
  0x59   : >> { %v290_v58 = vand.u32 2147483647, %v280_v57 }
  0x5b   : >> { %v291_v59 = vmax.f32 %v289_v56, %v290_v58 }
  0x5d   : >> { %973 = vrcp.f32 %v291_v59  ;;  %vm303_vm10 = vcmp.eq.f32.partialorder %v291_v59, 0.0 }
  0x6a   : >> { %v974_v60 = vpop.eup %973 }
  0x6b   : >> { %v293_v61 = vmul.f32 %v974_v60, %v288_v51  ;;  %v296_v62 = vmul.f32 0.0, %v974_v60  ;;  %v300_v63 = vmul.f32 %v974_v60, %v290_v58 }
  0x6d   : >> { %v294_v0 = vmul.f32 %v293_v61, %v293_v61  ;;  %v297_v1 = vmul.f32 %v296_v62, %v296_v62  ;;  %v301_v2 = vmul.f32 %v300_v63, %v300_v63 }
  0x6f   : >> { %v298_v3 = vadd.f32 %v297_v1, %v294_v0 }
  0x71   : >> { %v302_v4 = vadd.f32 %v301_v2, %v298_v3  ;;  %v1030_v3 = vmov 1.0  }
  0x73   : >> { %975 = vrsqrt.f32 %v302_v4  ;;  %vm306_vm8 = vcmp.eq.f32.partialorder %v302_v4, inf  ;;  %v309_v6 = vand.u32 2147483648, %v302_v4  ;;  %vm308_vm9 = vcmp.eq.f32.partialorder %v302_v4, 0.0 }
  0x80   : >> { %v976_v5 = vpop.eup %975 }
  0x81   : >> { %v305_v7 = vmul.f32 %v976_v5, %v302_v4 }
  0x83   : >> { %v307_v8 = vsel %vm306_vm8, %v302_v4, %v305_v7  ;;  %v447_v4 = vld [vmem:[%s1110_s9] ss:$0 sm:$0xff] }
  0x84   : >> { %v310_v9 = vsel %vm308_vm9, %v309_v6, %v307_v8  ;;  %v457_v7 = vld [vmem:[%s1218_s18] sm:$0xff]  ;;  %v887_v8 = vld [vmem:[%s1218_s18 + $0x8] sm:$0xff] }
  0x85   : >> { %v311_v10 = vmul.f32 %v310_v9, %v291_v59  ;;  %v889_v9 = vld [vmem:[%s1218_s18 + $0x10] sm:$0xff]  ;;  %s1240_s18 = smov %s1218_s18 }
  0x86   : >> { %s632_s24 = scalar_lea.vmem %s1240_s18, %s1027_s19  ;;  %s207_s19 = sadd.s32 1, %s1027_s19  }
  0x87   : >> { %v312_v11 = vsel %vm303_vm10, 0.0, %v311_v10  ;;  %p204_p9 = scmp.ge.s32.totalorder %s207_s19, 16  }
  0x88   : >> { %v314_v12 = vxor.u32 2147483648, %v312_v11  ;;  %s920_s26 = smul.u32 (%p204_p9), 48, %s1015_s11 }
  0x8a   : >> { %v315_v14 = vsel %vm313_vm11, %v312_v11, %v314_v12  ;;  %s661_s29 = scalar_lea.vmem (%p204_p9), %s1377_s1, %s920_s26 }
  0x8b   : >> { %v1165_v17 = vsel %vm278_vm7, %v1151_v50, %v315_v14  ;;  %v316_v44 = vsub.f32 %v315_v14, %v1151_v50 }
  0x8c   : >> { %v321_v18 = vsub.f32 %v1151_v50, %v1165_v17 }
  0x8e   : >> { %977 = vrcp.f32 %v321_v18 }
  0x8f   : >> { %979 = vrcp.f32 %v315_v14 }
  0x9b   : >> { %v978_v37 = vpop.eup %977 }
  0x9c   : >> { %v367_v13 = vmul.f32 %v978_v37, %v365_v31  ;;  %v332_v39 = vmul.f32 %v978_v37, %v330_v32  ;;  %v385_v40 = vmul.f32 %v978_v37, %v383_v33  ;;  %v349_v41 = vmul.f32 %v978_v37, %v347_v34  ;;  %v980_v51 = vpop.eup %979 }
  0x9d   : >> { %v423_v42 = vmul.f32 %v978_v37, %v421_v35  ;;  %v403_v43 = vmul.f32 %v978_v37, %v401_v36  ;;  %v318_v57 = vmul.f32 %v980_v51, %v316_v44  ;;  %v569_v44 = vadd.s32 24, %v506_v15  ;;  %v897_v51 = vld [vmem:[%s1240_s18 + $0x8] sm:$0xff] }
  0x9e   : >> { %v368_v45 = vsel %vm278_vm7, 0.0, %v367_v13  ;;  %v333_v46 = vsel %vm278_vm7, 0.0, %v332_v39  ;;  %v386_v47 = vsel %vm278_vm7, 0.0, %v385_v40  ;;  %v350_v48 = vsel %vm278_vm7, 0.0, %v349_v41 }
  0x9f   : >> { %v373_v52 = vsel %vm1182_vm4, %v368_v45, 0.0  ;;  %v338_v53 = vsel %vm1182_vm4, %v333_v46, 0.0  ;;  %v391_v50 = vsel %vm1182_vm4, %v386_v47, 0.0  ;;  %v355_v54 = vsel %vm1182_vm4, %v350_v48, 0.0  ;;  %v513_v47 = vld [vmem:[%s1240_s18] sm:$0xff] }
  0xa0   : >> { %374 = vadd.xlane.f32.xlu1 %v373_v52  ;;  %339 = vadd.xlane.f32.xlu0 %v338_v53  ;;  %v424_v55 = vsel %vm278_vm7, 0.0, %v423_v42  ;;  %v404_v56 = vsel %vm278_vm7, 0.0, %v403_v43  ;;  %v320_v60 = vsel %vm278_vm7, 0.0, %v318_v57  ;;  %v527_v41 = vadd.s32 8, %v506_v15  ;;  %vm1247_vm7 = vmand %vm1182_vm4, %vm523_vm6  ;;  %v900_v52 = vld [vmem:[%s1240_s18 + $0x10] sm:$0xff]  ;;  %v903_v53 = vld [vmem:[%s1240_s18 + $0x18] sm:$0xff] }
  0xa1   : >> { %v429_v58 = vsel %vm1182_vm4, %v424_v55, 0.0  ;;  %v409_v59 = vsel %vm1182_vm4, %v404_v56, 0.0  ;;  %v440_v61 = vsel %vm1182_vm4, %v320_v60, 0.0  ;;  %v548_v43 = vadd.s32 16, %v506_v15  ;;  %v906_v55 = vld [vmem:[%s1240_s18 + $0x20] sm:$0xff]  ;;  %v909_v56 = vld [vmem:[%s1240_s18 + $0x28] sm:$0xff] }
  0xa2   : >> { %v590_v45 = vadd.s32 32, %v506_v15  ;;  %vm544_vm8 = vcmp.ge.s32.totalorder %v527_v41, %v1127_v16  ;;  %vm586_vm10 = vcmp.ge.s32.totalorder %v569_v44, %v1127_v16 }
  0xa3   : >> { %vm565_vm9 = vcmp.ge.s32.totalorder %v548_v43, %v1127_v16  ;;  %vm1262_vm12 = vmand %vm1182_vm4, %vm544_vm8 }
  0xa4   : >> { %392 = vadd.xlane.f32.xlu1 %v391_v50  ;;  %356 = vadd.xlane.f32.xlu0 %v355_v54  ;;  %v611_v50 = vadd.s32 40, %v506_v15  ;;  %vm607_vm11 = vcmp.ge.s32.totalorder %v590_v45, %v1127_v16  ;;  %vm1276_vm14 = vmand %vm1182_vm4, %vm565_vm9 }
  0xa5   : >> { %vm1283_vm0 = vmand %vm1182_vm4, %vm586_vm10 }
  0xa6   : >> { %vm628_vm15 = vcmp.ge.s32.totalorder %v611_v50, %v1127_v16  ;;  %vm1291_vm1 = vmand %vm1182_vm4, %vm607_vm11 }
  0xa7   : >> { %vm1297_vm2 = vmand %vm1182_vm4, %vm628_vm15 }
  0xa8   : >> { %430 = vadd.xlane.f32.xlu1 %v429_v58  ;;  %410 = vadd.xlane.f32.xlu0 %v409_v59 }
  0xac   : >> { %441 = vadd.xlane.f32.xlu0 %v440_v61 }
 0x129   : >> { %v375_v62 = vpop.xlane.xlu1 %374  ;;  %v340_v63 = vpop.xlane.xlu0 %339 }
 0x12a   : >> { %377 = vst [vmem:[#allocation4 + $0x10] sm:$0xff] %v375_v62  ;;  %341 = vst [vmem:[#allocation4] sm:$0xff] %v340_v63 }
 0x12d   : >> { %v393_v0 = vpop.xlane.xlu1 %392  ;;  %v357_v1 = vpop.xlane.xlu0 %356 }
 0x12e   : >> { %395 = vst [vmem:[#allocation4 + $0x18] sm:$0xff] %v393_v0  ;;  %359 = vst [vmem:[#allocation4 + $0x8] sm:$0xff] %v357_v1 }
 0x131   : >> { %v431_v49 = vpop.xlane.xlu1 %430  ;;  %v411_v2 = vpop.xlane.xlu0 %410 }
 0x132   : >> { %433 = vst [vmem:[#allocation4 + $0x28] sm:$0xff] %v431_v49  ;;  %413 = vst [vmem:[#allocation4 + $0x20] sm:$0xff] %v411_v2 }
 0x133   : >> { %435 = vst [vmem:[%s434_s21] sm:$0x1] %v1030_v3 }
 0x135   : >> { %v442_v5 = vpop.xlane.xlu0 %441 }
 0x136   : >> { %v448_v6 = vsel %vm1182_vm4, %v442_v5, %v447_v4 }
 0x137   : >> { %449 = vst [vmem:[%s1110_s9] sm:$0x1] %v448_v6 }
 0x13a   : >> { %v456_v10 = vld [vmem:[%s1222_s23] sm:$0xff]  ;;  %v886_v11 = vld [vmem:[%s1222_s23 + $0x8] sm:$0xff]  ;;  %v888_v12 = vld [vmem:[%s1222_s23 + $0x10] sm:$0xff] }
 0x13b   : >> { %v458_v14 = vmul.f32 %v457_v7, %v456_v10  ;;  %v464_v18 = vmul.f32 %v887_v8, %v886_v11  ;;  %v890_v19 = vld [vmem:[%s1222_s23 + $0x18] sm:$0xff]  ;;  %v471_v22 = vmul.f32 %v889_v9, %v888_v12  ;;  %v894_v24 = vld [vmem:[%s1222_s23 + $0x28] sm:$0xff]  ;;  %v892_v26 = vld [vmem:[%s1222_s23 + $0x20] sm:$0xff]  ;;  %s503_s23 = smov %s1222_s23 }
 0x13c   : >> { %v478_v30 = vmul.f32 %v891_v20, %v890_v19  ;;  %v492_v31 = vmul.f32 %v895_v25, %v894_v24  ;;  %v485_v33 = vmul.f32 %v893_v27, %v892_v26  ;;  %v511_v54 = vld [vmem:[%s503_s23] sm:$0xff]  ;;  %v896_v58 = vld [vmem:[%s503_s23 + $0x8] sm:$0xff]  ;;  %v899_v59 = vld [vmem:[%s503_s23 + $0x10] sm:$0xff] }
 0x13d   : >> { %v465_v21 = vadd.f32 %v464_v18, %v458_v14  ;;  %v902_v60 = vld [vmem:[%s503_s23 + $0x18] sm:$0xff]  ;;  %v905_v15 = vld [vmem:[%s503_s23 + $0x20] sm:$0xff]  ;;  %v908_v62 = vld [vmem:[%s503_s23 + $0x28] sm:$0xff] }
 0x13e   : >> { %v494_v35 = vsel %vm493_vm5, %v492_v31, 0.0 }
 0x13f   : >> { %v472_v29 = vadd.f32 %v471_v22, %v465_v21 }
 0x141   : >> { %v479_v32 = vadd.f32 %v478_v30, %v472_v29 }
 0x143   : >> { %v486_v34 = vadd.f32 %v485_v33, %v479_v32  ;;  %v644_v32 = vld [vmem:[#allocation2] sm:$0x3] (%p204_p9) }
 0x144   : > { %647 = vst [vmem:[%s168_s15] sm:$0x3] (%p204_p9), %v644_v32 }
 0x145   : >> { %v495_v36 = vadd.f32 %v494_v35, %v486_v34 }
 0x147   : >> { %v496_v37 = vrot.slane %v495_v36, 4 }
 0x149   : >> { %v497_v13 = vadd.f32 %v496_v37, %v495_v36 }
 0x14b   : >> { %v498_v39 = vrot.slane %v497_v13, 2 }
 0x14d   : >> { %v499_v40 = vadd.f32 %v498_v39, %v497_v13 }
 0x14f   : >> { %v500_v42 = vrot.slane %v499_v40, 1 }
 0x151   : >> { %v501_v46 = vadd.f32 %v500_v42, %v499_v40 }
 0x153   : >> { %v507_v57 = vmul.f32 %v501_v46, %v442_v5 }
 0x155   : >> { %v512_v63 = vmul.f32 %v511_v54, %v507_v57  ;;  %v532_v0 = vmul.f32 %v896_v58, %v507_v57  ;;  %v553_v1 = vmul.f32 %v899_v59, %v507_v57  ;;  %v574_v49 = vmul.f32 %v902_v60, %v507_v57 }
 0x156   : >> { %v595_v4 = vmul.f32 %v905_v15, %v507_v57  ;;  %v616_v5 = vmul.f32 %v908_v62, %v507_v57 }
 0x157   : >> { %v516_v28 = vsub.f32 %v513_v47, %v512_v63  ;;  %v537_v7 = vsub.f32 %v897_v51, %v532_v0  ;;  %v558_v8 = vsub.f32 %v900_v52, %v553_v1  ;;  %v579_v9 = vsub.f32 %v903_v53, %v574_v49 }
 0x158   : >> { %v600_v11 = vsub.f32 %v906_v55, %v595_v4  ;;  %v621_v12 = vsub.f32 %v909_v56, %v616_v5 }
 0x159   : >> { %v517_v18 = vsel %vm1268_vm13, %v516_v28, %v513_v47  ;;  %v538_v16 = vsel %vm1268_vm13, %v537_v7, %v897_v51  ;;  %v559_v19 = vsel %vm1268_vm13, %v558_v8, %v900_v52  ;;  %v580_v20 = vsel %vm1268_vm13, %v579_v9, %v903_v53 }
 0x15a   : >> { %v525_v21 = vsel %vm1247_vm7, %v511_v54, %v517_v18  ;;  %v546_v22 = vsel %vm1262_vm12, %v896_v58, %v538_v16  ;;  %v567_v23 = vsel %vm1276_vm14, %v899_v59, %v559_v19  ;;  %v588_v24 = vsel %vm1283_vm0, %v902_v60, %v580_v20 }
 0x15b   : >> { %526 = vst [vmem:[%s1240_s18] sm:$0xff] %v525_v21  ;;  %898 = vst [vmem:[%s1240_s18 + $0x8] sm:$0xff] %v546_v22  ;;  %v601_v25 = vsel %vm1268_vm13, %v600_v11, %v906_v55  ;;  %v622_v26 = vsel %vm1268_vm13, %v621_v12, %v909_v56 }
 0x15c   : >> { %901 = vst [vmem:[%s1240_s18 + $0x10] sm:$0xff] %v567_v23  ;;  %904 = vst [vmem:[%s1240_s18 + $0x18] sm:$0xff] %v588_v24  ;;  %v609_v27 = vsel %vm1291_vm1, %v905_v15, %v601_v25  ;;  %v630_v29 = vsel %vm1297_vm2, %v908_v62, %v622_v26 }
 0x15d   : >> { %907 = vst [vmem:[%s1240_s18 + $0x20] sm:$0xff] %v609_v27  ;;  %910 = vst [vmem:[%s1240_s18 + $0x28] sm:$0xff] %v630_v29 }
 0x162   : > { %206 = sbr.rel (!%p204_p9) target bundleno = 39 (0x27), region = 220 }
 0x164   : >> { %v633_v30 = vld [vmem:[%s632_s24] ss:$0 sm:$0xff] }
 0x165   : >> { %v638_v31 = vsel %vm1182_vm4, %v1165_v17, %v633_v30 }
 0x166   : >> { %639 = vst [vmem:[%s632_s24] sm:$0x1] %v638_v31 }
 0x167   : > { %p718_p10 = scmp.lt.s32.totalorder (%p1083_p3), %s1015_s11, 0  ;;  %s719_s30 = ssub.s32 (%p1083_p3), 0, %s1015_s11  ;;  %v742_v37 = vld [vmem:[%s168_s15] sm:$0x3] (%p1083_p3) }
 0x168   : > { %s913_s3 = smin.u32 (%p1083_p3), %s1015_s11, %s719_s30 }
 0x169   : > { %s721_s4 = sshrl.u32 (%p1083_p3), %s913_s3, 3 }
 0x16a   : > { %s722_s5 = ssub.s32 (%p1083_p3), 0, %s721_s4 }
 0x16d   : > { %v700_v33 = vld [vmem:[%s1105_s18] sm:$0xff]  ;;  %v702_v38 = vld [vmem:[%s1105_s18 + $0x8] sm:$0xff]  ;;  %v704_v17 = vld [vmem:[%s1105_s18 + $0x10] sm:$0xff]  ;;  %717 = sbr.rel (!%p1083_p3) target bundleno = 374 (0x176), region = 99 }
 0x16e   : > { %v706_v34 = vld [vmem:[%s1105_s18 + $0x18] sm:$0xff]  ;;  %v708_v35 = vld [vmem:[%s1105_s18 + $0x20] sm:$0xff]  ;;  %v710_v36 = vld [vmem:[%s1105_s18 + $0x28] sm:$0xff]  ;;  %701 = vst [vmem:[%s661_s29] sm:$0xff] %v700_v33 }
 0x16f   : > { %703 = vst [vmem:[%s661_s29 + $0x8] sm:$0xff] %v702_v38  ;;  %705 = vst [vmem:[%s661_s29 + $0x10] sm:$0xff] %v704_v17 }
 0x170   : > { %707 = vst [vmem:[%s661_s29 + $0x18] sm:$0xff] %v706_v34  ;;  %709 = vst [vmem:[%s661_s29 + $0x20] sm:$0xff] %v708_v35 }
 0x171   : > { %711 = vst [vmem:[%s661_s29 + $0x28] sm:$0xff] %v710_v36 }
 0x172   : > { %s1403_s5 = smov (!%p718_p10, %s722_s5), %s721_s4 }
 0x173   : > { %s914_s6 = sshll.u32 %s1403_s5, 1 }
 0x174   : > { %s725_s17 = scalar_lea.vmem %s1378_s2, %s914_s6 }
 0x175   : > { %743 = vst [vmem:[%s725_s17] sm:$0x3] %v742_v37 }
 0x176 PF: > { %s9_s13 = sadd.s32 1, %s1023_s13   ;;  %s1396_s9 = smov %s1011_s10 }
 0x177   : > { %p6_p11 = scmp.ge.s32.totalorder %s9_s13, 4   ;;  %s1397_s10 = smov %s1089_s25 }
 0x178   : > { %s1398_s11 = smov %s1019_s12  ;;  %s1399_s12 = smov %s1401_s14 }
 0x179   :  { %8 = sbr.rel (!%p6_p11) target bundleno = 3 (0x3), region = 231 }

// kernel: custom-call.33
= control target key start
LH: loop header
LB: loop body
LE: loop exit
PB: predicated region body
PF: predicated region fallthrough
CT: control target
= control target key end

     0   :  { %s404_s6 = smov 0   ;;  %s481_s0 = inlined_call_operand.vmem [shape: f32[2,16,16], index: 0, kind: input, shape index: {}]   ;;  %s482_s1 = inlined_call_operand.vmem [shape: f32[2,16,16], index: 1, kind: output, shape index: {}]  }
   0x1 LB: > { %s348_s7 = sadd.s32 4294967295, %s391_s6   ;;  %p350_p0 = scmp.ge.s32.totalorder %s391_s6, 2  ;;  %s391_s6 = sphi %s404_s6, %s7_s6  }
   0x2   : > { %s23_s8 = sand.u32 (!%p350_p0), 1, %s391_s6   ;;  %s352_s9 = sshll.u32 (!%p350_p0), %s391_s6, 4 }
   0x3   : > { %21 = sbr.rel (%p350_p0) target bundleno = 10 (0xa), region = 16  ;;  %s351_s10 = sshll.u32 (!%p350_p0), %s23_s8, 4 }
   0x4   : > { %s27_s13 = scalar_lea.vmem (!%p350_p0), %s481_s0, %s352_s9  ;;  %s25_s14 = scalar_lea.vmem (!%p350_p0), [#allocation0], %s351_s10 }
   0x8   : > { %v40_v0 = vld [vmem:[%s27_s13] sm:$0xff]  ;;  %v42_v1 = vld [vmem:[%s27_s13 + $0x8] sm:$0xff] }
   0x9   : > { %41 = vst [vmem:[%s25_s14] sm:$0xff] %v40_v0  ;;  %43 = vst [vmem:[%s25_s14 + $0x8] sm:$0xff] %v42_v1 }
   0xa PF: > { %p353_p1 = scmp.ge.s32.totalorder %s391_s6, 1  ;;  %p48_p2 = scmp.lt.s32.totalorder %s391_s6, 3 }
   0xc   : > { %p49_p3 = pnand %p353_p1, %p48_p2 }
   0xd   : > { %s55_s15 = sand.u32 (!%p49_p3), 1, %s348_s7   ;;  %s373_s18 = sshll.u32 (!%p49_p3), %s348_s7, 4 }
   0xe   : > { %52 = sbr.rel (%p49_p3) target bundleno = 2142 (0x85e), region = 39  ;;  %s354_s16 = sshll.u32 (!%p49_p3), %s55_s15, 4 }
   0xf   : > { %s422_s17 = scalar_lea.vmem (!%p49_p3), [#allocation0], %s354_s16  ;;  %s290_s21 = scalar_lea.vmem (!%p49_p3), %s482_s1, %s373_s18 }
  0x13   : > { %v66_v2 = vlaneseq  ;;  %vm87_vm0 = vcmask 130048   ;;  %v72_v5 = vld [vmem:[%s422_s17] sm:$0xff]  ;;  %v363_v38 = vld [vmem:[%s422_s17 + $0x8] ss:$0 sm:$0xff]  ;;  %v393_v42 = vmov 0.0  }
  0x14   : > { %v356_v6 = vld [vmem:[%s422_s17 + $0x1] ss:$0 sm:$0xff]  ;;  %v357_v11 = vld [vmem:[%s422_s17 + $0x2] ss:$0 sm:$0xff]  ;;  %v358_v16 = vld [vmem:[%s422_s17 + $0x3] ss:$0 sm:$0xff] }
  0x15   : > { %v420_v3 = vand.u32 127, %v66_v2  ;;  %v69_v4 = vshrl.u32 %v66_v2, 7  ;;  %v88_v7 = vsel %vm87_vm0, %v356_v6, 0.0  ;;  %v99_v12 = vsel %vm87_vm0, %v357_v11, 0.0  ;;  %v359_v21 = vld [vmem:[%s422_s17 + $0x4] ss:$0 sm:$0xff] }
  0x16   : > { %v110_v17 = vsel %vm87_vm0, %v358_v16, 0.0  ;;  %v121_v22 = vsel %vm87_vm0, %v359_v21, 0.0  ;;  %v360_v26 = vld [vmem:[%s422_s17 + $0x5] ss:$0 sm:$0xff]  ;;  %v361_v31 = vld [vmem:[%s422_s17 + $0x6] ss:$0 sm:$0xff] }
  0x17   : > { %vm71_vm1 = vcmp.eq.s32.totalorder %v420_v3, %v69_v4  ;;  %vm75_vm2 = vcmp.eq.s32.totalorder %v420_v3, 0  ;;  %vm91_vm3 = vcmp.eq.s32.totalorder %v420_v3, 1  ;;  %vm102_vm4 = vcmp.eq.s32.totalorder %v420_v3, 2  ;;  %v362_v37 = vld [vmem:[%s422_s17 + $0x7] ss:$0 sm:$0xff] }
  0x18   : > { %v76_v8 = vsel %vm75_vm2, %v72_v5, 1.0  ;;  %vm113_vm5 = vcmp.eq.s32.totalorder %v420_v3, 3  ;;  %vm124_vm6 = vcmp.eq.s32.totalorder %v420_v3, 4  ;;  %v132_v27 = vsel %vm87_vm0, %v360_v26, 0.0  ;;  %v364_v48 = vld [vmem:[%s422_s17 + $0x9] ss:$0 sm:$0xff] }
  0x19   : > { %v77_v9 = vsel %vm71_vm1, %v76_v8, 0.0  ;;  %vm135_vm7 = vcmp.eq.s32.totalorder %v420_v3, 5  ;;  %v143_v32 = vsel %vm87_vm0, %v361_v31, 0.0  ;;  %v82_v36 = vadd.s32 8, %v69_v4  ;;  %v365_v56 = vld [vmem:[%s422_s17 + $0xa] ss:$0 sm:$0xff] }
  0x1a   : > { %v92_v10 = vmul.f32 %v88_v7, %v77_v9  ;;  %vm146_vm8 = vcmp.eq.s32.totalorder %v420_v3, 6  ;;  %v154_v39 = vsel %vm87_vm0, %v362_v37, 0.0  ;;  %v165_v44 = vsel %vm87_vm0, %v363_v38, 0.0  ;;  %v366_v0 = vld [vmem:[%s422_s17 + $0xb] ss:$0 sm:$0xff] }
  0x1b   : > { %vm83_vm9 = vcmp.eq.s32.totalorder %v420_v3, %v82_v36  ;;  %vm157_vm10 = vcmp.eq.s32.totalorder %v420_v3, 7  ;;  %vm168_vm11 = vcmp.eq.s32.totalorder %v420_v3, 8  ;;  %v180_v51 = vsel %vm87_vm0, %v364_v48, 0.0 }
  0x1c   : > { %93 = vadd.xlane.f32.xlu0 %v92_v10  ;;  %v84_v43 = vsel %vm83_vm9, 1.0, %v393_v42  ;;  %vm183_vm12 = vcmp.eq.s32.totalorder %v420_v3, 9  ;;  %v195_v59 = vsel %vm87_vm0, %v365_v56, 0.0  ;;  %vm198_vm13 = vcmp.eq.s32.totalorder %v420_v3, 10 }
  0x1d   : > { %v173_v46 = vmul.f32 %v165_v44, %v84_v43  ;;  %v210_v4 = vsel %vm87_vm0, %v366_v0, 0.0  ;;  %vm213_vm14 = vcmp.eq.s32.totalorder %v420_v3, 11  ;;  %vm228_vm15 = vcmp.eq.s32.totalorder %v420_v3, 12 }
  0x1e   : > { %vm243_vm1 = vcmp.eq.s32.totalorder %v420_v3, 13  ;;  %vm258_vm2 = vcmp.eq.s32.totalorder %v420_v3, 14 }
  0xa5   : > { %v94_v13 = vpop.xlane.xlu0 %93 }
  0xa6   : > { %v95_v14 = vsel %vm91_vm3, %v94_v13, %v77_v9  ;;  %v367_v9 = vld [vmem:[%s422_s17 + $0xc] ss:$0 sm:$0xff]  ;;  %vm273_vm3 = vcmp.eq.s32.totalorder %v420_v3, 15 }
  0xa7   : > { %v103_v15 = vmul.f32 %v99_v12, %v95_v14  ;;  %v225_v12 = vsel %vm87_vm0, %v367_v9, 0.0 }
  0xa9   : > { %104 = vadd.xlane.f32.xlu0 %v103_v15 }
 0x132   : > { %v105_v18 = vpop.xlane.xlu0 %104 }
 0x133   : > { %v106_v19 = vsel %vm102_vm4, %v105_v18, %v95_v14 }
 0x134   : > { %v114_v20 = vmul.f32 %v110_v17, %v106_v19  ;;  %v368_v17 = vld [vmem:[%s422_s17 + $0xd] ss:$0 sm:$0xff] }
 0x136   : > { %115 = vadd.xlane.f32.xlu1 %v114_v20  ;;  %v240_v20 = vsel %vm87_vm0, %v368_v17, 0.0 }
 0x1bf   : > { %v116_v23 = vpop.xlane.xlu1 %115 }
 0x1c0   : > { %v117_v24 = vsel %vm113_vm5, %v116_v23, %v106_v19 }
 0x1c1   : > { %v125_v25 = vmul.f32 %v121_v22, %v117_v24 }
 0x1c3   : > { %126 = vadd.xlane.f32.xlu1 %v125_v25  ;;  %v369_v25 = vld [vmem:[%s422_s17 + $0xe] ss:$0 sm:$0xff] }
 0x24c   : > { %v127_v28 = vpop.xlane.xlu1 %126 }
 0x24d   : > { %v128_v29 = vsel %vm124_vm6, %v127_v28, %v117_v24  ;;  %v255_v28 = vsel %vm87_vm0, %v369_v25, 0.0 }
 0x24e   : > { %v136_v30 = vmul.f32 %v132_v27, %v128_v29 }
 0x250   : > { %137 = vadd.xlane.f32.xlu0 %v136_v30 }
 0x2d9   : > { %v138_v33 = vpop.xlane.xlu0 %137 }
 0x2da   : > { %v139_v34 = vsel %vm135_vm7, %v138_v33, %v128_v29  ;;  %v370_v33 = vld [vmem:[%s422_s17 + $0xf] ss:$0 sm:$0xff] }
 0x2db   : > { %v147_v35 = vmul.f32 %v143_v32, %v139_v34  ;;  %v270_v36 = vsel %vm87_vm0, %v370_v33, 0.0 }
 0x2dd   : > { %148 = vadd.xlane.f32.xlu1 %v147_v35 }
 0x366   : > { %v149_v40 = vpop.xlane.xlu1 %148 }
 0x367   : > { %v150_v41 = vsel %vm146_vm8, %v149_v40, %v139_v34 }
 0x368   : > { %v158_v45 = vmul.f32 %v154_v39, %v150_v41 }
 0x36a   : > { %159 = vadd.xlane.f32.xlu0 %v158_v45 }
 0x36e   : > { %174 = vadd.xlane.f32.xlu0 %v173_v46 }
 0x3f3   : > { %v160_v47 = vpop.xlane.xlu0 %159 }
 0x3f4   : > { %v161_v49 = vsel %vm157_vm10, %v160_v47, %v150_v41 }
 0x3f5   : > { %v169_v50 = vmul.f32 %v165_v44, %v161_v49 }
 0x3f7   : > { %170 = vadd.xlane.f32.xlu1 %v169_v50  ;;  %v175_v52 = vpop.xlane.xlu0 %174 }
 0x3f8   : > { %v176_v53 = vsel %vm168_vm11, %v175_v52, %v84_v43 }
 0x3f9   : > { %v188_v54 = vmul.f32 %v180_v51, %v176_v53 }
 0x3fb   : > { %189 = vadd.xlane.f32.xlu0 %v188_v54 }
 0x480   : > { %v171_v55 = vpop.xlane.xlu1 %170 }
 0x481   : > { %v172_v57 = vsel %vm168_vm11, %v171_v55, %v161_v49 }
 0x482   : > { %v184_v58 = vmul.f32 %v180_v51, %v172_v57 }
 0x484   : > { %185 = vadd.xlane.f32.xlu1 %v184_v58  ;;  %v190_v60 = vpop.xlane.xlu0 %189 }
 0x485   : > { %v191_v61 = vsel %vm183_vm12, %v190_v60, %v176_v53 }
 0x486   : > { %v203_v62 = vmul.f32 %v195_v59, %v191_v61 }
 0x488   : > { %204 = vadd.xlane.f32.xlu0 %v203_v62 }
 0x50d   : > { %v186_v63 = vpop.xlane.xlu1 %185 }
 0x50e   : > { %v187_v1 = vsel %vm183_vm12, %v186_v63, %v172_v57 }
 0x50f   : > { %v199_v2 = vmul.f32 %v195_v59, %v187_v1 }
 0x511   : > { %200 = vadd.xlane.f32.xlu1 %v199_v2  ;;  %v205_v5 = vpop.xlane.xlu0 %204 }
 0x512   : > { %v206_v6 = vsel %vm198_vm13, %v205_v5, %v191_v61 }
 0x513   : > { %v218_v7 = vmul.f32 %v210_v4, %v206_v6 }
 0x515   : > { %219 = vadd.xlane.f32.xlu0 %v218_v7 }
 0x59a   : > { %v201_v8 = vpop.xlane.xlu1 %200 }
 0x59b   : > { %v202_v10 = vsel %vm198_vm13, %v201_v8, %v187_v1 }
 0x59c   : > { %v214_v11 = vmul.f32 %v210_v4, %v202_v10 }
 0x59e   : > { %215 = vadd.xlane.f32.xlu1 %v214_v11  ;;  %v220_v13 = vpop.xlane.xlu0 %219 }
 0x59f   : > { %v221_v14 = vsel %vm213_vm14, %v220_v13, %v206_v6 }
 0x5a0   : > { %v233_v15 = vmul.f32 %v225_v12, %v221_v14 }
 0x5a2   : > { %234 = vadd.xlane.f32.xlu0 %v233_v15 }
 0x627   : > { %v216_v16 = vpop.xlane.xlu1 %215 }
 0x628   : > { %v217_v18 = vsel %vm213_vm14, %v216_v16, %v202_v10 }
 0x629   : > { %v229_v19 = vmul.f32 %v225_v12, %v217_v18 }
 0x62b   : > { %230 = vadd.xlane.f32.xlu1 %v229_v19  ;;  %v235_v21 = vpop.xlane.xlu0 %234 }
 0x62c   : > { %v236_v22 = vsel %vm228_vm15, %v235_v21, %v221_v14 }
 0x62d   : > { %v248_v23 = vmul.f32 %v240_v20, %v236_v22 }
 0x62f   : > { %249 = vadd.xlane.f32.xlu0 %v248_v23 }
 0x6b4   : > { %v231_v24 = vpop.xlane.xlu1 %230 }
 0x6b5   : > { %v232_v26 = vsel %vm228_vm15, %v231_v24, %v217_v18 }
 0x6b6   : > { %v244_v27 = vmul.f32 %v240_v20, %v232_v26 }
 0x6b8   : > { %245 = vadd.xlane.f32.xlu1 %v244_v27  ;;  %v250_v29 = vpop.xlane.xlu0 %249 }
 0x6b9   : > { %v251_v30 = vsel %vm243_vm1, %v250_v29, %v236_v22 }
 0x6ba   : > { %v263_v31 = vmul.f32 %v255_v28, %v251_v30 }
 0x6bc   : > { %264 = vadd.xlane.f32.xlu0 %v263_v31 }
 0x741   : > { %v246_v32 = vpop.xlane.xlu1 %245 }
 0x742   : > { %v247_v34 = vsel %vm243_vm1, %v246_v32, %v232_v26 }
 0x743   : > { %v259_v35 = vmul.f32 %v255_v28, %v247_v34 }
 0x745   : > { %260 = vadd.xlane.f32.xlu1 %v259_v35  ;;  %v265_v37 = vpop.xlane.xlu0 %264 }
 0x746   : > { %v266_v38 = vsel %vm258_vm2, %v265_v37, %v251_v30 }
 0x747   : > { %v278_v39 = vmul.f32 %v270_v36, %v266_v38 }
 0x749   : > { %279 = vadd.xlane.f32.xlu0 %v278_v39 }
 0x7ce   : > { %v261_v40 = vpop.xlane.xlu1 %260 }
 0x7cf   : > { %v262_v41 = vsel %vm258_vm2, %v261_v40, %v247_v34 }
 0x7d0   : > { %v274_v42 = vmul.f32 %v270_v36, %v262_v41 }
 0x7d2   : > { %275 = vadd.xlane.f32.xlu1 %v274_v42  ;;  %v280_v43 = vpop.xlane.xlu0 %279 }
 0x7d3   : > { %v281_v44 = vsel %vm273_vm3, %v280_v43, %v266_v38 }
 0x7d4   : > { %306 = vst [vmem:[%s290_s21 + $0x8] sm:$0xff] %v281_v44 }
 0x85b   : > { %v276_v45 = vpop.xlane.xlu1 %275 }
 0x85c   : > { %v277_v46 = vsel %vm273_vm3, %v276_v45, %v262_v41 }
 0x85d   : > { %304 = vst [vmem:[%s290_s21] sm:$0xff] %v277_v46 }
 0x85e PF: > { %s7_s6 = sadd.s32 1, %s391_s6  }
 0x85f   : > { %p4_p4 = scmp.ge.s32.totalorder %s7_s6, 4  }
 0x861   :  { %6 = sbr.rel (!%p4_p4) target bundleno = 1 (0x1), region = 104 }

// kernel: custom-call.47
= control target key start
LH: loop header
LB: loop body
LE: loop exit
PB: predicated region body
PF: predicated region fallthrough
CT: control target
= control target key end

     0   :  { %s896_s9 = smov 0   ;;  %s898_s10 = smov 0   ;;  %s1153_s0 = inlined_call_operand.vmem [shape: f32[2,32,16], index: 0, kind: input, shape index: {}]   ;;  %s1154_s1 = inlined_call_operand.vmem [shape: f32[2,32,16], index: 1, kind: output, shape index: {0}]   ;;  %s1155_s2 = inlined_call_operand.vmem [shape: f32[2,16], index: 2, kind: output, shape index: {1}]  }
   0x1   :  { %s900_s11 = smov 0   ;;  %s902_s12 = smov 0  }
   0x2   :  { %s904_s13 = smov 0  }
   0x3 LB: > { %s28_s14 = sadd.s32 1, %s869_s12  ;;  %s720_s15 = sadd.s32 4294967295, %s873_s13   ;;  %s873_s13 = sphi %s904_s13, %s9_s13   ;;  %s869_s12 = sphi %s902_s12, %s1170_s12   ;;  %s865_s11 = sphi %s900_s11, %s1169_s11   ;;  %s861_s10 = sphi %s898_s10, %s1168_s10   ;;  %s857_s9 = sphi %s896_s9, %s1167_s9  }
   0x4   : > { %p30_p0 = scmp.ge.s32.totalorder %s28_s14, 2  ;;  %s33_s16 = ssub.s32 0, %s869_s12 }
   0x5   : > { %s722_s17 = smin.u32 %s869_s12, %s33_s16  ;;  %p57_p1 = scmp.ne.s32.totalorder %s861_s10, %s857_s9 }
   0x6   : > { %s1172_s14 = smov (%p30_p0, %s28_s14), 0  ;;  %s35_s18 = sshrl.u32 %s722_s17, 3 }
   0x7   : > { %s39_s19 = ssub.s32 0, %s1172_s14  ;;  %p58_p2 = scmp.eq.s32.totalorder %s720_s15, 1 }
   0x8   : > { %s723_s20 = smin.u32 %s39_s19, %s1172_s14  ;;  %s47_s24 = sadd.s32 1, %s861_s10 }
   0x9   : > { %s41_s21 = sshrl.u32 %s723_s20, 3  ;;  %p933_p3 = por %p58_p2, %p57_p1 }
   0xa   : > { %s44_s23 = ssub.s32 %s35_s18, %s41_s21  ;;  %p725_p5 = scmp.ge.s32.totalorder %s873_s13, 2 }
   0xb   : > { %p45_p4 = scmp.eq.s32.totalorder %s44_s23, 0  ;;  %s82_s26 = sand.u32 (!%p725_p5), 1, %s873_s13  }
   0xc   : > { %80 = sbr.rel (%p725_p5) target bundleno = 20 (0x14), region = 16  ;;  %s769_s27 = sshll.u32 (!%p725_p5), %s869_s12, 5 }
   0xd   : > { %s939_s25 = scalar_select %p45_p4, %s861_s10, %s47_s24  }
   0xe   : > { %s726_s28 = sshll.u32 (!%p725_p5), %s82_s26, 5  ;;  %s90_s3 = scalar_lea.vmem (!%p725_p5), %s1153_s0, %s769_s27 }
   0xf   : > { %s84_s4 = scalar_lea.vmem (!%p725_p5), [#allocation0], %s726_s28 }
  0x11   : > { %v125_v0 = vld [vmem:[%s90_s3] sm:$0xff]  ;;  %v127_v1 = vld [vmem:[%s90_s3 + $0x8] sm:$0xff]  ;;  %v129_v2 = vld [vmem:[%s90_s3 + $0x10] sm:$0xff] }
  0x12   : > { %126 = vst [vmem:[%s84_s4] sm:$0xff] %v125_v0  ;;  %128 = vst [vmem:[%s84_s4 + $0x8] sm:$0xff] %v127_v1  ;;  %v131_v3 = vld [vmem:[%s90_s3 + $0x18] sm:$0xff] }
  0x13   : > { %130 = vst [vmem:[%s84_s4 + $0x10] sm:$0xff] %v129_v2  ;;  %132 = vst [vmem:[%s84_s4 + $0x18] sm:$0xff] %v131_v3 }
  0x14 PF: > { %p729_p6 = scmp.ge.s32.totalorder %s873_s13, 1  ;;  %p137_p7 = scmp.lt.s32.totalorder %s873_s13, 3 }
  0x16   : > { %p138_p8 = pnand %p729_p6, %p137_p7 }
  0x18   : > { %141 = sbr.rel (%p138_p8) target bundleno = 356 (0x164), region = 54 }
  0x1d   : > { %s144_s5 = sand.u32 1, %s720_s15   ;;  %s158_s6 = sand.u32 1, %s857_s9   ;;  %v879_v8 = vmov 0.0  }
  0x1e   : > { %s730_s7 = sshll.u32 %s144_s5, 5  ;;  %s952_s8 = sshll.u32 %s158_s6, 1 }
  0x1f   : > { %s169_s16 = sand.u32 7, %s865_s11   ;;  %s146_s17 = scalar_lea.vmem [#allocation0], %s730_s7 }
  0x20   : > { %v171_v4 = vld [vmem:[%s146_s17] sm:$0xff]  ;;  %v733_v5 = vld [vmem:[%s146_s17 + $0x8] sm:$0xff]  ;;  %v735_v6 = vld [vmem:[%s146_s17 + $0x10] sm:$0xff]  ;;  %s955_s18 = scalar_lea.vmem [#allocation1], %s730_s7  ;;  %s961_s9 = scalar_lea.vmem [#allocation2], %s169_s16 }
  0x21   : > { %172 = vst [vmem:[%s955_s18] sm:$0xff] %v171_v4  ;;  %734 = vst [vmem:[%s955_s18 + $0x8] sm:$0xff] %v733_v5  ;;  %v737_v7 = vld [vmem:[%s146_s17 + $0x18] sm:$0xff]  ;;  %s160_s15 = scalar_lea.vmem [#allocation3], %s952_s8  ;;  %s965_s19 = smov 0  }
  0x22   : > { %736 = vst [vmem:[%s955_s18 + $0x10] sm:$0xff] %v735_v6  ;;  %738 = vst [vmem:[%s955_s18 + $0x18] sm:$0xff] %v737_v7 }
  0x23   : > { %185 = vst [vmem:[%s961_s9] sm:$0x1] %v879_v8 }
  0x24 LB: >> { %v193_v9 = vlaneseq  ;;  %v975_v12 = vstv %s877_s19  ;;  %s250_s20 = scalar_lea.vmem %s955_s18, %s877_s19 [#allocation1]  ;;  %s362_s21 = scalar_lea.vmem [#allocation4], %s877_s19  ;;  %s877_s19 = sphi %s965_s19, %s191_s19  }
  0x25   : >> { %s379_s23 = smov [#allocation4] }
  0x26   : >> { %v972_v11 = vshrl.u32 %v193_v9, 7 }
  0x28   : >> { %v192_v10 = vld [vmem:[%s955_s18] sm:$0xff]  ;;  %vm197_vm0 = vcmp.gt.s32.totalorder %v972_v11, %v975_v12  ;;  %v739_v13 = vld [vmem:[%s955_s18 + $0x8] sm:$0xff]  ;;  %v204_v14 = vadd.s32 8, %v972_v11  ;;  %v214_v16 = vadd.s32 16, %v972_v11  ;;  %v224_v18 = vadd.s32 24, %v972_v11 }
  0x29   : >> { %v740_v15 = vld [vmem:[%s955_s18 + $0x10] sm:$0xff]  ;;  %v741_v17 = vld [vmem:[%s955_s18 + $0x18] sm:$0xff]  ;;  %v198_v19 = vsel %vm197_vm0, %v192_v10, 0.0  ;;  %v993_v36 = vld [vmem:[%s250_s20] ss:$0 sm:$0xff]  ;;  %v289_v11 = vmov %v972_v11  ;;  %s286_s18 = smov %s955_s18  ;;  %v1018_v10 = vand.u32 127, %v193_v9 }
  0x2a   : >> { %v199_v20 = vmul.f32 %v198_v19, %v198_v19  ;;  %vm206_vm1 = vcmp.gt.s32.totalorder %v204_v14, %v975_v12  ;;  %vm216_vm2 = vcmp.gt.s32.totalorder %v214_v16, %v975_v12  ;;  %vm226_vm3 = vcmp.gt.s32.totalorder %v224_v18, %v975_v12  ;;  %v744_v5 = vld [vmem:[%s286_s18 + $0x10] sm:$0xff]  ;;  %v290_v6 = vld [vmem:[%s286_s18] sm:$0xff]  ;;  %v745_v7 = vld [vmem:[%s286_s18 + $0x18] sm:$0xff] }
  0x2b   : >> { %v207_v21 = vsel %vm206_vm1, %v739_v13, 0.0  ;;  %v217_v22 = vsel %vm216_vm2, %v740_v15, 0.0  ;;  %v229_v23 = vsel %vm226_vm3, %v741_v17, 0.0  ;;  %v252_v37 = vand.u32 2147483647, %v993_v36  ;;  %v743_v8 = vld [vmem:[%s286_s18 + $0x8] sm:$0xff]  ;;  %s1050_s18 = smov %s955_s18 }
  0x2c   : >> { %v208_v24 = vmul.f32 %v207_v21, %v207_v21  ;;  %v218_v25 = vmul.f32 %v217_v22, %v217_v22  ;;  %v230_v27 = vmul.f32 %v229_v23, %v229_v23  ;;  %vm277_vm9 = vcmp.lt.f32.partialorder %v993_v36, 0.0 }
  0x2d   : >> { %v253_v42 = vmax.f32 %v252_v37, 0.0  ;;  %v344_v2 = vadd.s32 24, %v289_v11  ;;  %v326_v3 = vadd.s32 16, %v289_v11  ;;  %v308_v4 = vadd.s32 8, %v289_v11 }
  0x2e   : >> { %v209_v26 = vadd.f32 %v208_v24, %v199_v20  ;;  %vm293_vm12 = vcmp.gt.s32.totalorder %v289_v11, %v975_v12  ;;  %vm1023_vm0 = vcmp.eq.s32.totalorder %v1018_v10, %v975_v12  ;;  %v382_v11 = vmov %v972_v11 }
  0x2f   : >> { %vm346_vm10 = vcmp.gt.s32.totalorder %v344_v2, %v975_v12  ;;  %vm347_vm11 = vcmp.lt.s32.totalorder %v344_v2, 32  ;;  %vm328_vm13 = vcmp.gt.s32.totalorder %v326_v3, %v975_v12  ;;  %vm310_vm15 = vcmp.gt.s32.totalorder %v308_v4, %v975_v12 }
  0x30   : >> { %v219_v28 = vadd.f32 %v218_v25, %v209_v26  ;;  %vm348_vm14 = vmand %vm346_vm10, %vm347_vm11  ;;  %v294_v13 = vsel %vm293_vm12, %v290_v6, 0.0  ;;  %v329_v14 = vsel %vm328_vm13, %v744_v5, 0.0  ;;  %v311_v16 = vsel %vm310_vm15, %v743_v8, 0.0 }
  0x31   : >> { %v349_v15 = vsel %vm348_vm14, %v745_v7, 0.0 }
  0x32   : >> { %v231_v29 = vadd.f32 %v230_v27, %v219_v28 }
  0x34   : >> { %v232_v30 = vrot.slane %v231_v29, 4 }
  0x36   : >> { %v233_v31 = vadd.f32 %v232_v30, %v231_v29 }
  0x38   : >> { %v234_v32 = vrot.slane %v233_v31, 2 }
  0x3a   : >> { %v235_v33 = vadd.f32 %v234_v32, %v233_v31 }
  0x3c   : >> { %v236_v34 = vrot.slane %v235_v33, 1 }
  0x3e   : >> { %v988_v35 = vadd.f32 %v236_v34, %v235_v33 }
  0x40   : >> { %821 = vrsqrt.f32 %v988_v35  ;;  %vm240_vm4 = vcmp.eq.f32.partialorder %v988_v35, inf  ;;  %v243_v39 = vand.u32 2147483648, %v988_v35  ;;  %vm242_vm5 = vcmp.eq.f32.partialorder %v988_v35, 0.0 }
  0x4d   : >> { %v822_v38 = vpop.eup %821 }
  0x4e   : >> { %v239_v40 = vmul.f32 %v822_v38, %v988_v35 }
  0x50   : >> { %v241_v41 = vsel %vm240_vm4, %v988_v35, %v239_v40  ;;  %v880_v35 = vmov 1.0   ;;  %v375_v40 = vld [vmem:[%s961_s9] ss:$0 sm:$0xff] }
  0x51   : >> { %v244_v43 = vsel %vm242_vm5, %v243_v39, %v241_v41 }
  0x52   : >> { %v254_v44 = vand.u32 2147483647, %v244_v43  ;;  %v385_v43 = vld [vmem:[%s1050_s18] sm:$0xff] }
  0x54   : >> { %v255_v45 = vmax.f32 %v253_v42, %v254_v44 }
  0x56   : >> { %823 = vrcp.f32 %v255_v45  ;;  %vm267_vm8 = vcmp.eq.f32.partialorder %v255_v45, 0.0 }
  0x63   : >> { %v824_v46 = vpop.eup %823 }
  0x64   : >> { %v257_v47 = vmul.f32 %v824_v46, %v252_v37  ;;  %v260_v48 = vmul.f32 0.0, %v824_v46  ;;  %v264_v49 = vmul.f32 %v824_v46, %v254_v44  ;;  %v747_v44 = vld [vmem:[%s1050_s18 + $0x8] sm:$0xff]  ;;  %v401_v46 = vadd.s32 24, %v382_v11 }
  0x65   : >> { %v420_v11 = vmov %v972_v11 }
  0x66   : >> { %v258_v50 = vmul.f32 %v257_v47, %v257_v47  ;;  %v261_v51 = vmul.f32 %v260_v48, %v260_v48  ;;  %v265_v52 = vmul.f32 %v264_v49, %v264_v49  ;;  %v751_v47 = vld [vmem:[%s1050_s18 + $0x18] sm:$0xff]  ;;  %vm407_vm1 = vcmp.lt.s32.totalorder %v401_v46, 32 }
  0x67   : >> { %v462_v3 = vadd.s32 16, %v420_v11  ;;  %vm437_vm2 = vcmp.ge.s32.totalorder %v420_v11, %v975_v12  ;;  %v483_v4 = vadd.s32 24, %v420_v11 }
  0x68   : >> { %v262_v53 = vadd.f32 %v261_v51, %v258_v50  ;;  %vm1071_vm4 = vmand %vm1023_vm0, %vm437_vm2 }
  0x6a   : >> { %v266_v54 = vadd.f32 %v265_v52, %v262_v53 }
  0x6c   : >> { %825 = vrsqrt.f32 %v266_v54  ;;  %vm270_vm6 = vcmp.eq.f32.partialorder %v266_v54, inf  ;;  %v273_v56 = vand.u32 2147483648, %v266_v54  ;;  %vm272_vm7 = vcmp.eq.f32.partialorder %v266_v54, 0.0 }
  0x79   : >> { %v826_v55 = vpop.eup %825 }
  0x7a   : >> { %v269_v57 = vmul.f32 %v826_v55, %v266_v54 }
  0x7c   : >> { %v271_v58 = vsel %vm270_vm6, %v266_v54, %v269_v57  ;;  %vm500_vm6 = vcmp.ge.s32.totalorder %v483_v4, %v975_v12 }
  0x7d   : >> { %v274_v59 = vsel %vm272_vm7, %v273_v56, %v271_v58  ;;  %vm1094_vm10 = vmand %vm1023_vm0, %vm500_vm6 }
  0x7e   : >> { %v275_v60 = vmul.f32 %v274_v59, %v255_v45  ;;  %v749_v45 = vld [vmem:[%s1050_s18 + $0x10] sm:$0xff]  ;;  %s1062_s18 = smov %s1050_s18 }
  0x7f   : >> { %v427_v6 = vld [vmem:[%s1062_s18] sm:$0xff]  ;;  %v753_v7 = vld [vmem:[%s1062_s18 + $0x8] sm:$0xff]  ;;  %v756_v8 = vld [vmem:[%s1062_s18 + $0x10] sm:$0xff]  ;;  %s504_s24 = scalar_lea.vmem %s1062_s18, %s877_s19  ;;  %s191_s19 = sadd.s32 1, %s877_s19  }
  0x80   : >> { %v276_v61 = vsel %vm267_vm8, 0.0, %v275_v60  ;;  %vm429_vm8 = vcmp.gt.s32.totalorder %v1018_v10, %v975_v12  ;;  %p188_p9 = scmp.ge.s32.totalorder %s191_s19, 16  }
  0x81   : >> { %v278_v62 = vxor.u32 2147483648, %v276_v61  ;;  %s770_s26 = sshll.u32 (%p188_p9), %s865_s11, 5 }
  0x82   : > { %s533_s29 = scalar_lea.vmem (%p188_p9), %s1154_s1, %s770_s26 }
  0x83   : >> { %v279_v63 = vsel %vm277_vm9, %v276_v61, %v278_v62 }
  0x84   : >> { %v1007_v0 = vsel %vm242_vm5, %v993_v36, %v279_v63  ;;  %827 = vrcp.f32 %v279_v63  ;;  %v280_v17 = vsub.f32 %v279_v63, %v993_v36 }
  0x85   : >> { %v285_v1 = vsub.f32 %v993_v36, %v1007_v0 }
  0x87   : >> { %829 = vrcp.f32 %v285_v1  ;;  %v441_v1 = vadd.s32 8, %v420_v11 }
  0x89   : >> { %vm458_vm3 = vcmp.ge.s32.totalorder %v441_v1, %v975_v12 }
  0x8a   : >> { %vm1080_vm7 = vmand %vm1023_vm0, %vm458_vm3 }
  0x91   : >> { %v828_v18 = vpop.eup %827 }
  0x92   : >> { %v282_v9 = vmul.f32 %v828_v18, %v280_v17 }
  0x94   : >> { %v830_v19 = vpop.eup %829  ;;  %v284_v33 = vsel %vm242_vm5, 0.0, %v282_v9 }
  0x95   : >> { %v331_v21 = vmul.f32 %v830_v19, %v329_v14  ;;  %v296_v22 = vmul.f32 %v830_v19, %v294_v13  ;;  %v351_v23 = vmul.f32 %v830_v19, %v349_v15  ;;  %v313_v24 = vmul.f32 %v830_v19, %v311_v16  ;;  %v759_v15 = vld [vmem:[%s1062_s18 + $0x18] sm:$0xff] }
  0x96   : >> { %v368_v34 = vsel %vm1023_vm0, %v284_v33, 0.0 }
  0x97   : >> { %v332_v25 = vsel %vm242_vm5, 0.0, %v331_v21  ;;  %v297_v26 = vsel %vm242_vm5, 0.0, %v296_v22  ;;  %v352_v27 = vsel %vm242_vm5, 0.0, %v351_v23  ;;  %v314_v28 = vsel %vm242_vm5, 0.0, %v313_v24 }
  0x98   : >> { %v337_v29 = vsel %vm1023_vm0, %v332_v25, 0.0  ;;  %v302_v30 = vsel %vm1023_vm0, %v297_v26, 0.0  ;;  %v357_v31 = vsel %vm1023_vm0, %v352_v27, 0.0  ;;  %v319_v32 = vsel %vm1023_vm0, %v314_v28, 0.0 }
  0x99   : >> { %338 = vadd.xlane.f32.xlu1 %v337_v29  ;;  %303 = vadd.xlane.f32.xlu0 %v302_v30  ;;  %vm479_vm5 = vcmp.ge.s32.totalorder %v462_v3, %v975_v12 }
  0x9a   : >> { %vm1088_vm9 = vmand %vm1023_vm0, %vm479_vm5 }
  0x9d   : >> { %358 = vadd.xlane.f32.xlu1 %v357_v31  ;;  %320 = vadd.xlane.f32.xlu0 %v319_v32 }
  0xa1   : >> { %369 = vadd.xlane.f32.xlu0 %v368_v34 }
 0x122   : >> { %v339_v36 = vpop.xlane.xlu1 %338  ;;  %v304_v37 = vpop.xlane.xlu0 %303 }
 0x123   : >> { %341 = vst [vmem:[#allocation4 + $0x10] sm:$0xff] %v339_v36  ;;  %305 = vst [vmem:[#allocation4] sm:$0xff] %v304_v37 }
 0x126   : >> { %v359_v38 = vpop.xlane.xlu1 %358  ;;  %v321_v39 = vpop.xlane.xlu0 %320 }
 0x127   : >> { %361 = vst [vmem:[#allocation4 + $0x18] sm:$0xff] %v359_v38  ;;  %323 = vst [vmem:[#allocation4 + $0x8] sm:$0xff] %v321_v39 }
 0x128   : >> { %363 = vst [vmem:[%s362_s21] sm:$0x1] %v880_v35 }
 0x12a   : >> { %v370_v41 = vpop.xlane.xlu0 %369 }
 0x12b   : >> { %v376_v42 = vsel %vm1023_vm0, %v370_v41, %v375_v40 }
 0x12c   : >> { %377 = vst [vmem:[%s961_s9] sm:$0x1] %v376_v42 }
 0x12f   : >> { %v384_v48 = vld [vmem:[%s379_s23] sm:$0xff]  ;;  %v746_v49 = vld [vmem:[%s379_s23 + $0x8] sm:$0xff]  ;;  %v748_v50 = vld [vmem:[%s379_s23 + $0x10] sm:$0xff] }
 0x130   : >> { %v386_v51 = vmul.f32 %v385_v43, %v384_v48  ;;  %v392_v52 = vmul.f32 %v747_v44, %v746_v49  ;;  %v750_v53 = vld [vmem:[%s379_s23 + $0x18] sm:$0xff]  ;;  %v399_v56 = vmul.f32 %v749_v45, %v748_v50  ;;  %s417_s23 = smov %s379_s23 }
 0x131   : >> { %v406_v54 = vmul.f32 %v751_v47, %v750_v53  ;;  %v425_v13 = vld [vmem:[%s417_s23] sm:$0xff]  ;;  %v752_v17 = vld [vmem:[%s417_s23 + $0x8] sm:$0xff]  ;;  %v755_v18 = vld [vmem:[%s417_s23 + $0x10] sm:$0xff] }
 0x132   : >> { %v393_v55 = vadd.f32 %v392_v52, %v386_v51  ;;  %v758_v11 = vld [vmem:[%s417_s23 + $0x18] sm:$0xff] }
 0x133   : >> { %v408_v58 = vsel %vm407_vm1, %v406_v54, 0.0  ;;  %v516_v39 = vld [vmem:[#allocation2] sm:$0x3] (%p188_p9) }
 0x134   : >> { %v400_v57 = vadd.f32 %v399_v56, %v393_v55  ;;  %519 = vst [vmem:[%s160_s15] sm:$0x3] (%p188_p9), %v516_v39 }
 0x136   : >> { %v409_v59 = vadd.f32 %v408_v58, %v400_v57 }
 0x138   : >> { %v410_v60 = vrot.slane %v409_v59, 4 }
 0x13a   : >> { %v411_v61 = vadd.f32 %v410_v60, %v409_v59 }
 0x13c   : >> { %v412_v62 = vrot.slane %v411_v61, 2 }
 0x13e   : >> { %v413_v63 = vadd.f32 %v412_v62, %v411_v61 }
 0x140   : >> { %v414_v2 = vrot.slane %v413_v63, 1 }
 0x142   : >> { %v415_v5 = vadd.f32 %v414_v2, %v413_v63 }
 0x144   : >> { %v421_v16 = vmul.f32 %v415_v5, %v370_v41 }
 0x146   : >> { %v426_v21 = vmul.f32 %v425_v13, %v421_v16  ;;  %v446_v22 = vmul.f32 %v752_v17, %v421_v16  ;;  %v467_v23 = vmul.f32 %v755_v18, %v421_v16  ;;  %v488_v24 = vmul.f32 %v758_v11, %v421_v16 }
 0x148   : >> { %v430_v26 = vsub.f32 %v427_v6, %v426_v21  ;;  %v451_v27 = vsub.f32 %v753_v7, %v446_v22  ;;  %v472_v12 = vsub.f32 %v756_v8, %v467_v23  ;;  %v493_v10 = vsub.f32 %v759_v15, %v488_v24 }
 0x14a   : >> { %v431_v28 = vsel %vm429_vm8, %v430_v26, %v427_v6  ;;  %v452_v29 = vsel %vm429_vm8, %v451_v27, %v753_v7  ;;  %v473_v30 = vsel %vm429_vm8, %v472_v12, %v756_v8  ;;  %v494_v31 = vsel %vm429_vm8, %v493_v10, %v759_v15 }
 0x14b   : >> { %v439_v32 = vsel %vm1071_vm4, %v425_v13, %v431_v28  ;;  %v460_v33 = vsel %vm1080_vm7, %v752_v17, %v452_v29  ;;  %v481_v34 = vsel %vm1088_vm9, %v755_v18, %v473_v30  ;;  %v502_v36 = vsel %vm1094_vm10, %v758_v11, %v494_v31 }
 0x14c   : >> { %440 = vst [vmem:[%s1062_s18] sm:$0xff] %v439_v32  ;;  %754 = vst [vmem:[%s1062_s18 + $0x8] sm:$0xff] %v460_v33 }
 0x14d   : >> { %757 = vst [vmem:[%s1062_s18 + $0x10] sm:$0xff] %v481_v34  ;;  %760 = vst [vmem:[%s1062_s18 + $0x18] sm:$0xff] %v502_v36 }
 0x152   : > { %190 = sbr.rel (!%p188_p9) target bundleno = 36 (0x24), region = 202 }
 0x154   : >> { %v505_v37 = vld [vmem:[%s504_s24] ss:$0 sm:$0xff] }
 0x155   : >> { %v510_v38 = vsel %vm1023_vm0, %v1007_v0, %v505_v37 }
 0x156   : >> { %511 = vst [vmem:[%s504_s24] sm:$0x1] %v510_v38 }
 0x157   : > { %p582_p10 = scmp.lt.s32.totalorder (%p933_p3), %s865_s11, 0  ;;  %s583_s30 = ssub.s32 (%p933_p3), 0, %s865_s11  ;;  %v606_v41 = vld [vmem:[%s160_s15] sm:$0x3] (%p933_p3) }
 0x158   : > { %s765_s3 = smin.u32 (%p933_p3), %s865_s11, %s583_s30 }
 0x159   : > { %s585_s4 = sshrl.u32 (%p933_p3), %s765_s3, 3 }
 0x15a   : > { %s586_s5 = ssub.s32 (%p933_p3), 0, %s585_s4 }
 0x15b   : > { %581 = sbr.rel (!%p933_p3) target bundleno = 356 (0x164), region = 99 }
 0x15d   : > { %v568_v35 = vld [vmem:[%s955_s18] sm:$0xff]  ;;  %v570_v40 = vld [vmem:[%s955_s18 + $0x8] sm:$0xff]  ;;  %v572_v0 = vld [vmem:[%s955_s18 + $0x10] sm:$0xff] }
 0x15e   : > { %v574_v20 = vld [vmem:[%s955_s18 + $0x18] sm:$0xff]  ;;  %569 = vst [vmem:[%s533_s29] sm:$0xff] %v568_v35  ;;  %571 = vst [vmem:[%s533_s29 + $0x8] sm:$0xff] %v570_v40 }
 0x15f   : > { %573 = vst [vmem:[%s533_s29 + $0x10] sm:$0xff] %v572_v0  ;;  %575 = vst [vmem:[%s533_s29 + $0x18] sm:$0xff] %v574_v20 }
 0x160   : > { %s1174_s5 = smov (!%p582_p10, %s586_s5), %s585_s4 }
 0x161   : > { %s766_s6 = sshll.u32 %s1174_s5, 1 }
 0x162   : > { %s589_s17 = scalar_lea.vmem %s1155_s2, %s766_s6 }
 0x163   : > { %607 = vst [vmem:[%s589_s17] sm:$0x3] %v606_v41 }
 0x164 PF: > { %s9_s13 = sadd.s32 1, %s873_s13   ;;  %s1167_s9 = smov %s861_s10 }
 0x165   : > { %p6_p11 = scmp.ge.s32.totalorder %s9_s13, 4   ;;  %s1168_s10 = smov %s939_s25 }
 0x166   : > { %s1169_s11 = smov %s869_s12  ;;  %s1170_s12 = smov %s1172_s14 }
 0x167   :  { %8 = sbr.rel (!%p6_p11) target bundleno = 3 (0x3), region = 213 }

// kernel: custom-call.40
= control target key start
LH: loop header
LB: loop body
LE: loop exit
PB: predicated region body
PF: predicated region fallthrough
CT: control target
= control target key end

     0   :  { %s6_s0 = inlined_call_operand.hbm [shape: pred[2], index: 0, kind: output, shape index: {}]  }

// kernel: custom-call.45
= control target key start
LH: loop header
LB: loop body
LE: loop exit
PB: predicated region body
PF: predicated region fallthrough
CT: control target
= control target key end

     0   :  { %s872_s6 = smov 0   ;;  %s874_s7 = smov 0   ;;  %s1043_s0 = inlined_call_operand.vmem [shape: f32[2,16,16], index: 0, kind: input, shape index: {}]   ;;  %s1044_s1 = inlined_call_operand.vmem [shape: f32[2,16,16], index: 1, kind: output, shape index: {}]  }
   0x1   :  { %s876_s8 = smov 0  }
   0x2 LB: > { %s685_s9 = sadd.s32 4294967295, %s859_s8   ;;  %s26_s10 = sadd.s32 1, %s855_s7  ;;  %s859_s8 = sphi %s876_s8, %s7_s8   ;;  %s855_s7 = sphi %s874_s7, %s1046_s7   ;;  %s851_s6 = sphi %s872_s6, %s1045_s6  }
   0x3   : > { %p28_p0 = scmp.ge.s32.totalorder %s26_s10, 2  ;;  %p687_p1 = scmp.ge.s32.totalorder %s859_s8, 2 }
   0x4   : > { %s42_s11 = sand.u32 (!%p687_p1), 1, %s859_s8   ;;  %s778_s12 = sshll.u32 (!%p687_p1), %s855_s7, 4 }
   0x5   : > { %s1048_s10 = smov (%p28_p0, %s26_s10), 0  ;;  %40 = sbr.rel (%p687_p1) target bundleno = 12 (0xc), region = 16 }
   0x6   : > { %s688_s13 = sshll.u32 (!%p687_p1), %s42_s11, 4  ;;  %s49_s16 = scalar_lea.vmem (!%p687_p1), %s1043_s0, %s778_s12 }
   0x7   : > { %s44_s17 = scalar_lea.vmem (!%p687_p1), [#allocation0], %s688_s13 }
   0xa   : > { %v80_v0 = vld [vmem:[%s49_s16] sm:$0xff]  ;;  %v82_v1 = vld [vmem:[%s49_s16 + $0x8] sm:$0xff] }
   0xb   : > { %81 = vst [vmem:[%s44_s17] sm:$0xff] %v80_v0  ;;  %83 = vst [vmem:[%s44_s17 + $0x8] sm:$0xff] %v82_v1 }
   0xc PF: > { %p691_p2 = scmp.ge.s32.totalorder %s859_s8, 1  ;;  %p88_p3 = scmp.lt.s32.totalorder %s859_s8, 3 }
   0xe   : > { %p89_p4 = pnand %p691_p2, %p88_p3 }
   0xf   : > { %s95_s18 = sand.u32 (!%p89_p4), 1, %s685_s9   ;;  %s779_s22 = sshll.u32 (!%p89_p4), %s851_s6, 4 }
  0x10   : > { %92 = sbr.rel (%p89_p4) target bundleno = 2728 (0xaa8), region = 54  ;;  %s692_s19 = sshll.u32 (!%p89_p4), %s95_s18, 4 }
  0x11   : > { %s899_s20 = scalar_lea.vmem (!%p89_p4), [#allocation1], %s692_s19  ;;  %s903_s21 = scalar_lea.vmem (!%p89_p4), [#allocation0], %s692_s19 }
  0x12   : > { %s1020_s25 = scalar_lea.vmem (!%p89_p4), %s1044_s1, %s779_s22 }
  0x15   : > { %v861_v2 = vmov 0.0   ;;  %v111_v6 = vld [vmem:[%s903_s21] ss:$0 sm:$0xff]  ;;  %vm109_vm0 = vcmask 7168   ;;  %v699_v18 = vld [vmem:[%s903_s21 + $0x1] ss:$0 sm:$0xff] }
  0x16   : > { %106 = vst [vmem:[%s899_s20] sm:$0xff] %v861_v2  ;;  %v907_v10 = vld [vmem:[%s903_s21] sm:$0xff]  ;;  %v915_v21 = vld [vmem:[%s903_s21 + $0x8] sm:$0xff]  ;;  %vm140_vm1 = vcmask 15368   ;;  %vm157_vm2 = vcmask 1047553   ;;  %vm175_vm4 = vcmask 23568   ;;  %vm192_vm5 = vcmask 1047554  }
  0x17   : > { %vm158_vm3 = vmand %vm140_vm1, %vm157_vm2  ;;  %v704_v42 = vld [vmem:[%s903_s21 + $0x2] ss:$0 sm:$0xff]  ;;  %v709_v60 = vld [vmem:[%s903_s21 + $0x3] ss:$0 sm:$0xff]  ;;  %vm210_vm7 = vcmask 31768   ;;  %vm227_vm8 = vcmask 1047555  }
  0x18   : > { %vm193_vm6 = vmand %vm175_vm4, %vm192_vm5  ;;  %vm245_vm10 = vcmask 39968   ;;  %vm262_vm11 = vcmask 1047556   ;;  %vm280_vm13 = vcmask 48168   ;;  %vm297_vm14 = vcmask 1047557  }
  0x19   : > { %vm228_vm9 = vmand %vm210_vm7, %vm227_vm8 }
  0x1a   : > { %vm263_vm12 = vmand %vm245_vm10, %vm262_vm11 }
  0x1b   : > { %vm298_vm15 = vmand %vm280_vm13, %vm297_vm14 }
  0x1d   : > { %v110_v3 = vld [vmem:[%s899_s20] ss:$0 sm:$0xff] }
  0x1e   : > { %v112_v4 = vmul.f32 %v110_v3, %v110_v3  ;;  %v119_v5 = vmul.f32 0.0, %v110_v3 }
  0x20   : > { %113 = vadd.xlane.f32.xlu0 %v112_v4 }
  0x24   : > { %120 = vadd.xlane.f32.xlu0 %v119_v5 }
  0xa9   : > { %v114_v7 = vpop.xlane.xlu0 %113 }
  0xaa   : > { %v115_v8 = vsub.f32 %v111_v6, %v114_v7 }
  0xac   : > { %805 = vrsqrt.f32 %v115_v8 }
  0xad   : > { %v121_v9 = vpop.xlane.xlu0 %120 }
  0xae   : > { %v122_v11 = vsub.f32 %v907_v10, %v121_v9 }
  0xb9   : > { %v806_v12 = vpop.eup %805 }
  0xba   : > { %v123_v13 = vmul.f32 %v806_v12, %v122_v11 }
  0xbc   : > { %v124_v14 = vsel %vm109_vm0, %v123_v13, 0.0 }
  0xbd   : > { %126 = vst [vmem:[%s899_s20] sm:$0xff] %v124_v14 }
  0xc4   : > { %v698_v15 = vld [vmem:[%s899_s20 + $0x1] ss:$0 sm:$0xff] }
  0xc5   : > { %v152_v16 = vmul.f32 %v698_v15, %v124_v14  ;;  %v145_v17 = vmul.f32 %v698_v15, %v698_v15 }
  0xc7   : > { %153 = vadd.xlane.f32.xlu0 %v152_v16  ;;  %146 = vadd.xlane.f32.xlu1 %v145_v17 }
  0xcb   : > { %132 = vadd.xlane.f32.xlu1 %v119_v5 }
 0x150   : > { %v147_v19 = vpop.xlane.xlu1 %146  ;;  %v154_v26 = vpop.xlane.xlu0 %153 }
 0x151   : > { %v148_v20 = vsub.f32 %v699_v18, %v147_v19  ;;  %v155_v28 = vsub.f32 %v907_v10, %v154_v26 }
 0x153   : > { %807 = vrsqrt.f32 %v148_v20 }
 0x154   : > { %v133_v22 = vpop.xlane.xlu1 %132 }
 0x155   : > { %v134_v23 = vsub.f32 %v915_v21, %v133_v22 }
 0x157   : > { %v135_v24 = vmul.f32 %v806_v12, %v134_v23 }
 0x159   : > { %v136_v25 = vsel %vm109_vm0, %v135_v24, 0.0  ;;  %vm315_vm0 = vcmask 56368  }
 0x15a   : > { %v166_v27 = vmul.f32 %v698_v15, %v136_v25  ;;  %v714_v15 = vld [vmem:[%s903_s21 + $0x4] ss:$0 sm:$0xff] }
 0x15c   : > { %167 = vadd.xlane.f32.xlu1 %v166_v27 }
 0x160   : > { %v808_v29 = vpop.eup %807 }
 0x161   : > { %v156_v30 = vmul.f32 %v808_v29, %v155_v28 }
 0x163   : > { %v159_v31 = vsel %vm158_vm3, %v156_v30, 0.0 }
 0x164   : > { %v160_v32 = vadd.f32 %v159_v31, %v124_v14 }
 0x166   : > { %161 = vst [vmem:[%s899_s20] sm:$0xff] %v160_v32 }
 0x16d   : > { %v703_v33 = vld [vmem:[%s899_s20 + $0x2] ss:$0 sm:$0xff] }
 0x16e   : > { %v180_v34 = vmul.f32 %v703_v33, %v703_v33  ;;  %v187_v35 = vmul.f32 %v703_v33, %v160_v32 }
 0x170   : > { %181 = vadd.xlane.f32.xlu0 %v180_v34  ;;  %188 = vadd.xlane.f32.xlu1 %v187_v35  ;;  %v719_v34 = vld [vmem:[%s903_s21 + $0x5] ss:$0 sm:$0xff] }
 0x1e5   : > { %v168_v36 = vpop.xlane.xlu1 %167 }
 0x1e6   : > { %v169_v37 = vsub.f32 %v915_v21, %v168_v36 }
 0x1e8   : > { %v170_v38 = vmul.f32 %v808_v29, %v169_v37 }
 0x1ea   : > { %v171_v39 = vsel %vm140_vm1, %v170_v38, 0.0  ;;  %vm332_vm1 = vcmask 1047558  }
 0x1eb   : > { %v172_v40 = vadd.f32 %v171_v39, %v136_v25  ;;  %vm333_vm3 = vmand %vm315_vm0, %vm332_vm1 }
 0x1ed   : > { %v201_v41 = vmul.f32 %v703_v33, %v172_v40 }
 0x1ef   : > { %202 = vadd.xlane.f32.xlu0 %v201_v41 }
 0x1f9   : > { %v182_v43 = vpop.xlane.xlu0 %181  ;;  %v189_v45 = vpop.xlane.xlu1 %188 }
 0x1fa   : > { %v183_v44 = vsub.f32 %v704_v42, %v182_v43  ;;  %v190_v46 = vsub.f32 %v907_v10, %v189_v45 }
 0x1fc   : > { %809 = vrsqrt.f32 %v183_v44 }
 0x209   : > { %v810_v47 = vpop.eup %809 }
 0x20a   : > { %v191_v48 = vmul.f32 %v810_v47, %v190_v46 }
 0x20c   : > { %v194_v49 = vsel %vm193_vm6, %v191_v48, 0.0  ;;  %vm385_vm6 = vcmask 72768  }
 0x20d   : > { %v195_v50 = vadd.f32 %v194_v49, %v160_v32 }
 0x20f   : > { %196 = vst [vmem:[%s899_s20] sm:$0xff] %v195_v50 }
 0x216   : > { %v708_v51 = vld [vmem:[%s899_s20 + $0x3] ss:$0 sm:$0xff] }
 0x217   : > { %v222_v52 = vmul.f32 %v708_v51, %v195_v50  ;;  %v215_v53 = vmul.f32 %v708_v51, %v708_v51 }
 0x219   : > { %223 = vadd.xlane.f32.xlu0 %v222_v52  ;;  %216 = vadd.xlane.f32.xlu1 %v215_v53  ;;  %v724_v52 = vld [vmem:[%s903_s21 + $0x6] ss:$0 sm:$0xff] }
 0x278   : > { %v203_v54 = vpop.xlane.xlu0 %202 }
 0x279   : > { %v204_v55 = vsub.f32 %v915_v21, %v203_v54 }
 0x27b   : > { %v205_v56 = vmul.f32 %v810_v47, %v204_v55 }
 0x27d   : > { %v206_v57 = vsel %vm175_vm4, %v205_v56, 0.0  ;;  %vm350_vm4 = vcmask 64568  }
 0x27e   : > { %v207_v58 = vadd.f32 %v206_v57, %v172_v40 }
 0x280   : > { %v236_v59 = vmul.f32 %v708_v51, %v207_v58 }
 0x282   : > { %237 = vadd.xlane.f32.xlu1 %v236_v59 }
 0x2a2   : > { %v217_v61 = vpop.xlane.xlu1 %216  ;;  %v224_v63 = vpop.xlane.xlu0 %223 }
 0x2a3   : > { %v218_v62 = vsub.f32 %v709_v60, %v217_v61  ;;  %v225_v0 = vsub.f32 %v907_v10, %v224_v63 }
 0x2a5   : > { %811 = vrsqrt.f32 %v218_v62 }
 0x2b2   : > { %v812_v1 = vpop.eup %811 }
 0x2b3   : > { %v226_v2 = vmul.f32 %v812_v1, %v225_v0 }
 0x2b5   : > { %v229_v3 = vsel %vm228_vm9, %v226_v2, 0.0 }
 0x2b6   : > { %v230_v4 = vadd.f32 %v229_v3, %v195_v50 }
 0x2b8   : > { %231 = vst [vmem:[%s899_s20] sm:$0xff] %v230_v4 }
 0x2bf   : > { %v713_v5 = vld [vmem:[%s899_s20 + $0x4] ss:$0 sm:$0xff] }
 0x2c0   : > { %v257_v6 = vmul.f32 %v713_v5, %v230_v4  ;;  %v250_v7 = vmul.f32 %v713_v5, %v713_v5 }
 0x2c2   : > { %258 = vadd.xlane.f32.xlu1 %v257_v6  ;;  %251 = vadd.xlane.f32.xlu0 %v250_v7 }
 0x30b   : > { %v238_v8 = vpop.xlane.xlu1 %237 }
 0x30c   : > { %v239_v9 = vsub.f32 %v915_v21, %v238_v8 }
 0x30e   : > { %v240_v11 = vmul.f32 %v812_v1, %v239_v9 }
 0x310   : > { %v241_v12 = vsel %vm210_vm7, %v240_v11, 0.0  ;;  %vm408_vm7 = vcmask 80968  }
 0x311   : > { %v242_v13 = vadd.f32 %v241_v12, %v207_v58  ;;  %vm428_vm9 = vmand %vm408_vm7, %vm157_vm2 }
 0x313   : > { %v271_v14 = vmul.f32 %v713_v5, %v242_v13  ;;  %v729_v5 = vld [vmem:[%s903_s21 + $0x7] ss:$0 sm:$0xff] }
 0x315   : > { %272 = vadd.xlane.f32.xlu0 %v271_v14 }
 0x34b   : > { %v252_v16 = vpop.xlane.xlu0 %251  ;;  %v259_v18 = vpop.xlane.xlu1 %258 }
 0x34c   : > { %v253_v17 = vsub.f32 %v714_v15, %v252_v16  ;;  %v260_v19 = vsub.f32 %v907_v10, %v259_v18  ;;  %v734_v18 = vld [vmem:[%s903_s21 + $0x8] ss:$0 sm:$0xff] }
 0x34e   : > { %813 = vrsqrt.f32 %v253_v17 }
 0x35b   : > { %v814_v20 = vpop.eup %813 }
 0x35c   : > { %v261_v22 = vmul.f32 %v814_v20, %v260_v19 }
 0x35e   : > { %v264_v23 = vsel %vm263_vm12, %v261_v22, 0.0  ;;  %vm458_vm12 = vcmask 97368  }
 0x35f   : > { %v265_v24 = vadd.f32 %v264_v23, %v230_v4 }
 0x361   : > { %266 = vst [vmem:[%s899_s20] sm:$0xff] %v265_v24 }
 0x368   : > { %v718_v25 = vld [vmem:[%s899_s20 + $0x5] ss:$0 sm:$0xff] }
 0x369   : > { %v292_v26 = vmul.f32 %v718_v25, %v265_v24  ;;  %v285_v27 = vmul.f32 %v718_v25, %v718_v25 }
 0x36b   : > { %293 = vadd.xlane.f32.xlu0 %v292_v26  ;;  %286 = vadd.xlane.f32.xlu1 %v285_v27 }
 0x39e   : > { %v273_v28 = vpop.xlane.xlu0 %272 }
 0x39f   : > { %v274_v29 = vsub.f32 %v915_v21, %v273_v28 }
 0x3a1   : > { %v275_v30 = vmul.f32 %v814_v20, %v274_v29 }
 0x3a3   : > { %v276_v31 = vsel %vm245_vm10, %v275_v30, 0.0  ;;  %vm433_vm10 = vcmask 89168  }
 0x3a4   : > { %v277_v32 = vadd.f32 %v276_v31, %v242_v13  ;;  %v739_v31 = vld [vmem:[%s903_s21 + $0x9] ss:$0 sm:$0xff]  ;;  %vm453_vm2 = vmand %vm433_vm10, %vm192_vm5 }
 0x3a5   : > { %vm478_vm5 = vmand %vm458_vm12, %vm227_vm8 }
 0x3a6   : > { %v306_v33 = vmul.f32 %v718_v25, %v277_v32 }
 0x3a8   : > { %307 = vadd.xlane.f32.xlu1 %v306_v33 }
 0x3f4   : > { %v287_v35 = vpop.xlane.xlu1 %286  ;;  %v294_v37 = vpop.xlane.xlu0 %293 }
 0x3f5   : > { %v288_v36 = vsub.f32 %v719_v34, %v287_v35  ;;  %v295_v38 = vsub.f32 %v907_v10, %v294_v37 }
 0x3f7   : > { %815 = vrsqrt.f32 %v288_v36 }
 0x404   : > { %v816_v39 = vpop.eup %815 }
 0x405   : > { %v296_v40 = vmul.f32 %v816_v39, %v295_v38 }
 0x407   : > { %v299_v41 = vsel %vm298_vm15, %v296_v40, 0.0  ;;  %vm508_vm15 = vcmask 113768  }
 0x408   : > { %v300_v42 = vadd.f32 %v299_v41, %v265_v24 }
 0x40a   : > { %301 = vst [vmem:[%s899_s20] sm:$0xff] %v300_v42 }
 0x411   : > { %v723_v43 = vld [vmem:[%s899_s20 + $0x6] ss:$0 sm:$0xff] }
 0x412   : > { %v327_v44 = vmul.f32 %v723_v43, %v300_v42  ;;  %v320_v45 = vmul.f32 %v723_v43, %v723_v43 }
 0x414   : > { %328 = vadd.xlane.f32.xlu1 %v327_v44  ;;  %321 = vadd.xlane.f32.xlu0 %v320_v45 }
 0x431   : > { %v308_v46 = vpop.xlane.xlu1 %307 }
 0x432   : > { %v309_v47 = vsub.f32 %v915_v21, %v308_v46 }
 0x434   : > { %v310_v48 = vmul.f32 %v816_v39, %v309_v47 }
 0x436   : > { %v311_v49 = vsel %vm280_vm13, %v310_v48, 0.0  ;;  %vm483_vm13 = vcmask 105568  }
 0x437   : > { %v312_v50 = vadd.f32 %v311_v49, %v277_v32  ;;  %vm503_vm8 = vmand %vm483_vm13, %vm262_vm11 }
 0x438   : > { %vm528_vm11 = vmand %vm508_vm15, %vm297_vm14  ;;  %vm367_vm14 = vcmask 1047559  }
 0x439   : > { %v341_v51 = vmul.f32 %v723_v43, %v312_v50  ;;  %v744_v43 = vld [vmem:[%s903_s21 + $0xa] ss:$0 sm:$0xff] }
 0x43b   : > { %342 = vadd.xlane.f32.xlu0 %v341_v51 }
 0x49d   : > { %v322_v53 = vpop.xlane.xlu0 %321  ;;  %v329_v55 = vpop.xlane.xlu1 %328 }
 0x49e   : > { %v323_v54 = vsub.f32 %v724_v52, %v322_v53  ;;  %v330_v56 = vsub.f32 %v907_v10, %v329_v55  ;;  %v749_v55 = vld [vmem:[%s903_s21 + $0xb] ss:$0 sm:$0xff] }
 0x4a0   : > { %817 = vrsqrt.f32 %v323_v54 }
 0x4ad   : > { %v818_v57 = vpop.eup %817 }
 0x4ae   : > { %v331_v58 = vmul.f32 %v818_v57, %v330_v56 }
 0x4b0   : > { %v334_v59 = vsel %vm333_vm3, %v331_v58, 0.0  ;;  %vm533_vm3 = vcmask 121968  }
 0x4b1   : > { %v961_v60 = vadd.f32 %v334_v59, %v300_v42 }
 0x4b3   : > { %336 = vst [vmem:[%s899_s20] sm:$0xff] %v961_v60 }
 0x4ba   : > { %v966_v61 = vld [vmem:[%s899_s20 + $0x7] ss:$0 sm:$0xff] }
 0x4bb   : > { %v355_v62 = vmul.f32 %v966_v61, %v966_v61 }
 0x4bd   : > { %356 = vadd.xlane.f32.xlu1 %v355_v62 }
 0x4c4   : > { %v343_v63 = vpop.xlane.xlu0 %342 }
 0x4c5   : > { %v344_v0 = vsub.f32 %v915_v21, %v343_v63 }
 0x4c7   : > { %v345_v1 = vmul.f32 %v818_v57, %v344_v0 }
 0x4c9   : > { %v346_v2 = vsel %vm315_vm0, %v345_v1, 0.0  ;;  %vm368_vm0 = vmand %vm350_vm4, %vm367_vm14 }
 0x4ca   : > { %v347_v3 = vadd.f32 %v346_v2, %v312_v50 }
 0x4cc   : > { %v376_v4 = vmul.f32 %v966_v61, %v347_v3 }
 0x4ce   : > { %377 = vadd.xlane.f32.xlu0 %v376_v4 }
 0x546   : > { %v357_v6 = vpop.xlane.xlu1 %356 }
 0x547   : > { %v358_v7 = vsub.f32 %v729_v5, %v357_v6  ;;  %v754_v5 = vld [vmem:[%s903_s21 + $0xc] ss:$0 sm:$0xff] }
 0x549   : > { %819 = vrsqrt.f32 %v358_v7 }
 0x556   : > { %v974_v11 = vpop.eup %819 }
 0x557   : > { %v378_v8 = vpop.xlane.xlu0 %377 }
 0x558   : > { %v379_v9 = vsub.f32 %v915_v21, %v378_v8 }
 0x55a   : > { %v380_v12 = vmul.f32 %v974_v11, %v379_v9 }
 0x55c   : > { %v381_v13 = vsel %vm350_vm4, %v380_v12, 0.0  ;;  %vm553_vm4 = vmand %vm533_vm3, %vm332_vm1 }
 0x55d   : > { %v382_v14 = vadd.f32 %v381_v13, %v347_v3 }
 0x55f   : > { %732 = vst [vmem:[%s899_s20 + $0x8] sm:$0xff] %v382_v14 }
 0x566   : > { %v733_v15 = vld [vmem:[%s899_s20 + $0x8] ss:$0 sm:$0xff] }
 0x567   : > { %v399_v16 = vmul.f32 %v733_v15, %v382_v14  ;;  %v390_v17 = vmul.f32 %v733_v15, %v733_v15 }
 0x569   : > { %400 = vadd.xlane.f32.xlu0 %v399_v16  ;;  %391 = vadd.xlane.f32.xlu1 %v390_v17 }
 0x5f2   : > { %v392_v19 = vpop.xlane.xlu1 %391  ;;  %v401_v22 = vpop.xlane.xlu0 %400 }
 0x5f3   : > { %v393_v20 = vsub.f32 %v734_v18, %v392_v19  ;;  %v402_v23 = vsub.f32 %v915_v21, %v401_v22  ;;  %v759_v19 = vld [vmem:[%s903_s21 + $0xd] ss:$0 sm:$0xff] }
 0x5f5   : > { %821 = vrsqrt.f32 %v393_v20 }
 0x602   : > { %v822_v24 = vpop.eup %821 }
 0x603   : > { %v403_v25 = vmul.f32 %v822_v24, %v402_v23 }
 0x605   : > { %v404_v26 = vsel %vm385_vm6, %v403_v25, 0.0  ;;  %vm558_vm6 = vcmask 130168  }
 0x606   : > { %v405_v27 = vadd.f32 %v404_v26, %v382_v14  ;;  %vm578_vm1 = vmand %vm558_vm6, %vm367_vm14 }
 0x608   : > { %737 = vst [vmem:[%s899_s20 + $0x8] sm:$0xff] %v405_v27 }
 0x60f   : > { %v738_v28 = vld [vmem:[%s899_s20 + $0x9] ss:$0 sm:$0xff] }
 0x610   : > { %v422_v29 = vmul.f32 %v738_v28, %v405_v27  ;;  %v413_v30 = vmul.f32 %v738_v28, %v738_v28 }
 0x612   : > { %423 = vadd.xlane.f32.xlu0 %v422_v29  ;;  %414 = vadd.xlane.f32.xlu1 %v413_v30 }
 0x69b   : > { %v415_v32 = vpop.xlane.xlu1 %414  ;;  %v424_v34 = vpop.xlane.xlu0 %423 }
 0x69c   : > { %v416_v33 = vsub.f32 %v739_v31, %v415_v32  ;;  %v425_v35 = vsub.f32 %v915_v21, %v424_v34  ;;  %v362_v32 = vmul.f32 %v966_v61, %v961_v60 }
 0x69e   : > { %823 = vrsqrt.f32 %v416_v33  ;;  %v764_v33 = vld [vmem:[%s903_s21 + $0xe] ss:$0 sm:$0xff] }
 0x6ab   : > { %v824_v36 = vpop.eup %823 }
 0x6ac   : > { %v426_v37 = vmul.f32 %v824_v36, %v425_v35 }
 0x6ae   : > { %v429_v38 = vsel %vm428_vm9, %v426_v37, 0.0 }
 0x6af   : > { %v430_v39 = vadd.f32 %v429_v38, %v405_v27 }
 0x6b1   : > { %742 = vst [vmem:[%s899_s20 + $0x8] sm:$0xff] %v430_v39 }
 0x6b8   : > { %v743_v40 = vld [vmem:[%s899_s20 + $0xa] ss:$0 sm:$0xff] }
 0x6b9   : > { %v447_v41 = vmul.f32 %v743_v40, %v430_v39  ;;  %v438_v42 = vmul.f32 %v743_v40, %v743_v40 }
 0x6bb   : > { %448 = vadd.xlane.f32.xlu0 %v447_v41  ;;  %439 = vadd.xlane.f32.xlu1 %v438_v42 }
 0x744   : > { %v440_v44 = vpop.xlane.xlu1 %439  ;;  %v449_v46 = vpop.xlane.xlu0 %448 }
 0x745   : > { %v441_v45 = vsub.f32 %v744_v43, %v440_v44  ;;  %v450_v47 = vsub.f32 %v915_v21, %v449_v46 }
 0x747   : > { %825 = vrsqrt.f32 %v441_v45 }
 0x754   : > { %v826_v48 = vpop.eup %825 }
 0x755   : > { %v451_v49 = vmul.f32 %v826_v48, %v450_v47 }
 0x757   : > { %v454_v50 = vsel %vm453_vm2, %v451_v49, 0.0 }
 0x758   : > { %v455_v51 = vadd.f32 %v454_v50, %v430_v39 }
 0x75a   : > { %747 = vst [vmem:[%s899_s20 + $0x8] sm:$0xff] %v455_v51 }
 0x761   : > { %v748_v52 = vld [vmem:[%s899_s20 + $0xb] ss:$0 sm:$0xff] }
 0x762   : > { %v472_v53 = vmul.f32 %v748_v52, %v455_v51  ;;  %v463_v54 = vmul.f32 %v748_v52, %v748_v52 }
 0x764   : > { %473 = vadd.xlane.f32.xlu0 %v472_v53  ;;  %464 = vadd.xlane.f32.xlu1 %v463_v54 }
 0x7ed   : > { %v465_v56 = vpop.xlane.xlu1 %464  ;;  %v474_v58 = vpop.xlane.xlu0 %473 }
 0x7ee   : > { %v466_v57 = vsub.f32 %v749_v55, %v465_v56  ;;  %v475_v59 = vsub.f32 %v915_v21, %v474_v58 }
 0x7f0   : > { %827 = vrsqrt.f32 %v466_v57 }
 0x7fd   : > { %v828_v62 = vpop.eup %827 }
 0x7fe   : > { %v476_v63 = vmul.f32 %v828_v62, %v475_v59 }
 0x800   : > { %v479_v0 = vsel %vm478_vm5, %v476_v63, 0.0 }
 0x801   : > { %v480_v1 = vadd.f32 %v479_v0, %v455_v51 }
 0x803   : > { %752 = vst [vmem:[%s899_s20 + $0x8] sm:$0xff] %v480_v1 }
 0x80a   : > { %v753_v2 = vld [vmem:[%s899_s20 + $0xc] ss:$0 sm:$0xff] }
 0x80b   : > { %v497_v3 = vmul.f32 %v753_v2, %v480_v1  ;;  %v488_v4 = vmul.f32 %v753_v2, %v753_v2 }
 0x80d   : > { %498 = vadd.xlane.f32.xlu0 %v497_v3  ;;  %489 = vadd.xlane.f32.xlu1 %v488_v4 }
 0x896   : > { %v490_v6 = vpop.xlane.xlu1 %489  ;;  %v499_v8 = vpop.xlane.xlu0 %498 }
 0x897   : > { %v491_v7 = vsub.f32 %v754_v5, %v490_v6  ;;  %v500_v9 = vsub.f32 %v915_v21, %v499_v8 }
 0x899   : > { %829 = vrsqrt.f32 %v491_v7 }
 0x8a6   : > { %v830_v12 = vpop.eup %829 }
 0x8a7   : > { %v501_v13 = vmul.f32 %v830_v12, %v500_v9 }
 0x8a9   : > { %v504_v14 = vsel %vm503_vm8, %v501_v13, 0.0 }
 0x8aa   : > { %v505_v15 = vadd.f32 %v504_v14, %v480_v1 }
 0x8ac   : > { %757 = vst [vmem:[%s899_s20 + $0x8] sm:$0xff] %v505_v15 }
 0x8b3   : > { %v758_v16 = vld [vmem:[%s899_s20 + $0xd] ss:$0 sm:$0xff] }
 0x8b4   : > { %v522_v17 = vmul.f32 %v758_v16, %v505_v15  ;;  %v513_v18 = vmul.f32 %v758_v16, %v758_v16 }
 0x8b6   : > { %523 = vadd.xlane.f32.xlu0 %v522_v17  ;;  %514 = vadd.xlane.f32.xlu1 %v513_v18 }
 0x93f   : > { %v515_v20 = vpop.xlane.xlu1 %514  ;;  %v524_v23 = vpop.xlane.xlu0 %523 }
 0x940   : > { %v516_v22 = vsub.f32 %v759_v19, %v515_v20  ;;  %v525_v24 = vsub.f32 %v915_v21, %v524_v23 }
 0x942   : > { %831 = vrsqrt.f32 %v516_v22 }
 0x94f   : > { %v832_v25 = vpop.eup %831 }
 0x950   : > { %v526_v26 = vmul.f32 %v832_v25, %v525_v24 }
 0x952   : > { %v529_v27 = vsel %vm528_vm11, %v526_v26, 0.0 }
 0x953   : > { %v530_v28 = vadd.f32 %v529_v27, %v505_v15 }
 0x955   : > { %762 = vst [vmem:[%s899_s20 + $0x8] sm:$0xff] %v530_v28 }
 0x95c   : > { %v763_v29 = vld [vmem:[%s899_s20 + $0xe] ss:$0 sm:$0xff] }
 0x95d   : > { %v547_v30 = vmul.f32 %v763_v29, %v530_v28  ;;  %v538_v31 = vmul.f32 %v763_v29, %v763_v29 }
 0x95f   : > { %548 = vadd.xlane.f32.xlu0 %v547_v30  ;;  %539 = vadd.xlane.f32.xlu1 %v538_v31 }
 0x963   : > { %363 = vadd.xlane.f32.xlu0 %v362_v32 }
 0x9e8   : > { %v549_v34 = vpop.xlane.xlu0 %548  ;;  %v540_v35 = vpop.xlane.xlu1 %539 }
 0x9e9   : > { %v541_v36 = vsub.f32 %v764_v33, %v540_v35 }
 0x9eb   : > { %833 = vrsqrt.f32 %v541_v36 }
 0x9ec   : > { %v364_v37 = vpop.xlane.xlu0 %363 }
 0x9ed   : > { %v365_v38 = vsub.f32 %v907_v10, %v364_v37  ;;  %v550_v10 = vsub.f32 %v915_v21, %v549_v34 }
 0x9ef   : > { %v366_v39 = vmul.f32 %v974_v11, %v365_v38 }
 0x9f1   : > { %v369_v61 = vsel %vm368_vm0, %v366_v39, 0.0 }
 0x9f2   : > { %v370_v40 = vadd.f32 %v369_v61, %v961_v60  ;;  %v769_v60 = vld [vmem:[%s903_s21 + $0xf] ss:$0 sm:$0xff] }
 0x9f4   : > { %371 = vst [vmem:[%s899_s20] sm:$0xff] %v370_v40  ;;  %623 = vst [vmem:[%s1020_s25] sm:$0xff] %v370_v40 }
 0x9f8   : > { %v834_v41 = vpop.eup %833 }
 0x9f9   : > { %v551_v42 = vmul.f32 %v834_v41, %v550_v10 }
 0x9fb   : > { %v554_v11 = vsel %vm553_vm4, %v551_v42, 0.0 }
 0x9fc   : > { %v555_v43 = vadd.f32 %v554_v11, %v530_v28 }
 0x9fe   : > { %767 = vst [vmem:[%s899_s20 + $0x8] sm:$0xff] %v555_v43 }
 0xa05   : > { %v768_v44 = vld [vmem:[%s899_s20 + $0xf] ss:$0 sm:$0xff] }
 0xa06   : > { %v563_v45 = vmul.f32 %v768_v44, %v768_v44  ;;  %v572_v46 = vmul.f32 %v768_v44, %v555_v43 }
 0xa08   : > { %564 = vadd.xlane.f32.xlu1 %v563_v45 }
 0xa0c   : > { %573 = vadd.xlane.f32.xlu1 %v572_v46 }
 0xa91   : > { %v565_v47 = vpop.xlane.xlu1 %564 }
 0xa92   : > { %v566_v48 = vsub.f32 %v769_v60, %v565_v47 }
 0xa94   : > { %835 = vrsqrt.f32 %v566_v48 }
 0xa95   : > { %v574_v49 = vpop.xlane.xlu1 %573 }
 0xa96   : > { %v575_v50 = vsub.f32 %v915_v21, %v574_v49 }
 0xaa1   : > { %v836_v51 = vpop.eup %835 }
 0xaa2   : > { %v576_v52 = vmul.f32 %v836_v51, %v575_v50 }
 0xaa4   : > { %v579_v53 = vsel %vm578_vm1, %v576_v52, 0.0 }
 0xaa5   : > { %v580_v54 = vadd.f32 %v579_v53, %v555_v43 }
 0xaa7   : > { %772 = vst [vmem:[%s899_s20 + $0x8] sm:$0xff] %v580_v54  ;;  %625 = vst [vmem:[%s1020_s25 + $0x8] sm:$0xff] %v580_v54 }
 0xaa8 PF: > { %s7_s8 = sadd.s32 1, %s859_s8   ;;  %s1045_s6 = smov %s855_s7 }
 0xaa9   : > { %p4_p5 = scmp.ge.s32.totalorder %s7_s8, 4   ;;  %s1046_s7 = smov %s1048_s10 }
 0xaab   :  { %6 = sbr.rel (!%p4_p5) target bundleno = 2 (0x2), region = 197 }

// kernel: custom-call.46
= control target key start
LH: loop header
LB: loop body
LE: loop exit
PB: predicated region body
PF: predicated region fallthrough
CT: control target
= control target key end

     0   :  { %s554_s6 = smov 0   ;;  %s556_s7 = smov 0   ;;  %s643_s0 = inlined_call_operand.vmem [shape: f32[2,1,16,16], index: 0, kind: input, shape index: {}]   ;;  %s644_s1 = inlined_call_operand.vmem [shape: f32[2,1,16,16], index: 1, kind: output, shape index: {}]  }
   0x1   :  { %s558_s8 = smov 0  }
   0x2 LB: > { %s470_s9 = sadd.s32 4294967295, %s540_s8   ;;  %s33_s10 = sadd.s32 1, %s536_s7  ;;  %s540_s8 = sphi %s558_s8, %s7_s8   ;;  %s536_s7 = sphi %s556_s7, %s646_s7   ;;  %s532_s6 = sphi %s554_s6, %s645_s6  }
   0x3   : > { %p35_p0 = scmp.ge.s32.totalorder %s33_s10, 2  ;;  %p472_p1 = scmp.ge.s32.totalorder %s540_s8, 2 }
   0x4   : > { %s49_s11 = sand.u32 (!%p472_p1), 1, %s540_s8   ;;  %s486_s12 = sshll.u32 (!%p472_p1), %s536_s7, 4 }
   0x5   : > { %s648_s10 = smov (%p35_p0, %s33_s10), 0  ;;  %47 = sbr.rel (%p472_p1) target bundleno = 12 (0xc), region = 16 }
   0x6   : > { %s473_s13 = sshll.u32 (!%p472_p1), %s49_s11, 4  ;;  %s58_s16 = scalar_lea.vmem (!%p472_p1), %s643_s0, %s486_s12 }
   0x7   : > { %s51_s17 = scalar_lea.vmem (!%p472_p1), [#allocation0], %s473_s13 }
   0xa   : > { %v89_v0 = vld [vmem:[%s58_s16] sm:$0xff]  ;;  %v91_v1 = vld [vmem:[%s58_s16 + $0x8] sm:$0xff] }
   0xb   : > { %90 = vst [vmem:[%s51_s17] sm:$0xff] %v89_v0  ;;  %92 = vst [vmem:[%s51_s17 + $0x8] sm:$0xff] %v91_v1 }
   0xc PF: > { %p476_p2 = scmp.ge.s32.totalorder %s540_s8, 1  ;;  %p97_p3 = scmp.lt.s32.totalorder %s540_s8, 3 }
   0xe   : > { %p98_p4 = pnand %p476_p2, %p97_p3 }
  0x10   : > { %101 = sbr.rel (%p98_p4) target bundleno = 2310 (0x906), region = 54 }
  0x15   : > { %s104_s18 = sand.u32 1, %s470_s9   ;;  %v115_v2 = vlaneseq  ;;  %v542_v11 = vmov -1.0   ;;  %v543_v55 = vmov 0.0   ;;  %s487_s21 = sshll.u32 %s532_s6, 4 }
  0x16   : > { %s477_s19 = sshll.u32 %s104_s18, 4  ;;  %s369_s24 = scalar_lea.vmem %s644_s1, %s487_s21 }
  0x17   : > { %v581_v3 = vand.u32 127, %v115_v2  ;;  %v119_v4 = vshrl.u32 %v115_v2, 7  ;;  %s583_s20 = scalar_lea.vmem [#allocation0], %s477_s19 }
  0x18   : > { %v122_v5 = vld [vmem:[%s583_s20] sm:$0xff]  ;;  %v479_v38 = vld [vmem:[%s583_s20 + $0x8] sm:$0xff] }
  0x19   : > { %vm121_vm0 = vcmp.eq.s32.totalorder %v119_v4, %v581_v3  ;;  %vm117_vm1 = vcmp.lt.s32.totalorder %v581_v3, 16  ;;  %vm126_vm2 = vcmp.ge.s32.totalorder %v119_v4, %v581_v3  ;;  %vm156_vm4 = vcmp.eq.s32.totalorder %v581_v3, 0 }
  0x1a   : > { %v123_v6 = vsel %vm121_vm0, %v122_v5, 0.0  ;;  %vm127_vm3 = vmand %vm126_vm2, %vm117_vm1  ;;  %vm153_vm5 = vcmp.eq.s32.totalorder %v581_v3, %v119_v4  ;;  %v157_v12 = vsel %vm156_vm4, 1.0, %v542_v11  ;;  %vm171_vm6 = vcmp.eq.s32.totalorder %v581_v3, 1 }
  0x1b   : > { %124 = vadd.xlane.f32.xlu0 %v123_v6  ;;  %v128_v8 = vsel %vm127_vm3, %v122_v5, 0.0  ;;  %v158_v13 = vsel %vm153_vm5, %v157_v12, 0.0  ;;  %vm181_vm7 = vcmp.eq.s32.totalorder %v581_v3, 2  ;;  %vm191_vm8 = vcmp.eq.s32.totalorder %v581_v3, 3 }
  0x1c   : > { %vm201_vm9 = vcmp.eq.s32.totalorder %v581_v3, 4  ;;  %v136_v33 = vadd.s32 8, %v119_v4  ;;  %vm211_vm11 = vcmp.eq.s32.totalorder %v581_v3, 5  ;;  %vm221_vm14 = vcmp.eq.s32.totalorder %v581_v3, 6 }
  0x1d   : > { %vm231_vm0 = vcmp.eq.s32.totalorder %v581_v3, 7  ;;  %vm255_vm2 = vcmp.eq.s32.totalorder %v581_v3, 9  ;;  %vm269_vm3 = vcmp.eq.s32.totalorder %v581_v3, 10  ;;  %vm283_vm4 = vcmp.eq.s32.totalorder %v581_v3, 11 }
  0x1e   : > { %vm137_vm10 = vcmp.eq.s32.totalorder %v136_v33, %v581_v3  ;;  %vm142_vm12 = vcmp.ge.s32.totalorder %v136_v33, %v581_v3  ;;  %vm164_vm15 = vcmp.eq.s32.totalorder %v581_v3, %v136_v33  ;;  %vm297_vm5 = vcmp.eq.s32.totalorder %v581_v3, 12 }
  0x1f   : > { %v139_v39 = vsel %vm137_vm10, %v479_v38, 0.0  ;;  %vm143_vm13 = vmand %vm142_vm12, %vm117_vm1  ;;  %v165_v56 = vsel %vm164_vm15, -1.0, %v543_v55  ;;  %vm241_vm1 = vcmp.eq.s32.totalorder %v581_v3, 8 }
  0x20   : > { %v144_v46 = vsel %vm143_vm13, %v479_v38, 0.0 }
  0xa4   : > { %v587_v7 = vpop.xlane.xlu0 %124 }
  0xa5   : > { %514 = vrcp.f32 %v587_v7  ;;  %vm350_vm10 = vweird.f32 %v587_v7 }
  0xb2   : > { %v594_v9 = vpop.eup %514 }
  0xb3   : > { %v130_v10 = vmul.f32 %v594_v9, %v128_v8 }
  0xb5   : > { %131 = vst [vmem:[#allocation2] sm:$0xff] %v130_v10 }
  0xbc   : > { %v167_v14 = vld [vmem:[#allocation2 + $0x1] ss:$0 sm:$0xff]  ;;  %v177_v17 = vld [vmem:[#allocation2 + $0x2] ss:$0 sm:$0xff]  ;;  %v187_v22 = vld [vmem:[#allocation2 + $0x3] ss:$0 sm:$0xff] }
  0xbd   : > { %v168_v15 = vxor.u32 2147483648, %v167_v14  ;;  %v178_v19 = vxor.u32 2147483648, %v177_v17  ;;  %v188_v24 = vxor.u32 2147483648, %v187_v22  ;;  %v197_v27 = vld [vmem:[#allocation2 + $0x4] ss:$0 sm:$0xff] }
  0xbe   : > { %v198_v29 = vxor.u32 2147483648, %v197_v27  ;;  %v207_v32 = vld [vmem:[#allocation2 + $0x5] ss:$0 sm:$0xff]  ;;  %v217_v40 = vld [vmem:[#allocation2 + $0x6] ss:$0 sm:$0xff] }
  0xbf   : > { %v172_v16 = vmul.f32 %v168_v15, %v158_v13  ;;  %v208_v35 = vxor.u32 2147483648, %v207_v32  ;;  %v218_v42 = vxor.u32 2147483648, %v217_v40  ;;  %v227_v49 = vld [vmem:[#allocation2 + $0x7] ss:$0 sm:$0xff] }
  0xc0   : > { %v228_v52 = vxor.u32 2147483648, %v227_v49 }
  0xc1   : > { %173 = vadd.xlane.f32.xlu0 %v172_v16 }
 0x14a   : > { %v174_v18 = vpop.xlane.xlu0 %173 }
 0x14b   : > { %v175_v20 = vsel %vm171_vm6, %v174_v18, %v158_v13  ;;  %vm311_vm6 = vcmp.eq.s32.totalorder %v581_v3, 13 }
 0x14c   : > { %v182_v21 = vmul.f32 %v178_v19, %v175_v20 }
 0x14e   : > { %183 = vadd.xlane.f32.xlu1 %v182_v21 }
 0x1d7   : > { %v184_v23 = vpop.xlane.xlu1 %183 }
 0x1d8   : > { %v185_v25 = vsel %vm181_vm7, %v184_v23, %v175_v20  ;;  %vm325_vm7 = vcmp.eq.s32.totalorder %v581_v3, 14 }
 0x1d9   : > { %v192_v26 = vmul.f32 %v188_v24, %v185_v25 }
 0x1db   : > { %193 = vadd.xlane.f32.xlu1 %v192_v26 }
 0x264   : > { %v194_v28 = vpop.xlane.xlu1 %193 }
 0x265   : > { %v195_v30 = vsel %vm191_vm8, %v194_v28, %v185_v25  ;;  %vm339_vm8 = vcmp.eq.s32.totalorder %v581_v3, 15 }
 0x266   : > { %v202_v31 = vmul.f32 %v198_v29, %v195_v30 }
 0x268   : > { %203 = vadd.xlane.f32.xlu0 %v202_v31 }
 0x2f1   : > { %v204_v34 = vpop.xlane.xlu0 %203 }
 0x2f2   : > { %v205_v36 = vsel %vm201_vm9, %v204_v34, %v195_v30 }
 0x2f3   : > { %v212_v37 = vmul.f32 %v208_v35, %v205_v36 }
 0x2f5   : > { %213 = vadd.xlane.f32.xlu1 %v212_v37 }
 0x2f9   : > { %140 = vadd.xlane.f32.xlu1 %v139_v39 }
 0x37e   : > { %v214_v41 = vpop.xlane.xlu1 %213 }
 0x37f   : > { %v215_v43 = vsel %vm211_vm11, %v214_v41, %v205_v36 }
 0x380   : > { %v222_v44 = vmul.f32 %v218_v42, %v215_v43 }
 0x382   : > { %223 = vadd.xlane.f32.xlu0 %v222_v44  ;;  %v606_v45 = vpop.xlane.xlu1 %140 }
 0x383   : > { %516 = vrcp.f32 %v606_v45  ;;  %vm355_vm9 = vweird.f32 %v606_v45 }
 0x390   : > { %v612_v47 = vpop.eup %516 }
 0x391   : > { %v146_v48 = vmul.f32 %v612_v47, %v144_v46 }
 0x393   : > { %147 = vst [vmem:[#allocation2 + $0x8] sm:$0xff] %v146_v48 }
 0x39a   : > { %v237_v50 = vld [vmem:[#allocation2 + $0x8] ss:$0 sm:$0xff]  ;;  %v251_v61 = vld [vmem:[#allocation2 + $0x9] ss:$0 sm:$0xff]  ;;  %v265_v6 = vld [vmem:[#allocation2 + $0xa] ss:$0 sm:$0xff] }
 0x39b   : > { %v238_v53 = vxor.u32 2147483648, %v237_v50  ;;  %v252_v0 = vxor.u32 2147483648, %v251_v61  ;;  %v266_v11 = vxor.u32 2147483648, %v265_v6  ;;  %v279_v16 = vld [vmem:[#allocation2 + $0xb] ss:$0 sm:$0xff] }
 0x39c   : > { %v280_v19 = vxor.u32 2147483648, %v279_v16  ;;  %v293_v24 = vld [vmem:[#allocation2 + $0xc] ss:$0 sm:$0xff]  ;;  %v307_v32 = vld [vmem:[#allocation2 + $0xd] ss:$0 sm:$0xff] }
 0x39d   : > { %v246_v58 = vmul.f32 %v238_v53, %v165_v56  ;;  %v294_v27 = vxor.u32 2147483648, %v293_v24  ;;  %v308_v35 = vxor.u32 2147483648, %v307_v32  ;;  %v321_v40 = vld [vmem:[#allocation2 + $0xe] ss:$0 sm:$0xff]  ;;  %v335_v50 = vld [vmem:[#allocation2 + $0xf] ss:$0 sm:$0xff] }
 0x40b   : > { %v224_v51 = vpop.xlane.xlu0 %223 }
 0x40c   : > { %v225_v54 = vsel %vm221_vm14, %v224_v51, %v215_v43  ;;  %v322_v43 = vxor.u32 2147483648, %v321_v40 }
 0x40d   : > { %v232_v57 = vmul.f32 %v228_v52, %v225_v54 }
 0x40f   : > { %233 = vadd.xlane.f32.xlu0 %v232_v57 }
 0x413   : > { %247 = vadd.xlane.f32.xlu0 %v246_v58 }
 0x498   : > { %v234_v59 = vpop.xlane.xlu0 %233 }
 0x499   : > { %v235_v60 = vsel %vm231_vm0, %v234_v59, %v225_v54 }
 0x49a   : > { %v242_v62 = vmul.f32 %v238_v53, %v235_v60  ;;  %v336_v53 = vxor.u32 2147483648, %v335_v50 }
 0x49c   : > { %v248_v63 = vpop.xlane.xlu0 %247  ;;  %243 = vadd.xlane.f32.xlu1 %v242_v62 }
 0x49d   : > { %v249_v1 = vsel %vm241_vm1, %v248_v63, %v165_v56 }
 0x49e   : > { %v260_v2 = vmul.f32 %v252_v0, %v249_v1 }
 0x4a0   : > { %261 = vadd.xlane.f32.xlu0 %v260_v2 }
 0x525   : > { %v244_v4 = vpop.xlane.xlu1 %243 }
 0x526   : > { %v245_v5 = vsel %vm241_vm1, %v244_v4, %v235_v60 }
 0x527   : > { %v256_v8 = vmul.f32 %v252_v0, %v245_v5 }
 0x529   : > { %v262_v10 = vpop.xlane.xlu0 %261  ;;  %257 = vadd.xlane.f32.xlu1 %v256_v8 }
 0x52a   : > { %v263_v12 = vsel %vm255_vm2, %v262_v10, %v249_v1 }
 0x52b   : > { %v274_v13 = vmul.f32 %v266_v11, %v263_v12 }
 0x52d   : > { %275 = vadd.xlane.f32.xlu0 %v274_v13 }
 0x5b2   : > { %v258_v14 = vpop.xlane.xlu1 %257 }
 0x5b3   : > { %v259_v15 = vsel %vm255_vm2, %v258_v14, %v245_v5 }
 0x5b4   : > { %v270_v17 = vmul.f32 %v266_v11, %v259_v15 }
 0x5b6   : > { %v276_v18 = vpop.xlane.xlu0 %275  ;;  %271 = vadd.xlane.f32.xlu1 %v270_v17 }
 0x5b7   : > { %v277_v20 = vsel %vm269_vm3, %v276_v18, %v263_v12 }
 0x5b8   : > { %v288_v21 = vmul.f32 %v280_v19, %v277_v20 }
 0x5ba   : > { %289 = vadd.xlane.f32.xlu0 %v288_v21 }
 0x63f   : > { %v272_v22 = vpop.xlane.xlu1 %271 }
 0x640   : > { %v273_v23 = vsel %vm269_vm3, %v272_v22, %v259_v15 }
 0x641   : > { %v284_v25 = vmul.f32 %v280_v19, %v273_v23 }
 0x643   : > { %v290_v26 = vpop.xlane.xlu0 %289  ;;  %285 = vadd.xlane.f32.xlu1 %v284_v25 }
 0x644   : > { %v291_v28 = vsel %vm283_vm4, %v290_v26, %v277_v20 }
 0x645   : > { %v302_v29 = vmul.f32 %v294_v27, %v291_v28 }
 0x647   : > { %303 = vadd.xlane.f32.xlu0 %v302_v29 }
 0x6cc   : > { %v286_v30 = vpop.xlane.xlu1 %285 }
 0x6cd   : > { %v287_v31 = vsel %vm283_vm4, %v286_v30, %v273_v23 }
 0x6ce   : > { %v298_v33 = vmul.f32 %v294_v27, %v287_v31 }
 0x6d0   : > { %v304_v34 = vpop.xlane.xlu0 %303  ;;  %299 = vadd.xlane.f32.xlu1 %v298_v33 }
 0x6d1   : > { %v305_v36 = vsel %vm297_vm5, %v304_v34, %v291_v28 }
 0x6d2   : > { %v316_v37 = vmul.f32 %v308_v35, %v305_v36 }
 0x6d4   : > { %317 = vadd.xlane.f32.xlu0 %v316_v37 }
 0x759   : > { %v300_v38 = vpop.xlane.xlu1 %299 }
 0x75a   : > { %v301_v39 = vsel %vm297_vm5, %v300_v38, %v287_v31 }
 0x75b   : > { %v312_v41 = vmul.f32 %v308_v35, %v301_v39 }
 0x75d   : > { %v318_v42 = vpop.xlane.xlu0 %317  ;;  %313 = vadd.xlane.f32.xlu1 %v312_v41 }
 0x75e   : > { %v319_v44 = vsel %vm311_vm6, %v318_v42, %v305_v36 }
 0x75f   : > { %v330_v46 = vmul.f32 %v322_v43, %v319_v44 }
 0x761   : > { %331 = vadd.xlane.f32.xlu0 %v330_v46 }
 0x7e6   : > { %v314_v48 = vpop.xlane.xlu1 %313 }
 0x7e7   : > { %v315_v49 = vsel %vm311_vm6, %v314_v48, %v301_v39 }
 0x7e8   : > { %v326_v51 = vmul.f32 %v322_v43, %v315_v49 }
 0x7ea   : > { %v332_v52 = vpop.xlane.xlu0 %331  ;;  %327 = vadd.xlane.f32.xlu1 %v326_v51 }
 0x7eb   : > { %v333_v54 = vsel %vm325_vm7, %v332_v52, %v319_v44 }
 0x7ec   : > { %v344_v55 = vmul.f32 %v336_v53, %v333_v54 }
 0x7ee   : > { %345 = vadd.xlane.f32.xlu0 %v344_v55 }
 0x873   : > { %v328_v56 = vpop.xlane.xlu1 %327 }
 0x874   : > { %v329_v57 = vsel %vm325_vm7, %v328_v56, %v315_v49 }
 0x875   : > { %v340_v58 = vmul.f32 %v336_v53, %v329_v57 }
 0x877   : > { %v346_v59 = vpop.xlane.xlu0 %345  ;;  %341 = vadd.xlane.f32.xlu1 %v340_v58 }
 0x878   : > { %v347_v60 = vsel %vm339_vm8, %v346_v59, %v333_v54 }
 0x879   : > { %v354_v61 = vmul.f32 %v612_v47, %v347_v60 }
 0x87b   : > { %v356_v62 = vsel %vm355_vm9, %v347_v60, %v354_v61 }
 0x87c   : > { %403 = vst [vmem:[%s369_s24 + $0x8] sm:$0xff] %v356_v62 }
 0x900   : > { %v342_v63 = vpop.xlane.xlu1 %341 }
 0x901   : > { %v343_v0 = vsel %vm339_vm8, %v342_v63, %v329_v57 }
 0x902   : > { %v349_v1 = vmul.f32 %v594_v9, %v343_v0 }
 0x904   : > { %v351_v3 = vsel %vm350_vm10, %v343_v0, %v349_v1 }
 0x905   : > { %401 = vst [vmem:[%s369_s24] sm:$0xff] %v351_v3 }
 0x906 PF: > { %s7_s8 = sadd.s32 1, %s540_s8   ;;  %s645_s6 = smov %s536_s7 }
 0x907   : > { %p4_p5 = scmp.ge.s32.totalorder %s7_s8, 4   ;;  %s646_s7 = smov %s648_s10 }
 0x909   :  { %6 = sbr.rel (!%p4_p5) target bundleno = 2 (0x2), region = 136 }

// kernel: custom-call.34
= control target key start
LH: loop header
LB: loop body
LE: loop exit
PB: predicated region body
PF: predicated region fallthrough
CT: control target
= control target key end

     0   :  { %s1688_s30 = smov 0   ;;  %s1690_s10 = smov 0   ;;  %s1997_s0 = inlined_call_operand.vmem [shape: f32[2,8,8], index: 0, kind: input, shape index: {}]   ;;  %s1998_s1 = inlined_call_operand.vmem [shape: f32[2,8,8], index: 1, kind: input, shape index: {}]   ;;  %s1999_s2 = inlined_call_operand.vmem [shape: f32[2,8,8], index: 2, kind: input, shape index: {}]   ;;  %s2000_s3 = inlined_call_operand.vmem [shape: f32[2,8,8], index: 3, kind: input, shape index: {}]   ;;  %s2001_s4 = inlined_call_operand.vmem [shape: f32[2,8], index: 4, kind: output, shape index: {0}]   ;;  %s2002_s5 = inlined_call_operand.vmem [shape: f32[2,8], index: 5, kind: output, shape index: {1}]   ;;  %s2003_s6 = inlined_call_operand.vmem [shape: f32[2,8,8], index: 6, kind: output, shape index: {2}]   ;;  %s2004_s7 = inlined_call_operand.vmem [shape: f32[2,8,8], index: 7, kind: output, shape index: {3}]   ;;  %s2005_s8 = inlined_call_operand.vmem [shape: f32[2,8,8], index: 8, kind: output, shape index: {4}]   ;;  %s2006_s9 = inlined_call_operand.vmem [shape: f32[2,8,8], index: 9, kind: output, shape index: {5}]  }
   0x1   :  { %s1692_s11 = smov 0  }
   0x2 LB: > { %s1704_s12 = sadd.s32 4294967295, %s1625_s11   ;;  %s1707_s13 = sadd.s32 1, %s1625_s11   ;;  %s1625_s11 = sphi %s1692_s11, %s2015_s11   ;;  %s1621_s10 = sphi %s1690_s10, %s2014_s10   ;;  %s1617_s30 = sphi %s1688_s30, %s2013_s30  }
   0x3   : > { %s20_s14 = sshrl.u32 %s1625_s11, 3  ;;  %s21_s15 = sshrl.u32 %s1707_s13, 3 }
   0x4   : > { %s22_s16 = ssub.s32 %s20_s14, %s21_s15  ;;  %s25_s17 = sadd.s32 1, %s1621_s10 }
   0x5   : > { %p23_p0 = scmp.eq.s32.totalorder %s22_s16, 0  ;;  %p35_p1 = scmp.ne.s32.totalorder %s1621_s10, %s1617_s30 }
   0x6   : > { %p36_p2 = scmp.eq.s32.totalorder %s1704_s12, 1  ;;  %p1486_p4 = scmp.ge.s32.totalorder %s1625_s11, 2 }
   0x7   : > { %s1716_s18 = scalar_select %p23_p0, %s1621_s10, %s25_s17  }
   0x8   : > { %p1718_p3 = por %p36_p2, %p35_p1  ;;  %86 = sbr.rel (%p1486_p4) target bundleno = 18 (0x12), region = 16 }
   0x9   : > { %2007 = sst [smem:[#allocation25_spill]] %s1716_s18  ;;  %s88_s20 = sand.u32 (!%p1486_p4), 1, %s1625_s11  }
   0xa   : > { %s1488_s21 = sshll.u32 (!%p1486_p4), %s1625_s11, 3  ;;  %s1487_s22 = sshll.u32 (!%p1486_p4), %s88_s20, 3 }
   0xb   : > { %s92_s25 = scalar_lea.vmem (!%p1486_p4), %s1997_s0, %s1488_s21  ;;  %s90_s26 = scalar_lea.vmem (!%p1486_p4), [#allocation0], %s1487_s22 }
   0xc   : > { %s131_s29 = scalar_lea.vmem (!%p1486_p4), %s1998_s1, %s1488_s21  ;;  %s170_s16 = scalar_lea.vmem (!%p1486_p4), %s1999_s2, %s1488_s21 }
   0xd   : > { %v121_v0 = vld [vmem:[%s92_s25] sm:$0xff]  ;;  %s129_s17 = scalar_lea.vmem [#allocation1], %s1487_s22  ;;  %s209_s23 = scalar_lea.vmem %s2000_s3, %s1488_s21 }
   0xe   : > { %122 = vst [vmem:[%s90_s26] sm:$0xff] %v121_v0  ;;  %v160_v1 = vld [vmem:[%s131_s29] sm:$0xff]  ;;  %s168_s24 = scalar_lea.vmem [#allocation2], %s1487_s22  ;;  %s207_s25 = scalar_lea.vmem [#allocation3], %s1487_s22 }
   0xf   : > { %161 = vst [vmem:[%s129_s17] sm:$0xff] %v160_v1  ;;  %v199_v2 = vld [vmem:[%s170_s16] sm:$0xff] }
  0x10   : > { %200 = vst [vmem:[%s168_s24] sm:$0xff] %v199_v2  ;;  %v238_v3 = vld [vmem:[%s209_s23] sm:$0xff] }
  0x11   : > { %239 = vst [vmem:[%s207_s25] sm:$0xff] %v238_v3 }
  0x12 PF: > { %p1495_p5 = scmp.ge.s32.totalorder %s1625_s11, 1  ;;  %p244_p6 = scmp.lt.s32.totalorder %s1625_s11, 3 }
  0x14   : > { %p245_p7 = pnand %p1495_p5, %p244_p6 }
  0x16   : > { %248 = sbr.rel (%p245_p7) target bundleno = 987 (0x3db), region = 156 }
  0x1b   : > { %s251_s26 = sand.u32 1, %s1704_s12   ;;  %s285_s27 = sand.u32 1, %s1617_s30   ;;  %v329_v4 = vlaneseq  ;;  %v1635_v11 = vmov 0.0  }
  0x1c   : > { %s1496_s28 = sshll.u32 %s251_s26, 3  ;;  %s1741_s18 = sshll.u32 %s285_s27, 1 }
  0x1d   : > { %v1743_v5 = vand.u32 127, %v329_v4  ;;  %v1745_v6 = vshrl.u32 %v329_v4, 7  ;;  %s253_s21 = scalar_lea.vmem [#allocation0], %s1496_s28  ;;  %s257_s22 = scalar_lea.vmem [#allocation1], %s1496_s28 }
  0x1e   : > { %v313_v7 = vld [vmem:[%s253_s21] sm:$0xff]  ;;  %v316_v8 = vld [vmem:[%s257_s22] sm:$0xff]  ;;  %s261_s29 = scalar_lea.vmem [#allocation2], %s1496_s28  ;;  %s265_s11 = scalar_lea.vmem [#allocation3], %s1496_s28 }
  0x1f   : > { %v319_v9 = vld [vmem:[%s261_s29] sm:$0xff]  ;;  %v322_v10 = vld [vmem:[%s265_s11] sm:$0xff]  ;;  %s1747_s14 = scalar_lea.vmem [#allocation8], %s1496_s28  ;;  %s1750_s30 = scalar_lea.vmem [#allocation9], %s1496_s28  ;;  %v331_v5 = vmov %v1743_v5  ;;  %v334_v6 = vmov %v1745_v6  ;;  %vm1375_vm2 = vcmp.lt.s32.totalorder %v1743_v5, 8 }
  0x20   : > { %324 = vst [vmem:[%s1747_s14] sm:$0xff] %v1635_v11  ;;  %325 = vst [vmem:[%s1750_s30] sm:$0xff] %v1635_v11  ;;  %s312_s15 = smov [#allocation12]  ;;  %s315_s16 = smov [#allocation13]  ;;  %v344_v5 = vmov %v1743_v5  ;;  %v347_v6 = vmov %v1745_v6  ;;  %vm338_vm0 = vcmp.eq.s32.totalorder %v334_v6, %v331_v5 }
  0x21   : > { %s1753_s17 = scalar_lea.vmem [#allocation10], %s1496_s28  ;;  %s1756_s20 = scalar_lea.vmem [#allocation11], %s1496_s28  ;;  %314 = vst [vmem:[%s312_s15] sm:$0xff] %v313_v7  ;;  %317 = vst [vmem:[%s315_s16] sm:$0xff] %v316_v8  ;;  %vm351_vm1 = vcmp.eq.s32.totalorder %v347_v6, %v344_v5  ;;  %v1367_v5 = vmov %v1743_v5  ;;  %v1370_v6 = vmov %v1745_v6 }
  0x22   : > { %326 = vst [vmem:[%s1753_s17] sm:$0xff] %v1635_v11  ;;  %327 = vst [vmem:[%s1756_s20] sm:$0xff] %v1635_v11  ;;  %s318_s23 = smov [#allocation14]  ;;  %s321_s24 = smov [#allocation15]  ;;  %vm1380_vm3 = vcmp.eq.s32.totalorder %v1370_v6, %v1367_v5  ;;  %v1418_v5 = vmov %v1743_v5  ;;  %v1387_v6 = vmov %v1745_v6 }
  0x23   : > { %320 = vst [vmem:[%s318_s23] sm:$0xff] %v319_v9  ;;  %323 = vst [vmem:[%s321_s24] sm:$0xff] %v322_v10  ;;  %s328_s14 = smov %s1747_s14  ;;  %s341_s20 = smov %s1756_s20  ;;  %v1384_v5 = vmov %v1743_v5  ;;  %v1421_v6 = vmov %v1745_v6 }
  0x24   : > { %s287_s25 = scalar_lea.vmem [#allocation5], %s1741_s18  ;;  %s1371_s27 = smov [#allocation12]  ;;  %v1401_v5 = vmov %v1743_v5  ;;  %v1404_v6 = vmov %v1745_v6  ;;  %vm1431_vm4 = vcmp.eq.s32.totalorder %v1421_v6, %v1418_v5 }
  0x25   : > { %s1388_s28 = smov [#allocation13]  ;;  %s1405_s21 = smov [#allocation14] }
  0x26   : > { %s1422_s22 = smov [#allocation15] }
  0x27   : > { %v335_v12 = vld [vmem:[%s328_s14] sm:$0xff] }
  0x28   : > { %v339_v13 = vsel %vm338_vm0, 1.0, %v335_v12  ;;  %v1377_v16 = vld [vmem:[%s1371_s27] sm:$0xff] }
  0x29   : > { %v348_v14 = vld [vmem:[%s341_s20] sm:$0xff]  ;;  %340 = vst [vmem:[%s328_s14] sm:$0xff] %v339_v13  ;;  %v1378_v18 = vsel %vm1375_vm2, %v1377_v16, 0.0 }
  0x2a   : > { %v352_v15 = vsel %vm351_vm1, 1.0, %v348_v14  ;;  %v1394_v17 = vld [vmem:[%s1388_s28] sm:$0xff]  ;;  %v1379_v22 = vmul.f32 %v1378_v18, %v1378_v18 }
  0x2b   : > { %353 = vst [vmem:[%s341_s20] sm:$0xff] %v352_v15  ;;  %v1395_v19 = vsel %vm1375_vm2, %v1394_v17, 0.0  ;;  %v1411_v20 = vld [vmem:[%s1405_s21] sm:$0xff] }
  0x2c   : > { %v1428_v21 = vld [vmem:[%s1422_s22] sm:$0xff]  ;;  %v1396_v23 = vmul.f32 %v1395_v19, %v1395_v19  ;;  %v1412_v24 = vsel %vm1375_vm2, %v1411_v20, 0.0  ;;  %v1381_v29 = vsel %vm1380_vm3, 0.0, %v1379_v22 }
  0x2d   : > { %v1429_v25 = vsel %vm1375_vm2, %v1428_v21, 0.0  ;;  %v1413_v26 = vmul.f32 %v1412_v24, %v1412_v24 }
  0x2e   : > { %v1398_v27 = vadd.f32 %v1396_v23, %v1379_v22  ;;  %v1430_v28 = vmul.f32 %v1429_v25, %v1429_v25  ;;  %v1397_v30 = vadd.f32 %v1396_v23, %v1381_v29 }
  0x30   : > { %v1415_v31 = vadd.f32 %v1413_v26, %v1398_v27  ;;  %v1414_v32 = vadd.f32 %v1413_v26, %v1397_v30  ;;  %v1432_v33 = vsel %vm1431_vm4, 0.0, %v1430_v28 }
  0x32   : > { %v1434_v34 = vadd.f32 %v1430_v28, %v1415_v31  ;;  %v1433_v35 = vadd.f32 %v1432_v33, %v1414_v32 }
  0x34   : > { %1435 = vadd.xlane.f32.xlu0 %v1434_v34 }
  0x38   : > { %1443 = vadd.xlane.f32.xlu0 %v1433_v35 }
  0xbd   : > { %v1436_v36 = vpop.xlane.xlu0 %1435 }
  0xbe   : > { %v1437_v37 = vrot.slane %v1436_v36, 4 }
  0xc0   : > { %v1438_v38 = vadd.f32 %v1437_v37, %v1436_v36 }
  0xc1   : > { %v1444_v39 = vpop.xlane.xlu0 %1443 }
  0xc2   : > { %v1439_v40 = vrot.slane %v1438_v38, 2  ;;  %v1445_v41 = vrot.slane %v1444_v39, 4 }
  0xc4   : > { %v1446_v42 = vadd.f32 %v1445_v41, %v1444_v39  ;;  %v1440_v43 = vadd.f32 %v1439_v40, %v1438_v38 }
  0xc6   : > { %v1447_v44 = vrot.slane %v1446_v42, 2  ;;  %v1441_v46 = vrot.slane %v1440_v43, 1 }
  0xc8   : > { %v1448_v45 = vadd.f32 %v1447_v44, %v1446_v42  ;;  %v1442_v49 = vadd.f32 %v1441_v46, %v1440_v43 }
  0xca   : > { %v1449_v47 = vrot.slane %v1448_v45, 1 }
  0xcc   : > { %v1450_v48 = vadd.f32 %v1449_v47, %v1448_v45 }
  0xce   : > { %1536 = vpush %v1450_v48 }
  0xcf   : > { %1538 = vpush %v1442_v49 }
  0xff   : > { %s1537_s29 = spop %1536 }
 0x100   : > { %s1539_s11 = spop %1538 }
 0x101   : > { %s1453_s15 = smul.f32 1e-10, %s1539_s11 }
 0x103   : > { %p1454_p8 = scmp.le.f32.partialorder %s1537_s29, %s1453_s15 }
 0x104   : > { %s1785_s16 = smov (!%p1454_p8), 0  }
 0x105   : > { %1457 = sbr.rel (%p1454_p8) target bundleno = 943 (0x3af), region = 499 }
 0x10a LB: >> { %s1790_s23 = smov 0   ;;  %s1629_s16 = sphi %s1785_s16, %s2009_s16  }
 0x10b LB: >>> { %s458_s24 = smov [#allocation12]  ;;  %v462_v5 = vmov %v1743_v5  ;;  %v465_v6 = vmov %v1745_v6  ;;  %s478_s27 = smov [#allocation13]  ;;  %vm781_vm14 = vcmp.eq.s32.totalorder %v1745_v6, 0  ;;  %vm793_vm15 = vcmp.eq.s32.totalorder %v1745_v6, 7  ;;  %s1633_s23 = sphi %s1790_s23, %s457_s23  }
 0x10c   : >>> { %v482_v5 = vmov %v1743_v5  ;;  %v485_v6 = vmov %v1745_v6  ;;  %v466_v50 = vld [vmem:[%s458_s24] sm:$0xff]  ;;  %vm469_vm5 = vcmp.eq.s32.totalorder %v465_v6, %v462_v5  ;;  %s498_s28 = smov [#allocation15]  ;;  %s459_s21 = smov [#allocation16] }
 0x10d   : >>> { %vm489_vm6 = vcmp.eq.s32.totalorder %v485_v6, %v482_v5  ;;  %v502_v5 = vmov %v1743_v5  ;;  %v505_v6 = vmov %v1745_v6  ;;  %v470_v51 = vsel %vm469_vm5, %v466_v50, 0.0  ;;  %v486_v52 = vld [vmem:[%s478_s27] sm:$0xff]  ;;  %s479_s22 = smov [#allocation17]  ;;  %s499_s29 = smov [#allocation18] }
 0x10e   : >>> { %vm509_vm7 = vcmp.eq.s32.totalorder %v505_v6, %v502_v5  ;;  %v471_v53 = vrot.slane %v470_v51, 4  ;;  %v490_v54 = vsel %vm489_vm6, %v486_v52, 0.0  ;;  %v506_v55 = vld [vmem:[%s498_s28] sm:$0xff]  ;;  %s522_s11 = smov [#allocation17]  ;;  %s520_s15 = smov [#allocation16]  ;;  %v571_v5 = vmov %v1743_v5 }
 0x10f   : >>> { %v491_v56 = vrot.slane %v490_v54, 4  ;;  %v510_v57 = vsel %vm509_vm7, %v506_v55, 0.0  ;;  %s524_s24 = smov [#allocation18]  ;;  %s559_s27 = smov [#allocation19]  ;;  %v574_v6 = vmov %v1745_v6  ;;  %v586_v5 = vmov %v1743_v5 }
 0x110   : >>> { %v472_v58 = vadd.f32 %v471_v53, %v470_v51  ;;  %v511_v59 = vrot.slane %v510_v57, 4  ;;  %s561_s28 = smov [#allocation20]  ;;  %v589_v6 = vmov %v1745_v6  ;;  %vm576_vm12 = vcmp.eq.s32.totalorder %v574_v6, %v571_v5  ;;  %s1812_s14 = smov %s1747_s14 }
 0x111   : >>> { %v492_v60 = vadd.f32 %v491_v56, %v490_v54  ;;  %vm591_vm13 = vcmp.eq.s32.totalorder %v589_v6, %v586_v5  ;;  %s1815_s30 = smov %s1750_s30  ;;  %s1818_s17 = smov %s1753_s17  ;;  %v829_v52 = vld [vmem:[%s1812_s14] sm:$0xff]  ;;  %v684_v5 = vmov %v1743_v5  ;;  %v687_v6 = vmov %v1745_v6 }
 0x112   : >>> { %v473_v61 = vrot.slane %v472_v58, 2  ;;  %v512_v62 = vadd.f32 %v511_v59, %v510_v57  ;;  %s1822_s20 = smov %s1756_s20  ;;  %v830_v53 = vld [vmem:[%s1815_s30] sm:$0xff]  ;;  %s823_s26 = smov [#allocation24]  ;;  %v657_v5 = vmov %v1743_v5  ;;  %v660_v6 = vmov %v1745_v6 }
 0x113   : >>> { %v493_v63 = vrot.slane %v492_v60, 2  ;;  %v831_v56 = vld [vmem:[%s1818_s17] sm:$0xff]  ;;  %v698_v5 = vmov %v1743_v5  ;;  %v701_v6 = vmov %v1745_v6  ;;  %vm691_vm0 = vcmp.eq.s32.totalorder %v687_v6, %v684_v5  ;;  %s457_s23 = sadd.s32 1, %s1633_s23  }
 0x114   : >>> { %v474_v0 = vadd.f32 %v473_v61, %v472_v58  ;;  %v513_v1 = vrot.slane %v512_v62, 2  ;;  %v832_v57 = vld [vmem:[%s1822_s20] sm:$0xff]  ;;  %v671_v5 = vmov %v1743_v5  ;;  %v674_v6 = vmov %v1745_v6  ;;  %p454_p9 = scmp.ge.s32.totalorder %s457_s23, 15  }
 0x115   : >>> { %v494_v2 = vadd.f32 %v493_v63, %v492_v60  ;;  %vm665_vm1 = vcmp.eq.s32.totalorder %v660_v6, %v657_v5  ;;  %vm706_vm3 = vcmp.eq.s32.totalorder %v701_v6, %v698_v5  ;;  %vm678_vm4 = vcmp.eq.s32.totalorder %v674_v6, %v671_v5 }
 0x116   : >>> { %v475_v3 = vrot.slane %v474_v0, 1  ;;  %v514_v4 = vadd.f32 %v513_v1, %v512_v62  ;;  %vm720_vm5 = vcmp.eq.s32.totalorder %v1743_v5, 0  ;;  %vm724_vm6 = vcmp.eq.s32.totalorder %v1743_v5, 1 }
 0x117   : >>> { %v495_v7 = vrot.slane %v494_v2, 1  ;;  %vm737_vm7 = vcmp.eq.s32.totalorder %v1743_v5, 7  ;;  %v358_v5 = vmov (%p454_p9), %v1743_v5  ;;  %v361_v6 = vmov (%p454_p9), %v1745_v6 }
 0x118   : >>> { %v476_v8 = vadd.f32 %v475_v3, %v474_v0  ;;  %v515_v9 = vrot.slane %v514_v4, 1  ;;  %v411_v5 = vmov (%p454_p9), %v1743_v5 }
 0x119   : >>> { %v496_v10 = vadd.f32 %v495_v7, %v494_v2 }
 0x11a   : >>> { %477 = vst [vmem:[%s459_s21] sm:$0x1] %v476_v8  ;;  %v516_v11 = vadd.f32 %v515_v9, %v514_v4  ;;  %s518_s21 = smov [#allocation21] }
 0x11b   : >>> { %497 = vst [vmem:[%s479_s22] sm:$0x1] %v496_v10  ;;  %s519_s22 = smov [#allocation22]  ;;  %s563_s21 = smov %s518_s21 }
 0x11c   : >>> { %517 = vst [vmem:[%s499_s29] sm:$0x1] %v516_v11  ;;  %s565_s22 = smov %s519_s22  ;;  %s567_s29 = smov [#allocation21] }
 0x121   : >>> { %v521_v14 = vld [vmem:[%s520_s15] sm:$0xff]  ;;  %s580_s15 = smov [#allocation23] }
 0x122   : >>> { %v523_v12 = vld [vmem:[%s522_s11] sm:$0xff]  ;;  %v544_v29 = vand.u32 2147483647, %v521_v14  ;;  %s582_s11 = smov [#allocation22] }
 0x123   : >>> { %v527_v13 = vmul.f32 2.0, %v523_v12  ;;  %v525_v15 = vld [vmem:[%s524_s24] sm:$0xff]  ;;  %v545_v32 = vand.u32 2147483647, %v523_v12  ;;  %s597_s24 = smov [#allocation23] }
 0x124   : >>> { %v526_v16 = vsub.f32 %v525_v15, %v521_v14  ;;  %v546_v30 = vand.u32 2147483647, %v525_v15 }
 0x125   : >>> { %1587 = vrcp.f32 %v527_v13 }
 0x126   : >>> { %v547_v31 = vmin.f32 %v544_v29, %v546_v30 }
 0x128   : >>> { %v548_v33 = vmul.f32 1.1920929e-08, %v547_v31 }
 0x12a   : >>> { %vm549_vm11 = vcmp.le.f32.partialorder %v545_v32, %v548_v33 }
 0x132   : >>> { %v1588_v17 = vpop.eup %1587 }
 0x133   : >>> { %v529_v18 = vmul.f32 %v1588_v17, %v526_v16 }
 0x135   : >>> { %v531_v19 = vmul.f32 %v529_v18, %v529_v18  ;;  %vm530_vm10 = vcmp.ge.f32.partialorder %v529_v18, 0.0 }
 0x137   : >>> { %v532_v20 = vadd.f32 1.0, %v531_v19 }
 0x139   : >>> { %1589 = vrsqrt.f32 %v532_v20  ;;  %vm535_vm8 = vcmp.eq.f32.partialorder %v532_v20, inf  ;;  %v538_v22 = vand.u32 2147483648, %v532_v20  ;;  %vm537_vm9 = vcmp.eq.f32.partialorder %v532_v20, 0.0 }
 0x146   : >>> { %v1590_v21 = vpop.eup %1589 }
 0x147   : >>> { %v534_v23 = vmul.f32 %v1590_v21, %v532_v20 }
 0x149   : >>> { %v536_v24 = vsel %vm535_vm8, %v532_v20, %v534_v23  ;;  %vm373_vm8 = vcmp.eq.s32.totalorder (%p454_p9), %v361_v6, %v358_v5  ;;  %v414_v6 = vmov (%p454_p9), %v1745_v6  ;;  %v377_v5 = vmov (%p454_p9), %v1743_v5 }
 0x14a   : >>> { %v539_v25 = vsel %vm537_vm9, %v538_v22, %v536_v24  ;;  %v380_v6 = vmov (%p454_p9), %v1745_v6  ;;  %v394_v5 = vmov (%p454_p9), %v1743_v5  ;;  %vm426_vm9 = vcmp.eq.s32.totalorder (%p454_p9), %v414_v6, %v411_v5 }
 0x14b   : >>> { %v540_v26 = vxor.u32 2147483648, %v539_v25  ;;  %v397_v6 = vmov (%p454_p9), %v1745_v6 }
 0x14d   : >>> { %v541_v27 = vsel %vm530_vm10, %v539_v25, %v540_v26 }
 0x14e   : >>> { %v542_v28 = vadd.f32 %v541_v27, %v529_v18 }
 0x150   : >>> { %1591 = vrcp.f32 %v542_v28 }
 0x15d   : >>> { %v1592_v34 = vpop.eup %1591 }
 0x15e   : >>> { %v550_v35 = vsel %vm549_vm11, 0.0, %v1592_v34 }
 0x15f   : >>> { %v551_v36 = vmul.f32 %v550_v35, %v550_v35  ;;  %v555_v37 = vmul.f32 %v550_v35, %v523_v12 }
 0x161   : >>> { %v552_v38 = vadd.f32 1.0, %v551_v36  ;;  %v556_v39 = vsub.f32 %v521_v14, %v555_v37  ;;  %v558_v40 = vadd.f32 %v555_v37, %v525_v15 }
 0x163   : >>> { %1593 = vrsqrt.f32 %v552_v38  ;;  %560 = vst [vmem:[%s559_s27] sm:$0xff] %v556_v39  ;;  %562 = vst [vmem:[%s561_s28] sm:$0xff] %v558_v40  ;;  %s1805_s27 = smov [#allocation12]  ;;  %s595_s28 = smov [#allocation24] }
 0x164   : >>> { %v605_v49 = vld [vmem:[%s1805_s27] sm:$0xff] }
 0x170   : >>> { %v1594_v41 = vpop.eup %1593 }
 0x171   : >>> { %564 = vst [vmem:[%s563_s21] sm:$0xff] %v1594_v41  ;;  %v554_v42 = vmul.f32 %v1594_v41, %v550_v35  ;;  %s1807_s21 = smov [#allocation13] }
 0x172   : >>> { %v606_v50 = vld [vmem:[%s1807_s21] sm:$0xff] }
 0x173   : >>> { %566 = vst [vmem:[%s565_s22] sm:$0xff] %v554_v42  ;;  %s1809_s22 = smov [#allocation15] }
 0x174   : >>> { %v608_v51 = vld [vmem:[%s1809_s22] sm:$0xff] }
 0x178   : >>> { %v568_v43 = vld [vmem:[%s567_s29] ss:$0 sm:$0xff]  ;;  %s821_s29 = smov [#allocation23] }
 0x179   : >>> { %v577_v44 = vsel %vm576_vm12, %v568_v43, 0.0 }
 0x17a   : >>> { %578 = vadd.xlane.f32.xlu0 %v577_v44  ;;  %v583_v45 = vld [vmem:[%s582_s11] ss:$0 sm:$0xff]  ;;  %s1824_s11 = smov [#allocation14] }
 0x17b   : >>> { %v592_v46 = vsel %vm591_vm13, %v583_v45, 0.0  ;;  %v607_v58 = vld [vmem:[%s1824_s11] sm:$0xff] }
 0x17e   : >>> { %593 = vadd.xlane.f32.xlu0 %v592_v46 }
 0x203   : >>> { %v579_v47 = vpop.xlane.xlu0 %578 }
 0x204   : >>> { %581 = vst [vmem:[%s580_s15] sm:$0xff] %v579_v47  ;;  %s599_s15 = smov [#allocation24] }
 0x207   : >>> { %v594_v48 = vpop.xlane.xlu0 %593 }
 0x208   : >>> { %596 = vst [vmem:[%s595_s28] sm:$0xff] %v594_v48  ;;  %s1851_s28 = smov [#allocation14] }
 0x20b   : >>> { %v598_v54 = vld [vmem:[%s597_s24] sm:$0xff]  ;;  %s627_s24 = smov [#allocation22] }
 0x20c   : >>> { %v822_v55 = vld [vmem:[%s821_s29] sm:$0xff]  ;;  %v609_v59 = vmul.f32 %v605_v49, %v598_v54  ;;  %v612_v60 = vmul.f32 %v606_v50, %v598_v54  ;;  %v619_v61 = vmul.f32 %v608_v51, %v598_v54  ;;  %v616_v4 = vmul.f32 %v607_v58, %v598_v54  ;;  %s654_s29 = smov [#allocation19] }
 0x20d   : >>> { %v833_v62 = vmul.f32 %v829_v52, %v822_v55  ;;  %v836_v63 = vmul.f32 %v830_v53, %v822_v55  ;;  %v840_v0 = vmul.f32 %v831_v56, %v822_v55  ;;  %v843_v1 = vmul.f32 %v832_v57, %v822_v55  ;;  %v628_v24 = vld [vmem:[%s627_s24] ss:$0 sm:$0xff]  ;;  %s694_s24 = smov [#allocation15] }
 0x20e   : >>> { %v661_v55 = vld [vmem:[%s654_s29] ss:$0 sm:$0xff]  ;;  %s710_s29 = smov [#allocation13] }
 0x20f   : >>> { %v600_v2 = vld [vmem:[%s599_s15] sm:$0xff]  ;;  %s681_s15 = smov [#allocation14] }
 0x210   : >>> { %v824_v3 = vld [vmem:[%s823_s26] sm:$0xff]  ;;  %v613_v7 = vmul.f32 %v608_v51, %v600_v2  ;;  %v615_v8 = vmul.f32 %v605_v49, %v600_v2  ;;  %v618_v9 = vmul.f32 %v606_v50, %v600_v2  ;;  %v610_v14 = vmul.f32 %v607_v58, %v600_v2  ;;  %s625_s26 = smov [#allocation21] }
 0x211   : >>> { %v834_v10 = vmul.f32 %v831_v56, %v824_v3  ;;  %v837_v11 = vmul.f32 %v832_v57, %v824_v3  ;;  %v839_v12 = vmul.f32 %v829_v52, %v824_v3  ;;  %v842_v13 = vmul.f32 %v830_v53, %v824_v3  ;;  %v626_v23 = vld [vmem:[%s625_s26] ss:$0 sm:$0xff]  ;;  %s653_s26 = smov [#allocation12] }
 0x212   : >>> { %v614_v15 = vsub.f32 %v612_v60, %v613_v7  ;;  %v620_v16 = vadd.f32 %v619_v61, %v618_v9  ;;  %v617_v18 = vadd.f32 %v616_v4, %v615_v8  ;;  %v611_v22 = vsub.f32 %v609_v59, %v610_v14 }
 0x213   : >>> { %v835_v17 = vsub.f32 %v833_v62, %v834_v10  ;;  %v838_v19 = vsub.f32 %v836_v63, %v837_v11  ;;  %v841_v20 = vadd.f32 %v840_v0, %v839_v12  ;;  %v844_v21 = vadd.f32 %v843_v1, %v842_v13 }
 0x214   : >>> { %622 = vst [vmem:[%s1807_s21] sm:$0xff] %v614_v15  ;;  %624 = vst [vmem:[%s1809_s22] sm:$0xff] %v620_v16  ;;  %s1853_s21 = smov [#allocation15]  ;;  %s1857_s22 = smov [#allocation13] }
 0x215   : >>> { %845 = vst [vmem:[%s1812_s14] sm:$0xff] %v835_v17  ;;  %623 = vst [vmem:[%s1824_s11] sm:$0xff] %v617_v18  ;;  %s849_s14 = smov %s1747_s14  ;;  %s695_s11 = smov [#allocation20] }
 0x216   : >>> { %846 = vst [vmem:[%s1815_s30] sm:$0xff] %v838_v19  ;;  %847 = vst [vmem:[%s1818_s17] sm:$0xff] %v841_v20  ;;  %s850_s17 = smov %s1753_s17  ;;  %s1844_s30 = smov %s1750_s30  ;;  %v702_v56 = vld [vmem:[%s695_s11] ss:$0 sm:$0xff] }
 0x217   : >>> { %848 = vst [vmem:[%s1822_s20] sm:$0xff] %v844_v21  ;;  %621 = vst [vmem:[%s1805_s27] sm:$0xff] %v611_v22  ;;  %s1847_s20 = smov %s1756_s20  ;;  %s1855_s27 = smov [#allocation12] }
 0x218   : >>> { %s1637_s11 = smov 127  }
 0x21b   : >>> { %v636_v39 = vld [vmem:[%s1853_s21] sm:$0xff] }
 0x21c   : >>> { %v851_v25 = vld [vmem:[%s849_s14] ss:$0 sm:$0xff]  ;;  %v1515_v27 = vld [vmem:[%s849_s14 + $0x7] ss:$0 sm:$0xff]  ;;  %v644_v42 = vmul.f32 %v636_v39, %v628_v24  ;;  %v647_v46 = vmul.f32 %v636_v39, %v626_v23 }
 0x21d   : >>> { %v1514_v26 = vld [vmem:[%s849_s14 - $0x1] sm:$0xfe]  ;;  %v1519_v34 = vld [vmem:[%s1844_s30 + $0x7] ss:$0 sm:$0xff] }
 0x21e   : >>> { %v858_v28 = vsel %vm781_vm14, %v851_v25, %v1514_v26  ;;  %v862_v29 = vld [vmem:[%s850_s17] ss:$0 sm:$0xff]  ;;  %v1517_v30 = vld [vmem:[%s850_s17 + $0x1] sm:$0x7f] }
 0x21f   : >>> { %v875_v31 = vld [vmem:[%s1844_s30] ss:$0 sm:$0xff]  ;;  %861 = vst [vmem:[%s849_s14] sm:$0xff] %v858_v28  ;;  %v870_v32 = vsel %vm793_vm15, %v1515_v27, %v1517_v30  ;;  %v1521_v37 = vld [vmem:[%s1847_s20 + $0x1] sm:$0x7f] }
 0x220   : >>> { %v1518_v33 = vld [vmem:[%s1844_s30 - $0x1] sm:$0xfe]  ;;  %1516 = vst [vmem:[%s849_s14 + $0x1] sm:$0x1] %v862_v29  ;;  %872 = vst [vmem:[%s850_s17] sm:$0xff] %v870_v32  ;;  %v894_v40 = vsel %vm793_vm15, %v1519_v34, %v1521_v37 }
 0x221   : >>> { %v886_v35 = vld [vmem:[%s1847_s20] ss:$0 sm:$0xff]  ;;  %v882_v36 = vsel %vm781_vm14, %v875_v31, %v1518_v33 }
 0x222   : >>> { %v635_v38 = vld [vmem:[%s1851_s28] sm:$0xff]  ;;  %885 = vst [vmem:[%s1844_s30] sm:$0xff] %v882_v36  ;;  %896 = vst [vmem:[%s1847_s20] sm:$0xff] %v894_v40 }
 0x223   : >>> { %v643_v41 = vmul.f32 %v635_v38, %v626_v23  ;;  %v646_v43 = vmul.f32 %v635_v38, %v628_v24  ;;  %v633_v44 = vld [vmem:[%s1855_s27] sm:$0xff]  ;;  %1520 = vst [vmem:[%s1844_s30 + $0x1] sm:$0x1] %v886_v35 }
 0x224   : >>> { %v634_v45 = vld [vmem:[%s1857_s22] sm:$0xff]  ;;  %v637_v47 = vmul.f32 %v633_v44, %v626_v23  ;;  %v640_v49 = vmul.f32 %v633_v44, %v628_v24 }
 0x225   : >>> { %v638_v48 = vmul.f32 %v634_v45, %v628_v24  ;;  %v645_v50 = vsub.f32 %v643_v41, %v644_v42  ;;  %v641_v51 = vmul.f32 %v634_v45, %v626_v23  ;;  %v648_v52 = vadd.f32 %v647_v46, %v646_v43 }
 0x227   : >>> { %v639_v53 = vsub.f32 %v637_v47, %v638_v48  ;;  %651 = vst [vmem:[%s1851_s28] sm:$0xff] %v645_v50  ;;  %v642_v54 = vadd.f32 %v641_v51, %v640_v49  ;;  %652 = vst [vmem:[%s1853_s21] sm:$0xff] %v648_v52  ;;  %s668_s28 = smov [#allocation13]  ;;  %s1891_s21 = smov [#allocation14] }
 0x229   : >>> { %649 = vst [vmem:[%s1855_s27] sm:$0xff] %v639_v53  ;;  %650 = vst [vmem:[%s1857_s22] sm:$0xff] %v642_v54  ;;  %s709_s27 = smov [#allocation12]  ;;  %s1636_s22 = smov 1  }
 0x22e   : >>> { %v688_v57 = vld [vmem:[%s681_s15] sm:$0xff] }
 0x22f   : >>> { %v692_v58 = vsel %vm691_vm0, 0.0, %v688_v57  ;;  %v703_v60 = vld [vmem:[%s694_s24] sm:$0xff] }
 0x230   : >>> { %v662_v59 = vld [vmem:[%s653_s26] sm:$0xff]  ;;  %693 = vst [vmem:[%s681_s15] sm:$0xff] %v692_v58  ;;  %v707_v63 = vsel %vm706_vm3, %v702_v56, %v703_v60  ;;  %s1894_s15 = smov [#allocation15] }
 0x231   : >>> { %v666_v61 = vsel %vm665_vm1, %v661_v55, %v662_v59  ;;  %v675_v62 = vld [vmem:[%s668_s28] sm:$0xff]  ;;  %708 = vst [vmem:[%s694_s24] sm:$0xff] %v707_v63  ;;  %s797_s24 = smov [#allocation13] }
 0x232   : >>> { %667 = vst [vmem:[%s653_s26] sm:$0xff] %v666_v61  ;;  %v679_v0 = vsel %vm678_vm4, 0.0, %v675_v62  ;;  %s773_s26 = smov [#allocation12] }
 0x233   : >>> { %680 = vst [vmem:[%s668_s28] sm:$0xff] %v679_v0  ;;  %s774_s28 = smov [#allocation14] }
 0x237   : >>> { %v747_v1 = vld [vmem:[%s1891_s21] sm:$0xff] }
 0x238   : >>> { %748 = vrot.lane.b32.xlu0 %v747_v1, %s1636_s22  ;;  %v743_v4 = vld [vmem:[%s1894_s15] sm:$0xff] }
 0x239   : >>> { %v715_v2 = vld [vmem:[%s709_s27] sm:$0xff] }
 0x23a   : >>> { %716 = vrot.lane.b32.xlu1 %v715_v2, %s1636_s22  ;;  %v711_v3 = vld [vmem:[%s710_s29] sm:$0xff] }
 0x23e   : >>> { %712 = vrot.lane.b32.xlu1 %v711_v3, %s1636_s22 }
 0x242   : >>> { %733 = vrot.lane.b32.xlu1 %v711_v3, %s1637_s11 }
 0x246   : >>> { %744 = vrot.lane.b32.xlu1 %v743_v4, %s1636_s22  ;;  %s362_s22 = smov (%p454_p9), [#allocation12] }
 0x24a   : >>> { %765 = vrot.lane.b32.xlu1 %v743_v4, %s1637_s11  ;;  %s398_s11 = smov (%p454_p9), [#allocation14] }
 0x2aa   : >>> { %v749_v13 = vpop.permute.xlu0 %748 }
 0x2ab   : >>> { %v753_v15 = vsel %vm720_vm5, %v747_v1, %v749_v13 }
 0x2ac   : >>> { %v717_v7 = vpop.permute.xlu1 %716 }
 0x2ad   : >>> { %v721_v8 = vsel %vm720_vm5, %v715_v2, %v717_v7 }
 0x2b0   : >>> { %v713_v9 = vpop.permute.xlu1 %712 }
 0x2b1   : >>> { %v725_v10 = vsel %vm724_vm6, %v713_v9, %v721_v8 }
 0x2b2   : >>> { %v731_v11 = vsel %vm1375_vm2, %v725_v10, 0.0 }
 0x2b3   : >>> { %739 = vst [vmem:[%s709_s27] sm:$0xff] %v731_v11  ;;  %s798_s27 = smov [#allocation15] }
 0x2b4   : >>> { %v734_v12 = vpop.permute.xlu1 %733 }
 0x2b5   : >>> { %v738_v14 = vsel %vm737_vm7, %v715_v2, %v734_v12 }
 0x2b6   : >>> { %740 = vst [vmem:[%s710_s29] sm:$0xff] %v738_v14  ;;  %s381_s29 = smov (%p454_p9), [#allocation13] }
 0x2b8   : >>> { %v745_v16 = vpop.permute.xlu1 %744 }
 0x2b9   : >>> { %v757_v17 = vsel %vm724_vm6, %v745_v16, %v753_v15 }
 0x2ba   : >>> { %v775_v18 = vld [vmem:[%s773_s26] ss:$0 sm:$0xff]  ;;  %v1507_v20 = vld [vmem:[%s773_s26 + $0x7] ss:$0 sm:$0xff]  ;;  %v763_v22 = vsel %vm1375_vm2, %v757_v17, 0.0 }
 0x2bb   : >>> { %v1506_v19 = vld [vmem:[%s773_s26 - $0x1] sm:$0xfe]  ;;  %771 = vst [vmem:[%s1891_s21] sm:$0xff] %v763_v22  ;;  %s897_s21 = sadd.s32 (%p454_p9), 1, %s1629_s16  }
 0x2bc   : >>> { %v782_v21 = vsel %vm781_vm14, %v775_v18, %v1506_v19  ;;  %v766_v23 = vpop.permute.xlu1 %765  ;;  %p450_p10 = scmp.ge.s32.totalorder (%p454_p9), %s897_s21, 15  ;;  %s2009_s16 = smov (%p454_p9), %s897_s21 }
 0x2bd   : >>> { %785 = vst [vmem:[%s773_s26] sm:$0xff] %v782_v21  ;;  %v799_v24 = vld [vmem:[%s797_s24] ss:$0 sm:$0xff]  ;;  %v1511_v26 = vld [vmem:[%s797_s24 + $0x7] ss:$0 sm:$0xff]  ;;  %v770_v27 = vsel %vm737_vm7, %v747_v1, %v766_v23 }
 0x2be   : >>> { %v1510_v25 = vld [vmem:[%s797_s24 - $0x1] sm:$0xfe]  ;;  %772 = vst [vmem:[%s1894_s15] sm:$0xff] %v770_v27  ;;  %s415_s15 = smov (%p454_p9), [#allocation15] }
 0x2bf   : >>> { %v806_v28 = vsel %vm781_vm14, %v799_v24, %v1510_v25 }
 0x2c0   : >>> { %809 = vst [vmem:[%s797_s24] sm:$0xff] %v806_v28 }
 0x2c2   : >>> { %v786_v29 = vld [vmem:[%s774_s28] ss:$0 sm:$0xff]  ;;  %v1509_v30 = vld [vmem:[%s774_s28 + $0x1] sm:$0x7f] }
 0x2c3   : >>> { %1508 = vst [vmem:[%s773_s26 + $0x1] sm:$0x1] %v786_v29  ;;  %v794_v31 = vsel %vm793_vm15, %v1507_v20, %v1509_v30 }
 0x2c4   : >>> { %796 = vst [vmem:[%s774_s28] sm:$0xff] %v794_v31 }
 0x2c5   : >>> { %v810_v32 = vld [vmem:[%s798_s27] ss:$0 sm:$0xff]  ;;  %v1513_v33 = vld [vmem:[%s798_s27 + $0x1] sm:$0x7f] }
 0x2c6   : >>> { %1512 = vst [vmem:[%s797_s24 + $0x1] sm:$0x1] %v810_v32  ;;  %v818_v34 = vsel %vm793_vm15, %v1511_v26, %v1513_v33 }
 0x2c7   : >>> { %820 = vst [vmem:[%s798_s27] sm:$0xff] %v818_v34  ;;  %456 = sbr.rel (!%p454_p9) target bundleno = 267 (0x10b), region = 494 }
 0x2ca   : >> { %v368_v35 = vld [vmem:[%s362_s22] sm:$0xff] (%p454_p9) }
 0x2cb   : >> { %v369_v37 = vsel (%p454_p9), %vm1375_vm2, %v368_v35, 0.0  ;;  %v404_v39 = vld [vmem:[%s398_s11] sm:$0xff] (%p454_p9) }
 0x2cc   : >> { %v370_v41 = vmul.f32 %v369_v37, %v369_v37  ;;  %v405_v43 = vsel %vm1375_vm2, %v404_v39, 0.0 }
 0x2cd   : >> { %v387_v36 = vld [vmem:[%s381_s29] sm:$0xff]  ;;  %v406_v45 = vmul.f32 %v405_v43, %v405_v43 }
 0x2ce   : >> { %v388_v38 = vsel %vm1375_vm2, %v387_v36, 0.0  ;;  %v421_v40 = vld [vmem:[%s415_s15] sm:$0xff]  ;;  %v374_v48 = vsel %vm373_vm8, 0.0, %v370_v41 }
 0x2cf   : >> { %v389_v42 = vmul.f32 %v388_v38, %v388_v38  ;;  %v422_v44 = vsel %vm1375_vm2, %v421_v40, 0.0 }
 0x2d0   : >> { %v423_v47 = vmul.f32 %v422_v44, %v422_v44 }
 0x2d1   : >> { %v391_v46 = vadd.f32 %v389_v42, %v370_v41  ;;  %v390_v49 = vadd.f32 %v389_v42, %v374_v48 }
 0x2d2   : >> { %v427_v52 = vsel %vm426_vm9, 0.0, %v423_v47 }
 0x2d3   : >> { %v408_v50 = vadd.f32 %v406_v45, %v391_v46  ;;  %v407_v51 = vadd.f32 %v406_v45, %v390_v49 }
 0x2d5   : >> { %v429_v53 = vadd.f32 %v423_v47, %v408_v50  ;;  %v428_v54 = vadd.f32 %v427_v52, %v407_v51 }
 0x2d7   : >> { %430 = vadd.xlane.f32.xlu0 %v429_v53 }
 0x2db   : >> { %438 = vadd.xlane.f32.xlu0 %v428_v54 }
 0x360   : >> { %v431_v55 = vpop.xlane.xlu0 %430 }
 0x361   : >> { %v432_v56 = vrot.slane %v431_v55, 4 }
 0x363   : >> { %v433_v57 = vadd.f32 %v432_v56, %v431_v55 }
 0x364   : >> { %v439_v58 = vpop.xlane.xlu0 %438 }
 0x365   : >> { %v434_v59 = vrot.slane %v433_v57, 2  ;;  %v440_v60 = vrot.slane %v439_v58, 4 }
 0x367   : >> { %v441_v61 = vadd.f32 %v440_v60, %v439_v58  ;;  %v435_v62 = vadd.f32 %v434_v59, %v433_v57 }
 0x369   : >> { %v442_v63 = vrot.slane %v441_v61, 2  ;;  %v436_v1 = vrot.slane %v435_v62, 1 }
 0x36b   : >> { %v443_v0 = vadd.f32 %v442_v63, %v441_v61  ;;  %v437_v4 = vadd.f32 %v436_v1, %v435_v62 }
 0x36d   : >> { %v444_v2 = vrot.slane %v443_v0, 1 }
 0x36f   : >> { %v445_v3 = vadd.f32 %v444_v2, %v443_v0 }
 0x371   : >> { %1540 = vpush %v445_v3 }
 0x372   : >> { %1542 = vpush %v437_v4 }
 0x3a2   : >> { %s1541_s23 = spop %1540 }
 0x3a3   : >> { %s1543_s26 = spop %1542 }
 0x3a4   : >> { %s448_s24 = smul.f32 1e-10, %s1543_s26 }
 0x3a6   : >> { %p449_p11 = scmp.le.f32.partialorder %s1541_s23, %s448_s24 }
 0x3a8   : >> { %p451_p12 = por %p450_p10, %p449_p11 }
 0x3aa   : > { %899 = sbr.rel (!%p451_p12) target bundleno = 266 (0x10a), region = 505 }
 0x3af PF: > { %s904_s28 = smov [#allocation12]  ;;  %v908_v5 = vmov %v1743_v5  ;;  %v911_v6 = vmov %v1745_v6  ;;  %s924_s27 = smov [#allocation15] }
 0x3b0   : > { %v928_v5 = vmov %v1743_v5  ;;  %v931_v6 = vmov %v1745_v6  ;;  %v912_v7 = vld [vmem:[%s904_s28] sm:$0xff]  ;;  %vm915_vm10 = vcmp.eq.s32.totalorder %v911_v6, %v908_v5  ;;  %s900_s16 = sand.u32 7, %s1704_s12   ;;  %s2010_s29 = scalar_lea.vmem [#allocation7], %s1741_s18 }
 0x3b1   : > { %vm935_vm11 = vcmp.eq.s32.totalorder %v931_v6, %v928_v5  ;;  %v916_v8 = vsel %vm915_vm10, %v912_v7, 0.0  ;;  %v932_v10 = vld [vmem:[%s924_s27] sm:$0xff]  ;;  %s901_s21 = scalar_lea.vmem [#allocation4], %s900_s16  ;;  %s903_s22 = scalar_lea.vmem [#allocation6], %s900_s16 }
 0x3b2   : > { %v917_v9 = vrot.slane %v916_v8, 4  ;;  %v936_v11 = vsel %vm935_vm11, %v932_v10, 0.0  ;;  %s905_s21 = smov %s901_s21  ;;  %s925_s22 = smov %s903_s22 }
 0x3b3   : > { %v937_v13 = vrot.slane %v936_v11, 4  ;;  %s987_s11 = sshrl.u32 (%p1718_p3), %s1704_s12, 3 }
 0x3b4   : > { %v918_v12 = vadd.f32 %v917_v9, %v916_v8  ;;  %s1528_s15 = sshll.u32 (%p1718_p3), %s987_s11, 1 }
 0x3b5   : > { %v938_v15 = vadd.f32 %v937_v13, %v936_v11  ;;  %s989_s24 = scalar_lea.vmem (%p1718_p3), %s2001_s4, %s1528_s15 }
 0x3b6   : > { %v919_v14 = vrot.slane %v918_v12, 2 }
 0x3b7   : > { %v939_v17 = vrot.slane %v938_v15, 2 }
 0x3b8   : > { %v920_v16 = vadd.f32 %v919_v14, %v918_v12 }
 0x3b9   : > { %v940_v19 = vadd.f32 %v939_v17, %v938_v15 }
 0x3ba   : > { %v921_v18 = vrot.slane %v920_v16, 1 }
 0x3bb   : > { %v941_v5 = vrot.slane %v940_v19, 1 }
 0x3bc   : > { %v922_v20 = vadd.f32 %v921_v18, %v920_v16 }
 0x3bd   : > { %v942_v6 = vadd.f32 %v941_v5, %v940_v19 }
 0x3be   : > { %923 = vst [vmem:[%s905_s21] sm:$0x1] %v922_v20 }
 0x3bf   : > { %943 = vst [vmem:[%s925_s22] sm:$0x1] %v942_v6 }
 0x3c3   : > { %986 = sbr.rel (!%p1718_p3) target bundleno = 975 (0x3cf), region = 174 }
 0x3c5   : > { %v948_v21 = vld [vmem:[#allocation4] sm:$0x3] }
 0x3c6   : > { %951 = vst [vmem:[%s287_s25] sm:$0x3] %v948_v21  ;;  %v956_v22 = vld [vmem:[#allocation6] sm:$0x3] }
 0x3c7   : > { %959 = vst [vmem:[%s2010_s29] sm:$0x3] %v956_v22 }
 0x3cd   : > { %v1006_v23 = vld [vmem:[%s287_s25] sm:$0x3] }
 0x3ce   : > { %1007 = vst [vmem:[%s989_s24] sm:$0x3] %v1006_v23 }
 0x3cf PF: > { %1025 = sbr.rel (!%p1718_p3) target bundleno = 983 (0x3d7), region = 208  ;;  %s1026_s28 = sshrl.u32 (%p1718_p3), %s1704_s12, 3 }
 0x3d0   : > { %s2011_s27 = scalar_lea.vmem (%p1718_p3), [#allocation7], %s1741_s18  ;;  %s1529_s16 = sshll.u32 (%p1718_p3), %s1026_s28, 1 }
 0x3d1   : > { %s1028_s25 = scalar_lea.vmem (%p1718_p3), %s2002_s5, %s1529_s16 }
 0x3d5   : > { %v1045_v24 = vld [vmem:[%s2011_s27] sm:$0x3] }
 0x3d6   : > { %1046 = vst [vmem:[%s1028_s25] sm:$0x3] %v1045_v24 }
 0x3d7 PF: > { %s1530_s29 = sshll.u32 %s1704_s12, 3  ;;  %v1092_v25 = vld [vmem:[%s1747_s14] sm:$0xff]  ;;  %v1127_v26 = vld [vmem:[%s1750_s30] sm:$0xff] }
 0x3d8   : > { %v1162_v27 = vld [vmem:[%s1753_s17] sm:$0xff]  ;;  %s1063_s18 = scalar_lea.vmem %s2003_s6, %s1530_s29  ;;  %s1098_s26 = scalar_lea.vmem %s2004_s7, %s1530_s29  ;;  %v1197_v28 = vld [vmem:[%s1756_s20] sm:$0xff] }
 0x3d9   : > { %1093 = vst [vmem:[%s1063_s18] sm:$0xff] %v1092_v25  ;;  %1128 = vst [vmem:[%s1098_s26] sm:$0xff] %v1127_v26  ;;  %s1133_s27 = scalar_lea.vmem %s2005_s8, %s1530_s29  ;;  %s1168_s14 = scalar_lea.vmem %s2006_s9, %s1530_s29 }
 0x3da   : > { %1163 = vst [vmem:[%s1133_s27] sm:$0xff] %v1162_v27  ;;  %1198 = vst [vmem:[%s1168_s14] sm:$0xff] %v1197_v28 }
 0x3db PF: > { %s2012_s17 = sld [smem:[#allocation25_spill]]  ;;  %p13_p13 = scmp.ge.s32.totalorder %s1707_s13, 4  }
 0x3dc   : > { %s2013_s30 = smov %s1621_s10  ;;  %s2015_s11 = smov %s1707_s13 }
 0x3dd   :  { %15 = sbr.rel (!%p13_p13) target bundleno = 2 (0x2), region = 516 }
 0x3e1   : > { %s2014_s10 = smov %s2012_s17 }

// kernel: reverse
= control target key start
LH: loop header
LB: loop body
LE: loop exit
PB: predicated region body
PF: predicated region fallthrough
CT: control target
= control target key end

     0   :  { %v2_v0 = vlaneseq  ;;  %s112_s0 = inlined_call_operand.vmem [shape: f32[2,16], index: 0, kind: input, shape index: {}]   ;;  %s113_s1 = inlined_call_operand.vmem [shape: f32[2,16], index: 1, kind: output, shape index: {}]  }
   0x2   :  { %v3_v1 = vsub.s32 15, %v2_v0 }
   0x4   :  { %4 = vset.pattern.permute.xlu0 %v3_v1 }
   0x5   :  { %v21_v2 = vld [vmem:[%s112_s0] sm:$0x3] }
   0x6   :  { %22 = vst [vmem:[#allocation1] sm:$0x3] %v21_v2 }
   0xd   :  { %v41_v3 = vld [vmem:[#allocation1] sm:$0x3] }
   0xe   :  { %42 = vst [vmem:[#allocation0] sm:$0x3] %v41_v3 }
  0x15   :  { %v43_v4 = vld [vmem:[#allocation0] sm:$0xff] }
  0x16   :  { %44 = vperm.xlu0 %4, %v43_v4  }
  0x91   :  { %v45_v5 = vpop.permute.xlu0 %44 }
  0x92   :  { %46 = vst [vmem:[#allocation2] sm:$0xff] %v45_v5 }
  0x99   :  { %v51_v6 = vld [vmem:[#allocation2] sm:$0x3] }
  0x9a   :  { %54 = vst [vmem:[#allocation3] sm:$0x3] %v51_v6 }
  0xa1   :  { %v71_v7 = vld [vmem:[#allocation3] sm:$0x3] }
  0xa2   :  { %72 = vst [vmem:[%s113_s1] sm:$0x3] %v71_v7 }

// kernel: custom-call.19
= control target key start
LH: loop header
LB: loop body
LE: loop exit
PB: predicated region body
PF: predicated region fallthrough
CT: control target
= control target key end

     0   :  { %s742_s9 = smov 0   ;;  %s744_s10 = smov 0   ;;  %s924_s0 = inlined_call_operand.vmem [shape: f32[2,16,16], index: 0, kind: input, shape index: {}]   ;;  %s925_s1 = inlined_call_operand.vmem [shape: f32[2,16,16], index: 1, kind: output, shape index: {0}]   ;;  %s926_s2 = inlined_call_operand.vmem [shape: f32[2,16], index: 2, kind: output, shape index: {1}]  }
   0x1   :  { %s746_s11 = smov 0   ;;  %s748_s12 = smov 0  }
   0x2   :  { %s750_s13 = smov 0  }
   0x3 LB: > { %s28_s14 = sadd.s32 1, %s715_s12  ;;  %s584_s15 = sadd.s32 4294967295, %s719_s13   ;;  %s719_s13 = sphi %s750_s13, %s9_s13   ;;  %s715_s12 = sphi %s748_s12, %s933_s12   ;;  %s711_s11 = sphi %s746_s11, %s932_s11   ;;  %s707_s10 = sphi %s744_s10, %s931_s10   ;;  %s703_s9 = sphi %s742_s9, %s930_s9  }
   0x4   : > { %p30_p0 = scmp.ge.s32.totalorder %s28_s14, 2  ;;  %s33_s16 = ssub.s32 0, %s715_s12 }
   0x5   : > { %s586_s17 = smin.u32 %s715_s12, %s33_s16  ;;  %p57_p1 = scmp.ne.s32.totalorder %s707_s10, %s703_s9 }
   0x6   : > { %s935_s14 = smov (%p30_p0, %s28_s14), 0  ;;  %s35_s18 = sshrl.u32 %s586_s17, 3 }
   0x7   : > { %s39_s19 = ssub.s32 0, %s935_s14  ;;  %p58_p2 = scmp.eq.s32.totalorder %s584_s15, 1 }
   0x8   : > { %s587_s20 = smin.u32 %s39_s19, %s935_s14  ;;  %s47_s24 = sadd.s32 1, %s707_s10 }
   0x9   : > { %s41_s21 = sshrl.u32 %s587_s20, 3  ;;  %p779_p3 = por %p58_p2, %p57_p1 }
   0xa   : > { %s44_s23 = ssub.s32 %s35_s18, %s41_s21  ;;  %p589_p5 = scmp.ge.s32.totalorder %s719_s13, 2 }
   0xb   : > { %p45_p4 = scmp.eq.s32.totalorder %s44_s23, 0  ;;  %s82_s26 = sand.u32 (!%p589_p5), 1, %s719_s13  }
   0xc   : > { %80 = sbr.rel (%p589_p5) target bundleno = 19 (0x13), region = 16  ;;  %s615_s27 = sshll.u32 (!%p589_p5), %s715_s12, 4 }
   0xd   : > { %s785_s25 = scalar_select %p45_p4, %s707_s10, %s47_s24  }
   0xe   : > { %s590_s28 = sshll.u32 (!%p589_p5), %s82_s26, 4  ;;  %s90_s3 = scalar_lea.vmem (!%p589_p5), %s924_s0, %s615_s27 }
   0xf   : > { %s84_s4 = scalar_lea.vmem (!%p589_p5), [#allocation0], %s590_s28 }
  0x11   : > { %v121_v0 = vld [vmem:[%s90_s3] sm:$0xff]  ;;  %v123_v1 = vld [vmem:[%s90_s3 + $0x8] sm:$0xff] }
  0x12   : > { %122 = vst [vmem:[%s84_s4] sm:$0xff] %v121_v0  ;;  %124 = vst [vmem:[%s84_s4 + $0x8] sm:$0xff] %v123_v1 }
  0x13 PF: > { %p593_p6 = scmp.ge.s32.totalorder %s719_s13, 1  ;;  %p129_p7 = scmp.lt.s32.totalorder %s719_s13, 3 }
  0x15   : > { %p130_p8 = pnand %p593_p6, %p129_p7 }
  0x17   : > { %133 = sbr.rel (%p130_p8) target bundleno = 345 (0x159), region = 54 }
  0x1c   : > { %s136_s5 = sand.u32 1, %s584_s15   ;;  %s150_s6 = sand.u32 1, %s703_s9   ;;  %v725_v4 = vmov 0.0  }
  0x1d   : > { %s594_s7 = sshll.u32 %s136_s5, 4  ;;  %s798_s8 = sshll.u32 %s150_s6, 1 }
  0x1e   : > { %s161_s16 = sand.u32 7, %s711_s11   ;;  %s138_s17 = scalar_lea.vmem [#allocation0], %s594_s7 }
  0x1f   : > { %v163_v2 = vld [vmem:[%s138_s17] sm:$0xff]  ;;  %v597_v3 = vld [vmem:[%s138_s17 + $0x8] sm:$0xff]  ;;  %s801_s18 = scalar_lea.vmem [#allocation1], %s594_s7  ;;  %s805_s19 = scalar_lea.vmem [#allocation2], %s161_s16 }
  0x20   : > { %164 = vst [vmem:[%s801_s18] sm:$0xff] %v163_v2  ;;  %598 = vst [vmem:[%s801_s18 + $0x8] sm:$0xff] %v597_v3  ;;  %s152_s9 = scalar_lea.vmem [#allocation3], %s798_s8  ;;  %s809_s15 = smov 0  }
  0x21   : > { %169 = vst [vmem:[%s805_s19] sm:$0x1] %v725_v4 }
  0x22 LB: >> { %v177_v5 = vlaneseq  ;;  %v819_v8 = vstv %s723_s15  ;;  %s214_s20 = scalar_lea.vmem %s801_s18, %s723_s15 [#allocation1]  ;;  %s290_s21 = scalar_lea.vmem [#allocation4], %s723_s15  ;;  %s723_s15 = sphi %s809_s15, %s175_s15  }
  0x23   : >> { %s307_s23 = smov [#allocation4] }
  0x24   : >> { %v816_v7 = vshrl.u32 %v177_v5, 7  ;;  %v848_v56 = vand.u32 127, %v177_v5 }
  0x26   : >> { %vm181_vm0 = vcmp.gt.s32.totalorder %v816_v7, %v819_v8  ;;  %v188_v10 = vadd.s32 8, %v816_v7  ;;  %v253_v7 = vmov %v816_v7  ;;  %vm852_vm12 = vcmp.eq.s32.totalorder %v848_v56, %v819_v8 }
  0x27   : >> { %v176_v6 = vld [vmem:[%s801_s18] sm:$0xff]  ;;  %v599_v9 = vld [vmem:[%s801_s18 + $0x8] sm:$0xff]  ;;  %v272_v52 = vadd.s32 8, %v253_v7  ;;  %s250_s18 = smov %s801_s18  ;;  %vm257_vm10 = vcmp.gt.s32.totalorder %v253_v7, %v819_v8  ;;  %v310_v7 = vmov %v816_v7 }
  0x28   : >> { %v182_v11 = vsel %vm181_vm0, %v176_v6, 0.0  ;;  %vm190_vm1 = vcmp.gt.s32.totalorder %v188_v10, %v819_v8  ;;  %v215_v22 = vld [vmem:[%s214_s20] ss:$0 sm:$0xff]  ;;  %v601_v55 = vld [vmem:[%s250_s18 + $0x8] sm:$0xff]  ;;  %vm343_vm0 = vcmp.gt.s32.totalorder %v848_v56, %v819_v8 }
  0x29   : >> { %v183_v12 = vmul.f32 %v182_v11, %v182_v11  ;;  %v193_v13 = vsel %vm190_vm1, %v599_v9, 0.0  ;;  %v216_v23 = vand.u32 2147483647, %v215_v22  ;;  %vm241_vm7 = vcmp.lt.f32.partialorder %v215_v22, 0.0  ;;  %v254_v54 = vld [vmem:[%s250_s18] sm:$0xff]  ;;  %s306_s18 = smov %s801_s18 }
  0x2a   : >> { %v194_v14 = vmul.f32 %v193_v13, %v193_v13  ;;  %vm274_vm8 = vcmp.gt.s32.totalorder %v272_v52, %v819_v8  ;;  %vm275_vm9 = vcmp.lt.s32.totalorder %v272_v52, 16  ;;  %v258_v58 = vsel %vm257_vm10, %v254_v54, 0.0  ;;  %v303_v9 = vld [vmem:[%s805_s19] ss:$0 sm:$0xff] }
  0x2b   : >> { %v217_v28 = vmax.f32 %v216_v23, 0.0  ;;  %vm276_vm11 = vmand %vm274_vm8, %vm275_vm9 }
  0x2c   : >> { %v195_v15 = vadd.f32 %v194_v14, %v183_v12  ;;  %v277_v59 = vsel %vm276_vm11, %v601_v55, 0.0  ;;  %v726_v14 = vmov 1.0  }
  0x2e   : >> { %v196_v16 = vrot.slane %v195_v15, 4 }
  0x30   : >> { %v197_v17 = vadd.f32 %v196_v16, %v195_v15  ;;  %v315_v15 = vadd.s32 8, %v310_v7  ;;  %v313_v16 = vld [vmem:[%s306_s18] sm:$0xff]  ;;  %v334_v7 = vmov %v816_v7 }
  0x31   : >> { %vm351_vm14 = vcmp.ge.s32.totalorder %v334_v7, %v819_v8 }
  0x32   : >> { %v198_v18 = vrot.slane %v197_v17, 2  ;;  %vm321_vm13 = vcmp.lt.s32.totalorder %v315_v15, 16  ;;  %vm352_vm1 = vmand %vm852_vm12, %vm351_vm14 }
  0x34   : >> { %v199_v19 = vadd.f32 %v198_v18, %v197_v17  ;;  %v603_v17 = vld [vmem:[%s306_s18 + $0x8] sm:$0xff]  ;;  %s330_s18 = smov %s306_s18 }
  0x35   : >> { %s376_s24 = scalar_lea.vmem %s330_s18, %s723_s15  ;;  %s175_s15 = sadd.s32 1, %s723_s15  }
  0x36   : >> { %v200_v20 = vrot.slane %v199_v19, 1  ;;  %p172_p9 = scmp.ge.s32.totalorder %s175_s15, 16  }
  0x37   : > { %s616_s26 = sshll.u32 (%p172_p9), %s711_s11, 4 }
  0x38   : >> { %v826_v21 = vadd.f32 %v200_v20, %v199_v19  ;;  %s405_s29 = scalar_lea.vmem (%p172_p9), %s925_s1, %s616_s26 }
  0x3a   : >> { %667 = vrsqrt.f32 %v826_v21  ;;  %vm204_vm2 = vcmp.eq.f32.partialorder %v826_v21, inf  ;;  %v207_v25 = vand.u32 2147483648, %v826_v21  ;;  %vm206_vm3 = vcmp.eq.f32.partialorder %v826_v21, 0.0 }
  0x47   : >> { %v668_v24 = vpop.eup %667 }
  0x48   : >> { %v203_v26 = vmul.f32 %v668_v24, %v826_v21 }
  0x4a   : >> { %v205_v27 = vsel %vm204_vm2, %v826_v21, %v203_v26 }
  0x4b   : >> { %v208_v29 = vsel %vm206_vm3, %v207_v25, %v205_v27 }
  0x4c   : >> { %v218_v30 = vand.u32 2147483647, %v208_v29  ;;  %v355_v29 = vadd.s32 8, %v334_v7 }
  0x4e   : >> { %v219_v31 = vmax.f32 %v217_v28, %v218_v30  ;;  %vm372_vm15 = vcmp.ge.s32.totalorder %v355_v29, %v819_v8 }
  0x4f   : >> { %vm373_vm2 = vmand %vm852_vm12, %vm372_vm15 }
  0x50   : >> { %669 = vrcp.f32 %v219_v31  ;;  %vm231_vm6 = vcmp.eq.f32.partialorder %v219_v31, 0.0 }
  0x5d   : >> { %v670_v32 = vpop.eup %669 }
  0x5e   : >> { %v221_v33 = vmul.f32 %v670_v32, %v216_v23  ;;  %v224_v34 = vmul.f32 0.0, %v670_v32  ;;  %v228_v35 = vmul.f32 %v670_v32, %v218_v30 }
  0x60   : >> { %v222_v36 = vmul.f32 %v221_v33, %v221_v33  ;;  %v225_v37 = vmul.f32 %v224_v34, %v224_v34  ;;  %v229_v38 = vmul.f32 %v228_v35, %v228_v35  ;;  %v605_v35 = vld [vmem:[%s330_s18 + $0x8] sm:$0xff] }
  0x62   : >> { %v226_v39 = vadd.f32 %v225_v37, %v222_v36 }
  0x64   : >> { %v230_v40 = vadd.f32 %v229_v38, %v226_v39 }
  0x66   : >> { %671 = vrsqrt.f32 %v230_v40  ;;  %vm234_vm4 = vcmp.eq.f32.partialorder %v230_v40, inf  ;;  %v237_v42 = vand.u32 2147483648, %v230_v40  ;;  %vm236_vm5 = vcmp.eq.f32.partialorder %v230_v40, 0.0 }
  0x73   : >> { %v672_v41 = vpop.eup %671 }
  0x74   : >> { %v233_v43 = vmul.f32 %v672_v41, %v230_v40 }
  0x76   : >> { %v235_v44 = vsel %vm234_vm4, %v230_v40, %v233_v43 }
  0x77   : >> { %v238_v45 = vsel %vm236_vm5, %v237_v42, %v235_v44 }
  0x78   : >> { %v239_v46 = vmul.f32 %v238_v45, %v219_v31  ;;  %v341_v31 = vld [vmem:[%s330_s18] sm:$0xff] }
  0x7a   : >> { %v240_v47 = vsel %vm231_vm6, 0.0, %v239_v46 }
  0x7b   : >> { %v242_v48 = vxor.u32 2147483648, %v240_v47 }
  0x7d   : >> { %v243_v49 = vsel %vm241_vm7, %v240_v47, %v242_v48 }
  0x7e   : >> { %v840_v50 = vsel %vm206_vm3, %v215_v22, %v243_v49  ;;  %673 = vrcp.f32 %v243_v49  ;;  %v244_v53 = vsub.f32 %v243_v49, %v215_v22 }
  0x7f   : >> { %v249_v51 = vsub.f32 %v215_v22, %v840_v50 }
  0x81   : >> { %675 = vrcp.f32 %v249_v51 }
  0x8b   : >> { %v674_v57 = vpop.eup %673 }
  0x8c   : >> { %v246_v60 = vmul.f32 %v674_v57, %v244_v53 }
  0x8e   : >> { %v676_v61 = vpop.eup %675  ;;  %v248_v63 = vsel %vm206_vm3, 0.0, %v246_v60 }
  0x8f   : >> { %v260_v0 = vmul.f32 %v676_v61, %v258_v58  ;;  %v279_v1 = vmul.f32 %v676_v61, %v277_v59  ;;  %v296_v2 = vsel %vm852_vm12, %v248_v63, 0.0 }
  0x90   : >> { %297 = vadd.xlane.f32.xlu1 %v296_v2 }
  0x91   : >> { %v261_v3 = vsel %vm206_vm3, 0.0, %v260_v0  ;;  %v280_v4 = vsel %vm206_vm3, 0.0, %v279_v1 }
  0x92   : >> { %v266_v5 = vsel %vm852_vm12, %v261_v3, 0.0  ;;  %v285_v6 = vsel %vm852_vm12, %v280_v4, 0.0 }
  0x93   : >> { %267 = vadd.xlane.f32.xlu0 %v266_v5 }
  0x97   : >> { %286 = vadd.xlane.f32.xlu0 %v285_v6 }
 0x119   : >> { %v298_v10 = vpop.xlane.xlu1 %297 }
 0x11a   : >> { %v304_v11 = vsel %vm852_vm12, %v298_v10, %v303_v9 }
 0x11b   : >> { %305 = vst [vmem:[%s805_s19] sm:$0x1] %v304_v11 }
 0x11c   : >> { %v268_v12 = vpop.xlane.xlu0 %267 }
 0x11d   : >> { %269 = vst [vmem:[#allocation4] sm:$0xff] %v268_v12 }
 0x120   : >> { %v287_v13 = vpop.xlane.xlu0 %286 }
 0x121   : >> { %289 = vst [vmem:[#allocation4 + $0x8] sm:$0xff] %v287_v13 }
 0x122   : >> { %291 = vst [vmem:[%s290_s21] sm:$0x1] %v726_v14  ;;  %v388_v44 = vld [vmem:[#allocation2] sm:$0x3] (%p172_p9) }
 0x123   : > { %391 = vst [vmem:[%s152_s9] sm:$0x3] (%p172_p9), %v388_v44 }
 0x129   : >> { %v312_v18 = vld [vmem:[%s307_s23] sm:$0xff]  ;;  %v602_v19 = vld [vmem:[%s307_s23 + $0x8] sm:$0xff]  ;;  %s331_s23 = smov %s307_s23 }
 0x12a   : >> { %v314_v20 = vmul.f32 %v313_v16, %v312_v18  ;;  %v320_v21 = vmul.f32 %v603_v17, %v602_v19  ;;  %v339_v33 = vld [vmem:[%s331_s23] sm:$0xff]  ;;  %v604_v34 = vld [vmem:[%s331_s23 + $0x8] sm:$0xff] }
 0x12c   : >> { %v322_v22 = vsel %vm321_vm13, %v320_v21, 0.0 }
 0x12d   : >> { %v323_v23 = vadd.f32 %v322_v22, %v314_v20 }
 0x12f   : >> { %v324_v24 = vrot.slane %v323_v23, 4 }
 0x131   : >> { %v325_v25 = vadd.f32 %v324_v24, %v323_v23 }
 0x133   : >> { %v326_v26 = vrot.slane %v325_v25, 2 }
 0x135   : >> { %v327_v27 = vadd.f32 %v326_v26, %v325_v25 }
 0x137   : >> { %v328_v28 = vrot.slane %v327_v27, 1 }
 0x139   : >> { %v329_v30 = vadd.f32 %v328_v28, %v327_v27 }
 0x13b   : >> { %v335_v32 = vmul.f32 %v329_v30, %v298_v10 }
 0x13d   : >> { %v340_v36 = vmul.f32 %v339_v33, %v335_v32  ;;  %v360_v37 = vmul.f32 %v604_v34, %v335_v32 }
 0x13f   : >> { %v344_v38 = vsub.f32 %v341_v31, %v340_v36  ;;  %v365_v7 = vsub.f32 %v605_v35, %v360_v37 }
 0x141   : >> { %v345_v39 = vsel %vm343_vm0, %v344_v38, %v341_v31  ;;  %v366_v40 = vsel %vm343_vm0, %v365_v7, %v605_v35 }
 0x142   : >> { %v353_v41 = vsel %vm352_vm1, %v339_v33, %v345_v39  ;;  %v374_v42 = vsel %vm373_vm2, %v604_v34, %v366_v40 }
 0x143   : >> { %354 = vst [vmem:[%s330_s18] sm:$0xff] %v353_v41  ;;  %606 = vst [vmem:[%s330_s18 + $0x8] sm:$0xff] %v374_v42 }
 0x148   : > { %174 = sbr.rel (!%p172_p9) target bundleno = 34 (0x22), region = 184 }
 0x14a   : >> { %v377_v43 = vld [vmem:[%s376_s24] ss:$0 sm:$0xff] }
 0x14b   : >> { %v382_v8 = vsel %vm852_vm12, %v840_v50, %v377_v43 }
 0x14c   : >> { %383 = vst [vmem:[%s376_s24] sm:$0x1] %v382_v8 }
 0x14d   : > { %p446_p10 = scmp.lt.s32.totalorder (%p779_p3), %s711_s11, 0  ;;  %s447_s30 = ssub.s32 (%p779_p3), 0, %s711_s11  ;;  %v470_v47 = vld [vmem:[%s152_s9] sm:$0x3] (%p779_p3) }
 0x14e   : > { %s611_s3 = smin.u32 (%p779_p3), %s711_s11, %s447_s30 }
 0x14f   : > { %s449_s4 = sshrl.u32 (%p779_p3), %s611_s3, 3 }
 0x150   : > { %445 = sbr.rel (!%p779_p3) target bundleno = 345 (0x159), region = 99  ;;  %s450_s5 = ssub.s32 (%p779_p3), 0, %s449_s4 }
 0x153   : > { %v436_v45 = vld [vmem:[%s801_s18] sm:$0xff]  ;;  %v438_v46 = vld [vmem:[%s801_s18 + $0x8] sm:$0xff] }
 0x154   : > { %437 = vst [vmem:[%s405_s29] sm:$0xff] %v436_v45  ;;  %439 = vst [vmem:[%s405_s29 + $0x8] sm:$0xff] %v438_v46 }
 0x155   : > { %s937_s5 = smov (!%p446_p10, %s450_s5), %s449_s4 }
 0x156   : > { %s612_s6 = sshll.u32 %s937_s5, 1 }
 0x157   : > { %s453_s17 = scalar_lea.vmem %s926_s2, %s612_s6 }
 0x158   : > { %471 = vst [vmem:[%s453_s17] sm:$0x3] %v470_v47 }
 0x159 PF: > { %s9_s13 = sadd.s32 1, %s719_s13   ;;  %s930_s9 = smov %s707_s10 }
 0x15a   : > { %p6_p11 = scmp.ge.s32.totalorder %s9_s13, 4   ;;  %s931_s10 = smov %s785_s25 }
 0x15b   : > { %s932_s11 = smov %s715_s12  ;;  %s933_s12 = smov %s935_s14 }
 0x15c   :  { %8 = sbr.rel (!%p6_p11) target bundleno = 3 (0x3), region = 195 }

// kernel: menet_forward.2
= control target key start
LH: loop header
LB: loop body
LE: loop exit
PB: predicated region body
PF: predicated region fallthrough
CT: control target
= control target key end

     0   :  { %vm29_vm0 = vcmask 1043456   ;;  %v280_v3 = vmov 0   ;;  %vm22_vm1 = vcmask 97280   ;;  %v198_v11 = vlaneseq  ;;  %s347_s1 = inlined_call_operand.vmem [shape: f32[2,12,128], index: 1, kind: input, shape index: {}]   ;;  %s348_s0 = inlined_call_operand.vmem [shape: f32[2,16,12], index: 0, kind: input, shape index: {}]   ;;  %s349_s2 = inlined_call_operand.vmem [shape: f32[2,1,1], index: 2, kind: input, shape index: {}]   ;;  %s350_s3 = inlined_call_operand.vmem [shape: f32[2,16,128], index: 3, kind: output, shape index: {}]  }
   0x1   :  { %v19_v0 = vld [vmem:[%s347_s1 + $0x8] sm:$0xf]  ;;  %v21_v1 = vld [vmem:[%s347_s1 + $0x18] sm:$0xf]  ;;  %v18_v2 = vld [vmem:[%s347_s1] sm:$0xff]  ;;  %275 = vset.pattern.permute.xlu0 %v280_v3 }
   0x2   :  { %260 = vmatprep.subr.msk.mxu0 %vm29_vm0, %v19_v0  ;;  %267 = vmatprep.subr.msk.mxu1 %vm29_vm0, %v21_v1  ;;  %v20_v4 = vld [vmem:[%s347_s1 + $0x10] sm:$0xff]  ;;  %v14_v5 = vld [vmem:[%s348_s0] sm:$0xff]  ;;  %v15_v8 = vld [vmem:[%s348_s0 + $0x8] sm:$0xff]  ;;  %v199_v12 = vshrl.u32 %v198_v11, 7 }
   0x3   :  { %261 = vmatpush3.msk.msra.mxu0 %vm29_vm0, %v19_v0  ;;  %268 = vmatpush3.msk.msra.mxu1 %vm29_vm0, %v21_v1  ;;  %v16_v6 = vld [vmem:[%s348_s0 + $0x10] sm:$0xff]  ;;  %v192_v7 = vld [vmem:[%s349_s2] sm:$0x1]  ;;  %v17_v9 = vld [vmem:[%s348_s0 + $0x18] sm:$0xff] }
   0x4   :  { %262 = vmatprep.subr.mxu0 %v18_v2  ;;  %269 = vmatprep.subr.mxu1 %v20_v4  ;;  %v193_v10 = vld [vmem:[%s349_s2 + $0x1] sm:$0x1]  ;;  %276 = vrcp.f32 %v192_v7  ;;  %v200_v13 = vsub.s32 0, %v199_v12 }
   0x5   :  { %263 = vmatpush3.msra.mxu0 %v18_v2  ;;  %264 = vmatprep.mubr.msk.f32.mxu0 %vm22_vm1, %v14_v5  ;;  %278 = vrcp.f32 %v193_v10 }
   0x6   :  { %270 = vmatpush3.msra.mxu1 %v20_v4  ;;  %271 = vmatprep.mubr.msk.f32.mxu1 %vm22_vm1, %v16_v6 }
   0x7   :  { %265 = vmatmul.mubr.msk.f32.vlgmr.msra.gmra.mxu0 %vm22_vm1, %v15_v8  ;;  %272 = vmatmul.mubr.msk.f32.vlgmr.msra.gmra.mxu1 %vm22_vm1, %v17_v9 }
  0x11   :  { %v277_v14 = vpop.eup %276 }
  0x12   :  { %v279_v15 = vpop.eup %278  ;;  %v201_v16 = vrot.slane %v277_v14, %v200_v13 }
  0x13   :  { %v205_v17 = vrot.slane %v279_v15, %v200_v13 }
  0x14   :  { %207 = vperm.xlu0 %275, %v201_v16  }
  0x18   :  { %211 = vperm.xlu0 %275, %v205_v17  }
  0x8f   :  { %v208_v18 = vpop.permute.xlu0 %207 }
  0x93   :  { %v212_v19 = vpop.permute.xlu0 %211 }
  0xc7   :  { %v266_v20 = vpop.f32.mrf.mxu0  ;;  %v273_v21 = vpop.f32.mrf.mxu1 }
  0xc8   :  { %v215_v22 = vmul.f32 %v266_v20, %v208_v18  ;;  %v217_v23 = vmul.f32 %v273_v21, %v212_v19 }
  0xc9   :  { %v99_v24 = vpop.f32.mrf.mxu0  ;;  %v183_v25 = vpop.f32.mrf.mxu1 }
  0xca   :  { %v249_v26 = vclamps-f32 %v215_v22, 1.0  ;;  %v251_v27 = vclamps-f32 %v217_v23, 1.0  ;;  %v214_v28 = vmul.f32 %v208_v18, %v99_v24  ;;  %v216_v29 = vmul.f32 %v212_v19, %v183_v25 }
  0xcc   :  { %v227_v30 = vadd.f32 1.0, %v249_v26  ;;  %v229_v31 = vadd.f32 1.0, %v251_v27  ;;  %v248_v32 = vclamps-f32 %v214_v28, 1.0  ;;  %v250_v33 = vclamps-f32 %v216_v29, 1.0 }
  0xce   :  { %v231_v34 = vmul.f32 0.5, %v227_v30  ;;  %v233_v35 = vmul.f32 0.5, %v229_v31  ;;  %v226_v36 = vadd.f32 1.0, %v248_v32  ;;  %v228_v37 = vadd.f32 1.0, %v250_v33 }
  0xd0   :  { %235 = vst [vmem:[%s350_s3 + $0x8] sm:$0xff] %v231_v34  ;;  %237 = vst [vmem:[%s350_s3 + $0x18] sm:$0xff] %v233_v35  ;;  %v230_v38 = vmul.f32 0.5, %v226_v36  ;;  %v232_v39 = vmul.f32 0.5, %v228_v37 }
  0xd2   :  { %234 = vst [vmem:[%s350_s3] sm:$0xff] %v230_v38  ;;  %236 = vst [vmem:[%s350_s3 + $0x10] sm:$0xff] %v232_v39 }

// kernel: menet_forward.3
= control target key start
LH: loop header
LB: loop body
LE: loop exit
PB: predicated region body
PF: predicated region fallthrough
CT: control target
= control target key end

     0   :  { %s5707_s0 = inlined_call_operand.vmem [shape: f32[2,3,18,18], index: 0, kind: input, shape index: {}]   ;;  %s5708_s1 = inlined_call_operand.vmem [shape: f32[216], index: 1, kind: input, shape index: {}]   ;;  %s5709_s2 = inlined_call_operand.vmem [shape: f32[8], index: 2, kind: input, shape index: {}]   ;;  %s5710_s3 = inlined_call_operand.vmem [shape: f32[8,10], index: 3, kind: input, shape index: {}]   ;;  %s5711_s4 = inlined_call_operand.vmem [shape: f32[1,10], index: 4, kind: input, shape index: {}]   ;;  %s5712_s5 = inlined_call_operand.hbm [shape: f32[2,1,10], index: 5, kind: output, shape index: {}]  }
   0x1   :  { %5753 = sst [smem:[#allocation30_spill]] %s5707_s0 }
   0x2   :  { %5754 = sst [smem:[#allocation31_spill]] %s5708_s1 }
   0x3   :  { %5755 = sst [smem:[#allocation32_spill]] %s5709_s2 }
   0x4   :  { %5756 = sst [smem:[#allocation33_spill]] %s5710_s3 }
   0x5   :  { %5757 = sst [smem:[#allocation34_spill]] %s5711_s4 }
   0x6   :  { %5758 = sst [smem:[#allocation35_spill]] %s5712_s5 }
   0x7   :  { %10 = vsyncpa [#allocation4], 0 }
   0x8   :  { %11 = vsyncpa [#allocation6], 0 }
   0x9   :  { %12 = vsyncpa [#allocation3], 0 }
   0xa   :  { %14 = vsyncpa [#allocation3 + $0x1], 0  ;;  %s3486_s18 = smov 0   ;;  %s3488_s19 = smov 0  }
   0xb   :  { %s3490_s20 = smov 0   ;;  %s3492_s21 = smov 0  }
   0xc LB: > { %5759 = sst [smem:[#allocation11_spill]] %s3437_s18  ;;  %s3507_s22 = sadd.s32 4294967295, %s3449_s21   ;;  %s3449_s21 = sphi %s3492_s21, %s5823_s21   ;;  %s3445_s20 = sphi %s3490_s20, %s5826_s20   ;;  %s3441_s19 = sphi %s3488_s19, %s5825_s19   ;;  %s3437_s18 = sphi %s3486_s18, %s5824_s18  }
   0xd   : > { %5760 = sst [smem:[#allocation12_spill]] %s3441_s19  ;;  %s2979_s23 = sadd.s32 4294967294, %s3449_s21  }
   0xe   : > { %5761 = sst [smem:[#allocation13_spill]] %s3445_s20  ;;  %s3511_s24 = sadd.s32 1, %s3449_s21  }
   0xf   : > { %5762 = sst [smem:[#allocation14_spill]] %s3449_s21  ;;  %s137_s25 = sadd.s32 1, %s3445_s20 }
  0x10   : > { %5763 = sst [smem:[#allocation15_spill]] %s3507_s22  ;;  %s134_s26 = ssub.s32 %s3449_s21, %s3511_s24 }
  0x11   : > { %5764 = sst [smem:[#allocation16_spill]] %s3511_s24  ;;  %p147_p0 = scmp.ne.s32.totalorder %s3445_s20, %s3441_s19 }
  0x12   : > { %p135_p1 = scmp.eq.s32.totalorder %s134_s26, 0  ;;  %p148_p2 = scmp.eq.s32.totalorder %s3507_s22, 1 }
  0x13   : > { %p153_p3 = scmp.ne.s32.totalorder %s3441_s19, %s3437_s18  ;;  %p154_p4 = scmp.eq.s32.totalorder %s2979_s23, 1 }
  0x14   : > { %s3522_s27 = scalar_select %p135_p1, %s3445_s20, %s137_s25  }
  0x15   : > { %p3524_p5 = por %p148_p2, %p147_p0  ;;  %p3528_p6 = por %p154_p4, %p153_p3 }
  0x16   : > { %5765 = sst [smem:[#allocation17_spill]] %s3522_s27  ;;  %p2980_p7 = scmp.ge.s32.totalorder %s3449_s21, 1 }
  0x17   : > { %s5766_s28 = scalar_select %p3524_p5, 1, 0 }
  0x18   : > { %s5768_s29 = scalar_select %p3528_p6, 1, 0 }
  0x19   : > { %5767 = sst [smem:[#allocation18_spill]] %s5766_s28  ;;  %p161_p8 = scmp.lt.s32.totalorder %s3449_s21, 3 }
  0x1a   : > { %5769 = sst [smem:[#allocation19_spill]] %s5768_s29  ;;  %p5713_p9 = scmp.eq.s32.totalorder %s3507_s22, 0 }
  0x1b   : > { %p3535_p10 = pnand %p2980_p7, %p161_p8  ;;  %s5771_s1 = sld [smem:[#allocation31_spill]] }
  0x1c   : > { %s5772_s2 = sld [smem:[#allocation32_spill]] }
  0x1d   : > { %s5770_s30 = scalar_select %p3535_p10, 1, 0 }
  0x1e   : > { %p3252_p11 = pneg %p3535_p10 }
  0x20   : > { %p3549_p12 = pnand %p5713_p9, %p3252_p11 }
  0x21   : > { %s174_s8 = sshll.u32 %s5771_s1, 4  ;;  %s175_s8 = int_to_ptr.vmem [resolvable:$true] %s174_s8 }
  0x22   : > { %s185_s11 = sshll.u32 %s5772_s2, 4  ;;  %s3351_s13 = scalar_lea.vmem %s175_s8, 32  ;;  %s186_s11 = int_to_ptr.vmem [resolvable:$true] %s185_s11 }
  0x23   : > { %p3352_p13 = scmp.ne.s32.totalorder %s175_s8, %s3351_s13  ;;  %p3353_p0 = pneg %p3549_p12 }
  0x24   : > { %p3359_p3 = scmp.lt.s32.totalorder %s175_s8, %s175_s8  ;;  %p3360_p4 = scmp.lt.s32.totalorder %s3351_s13, %s3351_s13 }
  0x25   : > { %p3354_p1 = pnand %p3353_p0, %p3352_p13 }
  0x26   : > { %p3361_p7 = por %p3360_p4, %p3359_p3 }
  0x27   : > { %p3355_p2 = pneg %p3354_p1 }
  0x29   : > { %p3362_p8 = pnand %p3361_p7, %p3355_p2 }
  0x2b   : > { %3365 = shalt.err (!%p3362_p8)
}
  0x2c   : > { %s3451_s14 = smov [#allocation2]   ;;  %s3366_s15 = scalar_lea.vmem %s186_s11, 16 }
  0x2d   : > { %3255 = dma.vmem_to_smem (!%p3549_p12), %s175_s8, 32, %s3451_s14, [#allocation4]  }
  0x2e   : > { %p3367_p11 = scmp.ne.s32.totalorder %s186_s11, %s3366_s15  ;;  %p3374_p5 = scmp.lt.s32.totalorder %s186_s11, %s186_s11 }
  0x2f   : > { %p3375_p10 = scmp.lt.s32.totalorder %s3366_s15, %s3366_s15 }
  0x30   : > { %p3369_p9 = pnand %p3367_p11, %p3353_p0 }
  0x31   : > { %p3376_p13 = por %p3375_p10, %p3374_p5 }
  0x32   : > { %p3370_p6 = pneg %p3369_p9 }
  0x34   : > { %p3377_p1 = pnand %p3376_p13, %p3370_p6 }
  0x36   : > { %3380 = shalt.err (!%p3377_p1)
}
  0x37   : > { %s3452_s16 = smov [#allocation5]   ;;  %p5774_p2 = scmp.ne.s32.totalorder %s5770_s30, 0 }
  0x38   : > { %3258 = dma.vmem_to_smem (!%p3549_p12), %s186_s11, 16, %s3452_s16, [#allocation6]  }
  0x39   : > { %212 = sbr.rel (%p5774_p2) target bundleno = 1517 (0x5ed), region = 40 }
  0x3e   : > { %p5775_p3 = scmp.eq.s32.totalorder %s3507_s22, 0 }
  0x40   : > { %3424 = dma.done.wait (%p5775_p3), [#allocation4], 32   ;;  %p5776_p4 = pmov %p5775_p3 }
  0x41   : > { %p5777_p9 = pmov %p5775_p3 }
  0x42   : > { %3426 = vsyncadd (%p5776_p4), [#allocation4], 4294967264 }
  0x43   : > { %3428 = dma.done.wait (%p5777_p9), [#allocation6], 16   ;;  %p5778_p5 = pmov %p5775_p3 }
  0x45   : > { %3430 = vsyncadd (%p5778_p5), [#allocation6], 4294967280 }
  0x46   : > { %222 = sfence }
  0x47   : > { %p244_p6 = scmp.lt.s32.totalorder %s3507_s22, 1  ;;  %s3001_s17 = sld [smem:[#allocation2 + $0x2]]  ;;  %vm580_vm0 = vcmask 130048   ;;  %vm2887_vm1 = vcmask 73728  }
  0x48   : > { %s3000_s23 = sld [smem:[#allocation2 + $0x1]]  ;;  %s5718_s10 = smov 126  }
  0x49   : > { %s245_s25 = scalar_select %p244_p6, %s3507_s22, 1 }
  0x4a   : > { %s3003_s26 = sld [smem:[#allocation2 + $0x4]]  ;;  %s5716_s11 = smov 127  }
  0x4b   : > { %s3225_s30 = smul.u32 72, %s245_s25  ;;  %s5779_s0 = sld [smem:[#allocation30_spill]] }
  0x4c   : > { %s3004_s9 = sld [smem:[#allocation2 + $0x5]] }
  0x4d   : > { %v289_v0 = vstv %s3001_s17  ;;  %s3006_s12 = sld [smem:[#allocation2 + $0x7]] }
  0x4e   : > { %v275_v3 = vstv %s3000_s23  ;;  %s3007_s13 = sld [smem:[#allocation2 + $0x8]] }
  0x4f   : > { %s3009_s14 = sld [smem:[#allocation2 + $0xa]] }
  0x50   : > { %v309_v9 = vstv %s3003_s26  ;;  %s3010_s15 = sld [smem:[#allocation2 + $0xb]] }
  0x51   : > { %s3574_s8 = scalar_lea.vmem %s5779_s0, %s3225_s30  ;;  %s3012_s16 = sld [smem:[#allocation2 + $0xd]] }
  0x52   : > { %5780 = sst [smem:[#allocation20_spill]] %s3574_s8  ;;  %v3577_v1 = vld [vmem:[%s3574_s8] sm:$0xff]  ;;  %v3580_v2 = vld [vmem:[%s3574_s8 + $0x8] sm:$0xff]  ;;  %v323_v13 = vstv %s3004_s9  ;;  %v3620_v26 = vld [vmem:[%s3574_s8 + $0x18] sm:$0xff]  ;;  %s5781_s0 = smov 127  }
  0x53   : > { %v290_v4 = vmul.f32 %v289_v0, %v3577_v1  ;;  %v276_v5 = vmul.f32 %v275_v3, %v3577_v1  ;;  %v291_v6 = vmul.f32 %v289_v0, %v3580_v2  ;;  %v277_v7 = vmul.f32 %v275_v3, %v3580_v2  ;;  %v3589_v8 = vld [vmem:[%s3574_s8 + $0x9] sm:$0xff]  ;;  %v3592_v10 = vld [vmem:[%s3574_s8 + $0x1] sm:$0xff]  ;;  %s3013_s17 = sld [smem:[#allocation2 + $0xe]]  ;;  %v3634_v34 = vld [vmem:[%s3574_s8 + $0x19] sm:$0xff] }
  0x54   : > { %v311_v11 = vmul.f32 %v309_v9, %v3589_v8  ;;  %v310_v12 = vmul.f32 %v309_v9, %v3592_v10  ;;  %v325_v14 = vmul.f32 %v323_v13, %v3589_v8  ;;  %v324_v15 = vmul.f32 %v323_v13, %v3592_v10  ;;  %v3603_v16 = vld [vmem:[%s3574_s8 + $0xa] sm:$0xff]  ;;  %v3606_v18 = vld [vmem:[%s3574_s8 + $0x2] sm:$0xff]  ;;  %s3015_s23 = sld [smem:[#allocation2 + $0x10]]  ;;  %v3648_v42 = vld [vmem:[%s3574_s8 + $0x1a] sm:$0xff] }
  0x55   : > { %294 = vrot.lane.b32.xlu1 %v290_v4, %s5718_s10  ;;  %280 = vrot.lane.b32.xlu0 %v276_v5, %s5716_s11  ;;  %v343_v17 = vstv %s3006_s12  ;;  %v357_v21 = vstv %s3007_s13  ;;  %s3016_s25 = sld [smem:[#allocation2 + $0x11]] }
  0x56   : > { %v345_v19 = vmul.f32 %v343_v17, %v3603_v16  ;;  %v344_v20 = vmul.f32 %v343_v17, %v3606_v18  ;;  %v359_v22 = vmul.f32 %v357_v21, %v3603_v16  ;;  %v358_v23 = vmul.f32 %v357_v21, %v3606_v18  ;;  %v3617_v24 = vld [vmem:[%s3574_s8 + $0x20] sm:$0xff]  ;;  %s3018_s26 = sld [smem:[#allocation2 + $0x13]]  ;;  %v3659_v48 = vld [vmem:[%s3574_s8 + $0x38] sm:$0xff]  ;;  %v3662_v50 = vld [vmem:[%s3574_s8 + $0x30] sm:$0xff] }
  0x57   : > { %v377_v25 = vstv %s3009_s14  ;;  %v391_v29 = vstv %s3010_s15  ;;  %v3631_v32 = vld [vmem:[%s3574_s8 + $0x21] sm:$0xff]  ;;  %v411_v33 = vstv %s3012_s16  ;;  %s3019_s30 = sld [smem:[#allocation2 + $0x14]] }
  0x58   : > { %v379_v27 = vmul.f32 %v3617_v24, %v377_v25  ;;  %v378_v28 = vmul.f32 %v3620_v26, %v377_v25  ;;  %v393_v30 = vmul.f32 %v3617_v24, %v391_v29  ;;  %v392_v31 = vmul.f32 %v3620_v26, %v391_v29  ;;  %v3645_v40 = vld [vmem:[%s3574_s8 + $0x22] sm:$0xff]  ;;  %s3021_s6 = sld [smem:[#allocation2 + $0x16]]  ;;  %v3673_v56 = vld [vmem:[%s3574_s8 + $0x39] sm:$0xff]  ;;  %v3676_v58 = vld [vmem:[%s3574_s8 + $0x31] sm:$0xff] }
  0x59   : > { %296 = vrot.lane.b32.xlu1 %v291_v6, %s5718_s10  ;;  %282 = vrot.lane.b32.xlu0 %v277_v7, %s5716_s11  ;;  %v413_v35 = vmul.f32 %v3631_v32, %v411_v33  ;;  %v412_v36 = vmul.f32 %v3634_v34, %v411_v33  ;;  %v425_v37 = vstv %s3013_s17  ;;  %s3022_s7 = sld [smem:[#allocation2 + $0x17]]  ;;  %v3687_v0 = vld [vmem:[%s3574_s8 + $0x3a] sm:$0xff] }
  0x5a   : > { %v427_v38 = vmul.f32 %v3631_v32, %v425_v37  ;;  %v426_v39 = vmul.f32 %v3634_v34, %v425_v37  ;;  %v445_v41 = vstv %s3015_s23  ;;  %s3024_s9 = sld [smem:[#allocation2 + $0x19]]  ;;  %v3690_v4 = vld [vmem:[%s3574_s8 + $0x32] sm:$0xff] }
  0x5b   : > { %v447_v43 = vmul.f32 %v3645_v40, %v445_v41  ;;  %v446_v44 = vmul.f32 %v3648_v42, %v445_v41  ;;  %v459_v45 = vstv %s3016_s25  ;;  %s3025_s12 = sld [smem:[#allocation2 + $0x1a]] }
  0x5c   : > { %v461_v46 = vmul.f32 %v3645_v40, %v459_v45  ;;  %v460_v47 = vmul.f32 %v3648_v42, %v459_v45  ;;  %v479_v49 = vstv %s3018_s26  ;;  %s3027_s13 = sld [smem:[#allocation2 + $0x1c]] }
  0x5d   : > { %316 = vrot.lane.b32.xlu1 %v311_v11, %s5716_s11  ;;  %314 = vrot.lane.b32.xlu0 %v310_v12, %s5716_s11  ;;  %v481_v51 = vmul.f32 %v3659_v48, %v479_v49  ;;  %v480_v52 = vmul.f32 %v3662_v50, %v479_v49  ;;  %v493_v53 = vstv %s3019_s30  ;;  %s3692_s14 = sld [smem:[#allocation2 + $0x22]] }
  0x5e   : > { %v495_v54 = vmul.f32 %v3659_v48, %v493_v53  ;;  %v494_v55 = vmul.f32 %v3662_v50, %v493_v53  ;;  %v513_v57 = vstv %s3021_s6  ;;  %s3698_s15 = sld [smem:[#allocation2 + $0x26]] }
  0x5f   : > { %v515_v59 = vmul.f32 %v3673_v56, %v513_v57  ;;  %v514_v60 = vmul.f32 %v3676_v58, %v513_v57  ;;  %v527_v61 = vstv %s3022_s7  ;;  %s3028_s16 = sld [smem:[#allocation2 + $0x1d]] }
  0x60   : > { %v529_v62 = vmul.f32 %v3673_v56, %v527_v61  ;;  %v528_v63 = vmul.f32 %v3676_v58, %v527_v61  ;;  %v547_v3 = vstv %s3024_s9  ;;  %s3705_s17 = sld [smem:[#allocation2 + $0x28]] }
  0x61   : > { %330 = vrot.lane.b32.xlu1 %v325_v14, %s5718_s10  ;;  %328 = vrot.lane.b32.xlu0 %v324_v15, %s5718_s10  ;;  %v549_v5 = vmul.f32 %v3687_v0, %v547_v3  ;;  %v548_v6 = vmul.f32 %v3690_v4, %v547_v3  ;;  %v561_v7 = vstv %s3025_s12  ;;  %s3712_s23 = sld [smem:[#allocation2 + $0x29]] }
  0x62   : > { %v563_v9 = vmul.f32 %v3687_v0, %v561_v7  ;;  %v562_v11 = vmul.f32 %v3690_v4, %v561_v7  ;;  %v603_v12 = vstv %s3027_s13  ;;  %s3030_s25 = sld [smem:[#allocation2 + $0x1f]] }
  0x63   : > { %v671_v13 = vstv %s3692_s14  ;;  %v604_v14 = vmul.f32 %v603_v12, %v3577_v1  ;;  %s3721_s26 = sld [smem:[#allocation2 + $0x2b]] }
  0x64   : > { %v672_v15 = vmul.f32 %v671_v13, %v3606_v18  ;;  %v719_v17 = vstv %s3698_s15  ;;  %s3730_s30 = sld [smem:[#allocation2 + $0x2c]] }
  0x65   : > { %350 = vrot.lane.b32.xlu1 %v345_v19, %s5716_s11  ;;  %348 = vrot.lane.b32.xlu0 %v344_v20, %s5716_s11  ;;  %v605_v19 = vmul.f32 %v603_v12, %v3580_v2  ;;  %v721_v20 = vmul.f32 %v3617_v24, %v719_v17  ;;  %v617_v21 = vstv %s3028_s16  ;;  %s3031_s6 = sld [smem:[#allocation2 + $0x20]] }
  0x66   : > { %s3739_s7 = sld [smem:[#allocation2 + $0x2e]] }
  0x67   : > { %s3748_s9 = sld [smem:[#allocation2 + $0x2f]] }
  0x68   : > { %s3757_s12 = sld [smem:[#allocation2 + $0x31]] }
  0x69   : > { %364 = vrot.lane.b32.xlu1 %v359_v22, %s5718_s10  ;;  %362 = vrot.lane.b32.xlu0 %v358_v23, %s5718_s10  ;;  %v739_v22 = vstv %s3705_s17  ;;  %v618_v23 = vmul.f32 %v617_v21, %v3577_v1  ;;  %s3034_s13 = sld [smem:[#allocation2 + $0x23]] }
  0x6a   : > { %v741_v25 = vmul.f32 %v3631_v32, %v739_v22  ;;  %s3766_s14 = sld [smem:[#allocation2 + $0x32]] }
  0x6b   : > { %s3775_s16 = sld [smem:[#allocation2 + $0x34]] }
  0x6c   : > { %v807_v41 = vstv %s3739_s7  ;;  %s3011_s15 = sld [smem:[#allocation2 + $0xc]] }
  0x6d   : > { %384 = vrot.lane.b32.xlu1 %v379_v27, %s5716_s11  ;;  %382 = vrot.lane.b32.xlu0 %v378_v28, %s5716_s11  ;;  %v753_v27 = vstv %s3712_s23  ;;  %v619_v28 = vmul.f32 %v617_v21, %v3580_v2  ;;  %v821_v45 = vstv %s3748_s9  ;;  %s3014_s17 = sld [smem:[#allocation2 + $0xf]] }
  0x6e   : > { %v755_v29 = vmul.f32 %v3631_v32, %v753_v27  ;;  %v841_v49 = vstv %s3757_s12  ;;  %s3017_s23 = sld [smem:[#allocation2 + $0x12]] }
  0x6f   : > { %v685_v53 = vstv %s3034_s13  ;;  %s3002_s13 = sld [smem:[#allocation2 + $0x3]] }
  0x70   : > { %s3026_s7 = sld [smem:[#allocation2 + $0x1b]] }
  0x71   : > { %398 = vrot.lane.b32.xlu1 %v393_v30, %s5718_s10  ;;  %396 = vrot.lane.b32.xlu0 %v392_v31, %s5718_s10  ;;  %v637_v30 = vstv %s3030_s25  ;;  %v773_v31 = vstv %s3721_s26  ;;  %s3777_s25 = sld [smem:[#allocation2]] }
  0x72   : > { %v638_v33 = vmul.f32 %v637_v30, %v3592_v10  ;;  %v639_v37 = vmul.f32 %v637_v30, %v3589_v8  ;;  %s3020_s26 = sld [smem:[#allocation2 + $0x15]] }
  0x73   : > { %s3055_s9 = sld [smem:[#allocation2 + $0x37]] }
  0x74   : > { %s3029_s12 = sld [smem:[#allocation2 + $0x1e]] }
  0x75   : > { %418 = vrot.lane.b32.xlu1 %v413_v35, %s5716_s11  ;;  %416 = vrot.lane.b32.xlu0 %v412_v36, %s5716_s11  ;;  %v775_v35 = vmul.f32 %v3645_v40, %v773_v31  ;;  %v787_v36 = vstv %s3730_s30  ;;  %s3023_s30 = sld [smem:[#allocation2 + $0x18]] }
  0x76   : > { %s4241_s1 = sld [smem:[#allocation2 + $0x68]] }
  0x77   : > { %v271_v61 = vstv %s3777_s25  ;;  %s3005_s25 = sld [smem:[#allocation2 + $0x6]] }
  0x78   : > { %s4266_s2 = sld [smem:[#allocation2 + $0x6b]] }
  0x79   : > { %432 = vrot.lane.b32.xlu1 %v427_v38, %s5718_s10  ;;  %430 = vrot.lane.b32.xlu0 %v426_v39, %s5718_s10  ;;  %v789_v38 = vmul.f32 %v3645_v40, %v787_v36  ;;  %v651_v39 = vstv %s3031_s6  ;;  %s3781_s6 = sld [smem:[#allocation2 + $0x25]] }
  0x7a   : > { %s4780_s27 = sld [smem:[#allocation2 + $0x81]] }
  0x7b   : > { %s4801_s20 = sld [smem:[#allocation2 + $0x92]] }
  0x7c   : > { %s4844_s24 = sld [smem:[#allocation2 + $0xc7]] }
  0x7d   : > { %452 = vrot.lane.b32.xlu1 %v447_v43, %s5716_s11  ;;  %450 = vrot.lane.b32.xlu0 %v446_v44, %s5716_s11  ;;  %v652_v43 = vmul.f32 %v651_v39, %v3592_v10  ;;  %v809_v44 = vmul.f32 %v3659_v48, %v807_v41  ;;  %s4869_s29 = sld [smem:[#allocation5 + $0x4]] }
  0x7e   : > { %s4876_s18 = sld [smem:[#allocation2 + $0x95]] }
  0x7f   : > { %s4890_s21 = sld [smem:[#allocation2 + $0xaf]] }
  0x80   : > { %s4898_s5 = sld [smem:[#allocation2 + $0xb0]] }
  0x81   : > { %466 = vrot.lane.b32.xlu1 %v461_v46, %s5718_s10  ;;  %464 = vrot.lane.b32.xlu0 %v460_v47, %s5718_s10  ;;  %v653_v46 = vmul.f32 %v651_v39, %v3589_v8  ;;  %v823_v47 = vmul.f32 %v3659_v48, %v821_v45  ;;  %s4914_s28 = sld [smem:[#allocation2 + $0x97]] }
  0x82   : > { %s4925_s22 = sld [smem:[#allocation2 + $0xcb]] }
  0x83   : > { %s4934_s19 = sld [smem:[#allocation2 + $0x98]] }
  0x84   : > { %s4943_s4 = sld [smem:[#allocation2 + $0xb2]] }
  0x85   : > { %486 = vrot.lane.b32.xlu1 %v481_v51, %s5716_s11  ;;  %484 = vrot.lane.b32.xlu0 %v480_v52, %s5716_s11  ;;  %v673_v51 = vmul.f32 %v671_v13, %v3603_v16  ;;  %v843_v52 = vmul.f32 %v3673_v56, %v841_v49  ;;  %v273_v13 = vmul.f32 %v271_v61, %v3580_v2  ;;  %s4952_s3 = sld [smem:[#allocation2 + $0xb3]] }
  0x89   : > { %500 = vrot.lane.b32.xlu1 %v495_v54, %s5718_s10  ;;  %498 = vrot.lane.b32.xlu0 %v494_v55, %s5718_s10  ;;  %v855_v54 = vstv %s3766_s14  ;;  %v686_v55 = vmul.f32 %v685_v53, %v3606_v18  ;;  %s3882_s14 = sld [smem:[#allocation2 + $0x38]] }
  0x8a   : > { %v857_v57 = vmul.f32 %v3673_v56, %v855_v54  ;;  %5783 = sst [smem:[#allocation21_spill]] %s4934_s19 }
  0x8d   : > { %520 = vrot.lane.b32.xlu1 %v515_v59, %s5716_s11  ;;  %518 = vrot.lane.b32.xlu0 %v514_v60, %s5716_s11  ;;  %v875_v59 = vstv %s3775_s16  ;;  %v687_v60 = vmul.f32 %v685_v53, %v3603_v16  ;;  %s3032_s16 = sld [smem:[#allocation2 + $0x21]] }
  0x91   : > { %534 = vrot.lane.b32.xlu1 %v529_v62, %s5718_s10  ;;  %532 = vrot.lane.b32.xlu0 %v528_v63, %s5718_s10  ;;  %v877_v62 = vmul.f32 %v3687_v0, %v875_v59  ;;  %v705_v63 = vstv %s3781_s6  ;;  %s3008_s6 = sld [smem:[#allocation2 + $0x9]] }
  0x95   : > { %554 = vrot.lane.b32.xlu1 %v549_v5, %s5716_s11  ;;  %552 = vrot.lane.b32.xlu0 %v548_v6, %s5716_s11  ;;  %v272_v5 = vmul.f32 %v271_v61, %v3577_v1  ;;  %v706_v6 = vmul.f32 %v3620_v26, %v705_v63 }
  0x99   : > { %568 = vrot.lane.b32.xlu1 %v563_v9, %s5718_s10  ;;  %566 = vrot.lane.b32.xlu0 %v562_v11, %s5718_s10 }
  0x9d   : > { %608 = vrot.lane.b32.xlu1 %v604_v14, %s5716_s11  ;;  %676 = vrot.lane.b32.xlu0 %v672_v15, %s5716_s11  ;;  %v707_v14 = vmul.f32 %v3617_v24, %v705_v63  ;;  %v303_v15 = vstv %s3002_s13  ;;  %v371_v63 = vstv %s3008_s6  ;;  %s3892_s13 = sld [smem:[#allocation2 + $0x3a]] }
  0x9e   : > { %s3901_s6 = sld [smem:[#allocation2 + $0x3b]] }
  0xa1   : > { %610 = vrot.lane.b32.xlu1 %v605_v19, %s5716_s11  ;;  %726 = vrot.lane.b32.xlu0 %v721_v20, %s5718_s10 }
  0xa5   : > { %622 = vrot.lane.b32.xlu1 %v618_v23, %s5718_s10  ;;  %746 = vrot.lane.b32.xlu0 %v741_v25, %s5716_s11  ;;  %v305_v25 = vmul.f32 %v303_v15, %v3589_v8 }
  0xa9   : > { %624 = vrot.lane.b32.xlu1 %v619_v28, %s5718_s10  ;;  %760 = vrot.lane.b32.xlu0 %v755_v29, %s5718_s10  ;;  %v304_v28 = vmul.f32 %v303_v15, %v3592_v10  ;;  %v720_v29 = vmul.f32 %v3620_v26, %v719_v17  ;;  %v788_v15 = vmul.f32 %v3648_v42, %v787_v36 }
  0xad   : > { %642 = vrot.lane.b32.xlu1 %v638_v33, %s5716_s11  ;;  %780 = vrot.lane.b32.xlu0 %v775_v35, %s5716_s11 }
  0xb1   : > { %644 = vrot.lane.b32.xlu1 %v639_v37, %s5716_s11  ;;  %794 = vrot.lane.b32.xlu0 %v789_v38, %s5718_s10  ;;  %v337_v37 = vstv %s3005_s25  ;;  %s3035_s25 = sld [smem:[#allocation2 + $0x24]] }
  0xb2   : > { %v338_v17 = vmul.f32 %v337_v37, %v3606_v18 }
  0xb5   : > { %656 = vrot.lane.b32.xlu1 %v652_v43, %s5718_s10  ;;  %814 = vrot.lane.b32.xlu0 %v809_v44, %s5716_s11  ;;  %s3788_s11 = sld [smem:[#allocation2 + $0x35]]  ;;  %v740_v43 = vmul.f32 %v3634_v34, %v739_v22 }
  0xb9   : > { %658 = vrot.lane.b32.xlu1 %v653_v46, %s5718_s10  ;;  %828 = vrot.lane.b32.xlu0 %v823_v47, %s5718_s10  ;;  %v339_v47 = vmul.f32 %v337_v37, %v3603_v16 }
  0xbb   : > { %v889_v3 = vstv %s3788_s11  ;;  %s574_s11 = sld [smem:[#allocation5]] }
  0xbc   : > { %v891_v7 = vmul.f32 %v3687_v0, %v889_v3 }
  0xbd   : > { %678 = vrot.lane.b32.xlu1 %v673_v51, %s5781_s0  ;;  %848 = vrot.lane.b32.xlu0 %v843_v52, %s5781_s0 }
  0xc1   : > { %690 = vrot.lane.b32.xlu1 %v686_v55, %s5718_s10  ;;  %862 = vrot.lane.b32.xlu0 %v857_v57, %s5718_s10  ;;  %v754_v57 = vmul.f32 %v3634_v34, %v753_v27 }
  0xc5   : > { %692 = vrot.lane.b32.xlu1 %v687_v60, %s5718_s10  ;;  %882 = vrot.lane.b32.xlu0 %v877_v62, %s5781_s0 }
  0xc7   : > { %v295_v9 = vpop.permute.xlu1 %294  ;;  %v281_v11 = vpop.permute.xlu0 %280 }
  0xc8   : > { %v286_v12 = vadd.f32 %v281_v11, %v272_v5  ;;  %v774_v5 = vmul.f32 %v3648_v42, %v773_v31  ;;  %v372_v11 = vmul.f32 %v3620_v26, %v371_v63 }
  0xc9   : > { %710 = vrot.lane.b32.xlu1 %v706_v6, %s5781_s0  ;;  %896 = vrot.lane.b32.xlu0 %v891_v7, %s5718_s10 }
  0xca   : > { %v300_v21 = vadd.f32 %v295_v9, %v286_v12  ;;  %v373_v9 = vmul.f32 %v3617_v24, %v371_v63 }
  0xcb   : > { %v297_v19 = vpop.permute.xlu1 %296  ;;  %v283_v20 = vpop.permute.xlu0 %282 }
  0xcc   : > { %v287_v23 = vadd.f32 %v283_v20, %v273_v13  ;;  %v306_v39 = vadd.f32 %v304_v28, %v300_v21 }
  0xcd   : > { %712 = vrot.lane.b32.xlu1 %v707_v14, %s5781_s0 }
  0xce   : > { %v301_v30 = vadd.f32 %v297_v19, %v287_v23  ;;  %v405_v23 = vstv %s3011_s15  ;;  %s3903_s15 = sld [smem:[#allocation2 + $0x27]] }
  0xcf   : > { %v317_v33 = vpop.permute.xlu1 %316  ;;  %v315_v35 = vpop.permute.xlu0 %314 }
  0xd0   : > { %v307_v38 = vadd.f32 %v305_v25, %v301_v30  ;;  %v320_v46 = vadd.f32 %v315_v35, %v306_v39  ;;  %v808_v25 = vmul.f32 %v3662_v50, %v807_v41  ;;  %v407_v30 = vmul.f32 %v3631_v32, %v405_v23 }
  0xd1   : > { %724 = vrot.lane.b32.xlu1 %v720_v29, %s5718_s10  ;;  %v822_v39 = vmul.f32 %v3662_v50, %v821_v45 }
  0xd2   : > { %v321_v44 = vadd.f32 %v317_v33, %v307_v38  ;;  %v406_v33 = vmul.f32 %v3634_v34, %v405_v23 }
  0xd3   : > { %v331_v51 = vpop.permute.xlu1 %330  ;;  %v329_v52 = vpop.permute.xlu0 %328 }
  0xd4   : > { %v335_v53 = vadd.f32 %v331_v51, %v321_v44  ;;  %v334_v55 = vadd.f32 %v329_v52, %v320_v46 }
  0xd5   : > { %744 = vrot.lane.b32.xlu1 %v740_v43, %s5781_s0 }
  0xd6   : > { %v341_v60 = vadd.f32 %v339_v47, %v335_v53  ;;  %v340_v61 = vadd.f32 %v338_v17, %v334_v55  ;;  %v439_v47 = vstv %s3014_s17  ;;  %v842_v17 = vmul.f32 %v3676_v58, %v841_v49  ;;  %s3908_s17 = sld [smem:[#allocation2 + $0x2a]] }
  0xd7   : > { %v351_v22 = vpop.permute.xlu1 %350  ;;  %v349_v62 = vpop.permute.xlu0 %348  ;;  %v441_v53 = vmul.f32 %v3645_v40, %v439_v47  ;;  %v440_v55 = vmul.f32 %v3648_v42, %v439_v47 }
  0xd8   : > { %v355_v6 = vadd.f32 %v351_v22, %v341_v60  ;;  %v354_v7 = vadd.f32 %v349_v62, %v340_v61  ;;  %v856_v22 = vmul.f32 %v3676_v58, %v855_v54 }
  0xd9   : > { %758 = vrot.lane.b32.xlu1 %v754_v57, %s5718_s10 }
  0xdb   : > { %v365_v27 = vpop.permute.xlu1 %364  ;;  %v363_v12 = vpop.permute.xlu0 %362 }
  0xdc   : > { %v369_v13 = vadd.f32 %v365_v27, %v355_v6  ;;  %v368_v14 = vadd.f32 %v363_v12, %v354_v7  ;;  %v473_v6 = vstv %s3017_s23  ;;  %v876_v7 = vmul.f32 %v3690_v4, %v875_v59  ;;  %s3914_s23 = sld [smem:[#allocation2 + $0x3d]] }
  0xdd   : > { %778 = vrot.lane.b32.xlu1 %v774_v5, %s5781_s0  ;;  %v475_v27 = vmul.f32 %v3659_v48, %v473_v6  ;;  %v474_v12 = vmul.f32 %v3662_v50, %v473_v6  ;;  %v507_v59 = vstv %s3020_s26  ;;  %s3920_s26 = sld [smem:[#allocation2 + $0x3e]] }
  0xde   : > { %v375_v19 = vadd.f32 %v373_v9, %v369_v13  ;;  %v374_v20 = vadd.f32 %v372_v11, %v368_v14 }
  0xdf   : > { %v385_v31 = vpop.permute.xlu1 %384  ;;  %v383_v21 = vpop.permute.xlu0 %382 }
  0xe0   : > { %v389_v28 = vadd.f32 %v385_v31, %v375_v19  ;;  %v388_v29 = vadd.f32 %v383_v21, %v374_v20  ;;  %v890_v19 = vmul.f32 %v3690_v4, %v889_v3 }
  0xe1   : > { %792 = vrot.lane.b32.xlu1 %v788_v15, %s5718_s10 }
  0xe3   : > { %v399_v36 = vpop.permute.xlu1 %398  ;;  %v397_v35 = vpop.permute.xlu0 %396 }
  0xe4   : > { %v403_v37 = vadd.f32 %v399_v36, %v389_v28  ;;  %v402_v38 = vadd.f32 %v397_v35, %v388_v29  ;;  %v509_v29 = vmul.f32 %v3673_v56, %v507_v59 }
  0xe5   : > { %812 = vrot.lane.b32.xlu1 %v808_v25, %s5781_s0 }
  0xe6   : > { %v409_v43 = vadd.f32 %v407_v30, %v403_v37  ;;  %v408_v44 = vadd.f32 %v406_v33, %v402_v38  ;;  %v508_v30 = vmul.f32 %v3676_v58, %v507_v59 }
  0xe7   : > { %v419_v41 = vpop.permute.xlu1 %418  ;;  %v417_v46 = vpop.permute.xlu0 %416 }
  0xe8   : > { %v423_v51 = vadd.f32 %v419_v41, %v409_v43  ;;  %v422_v52 = vadd.f32 %v417_v46, %v408_v44  ;;  %v541_v44 = vstv %s3023_s30  ;;  %s3922_s30 = sld [smem:[#allocation2 + $0x2d]] }
  0xe9   : > { %826 = vrot.lane.b32.xlu1 %v822_v39, %s5718_s10  ;;  %v543_v47 = vmul.f32 %v3687_v0, %v541_v44 }
  0xeb   : > { %v433_v45 = vpop.permute.xlu1 %432  ;;  %v431_v57 = vpop.permute.xlu0 %430 }
  0xec   : > { %v437_v60 = vadd.f32 %v433_v45, %v423_v51  ;;  %v436_v61 = vadd.f32 %v431_v57, %v422_v52 }
  0xed   : > { %846 = vrot.lane.b32.xlu1 %v842_v17, %s5781_s0  ;;  %v542_v17 = vmul.f32 %v3690_v4, %v541_v44 }
  0xee   : > { %v443_v62 = vadd.f32 %v441_v53, %v437_v60  ;;  %v442_v63 = vadd.f32 %v440_v55, %v436_v61 }
  0xef   : > { %v453_v49 = vpop.permute.xlu1 %452  ;;  %v451_v5 = vpop.permute.xlu0 %450 }
  0xf0   : > { %v457_v9 = vadd.f32 %v453_v49, %v443_v62  ;;  %v456_v11 = vadd.f32 %v451_v5, %v442_v63  ;;  %v575_v63 = vstv %s574_s11  ;;  %s3932_s11 = sld [smem:[#allocation2 + $0x30]] }
  0xf1   : > { %860 = vrot.lane.b32.xlu1 %v856_v22, %s5718_s10 }
  0xf3   : > { %v467_v13 = vpop.permute.xlu1 %466  ;;  %v465_v54 = vpop.permute.xlu0 %464 }
  0xf4   : > { %v471_v14 = vadd.f32 %v467_v13, %v457_v9  ;;  %v470_v15 = vadd.f32 %v465_v54, %v456_v11 }
  0xf5   : > { %880 = vrot.lane.b32.xlu1 %v876_v7, %s5781_s0 }
  0xf6   : > { %v477_v20 = vadd.f32 %v475_v27, %v471_v14  ;;  %v476_v31 = vadd.f32 %v474_v12, %v470_v15 }
  0xf7   : > { %v487_v21 = vpop.permute.xlu1 %486  ;;  %v485_v23 = vpop.permute.xlu0 %484 }
  0xf8   : > { %v491_v25 = vadd.f32 %v487_v21, %v477_v20  ;;  %v490_v28 = vadd.f32 %v485_v23, %v476_v31  ;;  %v599_v23 = vstv %s3026_s7  ;;  %s3938_s7 = sld [smem:[#allocation2 + $0x40]] }
  0xf9   : > { %894 = vrot.lane.b32.xlu1 %v890_v19, %s5718_s10  ;;  %v601_v59 = vmul.f32 %v599_v23, %v3580_v2 }
  0xfb   : > { %v501_v33 = vpop.permute.xlu1 %500  ;;  %v499_v36 = vpop.permute.xlu0 %498 }
  0xfc   : > { %v505_v35 = vadd.f32 %v501_v33, %v491_v25  ;;  %v504_v37 = vadd.f32 %v499_v36, %v490_v28  ;;  %v631_v36 = vstv %s3029_s12  ;;  %s3951_s12 = sld [smem:[#allocation2 + $0x41]] }
  0xfe   : > { %v511_v38 = vadd.f32 %v509_v29, %v505_v35  ;;  %v510_v3 = vadd.f32 %v508_v30, %v504_v37  ;;  %v600_v29 = vmul.f32 %v599_v23, %v3577_v1  ;;  %v930_v30 = vstv %s3055_s9  ;;  %s3947_s9 = sld [smem:[#allocation2 + $0x33]] }
  0xff   : > { %v521_v39 = vpop.permute.xlu1 %520  ;;  %v519_v43 = vpop.permute.xlu0 %518  ;;  %v931_v37 = vmul.f32 %v930_v30, %v3577_v1 }
 0x100   : > { %v525_v41 = vadd.f32 %v521_v39, %v511_v38  ;;  %v524_v46 = vadd.f32 %v519_v43, %v510_v3  ;;  %v633_v43 = vmul.f32 %v631_v36, %v3589_v8 }
 0x103   : > { %v535_v51 = vpop.permute.xlu1 %534  ;;  %v533_v52 = vpop.permute.xlu0 %532 }
 0x104   : > { %v539_v53 = vadd.f32 %v535_v51, %v525_v41  ;;  %v538_v55 = vadd.f32 %v533_v52, %v524_v46  ;;  %v632_v41 = vmul.f32 %v631_v36, %v3592_v10  ;;  %v944_v51 = vstv %s3882_s14  ;;  %s3957_s14 = sld [smem:[#allocation2 + $0x43]] }
 0x106   : > { %v545_v45 = vadd.f32 %v543_v47, %v539_v53  ;;  %v544_v57 = vadd.f32 %v542_v17, %v538_v55  ;;  %v932_v47 = vmul.f32 %v930_v30, %v3580_v2 }
 0x107   : > { %v555_v60 = vpop.permute.xlu1 %554  ;;  %v553_v61 = vpop.permute.xlu0 %552 }
 0x108   : > { %v559_v22 = vadd.f32 %v555_v60, %v545_v45  ;;  %v558_v62 = vadd.f32 %v553_v61, %v544_v57  ;;  %v665_v45 = vstv %s3032_s16  ;;  %v945_v60 = vmul.f32 %v944_v51, %v3577_v1  ;;  %s3963_s16 = sld [smem:[#allocation2 + $0x44]] }
 0x10b   : > { %v569_v49 = vpop.permute.xlu1 %568  ;;  %v567_v5 = vpop.permute.xlu0 %566 }
 0x10c   : > { %v573_v6 = vadd.f32 %v569_v49, %v559_v22  ;;  %v572_v7 = vadd.f32 %v567_v5, %v558_v62  ;;  %v667_v62 = vmul.f32 %v665_v45, %v3603_v16  ;;  %v666_v49 = vmul.f32 %v665_v45, %v3606_v18 }
 0x10e   : > { %v577_v9 = vadd.f32 %v575_v63, %v573_v6  ;;  %v576_v11 = vadd.f32 %v575_v63, %v572_v7  ;;  %v946_v7 = vmul.f32 %v944_v51, %v3580_v2 }
 0x10f   : > { %v609_v27 = vpop.permute.xlu1 %608  ;;  %v677_v28 = vpop.permute.xlu0 %676 }
 0x110   : > { %v579_v12 = vmax.f32 %v577_v9, 0.0  ;;  %v578_v13 = vmax.f32 %v576_v11, 0.0  ;;  %v614_v3 = vadd.f32 %v609_v27, %v600_v29  ;;  %v964_v11 = vstv %s3892_s13  ;;  %s3972_s13 = sld [smem:[#allocation2 + $0x46]] }
 0x112   : > { %v581_v54 = vsel %vm580_vm0, %v578_v13, 0.0  ;;  %v582_v14 = vsel %vm580_vm0, %v579_v12, 0.0  ;;  %v965_v12 = vmul.f32 %v964_v11, %v3592_v10 }
 0x113   : > { %v611_v15 = vpop.permute.xlu1 %610  ;;  %v583_v19 = vadd.f32 %v582_v14, %v581_v54  ;;  %v3885_v38 = vpop.permute.xlu0 %726  ;;  %v699_v54 = vstv %s3035_s25  ;;  %s3974_s25 = sld [smem:[#allocation5 + $0x1]] }
 0x114   : > { %v615_v33 = vadd.f32 %v611_v15, %v601_v59  ;;  %v701_v2 = vmul.f32 %v3617_v24, %v699_v54  ;;  %v700_v23 = vmul.f32 %v3620_v26, %v699_v54  ;;  %v978_v59 = vstv %s3901_s6  ;;  %s3981_s6 = sld [smem:[#allocation2 + $0x47]] }
 0x115   : > { %584 = vadd.xlane.f32.xlu0 %v583_v19 }
 0x117   : > { %v623_v20 = vpop.permute.xlu1 %622  ;;  %v747_v52 = vpop.permute.xlu0 %746 }
 0x118   : > { %v628_v44 = vadd.f32 %v623_v20, %v614_v3 }
 0x11a   : > { %v634_v53 = vadd.f32 %v632_v41, %v628_v44  ;;  %v767_v41 = vstv %s3908_s17  ;;  %s3995_s17 = sld [smem:[#allocation2 + $0x4a]] }
 0x11b   : > { %v625_v31 = vpop.permute.xlu1 %624  ;;  %v761_v6 = vpop.permute.xlu0 %760 }
 0x11c   : > { %v629_v39 = vadd.f32 %v625_v31, %v615_v33  ;;  %v966_v31 = vmul.f32 %v964_v11, %v3589_v8  ;;  %v979_v33 = vmul.f32 %v978_v59, %v3592_v10  ;;  %v980_v10 = vmul.f32 %v978_v59, %v3589_v8 }
 0x11d   : > { %v801_v8 = vstv %s3922_s30  ;;  %s4005_s30 = sld [smem:[#allocation2 + $0x4d]] }
 0x11e   : > { %v635_v17 = vadd.f32 %v633_v43, %v629_v39 }
 0x11f   : > { %v643_v21 = vpop.permute.xlu1 %642  ;;  %v781_v14 = vpop.permute.xlu0 %780 }
 0x120   : > { %v648_v61 = vadd.f32 %v643_v21, %v634_v53  ;;  %v769_v53 = vmul.f32 %v3645_v40, %v767_v41 }
 0x123   : > { %v645_v25 = vpop.permute.xlu1 %644  ;;  %v795_v30 = vpop.permute.xlu0 %794 }
 0x124   : > { %v649_v55 = vadd.f32 %v645_v25, %v635_v17  ;;  %v733_v25 = vstv %s3903_s15  ;;  %s3989_s15 = sld [smem:[#allocation2 + $0x49]] }
 0x125   : > { %v734_v43 = vmul.f32 %v3634_v34, %v733_v25 }
 0x127   : > { %v657_v35 = vpop.permute.xlu1 %656  ;;  %v815_v17 = vpop.permute.xlu0 %814 }
 0x128   : > { %v662_v63 = vadd.f32 %v657_v35, %v648_v61 }
 0x12a   : > { %v668_v1 = vadd.f32 %v666_v49, %v662_v63 }
 0x12b   : > { %v659_v46 = vpop.permute.xlu1 %658  ;;  %935 = vrot.lane.b32.xlu0 %v931_v37, %s5781_s0  ;;  %v735_v37 = vmul.f32 %v3631_v32, %v733_v25  ;;  %v869_v25 = vstv %s3947_s9  ;;  %s3084_s9 = sld [smem:[#allocation2 + $0x53]] }
 0x12c   : > { %v663_v22 = vadd.f32 %v659_v46, %v649_v55  ;;  %v682_v15 = vadd.f32 %v677_v28, %v668_v1  ;;  %v835_v1 = vstv %s3932_s11  ;;  %s4012_s11 = sld [smem:[#allocation2 + $0x4f]] }
 0x12e   : > { %v669_v9 = vadd.f32 %v667_v62, %v663_v22  ;;  %v829_v62 = vpop.permute.xlu0 %828 }
 0x12f   : > { %v679_v57 = vpop.permute.xlu1 %678  ;;  %937 = vrot.lane.b32.xlu0 %v932_v47, %s5781_s0  ;;  %v998_v47 = vstv %s3914_s23  ;;  %s3083_s23 = sld [smem:[#allocation2 + $0x52]] }
 0x130   : > { %v683_v13 = vadd.f32 %v679_v57, %v669_v9  ;;  %v999_v45 = vmul.f32 %v998_v47, %v3606_v18 }
 0x133   : > { %v691_v5 = vpop.permute.xlu1 %690  ;;  %949 = vrot.lane.b32.xlu0 %v945_v60, %s5718_s10  ;;  %v1012_v60 = vstv %s3920_s26  ;;  %s4000_s26 = sld [smem:[#allocation2 + $0x4c]] }
 0x134   : > { %v696_v21 = vadd.f32 %v691_v5, %v682_v15  ;;  %v1013_v63 = vmul.f32 %v1012_v60, %v3606_v18  ;;  %v849_v18 = vpop.permute.xlu0 %848  ;;  %v802_v15 = vmul.f32 %v3662_v50, %v801_v8 }
 0x136   : > { %v702_v36 = vadd.f32 %v700_v23, %v696_v21 }
 0x137   : > { %v693_v27 = vpop.permute.xlu1 %692  ;;  %951 = vrot.lane.b32.xlu0 %v946_v7, %s5718_s10 }
 0x138   : > { %v697_v19 = vadd.f32 %v693_v27, %v683_v13  ;;  %v1014_v27 = vmul.f32 %v1012_v60, %v3603_v16  ;;  %v1032_v13 = vstv %s3938_s7  ;;  %v863_v59 = vpop.permute.xlu0 %862  ;;  %v1100_v60 = vstv %s3972_s13  ;;  %s4017_s7 = sld [smem:[#allocation2 + $0x50]] }
 0x139   : > { %s3087_s13 = sld [smem:[#allocation2 + $0x56]] }
 0x13a   : > { %v703_v29 = vadd.f32 %v701_v2, %v697_v19  ;;  %v1033_v2 = vmul.f32 %v3620_v26, %v1032_v13 }
 0x13b   : > { %v711_v20 = vpop.permute.xlu1 %710  ;;  %969 = vrot.lane.b32.xlu0 %v965_v12, %s5781_s0 }
 0x13c   : > { %v716_v3 = vadd.f32 %v711_v20, %v702_v36 }
 0x13f   : > { %v713_v28 = vpop.permute.xlu1 %712  ;;  %971 = vrot.lane.b32.xlu0 %v966_v31, %s5781_s0 }
 0x140   : > { %v717_v35 = vadd.f32 %v713_v28, %v703_v29  ;;  %v1034_v29 = vmul.f32 %v3617_v24, %v1032_v13  ;;  %v1066_v24 = vstv %s3957_s14  ;;  %s3086_s14 = sld [smem:[#allocation2 + $0x55]] }
 0x142   : > { %v731_v39 = vadd.f32 %v3885_v38, %v717_v35  ;;  %v871_v35 = vmul.f32 %v3687_v0, %v869_v25 }
 0x143   : > { %v725_v44 = vpop.permute.xlu1 %724  ;;  %983 = vrot.lane.b32.xlu0 %v979_v33, %s5718_s10 }
 0x144   : > { %v737_v46 = vadd.f32 %v735_v37, %v731_v39  ;;  %v730_v32 = vadd.f32 %v725_v44, %v716_v3  ;;  %v836_v37 = vmul.f32 %v3676_v58, %v835_v1  ;;  %v883_v44 = vpop.permute.xlu0 %882 }
 0x146   : > { %v751_v51 = vadd.f32 %v747_v52, %v737_v46  ;;  %v736_v55 = vadd.f32 %v734_v43, %v730_v32  ;;  %v768_v52 = vmul.f32 %v3648_v42, %v767_v41  ;;  %v1067_v32 = vmul.f32 %v3634_v34, %v1066_v24 }
 0x147   : > { %v745_v38 = vpop.permute.xlu1 %744  ;;  %985 = vrot.lane.b32.xlu0 %v980_v10, %s5718_s10 }
 0x148   : > { %v765_v57 = vadd.f32 %v761_v6, %v751_v51  ;;  %v750_v22 = vadd.f32 %v745_v38, %v736_v55  ;;  %v803_v6 = vmul.f32 %v3659_v48, %v801_v8  ;;  %v837_v48 = vmul.f32 %v3673_v56, %v835_v1  ;;  %v897_v55 = vpop.permute.xlu0 %896 }
 0x14a   : > { %v771_v61 = vadd.f32 %v769_v53, %v765_v57  ;;  %v870_v53 = vmul.f32 %v3690_v4, %v869_v25  ;;  %v4054_v25 = vld [vmem:[%s3574_s8 + $0x22] sm:$0xff] }
 0x14b   : > { %v759_v40 = vpop.permute.xlu1 %758  ;;  %1003 = vrot.lane.b32.xlu0 %v999_v45, %s5781_s0 }
 0x14c   : > { %v785_v49 = vadd.f32 %v781_v14, %v771_v61  ;;  %v764_v5 = vadd.f32 %v759_v40, %v750_v22  ;;  %v903_v22 = vstv %s3974_s25  ;;  %v1101_v40 = vmul.f32 %v3648_v42, %v1100_v60  ;;  %s4118_s25 = sld [smem:[#allocation2 + $0x58]] }
 0x14e   : > { %v799_v7 = vadd.f32 %v795_v30, %v785_v49  ;;  %v770_v9 = vadd.f32 %v768_v52, %v764_v5  ;;  %v1046_v30 = vstv %s3951_s12  ;;  %s4086_s12 = sld [smem:[#allocation2 + $0x36]] }
 0x14f   : > { %v779_v11 = vpop.permute.xlu1 %778  ;;  %1017 = vrot.lane.b32.xlu0 %v1013_v63, %s5718_s10  ;;  %v1047_v39 = vmul.f32 %v3620_v26, %v1046_v30 }
 0x150   : > { %v805_v12 = vadd.f32 %v803_v6, %v799_v7  ;;  %v784_v14 = vadd.f32 %v779_v11, %v770_v9  ;;  %v1134_v7 = vstv %s3989_s15  ;;  %s3090_s15 = sld [smem:[#allocation2 + $0x59]] }
 0x151   : > { %v1135_v1 = vmul.f32 %v3662_v50, %v1134_v7 }
 0x152   : > { %v819_v54 = vadd.f32 %v815_v17, %v805_v12  ;;  %v1080_v17 = vstv %s3963_s16  ;;  %v1148_v12 = vstv %s3995_s17  ;;  %s4098_s16 = sld [smem:[#allocation2 + $0x39]] }
 0x153   : > { %v793_v19 = vpop.permute.xlu1 %792  ;;  %1019 = vrot.lane.b32.xlu0 %v1014_v27, %s5718_s10  ;;  %v1081_v45 = vmul.f32 %v3634_v34, %v1080_v17  ;;  %s3092_s17 = sld [smem:[#allocation2 + $0x5b]] }
 0x154   : > { %v833_v20 = vadd.f32 %v829_v62, %v819_v54  ;;  %v798_v16 = vadd.f32 %v793_v19, %v784_v14  ;;  %v1114_v62 = vstv %s3981_s6  ;;  %v1149_v54 = vmul.f32 %v3662_v50, %v1148_v12  ;;  %s4123_s6 = sld [smem:[#allocation2 + $0x3c]] }
 0x155   : > { %v1115_v5 = vmul.f32 %v3648_v42, %v1114_v62  ;;  %v1168_v14 = vstv %s4000_s26  ;;  %v1202_v19 = vstv %s4012_s11  ;;  %s4141_s26 = sld [smem:[#allocation2 + $0x3f]] }
 0x156   : > { %v839_v31 = vadd.f32 %v837_v48, %v833_v20  ;;  %v804_v21 = vadd.f32 %v802_v15, %v798_v16  ;;  %v1169_v48 = vmul.f32 %v3676_v58, %v1168_v14  ;;  %v1182_v15 = vstv %s4005_s30  ;;  %v4026_v16 = vld [vmem:[%s3574_s8 + $0xa] sm:$0xff]  ;;  %s4149_s30 = sld [smem:[#allocation2 + $0x5c]] }
 0x157   : > { %v813_v23 = vpop.permute.xlu1 %812  ;;  %1037 = vrot.lane.b32.xlu0 %v1033_v2, %s5781_s0  ;;  %v1183_v50 = vmul.f32 %v3676_v58, %v1182_v15  ;;  %v1203_v2 = vmul.f32 %v3690_v4, %v1202_v19  ;;  %v1216_v20 = vstv %s4017_s7  ;;  %v4035_v58 = vld [vmem:[%s3574_s8 + $0x20] sm:$0xff]  ;;  %s4157_s11 = sld [smem:[#allocation2 + $0x5e]] }
 0x158   : > { %v853_v28 = vadd.f32 %v849_v18, %v839_v31  ;;  %v818_v33 = vadd.f32 %v813_v23, %v804_v21  ;;  %v1000_v31 = vmul.f32 %v4026_v16, %v998_v47  ;;  %v1217_v21 = vmul.f32 %v3690_v4, %v1216_v20  ;;  %s4162_s7 = sld [smem:[#allocation2 + $0x42]] }
 0x159   : > { %v1048_v23 = vmul.f32 %v4035_v58, %v1046_v30  ;;  %v4061_v30 = vld [vmem:[%s3574_s8 + $0x38] sm:$0xff] }
 0x15a   : > { %v867_v36 = vadd.f32 %v863_v59, %v853_v28  ;;  %v4043_v59 = vld [vmem:[%s3574_s8 + $0x21] sm:$0xff]  ;;  %v1116_v28 = vmul.f32 %v4054_v25, %v1114_v62  ;;  %v1291_v62 = vstv %s3086_s14  ;;  %s4190_s14 = sld [smem:[#allocation2 + $0x62]] }
 0x15b   : > { %v827_v3 = vpop.permute.xlu1 %826  ;;  %1039 = vrot.lane.b32.xlu0 %v1034_v29, %s5781_s0  ;;  %v1068_v47 = vmul.f32 %v4043_v59, %v1066_v24  ;;  %v1082_v4 = vmul.f32 %v4043_v59, %v1080_v17  ;;  %v1102_v29 = vmul.f32 %v4054_v25, %v1100_v60  ;;  %v4090_v60 = vld [vmem:[%s3574_s8 + $0x8] sm:$0xff] }
 0x15c   : > { %v832_v43 = vadd.f32 %v827_v3, %v818_v33  ;;  %v873_v41 = vadd.f32 %v871_v35, %v867_v36  ;;  %v1136_v33 = vmul.f32 %v4061_v30, %v1134_v7  ;;  %v1150_v35 = vmul.f32 %v4061_v30, %v1148_v12 }
 0x15d   : > { %v958_v7 = vstv %s4098_s16  ;;  %s4225_s16 = sld [smem:[#allocation2 + $0x67]] }
 0x15e   : > { %v838_v10 = vadd.f32 %v836_v37, %v832_v43  ;;  %v887_v26 = vadd.f32 %v883_v44, %v873_v41  ;;  %v1170_v43 = vmul.f32 %v3673_v56, %v1168_v14  ;;  %v1204_v56 = vmul.f32 %v3687_v0, %v1202_v19 }
 0x15f   : > { %v847_v46 = vpop.permute.xlu1 %846  ;;  %1051 = vrot.lane.b32.xlu0 %v1047_v39, %s5718_s10 }
 0x160   : > { %v852_v51 = vadd.f32 %v847_v46, %v838_v10  ;;  %v901_v8 = vadd.f32 %v897_v55, %v887_v26  ;;  %v4072_v10 = vld [vmem:[%s3574_s8 + $0x39] sm:$0xff]  ;;  %v1257_v55 = vstv %s3083_s23  ;;  %s4167_s23 = sld [smem:[#allocation2 + $0x5f]] }
 0x161   : > { %v1184_v46 = vmul.f32 %v4072_v10, %v1182_v15 }
 0x162   : > { %v905_v63 = vadd.f32 %v903_v22, %v901_v8  ;;  %v1271_v8 = vstv %s3084_s9  ;;  %s4176_s9 = sld [smem:[#allocation2 + $0x61]] }
 0x163   : > { %v861_v38 = vpop.permute.xlu1 %860  ;;  %1071 = vrot.lane.b32.xlu0 %v1067_v32, %s5781_s0 }
 0x164   : > { %v866_v57 = vadd.f32 %v861_v38, %v852_v51  ;;  %v907_v9 = vmax.f32 %v905_v63, 0.0  ;;  %v4083_v38 = vld [vmem:[%s3574_s8] sm:$0xff] }
 0x166   : > { %v872_v61 = vadd.f32 %v870_v53, %v866_v57  ;;  %v909_v42 = vsel %vm580_vm0, %v907_v9, 0.0  ;;  %v1218_v53 = vmul.f32 %v3687_v0, %v1216_v20  ;;  %v1259_v0 = vmul.f32 %v4090_v60, %v1257_v55 }
 0x167   : > { %v881_v52 = vpop.permute.xlu1 %880  ;;  %1085 = vrot.lane.b32.xlu0 %v1081_v45, %s5718_s10  ;;  %v1258_v45 = vmul.f32 %v4083_v38, %v1257_v55  ;;  %v1339_v20 = vstv %s3090_s15  ;;  %s4217_s15 = sld [smem:[#allocation2 + $0x65]] }
 0x168   : > { %v886_v49 = vadd.f32 %v881_v52, %v872_v61  ;;  %v926_v52 = vstv %s4086_s12  ;;  %s4196_s12 = sld [smem:[#allocation2 + $0x45]] }
 0x16b   : > { %v895_v34 = vpop.permute.xlu1 %894  ;;  %1105 = vrot.lane.b32.xlu0 %v1101_v40, %s5781_s0  ;;  %v1273_v40 = vmul.f32 %v4090_v60, %v1271_v8 }
 0x16c   : > { %v900_v6 = vadd.f32 %v895_v34, %v886_v49  ;;  %v927_v49 = vmul.f32 %v4083_v38, %v926_v52  ;;  %v4107_v34 = vld [vmem:[%s3574_s8 + $0x1] sm:$0xff] }
 0x16e   : > { %v904_v11 = vadd.f32 %v903_v22, %v900_v6  ;;  %v1272_v22 = vmul.f32 %v4083_v38, %v1271_v8 }
 0x16f   : > { %1119 = vrot.lane.b32.xlu0 %v1115_v5, %s5718_s10  ;;  %v1292_v5 = vmul.f32 %v4107_v34, %v1291_v62 }
 0x170   : > { %v906_v27 = vmax.f32 %v904_v11, 0.0  ;;  %v4115_v11 = vld [vmem:[%s3574_s8 + $0x9] sm:$0xff] }
 0x172   : > { %v908_v13 = vsel %vm580_vm0, %v906_v27, 0.0  ;;  %v1305_v27 = vstv %s3087_s13  ;;  %s4203_s13 = sld [smem:[#allocation2 + $0x64]] }
 0x173   : > { %v910_v18 = vadd.f32 %v909_v42, %v908_v13  ;;  %1139 = vrot.lane.b32.xlu0 %v1135_v1, %s5781_s0  ;;  %v1293_v1 = vmul.f32 %v4115_v11, %v1291_v62  ;;  %v959_v13 = vmul.f32 %v4107_v34, %v958_v7  ;;  %v1306_v42 = vmul.f32 %v4107_v34, %v1305_v27 }
 0x174   : > { %v1307_v14 = vmul.f32 %v4115_v11, %v1305_v27  ;;  %v4211_v27 = vld [vmem:[%s3574_s8 + $0x1a] sm:$0xff] }
 0x175   : > { %911 = vadd.xlane.f32.xlu1 %v910_v18 }
 0x177   : > { %1153 = vrot.lane.b32.xlu0 %v1149_v54, %s5718_s10 }
 0x17b   : > { %1173 = vrot.lane.b32.xlu0 %v1169_v48, %s5781_s0  ;;  %v1325_v48 = vstv %s4118_s25  ;;  %s3111_s25 = sld [smem:[#allocation2 + $0x6d]] }
 0x17f   : > { %1187 = vrot.lane.b32.xlu0 %v1183_v50, %s5718_s10  ;;  %v992_v50 = vstv %s4123_s6  ;;  %s5782_s6 = smov 126  }
 0x183   : > { %1207 = vrot.lane.b32.xlu0 %v1203_v2, %s5781_s0  ;;  %v1327_v2 = vmul.f32 %v4026_v16, %v1325_v48 }
 0x186   : > { %1005 = vrot.lane.b32.xlu1 %v1000_v31, %s5781_s0 }
 0x187   : > { %1221 = vrot.lane.b32.xlu0 %v1217_v21, %s5718_s10  ;;  %v4136_v21 = vld [vmem:[%s3574_s8 + $0x2] sm:$0xff] }
 0x18a   : > { %1053 = vrot.lane.b32.xlu1 %v1048_v23, %s5718_s10  ;;  %v993_v23 = vmul.f32 %v4136_v21, %v992_v50 }
 0x18e   : > { %1073 = vrot.lane.b32.xlu1 %v1068_v47, %s5781_s0  ;;  %v1340_v47 = vmul.f32 %v4136_v21, %v1339_v20 }
 0x192   : > { %1087 = vrot.lane.b32.xlu1 %v1082_v4, %s5718_s10 }
 0x196   : > { %1107 = vrot.lane.b32.xlu1 %v1102_v29, %s5781_s0 }
 0x19a   : > { %1121 = vrot.lane.b32.xlu1 %v1116_v28, %s5718_s10  ;;  %v1341_v28 = vmul.f32 %v4026_v16, %v1339_v20  ;;  %v4235_v20 = vld [vmem:[%s3574_s8 + $0x30] sm:$0xff] }
 0x19e   : > { %v585_v36 = vpop.xlane.xlu0 %584  ;;  %1141 = vrot.lane.b32.xlu1 %v1136_v33, %s5781_s0  ;;  %v1359_v33 = vstv %s3092_s17  ;;  %s4231_s17 = sld [smem:[#allocation2 + $0x48]] }
 0x19f   : > { %v586_v37 = vrot.slane %v585_v36, 4 }
 0x1a1   : > { %v587_v3 = vadd.f32 %v586_v37, %v585_v36 }
 0x1a2   : > { %v936_v39 = vpop.permute.xlu0 %935  ;;  %1155 = vrot.lane.b32.xlu1 %v1150_v35, %s5718_s10  ;;  %v1026_v35 = vstv %s4141_s26  ;;  %s3078_s26 = sld [smem:[#allocation2 + $0x4e]] }
 0x1a3   : > { %v588_v24 = vrot.slane %v587_v3, 2  ;;  %v941_v6 = vadd.f32 %v936_v39, %v927_v49  ;;  %v1427_v49 = vstv %s4176_s9  ;;  %s3120_s9 = sld [smem:[#allocation2 + $0x76]] }
 0x1a5   : > { %v589_v44 = vadd.f32 %v588_v24, %v587_v3  ;;  %v4154_v3 = vld [vmem:[%s3574_s8 + $0x18] sm:$0xff] }
 0x1a6   : > { %v4068_v41 = vpop.permute.xlu0 %937  ;;  %1175 = vrot.lane.b32.xlu1 %v1170_v43, %s5781_s0  ;;  %v1360_v39 = vmul.f32 %v4154_v3, %v1359_v33  ;;  %v1027_v24 = vmul.f32 %v4154_v3, %v1026_v35 }
 0x1a7   : > { %v590_v32 = vrot.slane %v589_v44, 1 }
 0x1a9   : > { %v591_v17 = vadd.f32 %v590_v32, %v589_v44  ;;  %v1361_v44 = vmul.f32 %v4035_v58, %v1359_v33 }
 0x1aa   : > { %v950_v26 = vpop.permute.xlu0 %949  ;;  %1189 = vrot.lane.b32.xlu1 %v1184_v46, %s5718_s10  ;;  %v1373_v46 = vstv %s4149_s30  ;;  %s3112_s30 = sld [smem:[#allocation2 + $0x6e]] }
 0x1ab   : > { %3226 = vpush %v591_v17  ;;  %v955_v12 = vadd.f32 %v950_v26, %v941_v6  ;;  %v1374_v26 = vmul.f32 %v4154_v3, %v1373_v46  ;;  %v960_v6 = vmul.f32 %v4115_v11, %v958_v7 }
 0x1ad   : > { %v961_v54 = vadd.f32 %v959_v13, %v955_v12  ;;  %v1428_v12 = vmul.f32 %v4211_v27, %v1427_v49  ;;  %v1441_v13 = vstv %s4190_s14  ;;  %s4397_s14 = sld [smem:[#allocation2 + $0x54]] }
 0x1ae   : > { %v4077_v51 = vpop.permute.xlu0 %951  ;;  %1209 = vrot.lane.b32.xlu1 %v1204_v56, %s5781_s0  ;;  %v1393_v56 = vstv %s4157_s11  ;;  %v1442_v7 = vmul.f32 %v4211_v27, %v1441_v13  ;;  %s3118_s11 = sld [smem:[#allocation2 + $0x74]] }
 0x1b2   : > { %1223 = vrot.lane.b32.xlu1 %v1218_v53, %s5718_s10  ;;  %v970_v57 = vpop.permute.xlu0 %969  ;;  %v928_v53 = vmul.f32 %v4090_v60, %v926_v52 }
 0x1b3   : > { %v975_v15 = vadd.f32 %v970_v57, %v961_v54  ;;  %v1060_v57 = vstv %s4162_s7  ;;  %v1094_v54 = vstv %s4196_s12  ;;  %s3081_s7 = sld [smem:[#allocation5 + $0x2]] }
 0x1b4   : > { %s4404_s12 = sld [smem:[#allocation2 + $0x77]] }
 0x1b6   : > { %1262 = vrot.lane.b32.xlu1 %v1258_v45, %s5781_s0  ;;  %v4093_v61 = vpop.permute.xlu0 %971 }
 0x1ba   : > { %1264 = vrot.lane.b32.xlu1 %v1259_v0, %s5781_s0  ;;  %v984_v63 = vpop.permute.xlu0 %983  ;;  %v4184_v0 = vld [vmem:[%s3574_s8 + $0x19] sm:$0xff] }
 0x1bb   : > { %v989_v31 = vadd.f32 %v984_v63, %v975_v15  ;;  %v1394_v8 = vmul.f32 %v4184_v0, %v1393_v56  ;;  %v1061_v62 = vmul.f32 %v4184_v0, %v1060_v57 }
 0x1bd   : > { %v995_v29 = vadd.f32 %v993_v23, %v989_v31  ;;  %v1475_v23 = vstv %s4217_s15  ;;  %s4414_s15 = sld [smem:[#allocation2 + $0x57]] }
 0x1be   : > { %1276 = vrot.lane.b32.xlu1 %v1272_v22, %s5718_s10  ;;  %v4111_v9 = vpop.permute.xlu0 %985  ;;  %v1407_v22 = vstv %s4167_s23  ;;  %s4383_s23 = sld [smem:[#allocation2 + $0x51]] }
 0x1bf   : > { %v1408_v63 = vmul.f32 %v4184_v0, %v1407_v22 }
 0x1c2   : > { %1278 = vrot.lane.b32.xlu1 %v1273_v40, %s5718_s10  ;;  %v1004_v18 = vpop.permute.xlu0 %1003  ;;  %v942_v40 = vadd.f32 %v4068_v41, %v928_v53 }
 0x1c3   : > { %v1009_v36 = vadd.f32 %v1004_v18, %v995_v29 }
 0x1c4   : > { %v956_v41 = vadd.f32 %v4077_v51, %v942_v40  ;;  %v1509_v40 = vstv %s4241_s1  ;;  %s3114_s1 = sld [smem:[#allocation2 + $0x70]] }
 0x1c6   : > { %1296 = vrot.lane.b32.xlu1 %v1292_v5, %s5781_s0  ;;  %v1018_v19 = vpop.permute.xlu0 %1017 }
 0x1c7   : > { %v1023_v43 = vadd.f32 %v1018_v19, %v1009_v36  ;;  %v1476_v36 = vmul.f32 %v4235_v20, %v1475_v23 }
 0x1c9   : > { %v1029_v17 = vadd.f32 %v1027_v24, %v1023_v43 }
 0x1ca   : > { %1298 = vrot.lane.b32.xlu1 %v1293_v1, %s5781_s0  ;;  %v4145_v4 = vpop.permute.xlu0 %1019 }
 0x1ce   : > { %1310 = vrot.lane.b32.xlu1 %v1306_v42, %s5718_s10  ;;  %v1038_v37 = vpop.permute.xlu0 %1037  ;;  %v962_v42 = vadd.f32 %v960_v6, %v956_v41 }
 0x1cf   : > { %v1043_v55 = vadd.f32 %v1038_v37, %v1029_v17  ;;  %v1128_v17 = vstv %s4231_s17  ;;  %s4270_s17 = sld [smem:[#allocation2 + $0x4b]] }
 0x1d0   : > { %v976_v15 = vadd.f32 %v4093_v61, %v962_v42 }
 0x1d2   : > { %1312 = vrot.lane.b32.xlu1 %v1307_v14, %s5718_s10  ;;  %v4169_v32 = vpop.permute.xlu0 %1039  ;;  %v1461_v14 = vstv %s4203_s13  ;;  %v990_v61 = vadd.f32 %v4111_v9, %v976_v15  ;;  %s4409_s13 = sld [smem:[#allocation2 + $0x79]] }
 0x1d3   : > { %v1462_v31 = vmul.f32 %v4235_v20, %v1461_v14 }
 0x1d6   : > { %1332 = vrot.lane.b32.xlu1 %v1327_v2, %s5781_s0  ;;  %v1052_v45 = vpop.permute.xlu0 %1051  ;;  %v1095_v2 = vmul.f32 %v4211_v27, %v1094_v54 }
 0x1d7   : > { %v1057_v52 = vadd.f32 %v1052_v45, %v1043_v55  ;;  %v1028_v45 = vmul.f32 %v4035_v58, %v1026_v35 }
 0x1d9   : > { %v1063_v1 = vadd.f32 %v1061_v62, %v1057_v52  ;;  %v1129_v62 = vmul.f32 %v4235_v20, %v1128_v17 }
 0x1da   : > { %1344 = vrot.lane.b32.xlu1 %v1340_v47, %s5718_s10  ;;  %v1072_v5 = vpop.permute.xlu0 %1071 }
 0x1db   : > { %v1077_v51 = vadd.f32 %v1072_v5, %v1063_v1 }
 0x1de   : > { %1346 = vrot.lane.b32.xlu1 %v1341_v28, %s5718_s10  ;;  %v1086_v18 = vpop.permute.xlu0 %1085  ;;  %v994_v28 = vmul.f32 %v4026_v16, %v992_v50  ;;  %v4257_v50 = vld [vmem:[%s3574_s8 + $0x31] sm:$0xff] }
 0x1df   : > { %v1091_v19 = vadd.f32 %v1086_v18, %v1077_v51  ;;  %v1510_v35 = vmul.f32 %v4257_v50, %v1509_v40  ;;  %v1062_v18 = vmul.f32 %v4043_v59, %v1060_v57 }
 0x1e0   : > { %v996_v24 = vadd.f32 %v994_v28, %v990_v61  ;;  %v1162_v28 = vstv %s4270_s17  ;;  %s4429_s17 = sld [smem:[#allocation2 + $0x7c]] }
 0x1e1   : > { %v1097_v29 = vadd.f32 %v1095_v2, %v1091_v19  ;;  %v4283_v19 = vld [vmem:[%s3574_s8 + $0x32] sm:$0xff] }
 0x1e2   : > { %1364 = vrot.lane.b32.xlu1 %v1360_v39, %s5781_s0  ;;  %v1106_v47 = vpop.permute.xlu0 %1105  ;;  %v1495_v39 = vstv %s4225_s16  ;;  %s4419_s16 = sld [smem:[#allocation2 + $0x7a]] }
 0x1e3   : > { %v1111_v43 = vadd.f32 %v1106_v47, %v1097_v29  ;;  %v1496_v53 = vmul.f32 %v4257_v50, %v1495_v39  ;;  %v1543_v47 = vstv %s4266_s2  ;;  %s3115_s2 = sld [smem:[#allocation2 + $0x71]] }
 0x1e4   : > { %v1544_v57 = vmul.f32 %v4283_v19, %v1543_v47 }
 0x1e6   : > { %1366 = vrot.lane.b32.xlu1 %v1361_v44, %s5781_s0  ;;  %v1120_v44 = vpop.permute.xlu0 %1119 }
 0x1e7   : > { %v1125_v52 = vadd.f32 %v1120_v44, %v1111_v43 }
 0x1e9   : > { %v1131_v51 = vadd.f32 %v1129_v62, %v1125_v52 }
 0x1ea   : > { %1378 = vrot.lane.b32.xlu1 %v1374_v26, %s5718_s10  ;;  %v1140_v42 = vpop.permute.xlu0 %1139 }
 0x1eb   : > { %v1145_v61 = vadd.f32 %v1140_v42, %v1131_v51  ;;  %v1164_v51 = vmul.f32 %v4072_v10, %v1162_v28 }
 0x1ee   : > { %1398 = vrot.lane.b32.xlu1 %v1394_v8, %s5781_s0 }
 0x1f2   : > { %1412 = vrot.lane.b32.xlu1 %v1408_v63, %s5718_s10 }
 0x1f6   : > { %1432 = vrot.lane.b32.xlu1 %v1428_v12, %s5781_s0 }
 0x1fa   : > { %1446 = vrot.lane.b32.xlu1 %v1442_v7, %s5718_s10  ;;  %s4252_s10 = sld [smem:[#allocation2 + $0x6a]] }
 0x1fe   : > { %v912_v33 = vpop.xlane.xlu1 %911  ;;  %1466 = vrot.lane.b32.xlu1 %v1462_v31, %s5781_s0 }
 0x1ff   : > { %v913_v37 = vrot.slane %v912_v33, 4 }
 0x200   : > { %v1529_v12 = vstv %s4252_s10  ;;  %s4375_s10 = sld [smem:[#allocation2 + $0x73]] }
 0x201   : > { %v914_v9 = vadd.f32 %v913_v37, %v912_v33  ;;  %v1530_v2 = vmul.f32 %v4283_v19, %v1529_v12  ;;  %v1096_v37 = vmul.f32 %v4054_v25, %v1094_v54  ;;  %v1196_v54 = vstv %s3078_s26  ;;  %s4440_s26 = sld [smem:[#allocation2 + $0x7d]] }
 0x202   : > { %v1006_v26 = vpop.permute.xlu1 %1005  ;;  %1480 = vrot.lane.b32.xlu1 %v1476_v36, %s5782_s6 }
 0x203   : > { %v1010_v55 = vadd.f32 %v1006_v26, %v996_v24  ;;  %v915_v8 = vrot.slane %v914_v9, 2 }
 0x205   : > { %v1024_v63 = vadd.f32 %v4145_v4, %v1010_v55  ;;  %v916_v5 = vadd.f32 %v915_v8, %v914_v9  ;;  %v1163_v9 = vmul.f32 %v4257_v50, %v1162_v28  ;;  %v1130_v8 = vmul.f32 %v4061_v30, %v1128_v17 }
 0x206   : > { %v1054_v41 = vpop.permute.xlu1 %1053  ;;  %1500 = vrot.lane.b32.xlu1 %v1496_v53, %s5781_s0  ;;  %v1230_v28 = vstv %s3081_s7  ;;  %s4445_s7 = sld [smem:[#allocation2 + $0x5a]] }
 0x207   : > { %v1030_v6 = vadd.f32 %v1028_v45, %v1024_v63  ;;  %v917_v1 = vrot.slane %v916_v5, 1 }
 0x209   : > { %v1044_v4 = vadd.f32 %v4169_v32, %v1030_v6  ;;  %v918_v7 = vadd.f32 %v917_v1, %v916_v5  ;;  %v1154_v32 = vpop.permute.xlu0 %1153  ;;  %v1197_v1 = vmul.f32 %v4283_v19, %v1196_v54 }
 0x20a   : > { %v1074_v15 = vpop.permute.xlu1 %1073  ;;  %1514 = vrot.lane.b32.xlu1 %v1510_v35, %s5782_s6  ;;  %v1159_v43 = vadd.f32 %v1154_v32, %v1145_v61 }
 0x20b   : > { %v1058_v31 = vadd.f32 %v1054_v41, %v1044_v4  ;;  %3228 = vpush %v918_v7 }
 0x20c   : > { %v1165_v55 = vadd.f32 %v1163_v9, %v1159_v43 }
 0x20d   : > { %v1064_v29 = vadd.f32 %v1062_v18, %v1058_v31  ;;  %v1174_v53 = vpop.permute.xlu0 %1173 }
 0x20e   : > { %v1088_v33 = vpop.permute.xlu1 %1087  ;;  %1534 = vrot.lane.b32.xlu1 %v1530_v2, %s5781_s0  ;;  %v1179_v63 = vadd.f32 %v1174_v53, %v1165_v55 }
 0x20f   : > { %v1078_v36 = vadd.f32 %v1074_v15, %v1064_v29  ;;  %v4303_v29 = vld [vmem:[%s3574_s8 + $0x3a] sm:$0xff] }
 0x210   : > { %v1198_v32 = vmul.f32 %v4303_v29, %v1196_v54  ;;  %v1395_v54 = vmul.f32 %v4043_v59, %v1393_v56  ;;  %v1463_v56 = vmul.f32 %v4061_v30, %v1461_v14  ;;  %v1531_v14 = vmul.f32 %v4303_v29, %v1529_v12 }
 0x211   : > { %v1092_v24 = vadd.f32 %v1088_v33, %v1078_v36  ;;  %v1188_v41 = vpop.permute.xlu0 %1187  ;;  %v1598_v12 = vstv %s3112_s30  ;;  %s4461_s30 = sld [smem:[#allocation2 + $0x80]] }
 0x212   : > { %v1108_v44 = vpop.permute.xlu1 %1107  ;;  %1548 = vrot.lane.b32.xlu1 %v1544_v57, %s5782_s6  ;;  %v1193_v6 = vadd.f32 %v1188_v41, %v1179_v63  ;;  %v1375_v41 = vmul.f32 %v4035_v58, %v1373_v46  ;;  %v1443_v46 = vmul.f32 %v4054_v25, %v1441_v13 }
 0x213   : > { %v1098_v26 = vadd.f32 %v1096_v37, %v1092_v24 }
 0x214   : > { %v1199_v15 = vadd.f32 %v1197_v1, %v1193_v6  ;;  %v1497_v1 = vmul.f32 %v4072_v10, %v1495_v39  ;;  %v1584_v39 = vstv %s3111_s25  ;;  %s4452_s25 = sld [smem:[#allocation2 + $0x7f]] }
 0x215   : > { %v1112_v45 = vadd.f32 %v1108_v44, %v1098_v26  ;;  %v1208_v7 = vpop.permute.xlu0 %1207 }
 0x216   : > { %v1122_v52 = vpop.permute.xlu1 %1121  ;;  %v1213_v31 = vadd.f32 %v1208_v7, %v1199_v15  ;;  %v1599_v15 = vmul.f32 %v4083_v38, %v1598_v12 }
 0x217   : > { %v1126_v62 = vadd.f32 %v1122_v52, %v1112_v45 }
 0x219   : > { %v1132_v5 = vadd.f32 %v1130_v8, %v1126_v62  ;;  %v1222_v33 = vpop.permute.xlu0 %1221 }
 0x21a   : > { %v1142_v35 = vpop.permute.xlu1 %1141  ;;  %v1227_v37 = vadd.f32 %v1222_v33, %v1213_v31  ;;  %v1632_v33 = vstv %s3115_s2  ;;  %s4475_s2 = sld [smem:[#allocation2 + $0x82]] }
 0x21b   : > { %v1146_v42 = vadd.f32 %v1142_v35, %v1132_v5  ;;  %v1326_v5 = vmul.f32 %v4136_v21, %v1325_v48  ;;  %v1409_v35 = vmul.f32 %v4043_v59, %v1407_v22  ;;  %v1429_v48 = vmul.f32 %v4054_v25, %v1427_v49 }
 0x21c   : > { %v1231_v24 = vadd.f32 %v1230_v28, %v1227_v37  ;;  %v1477_v22 = vmul.f32 %v4061_v30, %v1475_v23  ;;  %v1634_v37 = vmul.f32 %v4115_v11, %v1632_v33 }
 0x21e   : > { %v1156_v4 = vpop.permute.xlu1 %1155  ;;  %v1233_v55 = vmax.f32 %v1231_v24, 0.0  ;;  %v1666_v24 = vstv %s3118_s11  ;;  %s4486_s11 = sld [smem:[#allocation2 + $0x83]] }
 0x21f   : > { %v1160_v18 = vadd.f32 %v1156_v4, %v1146_v42  ;;  %v1511_v42 = vmul.f32 %v4072_v10, %v1509_v40  ;;  %v1585_v40 = vmul.f32 %v4083_v38, %v1584_v39 }
 0x220   : > { %v1235_v52 = vsel %vm580_vm0, %v1233_v55, 0.0 }
 0x221   : > { %v1166_v2 = vadd.f32 %v1164_v51, %v1160_v18  ;;  %v1545_v51 = vmul.f32 %v4303_v29, %v1543_v47  ;;  %v1586_v18 = vmul.f32 %v4090_v60, %v1584_v39  ;;  %v1319_v39 = vstv %s4414_s15  ;;  %s3100_s15 = sld [smem:[#allocation2 + $0x63]] }
 0x222   : > { %v1176_v17 = vpop.permute.xlu1 %1175 }
 0x223   : > { %v1180_v61 = vadd.f32 %v1176_v17, %v1166_v2  ;;  %v1600_v2 = vmul.f32 %v4090_v60, %v1598_v12  ;;  %v1618_v17 = vstv %s3114_s1  ;;  %s4466_s1 = sld [smem:[#allocation2 + $0x5d]] }
 0x224   : > { %v1619_v31 = vmul.f32 %v4107_v34, %v1618_v17 }
 0x226   : > { %v1190_v57 = vpop.permute.xlu1 %1189 }
 0x227   : > { %v1194_v36 = vadd.f32 %v1190_v57, %v1180_v61 }
 0x229   : > { %v1200_v43 = vadd.f32 %v1198_v32, %v1194_v36  ;;  %v1620_v32 = vmul.f32 %v4115_v11, %v1618_v17  ;;  %v1633_v36 = vmul.f32 %v4107_v34, %v1632_v33  ;;  %v1754_v17 = vstv %s4429_s17  ;;  %s4603_s17 = sld [smem:[#allocation2 + $0x6f]] }
 0x22a   : > { %v1210_v9 = vpop.permute.xlu1 %1209  ;;  %v1768_v33 = vstv %s4440_s26  ;;  %s3143_s26 = sld [smem:[#allocation2 + $0x8c]] }
 0x22b   : > { %v1214_v44 = vadd.f32 %v1210_v9, %v1200_v43 }
 0x22e   : > { %v1224_v26 = vpop.permute.xlu1 %1223 }
 0x22f   : > { %v1228_v53 = vadd.f32 %v1224_v26, %v1214_v44  ;;  %v1667_v26 = vmul.f32 %v4136_v21, %v1666_v24 }
 0x231   : > { %v1232_v45 = vadd.f32 %v1230_v28, %v1228_v53  ;;  %v1652_v28 = vstv %s4375_s10  ;;  %v1253_v53 = vstv %s4383_s23  ;;  %s4489_s23 = sld [smem:[#allocation2 + $0x60]] }
 0x232   : > { %v4331_v6 = vpop.permute.xlu1 %1262  ;;  %v1653_v9 = vmul.f32 %v4136_v21, %v1652_v28  ;;  %v1255_v55 = vmul.f32 %v4090_v60, %v1253_v53  ;;  %s3139_s10 = sld [smem:[#allocation2 + $0x88]] }
 0x233   : > { %v1234_v8 = vmax.f32 %v1232_v45, 0.0  ;;  %v1668_v45 = vmul.f32 %v4026_v16, %v1666_v24  ;;  %v1769_v24 = vmul.f32 %v4211_v27, %v1768_v33 }
 0x235   : > { %v1236_v62 = vsel %vm580_vm0, %v1234_v8, 0.0 }
 0x236   : > { %v1237_v63 = vadd.f32 %v1236_v62, %v1235_v52  ;;  %v1265_v49 = vpop.permute.xlu1 %1264  ;;  %v1686_v52 = vstv %s3120_s9  ;;  %s4497_s9 = sld [smem:[#allocation2 + $0x85]] }
 0x237   : > { %v1269_v62 = vadd.f32 %v1265_v49, %v1255_v55 }
 0x238   : > { %1238 = vadd.xlane.f32.xlu0 %v1237_v63  ;;  %v1687_v63 = vmul.f32 %v4154_v3, %v1686_v52 }
 0x23a   : > { %v4345_v13 = vpop.permute.xlu1 %1276 }
 0x23e   : > { %v1279_v23 = vpop.permute.xlu1 %1278 }
 0x242   : > { %v4359_v4 = vpop.permute.xlu1 %1296 }
 0x246   : > { %v1299_v7 = vpop.permute.xlu1 %1298 }
 0x24a   : > { %v4367_v47 = vpop.permute.xlu1 %1310 }
 0x24e   : > { %1330 = vrot.lane.b32.xlu0 %v1326_v5, %s5781_s0  ;;  %v1313_v61 = vpop.permute.xlu1 %1312  ;;  %v1285_v5 = vstv %s4397_s14  ;;  %s4507_s14 = sld [smem:[#allocation2 + $0x86]] }
 0x252   : > { %1380 = vrot.lane.b32.xlu0 %v1375_v41, %s5782_s6  ;;  %v4377_v57 = vpop.permute.xlu1 %1332  ;;  %v1283_v41 = vadd.f32 %v1279_v23, %v1269_v62 }
 0x256   : > { %1400 = vrot.lane.b32.xlu0 %v1395_v54, %s5781_s0  ;;  %v4385_v43 = vpop.permute.xlu1 %1344  ;;  %v1287_v54 = vmul.f32 %v4115_v11, %v1285_v5 }
 0x25a   : > { %1414 = vrot.lane.b32.xlu0 %v1409_v35, %s5782_s6  ;;  %v4392_v44 = vpop.permute.xlu1 %1346 }
 0x25e   : > { %1434 = vrot.lane.b32.xlu0 %v1429_v48, %s5781_s0  ;;  %v4402_v8 = vpop.permute.xlu1 %1364  ;;  %v1688_v48 = vmul.f32 %v4035_v58, %v1686_v52 }
 0x262   : > { %1448 = vrot.lane.b32.xlu0 %v1443_v46, %s5782_s6  ;;  %v4412_v35 = vpop.permute.xlu1 %1366  ;;  %v1700_v46 = vstv %s4404_s12  ;;  %s3140_s12 = sld [smem:[#allocation2 + $0x89]] }
 0x266   : > { %1468 = vrot.lane.b32.xlu0 %v1463_v56, %s5781_s0  ;;  %v1254_v56 = vmul.f32 %v4083_v38, %v1253_v53  ;;  %v4422_v49 = vpop.permute.xlu1 %1378  ;;  %v1788_v53 = vstv %s4452_s25  ;;  %s4620_s25 = sld [smem:[#allocation2 + $0x8e]] }
 0x26a   : > { %1482 = vrot.lane.b32.xlu0 %v1477_v22, %s5782_s6  ;;  %v1289_v22 = vadd.f32 %v1287_v54, %v1283_v41 }
 0x26c   : > { %v1303_v23 = vadd.f32 %v1299_v7, %v1289_v22 }
 0x26e   : > { %1502 = vrot.lane.b32.xlu0 %v1497_v1, %s5781_s0  ;;  %v1701_v1 = vmul.f32 %v4154_v3, %v1700_v46 }
 0x272   : > { %1516 = vrot.lane.b32.xlu0 %v1511_v42, %s5782_s6  ;;  %v1720_v42 = vstv %s4409_s13  ;;  %s4594_s13 = sld [smem:[#allocation2 + $0x6c]] }
 0x276   : > { %1536 = vrot.lane.b32.xlu0 %v1531_v14, %s5781_s0  ;;  %v1268_v14 = vadd.f32 %v4331_v6, %v1254_v56  ;;  %v1321_v6 = vmul.f32 %v4026_v16, %v1319_v39 }
 0x278   : > { %v1282_v12 = vadd.f32 %v4345_v13, %v1268_v14 }
 0x27a   : > { %1550 = vrot.lane.b32.xlu0 %v1545_v51, %s5782_s6  ;;  %v1721_v51 = vmul.f32 %v4184_v0, %v1720_v42 }
 0x27e   : > { %1589 = vrot.lane.b32.xlu0 %v1585_v40, %s5781_s0  ;;  %v4437_v40 = vpop.permute.xlu1 %1398 }
 0x282   : > { %1591 = vrot.lane.b32.xlu0 %v1586_v18, %s5781_s0  ;;  %v1734_v18 = vstv %s4419_s16  ;;  %s3142_s16 = sld [smem:[#allocation2 + $0x8b]] }
 0x283   : > { %v1735_v7 = vmul.f32 %v4184_v0, %v1734_v18 }
 0x286   : > { %1603 = vrot.lane.b32.xlu0 %v1599_v15, %s5782_s6  ;;  %v1286_v15 = vmul.f32 %v4107_v34, %v1285_v5  ;;  %v1802_v5 = vstv %s4461_s30  ;;  %s4625_s30 = sld [smem:[#allocation2 + $0x72]] }
 0x28a   : > { %1605 = vrot.lane.b32.xlu0 %v1600_v2, %s5782_s6  ;;  %v1317_v2 = vadd.f32 %v1313_v61, %v1303_v23  ;;  %v1755_v61 = vmul.f32 %v4211_v27, %v1754_v17  ;;  %v1803_v23 = vmul.f32 %v4235_v20, %v1802_v5 }
 0x28c   : > { %v1323_v13 = vadd.f32 %v1321_v6, %v1317_v2 }
 0x28e   : > { %1623 = vrot.lane.b32.xlu0 %v1619_v31, %s5781_s0  ;;  %v1288_v31 = vadd.f32 %v1286_v15, %v1282_v12 }
 0x292   : > { %1625 = vrot.lane.b32.xlu0 %v1620_v32, %s5781_s0  ;;  %v4454_v32 = vpop.permute.xlu1 %1412 }
 0x296   : > { %1637 = vrot.lane.b32.xlu0 %v1633_v36, %s5782_s6  ;;  %v1302_v36 = vadd.f32 %v4359_v4, %v1288_v31 }
 0x298   : > { %v1316_v4 = vadd.f32 %v4367_v47, %v1302_v36 }
 0x29a   : > { %1639 = vrot.lane.b32.xlu0 %v1634_v37, %s5782_s6  ;;  %v1337_v37 = vadd.f32 %v4377_v57, %v1323_v13 }
 0x29c   : > { %v1351_v55 = vadd.f32 %v4392_v44, %v1337_v37  ;;  %v1836_v37 = vstv %s4486_s11  ;;  %s3167_s11 = sld [smem:[#allocation2 + $0xa3]] }
 0x29e   : > { %1657 = vrot.lane.b32.xlu0 %v1653_v9, %s5781_s0  ;;  %v1353_v9 = vstv %s4445_s7  ;;  %s3103_s7 = sld [smem:[#allocation2 + $0x66]] }
 0x29f   : > { %v1355_v57 = vmul.f32 %v4035_v58, %v1353_v9  ;;  %v1354_v22 = vmul.f32 %v4154_v3, %v1353_v9 }
 0x2a1   : > { %v1357_v41 = vadd.f32 %v1355_v57, %v1351_v55  ;;  %v1421_v55 = vstv %s4489_s23  ;;  %s3109_s23 = sld [smem:[#allocation5 + $0x3]] }
 0x2a2   : > { %1671 = vrot.lane.b32.xlu0 %v1667_v26, %s5782_s6  ;;  %v4472_v26 = vpop.permute.xlu1 %1432 }
 0x2a6   : > { %1673 = vrot.lane.b32.xlu0 %v1668_v45, %s5782_s6  ;;  %v1320_v45 = vmul.f32 %v4136_v21, %v1319_v39  ;;  %v1447_v56 = vpop.permute.xlu1 %1446  ;;  %v1371_v39 = vadd.f32 %v4412_v35, %v1357_v41 }
 0x2a8   : > { %v1322_v54 = vadd.f32 %v1320_v45, %v1316_v4  ;;  %v1837_v45 = vmul.f32 %v4257_v50, %v1836_v37 }
 0x2aa   : > { %1691 = vrot.lane.b32.xlu0 %v1687_v63, %s5781_s0  ;;  %v1789_v63 = vmul.f32 %v4235_v20, %v1788_v53  ;;  %v1467_v36 = vpop.permute.xlu1 %1466 }
 0x2ae   : > { %1693 = vrot.lane.b32.xlu0 %v1688_v48, %s5781_s0  ;;  %v1387_v48 = vstv %s4466_s1  ;;  %s3106_s1 = sld [smem:[#allocation2 + $0x69]] }
 0x2af   : > { %v1389_v15 = vmul.f32 %v4043_v59, %v1387_v48 }
 0x2b2   : > { %1705 = vrot.lane.b32.xlu0 %v1701_v1, %s5782_s6 }
 0x2b6   : > { %1725 = vrot.lane.b32.xlu0 %v1721_v51, %s5781_s0  ;;  %v1822_v51 = vstv %s4475_s2  ;;  %s3146_s2 = sld [smem:[#allocation2 + $0x8f]] }
 0x2ba   : > { %1739 = vrot.lane.b32.xlu0 %v1735_v7, %s5782_s6 }
 0x2be   : > { %1759 = vrot.lane.b32.xlu0 %v1755_v61, %s5781_s0  ;;  %v1823_v61 = vmul.f32 %v4257_v50, %v1822_v51 }
 0x2c1   : > { %v1239_v52 = vpop.xlane.xlu0 %1238 }
 0x2c2   : > { %v1240_v62 = vrot.slane %v1239_v52, 4  ;;  %1773 = vrot.lane.b32.xlu0 %v1769_v24, %s5782_s6 }
 0x2c4   : > { %v1241_v47 = vadd.f32 %v1240_v62, %v1239_v52  ;;  %v1856_v52 = vstv %s4497_s9  ;;  %s4649_s9 = sld [smem:[#allocation2 + $0x75]] }
 0x2c5   : > { %v1331_v44 = vpop.permute.xlu0 %1330 }
 0x2c6   : > { %v1336_v1 = vadd.f32 %v1331_v44, %v1322_v54  ;;  %v1242_v14 = vrot.slane %v1241_v47, 2  ;;  %1793 = vrot.lane.b32.xlu0 %v1789_v63, %s5781_s0  ;;  %v1422_v44 = vmul.f32 %v4211_v27, %v1421_v55 }
 0x2c8   : > { %v1350_v12 = vadd.f32 %v4385_v43, %v1336_v1  ;;  %v1243_v2 = vadd.f32 %v1242_v14, %v1241_v47  ;;  %v1388_v43 = vmul.f32 %v4184_v0, %v1387_v48  ;;  %v1481_v47 = vpop.permute.xlu1 %1480  ;;  %v1857_v48 = vmul.f32 %v4283_v19, %v1856_v52 }
 0x2c9   : > { %v1381_v6 = vpop.permute.xlu0 %1380 }
 0x2ca   : > { %v1356_v7 = vadd.f32 %v1354_v22, %v1350_v12  ;;  %v1385_v31 = vadd.f32 %v1381_v6, %v1371_v39  ;;  %v1244_v13 = vrot.slane %v1243_v2, 1  ;;  %1807 = vrot.lane.b32.xlu0 %v1803_v23, %s5782_s6  ;;  %v1870_v22 = vstv %s4507_s14  ;;  %s4657_s14 = sld [smem:[#allocation2 + $0xa4]] }
 0x2cb   : > { %v1455_v39 = vstv %s3100_s15  ;;  %s4662_s15 = sld [smem:[#allocation2 + $0xbe]] }
 0x2cc   : > { %v1370_v35 = vadd.f32 %v4402_v8, %v1356_v7  ;;  %v1391_v9 = vadd.f32 %v1389_v15, %v1385_v31  ;;  %v1245_v24 = vadd.f32 %v1244_v13, %v1243_v2  ;;  %v1423_v8 = vmul.f32 %v4054_v25, %v1421_v55  ;;  %v1501_v27 = vpop.permute.xlu1 %1500 }
 0x2cd   : > { %v1401_v4 = vpop.permute.xlu0 %1400  ;;  %v1456_v6 = vmul.f32 %v4235_v20, %v1455_v39  ;;  %v1457_v7 = vmul.f32 %v4061_v30, %v1455_v39 }
 0x2ce   : > { %v1384_v57 = vadd.f32 %v4422_v49, %v1370_v35  ;;  %3230 = vpush %v1245_v24  ;;  %1827 = vrot.lane.b32.xlu0 %v1823_v61, %s5781_s0  ;;  %v1405_v63 = vadd.f32 %v1401_v4, %v1391_v9  ;;  %v1489_v61 = vstv %s3103_s7  ;;  %s4667_s7 = sld [smem:[#allocation2 + $0x78]] }
 0x2cf   : > { %v1490_v55 = vmul.f32 %v4257_v50, %v1489_v61  ;;  %v1491_v20 = vmul.f32 %v4072_v10, %v1489_v61 }
 0x2d0   : > { %v1390_v62 = vadd.f32 %v1388_v43, %v1384_v57  ;;  %v1515_v24 = vpop.permute.xlu1 %1514 }
 0x2d1   : > { %v1415_v41 = vpop.permute.xlu0 %1414 }
 0x2d2   : > { %v1404_v54 = vadd.f32 %v4437_v40, %v1390_v62  ;;  %v1419_v49 = vadd.f32 %v1415_v41, %v1405_v63  ;;  %1841 = vrot.lane.b32.xlu0 %v1837_v45, %s5782_s6  ;;  %v1871_v40 = vmul.f32 %v4283_v19, %v1870_v22  ;;  %v1523_v62 = vstv %s3106_s1  ;;  %s4675_s1 = sld [smem:[#allocation2 + $0xbf]] }
 0x2d3   : > { %v1525_v50 = vmul.f32 %v4303_v29, %v1523_v62 }
 0x2d4   : > { %v1418_v1 = vadd.f32 %v4454_v32, %v1404_v54  ;;  %v1425_v14 = vadd.f32 %v1423_v8, %v1419_v49 }
 0x2d5   : > { %v1435_v23 = vpop.permute.xlu0 %1434 }
 0x2d6   : > { %v1424_v12 = vadd.f32 %v1422_v44, %v1418_v1  ;;  %1861 = vrot.lane.b32.xlu0 %v1857_v48, %s5781_s0  ;;  %v1439_v2 = vadd.f32 %v1435_v23, %v1425_v14  ;;  %v1524_v44 = vmul.f32 %v4283_v19, %v1523_v62  ;;  %v4608_v62 = vld [vmem:[%s3574_s8] sm:$0xff] }
 0x2d8   : > { %v1438_v15 = vadd.f32 %v4472_v26, %v1424_v12 }
 0x2d9   : > { %v1449_v31 = vpop.permute.xlu0 %1448 }
 0x2da   : > { %v1452_v32 = vadd.f32 %v1447_v56, %v1438_v15  ;;  %v1453_v13 = vadd.f32 %v1449_v31, %v1439_v2  ;;  %1875 = vrot.lane.b32.xlu0 %v1871_v40, %s5782_s6  ;;  %v1535_v56 = vpop.permute.xlu1 %1534  ;;  %v1557_v15 = vstv %s3109_s23  ;;  %s4684_s23 = sld [smem:[#allocation2 + $0xa6]] }
 0x2dc   : > { %v1458_v43 = vadd.f32 %v1456_v6, %v1452_v32  ;;  %v1459_v35 = vadd.f32 %v1457_v7, %v1453_v13 }
 0x2dd   : > { %v1469_v9 = vpop.permute.xlu0 %1468 }
 0x2de   : > { %v1472_v4 = vadd.f32 %v1467_v36, %v1458_v43  ;;  %v1473_v57 = vadd.f32 %v1469_v9, %v1459_v35  ;;  %v1549_v14 = vpop.permute.xlu1 %1548  ;;  %v1654_v9 = vmul.f32 %v4026_v16, %v1652_v28  ;;  %v1756_v16 = vmul.f32 %v4054_v25, %v1754_v17 }
 0x2df   : > { %v1790_v28 = vmul.f32 %v4061_v30, %v1788_v53  ;;  %v1872_v53 = vmul.f32 %v4303_v29, %v1870_v22  ;;  %v1580_v22 = vstv %s4594_s13  ;;  %s4708_s13 = sld [smem:[#allocation2 + $0xc1]] }
 0x2e0   : > { %v1486_v26 = vadd.f32 %v1481_v47, %v1472_v4  ;;  %v1722_v4 = vmul.f32 %v4043_v59, %v1720_v42 }
 0x2e1   : > { %v1483_v45 = vpop.permute.xlu0 %1482 }
 0x2e2   : > { %v1492_v63 = vadd.f32 %v1490_v55, %v1486_v26  ;;  %v1487_v8 = vadd.f32 %v1483_v45, %v1473_v57  ;;  %v1736_v55 = vmul.f32 %v4043_v59, %v1734_v18  ;;  %v1804_v59 = vmul.f32 %v4061_v30, %v1802_v5 }
 0x2e3   : > { %v1824_v18 = vmul.f32 %v4072_v10, %v1822_v51  ;;  %v1911_v5 = vstv %s3139_s10  ;;  %s4695_s10 = sld [smem:[#allocation2 + $0xa7]] }
 0x2e4   : > { %v1506_v41 = vadd.f32 %v1501_v27, %v1492_v63  ;;  %v1493_v54 = vadd.f32 %v1491_v20, %v1487_v8  ;;  %v1945_v20 = vstv %s3142_s16  ;;  %v1581_v63 = vmul.f32 %v4608_v62, %v1580_v22  ;;  %s4719_s16 = sld [smem:[#allocation2 + $0xc2]] }
 0x2e5   : > { %v1503_v49 = vpop.permute.xlu0 %1502 }
 0x2e6   : > { %v1520_v48 = vadd.f32 %v1515_v24, %v1506_v41  ;;  %v1507_v1 = vadd.f32 %v1503_v49, %v1493_v54  ;;  %v1702_v24 = vmul.f32 %v4035_v58, %v1700_v46  ;;  %v1770_v58 = vmul.f32 %v4054_v25, %v1768_v33 }
 0x2e7   : > { %v1838_v25 = vmul.f32 %v4072_v10, %v1836_v37  ;;  %v1858_v33 = vmul.f32 %v4303_v29, %v1856_v52  ;;  %v1912_v10 = vmul.f32 %v4083_v38, %v1911_v5  ;;  %v1913_v37 = vmul.f32 %v4090_v60, %v1911_v5 }
 0x2e8   : > { %v1526_v36 = vadd.f32 %v1524_v44, %v1520_v48  ;;  %v1925_v52 = vstv %s3140_s12  ;;  %v1959_v54 = vstv %s3143_s26  ;;  %v4629_v48 = vld [vmem:[%s3574_s8 + $0x1] sm:$0xff]  ;;  %s4701_s12 = sld [smem:[#allocation2 + $0x7b]] }
 0x2e9   : > { %v1517_v47 = vpop.permute.xlu0 %1516  ;;  %v1926_v29 = vmul.f32 %v4083_v38, %v1925_v52  ;;  %v1927_v57 = vmul.f32 %v4090_v60, %v1925_v52  ;;  %v1946_v38 = vmul.f32 %v4107_v34, %v1945_v20  ;;  %v1947_v60 = vmul.f32 %v4115_v11, %v1945_v20  ;;  %s4736_s26 = sld [smem:[#allocation2 + $0x7e]] }
 0x2ea   : > { %v1540_v23 = vadd.f32 %v1535_v56, %v1526_v36  ;;  %v1521_v39 = vadd.f32 %v1517_v47, %v1507_v1  ;;  %v1612_v56 = vstv %s4603_s17  ;;  %v1960_v1 = vmul.f32 %v4629_v48, %v1959_v54  ;;  %s4727_s17 = sld [smem:[#allocation2 + $0xa9]] }
 0x2eb   : > { %v1613_v49 = vmul.f32 %v4107_v34, %v1612_v56  ;;  %v1979_v47 = vstv %s4620_s25  ;;  %s4986_s25 = sld [smem:[#allocation2 + $0xce]] }
 0x2ec   : > { %v1554_v12 = vadd.f32 %v1549_v14, %v1540_v23  ;;  %v1527_v40 = vadd.f32 %v1525_v50, %v1521_v39  ;;  %v4634_v50 = vld [vmem:[%s3574_s8 + $0x9] sm:$0xff]  ;;  %v1646_v23 = vstv %s4625_s30  ;;  %s4771_s30 = sld [smem:[#allocation2 + $0x91]] }
 0x2ed   : > { %v1537_v27 = vpop.permute.xlu0 %1536  ;;  %v1961_v34 = vmul.f32 %v4634_v50, %v1959_v54  ;;  %v4731_v54 = vld [vmem:[%s3574_s8 + $0x1a] sm:$0xff] }
 0x2ee   : > { %v1558_v2 = vadd.f32 %v1557_v15, %v1554_v12  ;;  %v1541_v19 = vadd.f32 %v1537_v27, %v1527_v40  ;;  %v4641_v12 = vld [vmem:[%s3574_s8 + $0xa] sm:$0xff] }
 0x2ef   : > { %v1981_v40 = vmul.f32 %v4641_v12, %v1979_v47 }
 0x2f0   : > { %v1560_v31 = vmax.f32 %v1558_v2, 0.0  ;;  %v1647_v2 = vmul.f32 %v4136_v21, %v1646_v23 }
 0x2f1   : > { %v1551_v6 = vpop.permute.xlu0 %1550  ;;  %5786 = sst [smem:[#allocation24_spill]] %s4986_s25 }
 0x2f2   : > { %v1555_v7 = vadd.f32 %v1551_v6, %v1541_v19  ;;  %v1562_v61 = vsel %vm580_vm0, %v1560_v31, 0.0 }
 0x2f4   : > { %v1559_v32 = vadd.f32 %v1557_v15, %v1555_v7  ;;  %v1993_v15 = vstv %s3146_s2  ;;  %s4743_s2 = sld [smem:[#allocation2 + $0xaa]] }
 0x2f5   : > { %v1590_v46 = vpop.permute.xlu0 %1589  ;;  %v1994_v19 = vmul.f32 %v4136_v21, %v1993_v15  ;;  %v1995_v31 = vmul.f32 %v4641_v12, %v1993_v15  ;;  %v2306_v15 = vstv %s4727_s17  ;;  %s5102_s17 = sld [smem:[#allocation2 + $0xb8]] }
 0x2f6   : > { %v1561_v13 = vmax.f32 %v1559_v32, 0.0  ;;  %v1595_v8 = vadd.f32 %v1590_v46, %v1581_v63  ;;  %v2238_v32 = vstv %s3167_s11  ;;  %s4754_s11 = sld [smem:[#allocation2 + $0xc4]] }
 0x2f7   : > { %v2239_v21 = vmul.f32 %v4608_v62, %v2238_v32 }
 0x2f8   : > { %v1563_v43 = vsel %vm580_vm0, %v1561_v13, 0.0 }
 0x2f9   : > { %v1564_v35 = vadd.f32 %v1563_v43, %v1562_v61  ;;  %v4573_v42 = vpop.permute.xlu0 %1591  ;;  %v1680_v61 = vstv %s4649_s9  ;;  %s4787_s9 = sld [smem:[#allocation2 + $0xc5]] }
 0x2fb   : > { %1565 = vadd.xlane.f32.xlu1 %v1564_v35 }
 0x2fd   : > { %v1604_v17 = vpop.permute.xlu0 %1603 }
 0x2fe   : > { %v1609_v44 = vadd.f32 %v1604_v17, %v1595_v8  ;;  %v2599_v8 = vstv %s4708_s13  ;;  %s5074_s13 = sld [smem:[#allocation2 + $0xd1]] }
 0x300   : > { %v1615_v36 = vadd.f32 %v1613_v49, %v1609_v44  ;;  %v2600_v49 = vmul.f32 %v4629_v48, %v2599_v8 }
 0x301   : > { %v4586_v30 = vpop.permute.xlu0 %1605 }
 0x304   : > { %5789 = sst [smem:[#allocation27_spill]] %s5074_s13 }
 0x305   : > { %v1624_v51 = vpop.permute.xlu0 %1623 }
 0x306   : > { %v1629_v14 = vadd.f32 %v1624_v51, %v1615_v36 }
 0x309   : > { %v4598_v26 = vpop.permute.xlu0 %1625 }
 0x30c   : > { %1659 = vrot.lane.b32.xlu1 %v1654_v9, %s5781_s0  ;;  %v1681_v9 = vmul.f32 %v4154_v3, %v1680_v61 }
 0x30d   : > { %v1638_v45 = vpop.permute.xlu0 %1637 }
 0x30e   : > { %v1643_v27 = vadd.f32 %v1638_v45, %v1629_v14 }
 0x310   : > { %1707 = vrot.lane.b32.xlu1 %v1702_v24, %s5782_s6  ;;  %v1649_v7 = vadd.f32 %v1647_v2, %v1643_v27  ;;  %v4671_v24 = vld [vmem:[%s3574_s8 + $0x8] sm:$0xff] }
 0x311   : > { %v4616_v41 = vpop.permute.xlu0 %1639  ;;  %v1582_v46 = vmul.f32 %v4671_v24, %v1580_v22 }
 0x314   : > { %1727 = vrot.lane.b32.xlu1 %v1722_v4, %s5781_s0  ;;  %v2240_v4 = vmul.f32 %v4671_v24, %v2238_v32 }
 0x315   : > { %v1658_v11 = vpop.permute.xlu0 %1657 }
 0x316   : > { %v1663_v13 = vadd.f32 %v1658_v11, %v1649_v7 }
 0x318   : > { %1741 = vrot.lane.b32.xlu1 %v1736_v55, %s5782_s6  ;;  %v2252_v55 = vstv %s4657_s14  ;;  %s4999_s14 = sld [smem:[#allocation2 + $0x9b]] }
 0x319   : > { %v1672_v39 = vpop.permute.xlu0 %1671  ;;  %v2253_v3 = vmul.f32 %v4608_v62, %v2252_v55 }
 0x31a   : > { %v1677_v35 = vadd.f32 %v1672_v39, %v1663_v13 }
 0x31c   : > { %1761 = vrot.lane.b32.xlu1 %v1756_v16, %s5781_s0 }
 0x31d   : > { %v4653_v6 = vpop.permute.xlu0 %1673 }
 0x320   : > { %1775 = vrot.lane.b32.xlu1 %v1770_v58, %s5782_s6  ;;  %v1683_v58 = vadd.f32 %v1681_v9, %v1677_v35  ;;  %v2320_v9 = vstv %s4743_s2  ;;  %s5119_s2 = sld [smem:[#allocation2 + $0xb9]] }
 0x321   : > { %v1692_v43 = vpop.permute.xlu0 %1691 }
 0x324   : > { %1795 = vrot.lane.b32.xlu1 %v1790_v28, %s5781_s0  ;;  %v2565_v28 = vstv %s4662_s15  ;;  %s5012_s15 = sld [smem:[#allocation2 + $0xb5]] }
 0x325   : > { %v4677_v16 = vpop.permute.xlu0 %1693  ;;  %v2566_v17 = vmul.f32 %v4608_v62, %v2565_v28 }
 0x328   : > { %1809 = vrot.lane.b32.xlu1 %v1804_v59, %s5782_s6  ;;  %v1697_v59 = vadd.f32 %v1692_v43, %v1683_v58  ;;  %v4765_v43 = vld [vmem:[%s3574_s8 + $0x20] sm:$0xff]  ;;  %v4774_v58 = vld [vmem:[%s3574_s8 + $0x30] sm:$0xff] }
 0x32c   : > { %1829 = vrot.lane.b32.xlu1 %v1824_v18, %s5781_s0  ;;  %v1706_v18 = vpop.permute.xlu0 %1705 }
 0x32d   : > { %v1711_v5 = vadd.f32 %v1706_v18, %v1697_v59 }
 0x330   : > { %1843 = vrot.lane.b32.xlu1 %v1838_v25, %s5782_s6  ;;  %v1714_v25 = vstv %s4667_s7  ;;  %v1726_v52 = vpop.permute.xlu0 %1725  ;;  %s4818_s7 = sld [smem:[#allocation2 + $0xac]] }
 0x334   : > { %1863 = vrot.lane.b32.xlu1 %v1858_v33, %s5781_s0  ;;  %v2579_v33 = vstv %s4675_s1  ;;  %v1740_v63 = vpop.permute.xlu0 %1739  ;;  %s5027_s1 = sld [smem:[#allocation2 + $0xb6]] }
 0x335   : > { %v2580_v51 = vmul.f32 %v4608_v62, %v2579_v33 }
 0x338   : > { %1877 = vrot.lane.b32.xlu1 %v1872_v53, %s5782_s6  ;;  %v1596_v53 = vadd.f32 %v4573_v42, %v1582_v46  ;;  %v1760_v11 = vpop.permute.xlu0 %1759 }
 0x33a   : > { %v1610_v42 = vadd.f32 %v4586_v30, %v1596_v53  ;;  %v1748_v30 = vstv %s4701_s12  ;;  %s4831_s12 = sld [smem:[#allocation2 + $0xad]] }
 0x33b   : > { %v1749_v44 = vmul.f32 %v4731_v54, %v1748_v30  ;;  %5787 = sst [smem:[#allocation25_spill]] %s5027_s1 }
 0x33c   : > { %1916 = vrot.lane.b32.xlu1 %v1912_v10, %s5781_s0  ;;  %v1715_v10 = vmul.f32 %v4184_v0, %v1714_v25 }
 0x33e   : > { %v1717_v0 = vadd.f32 %v1715_v10, %v1711_v5  ;;  %v2633_v5 = vstv %s4754_s11  ;;  %s5130_s11 = sld [smem:[#allocation2 + $0xd3]] }
 0x340   : > { %1918 = vrot.lane.b32.xlu1 %v1913_v37, %s5781_s0  ;;  %v2272_v37 = vstv %s4684_s23  ;;  %v1731_v45 = vadd.f32 %v1726_v52, %v1717_v0  ;;  %v4791_v52 = vld [vmem:[%s3574_s8 + $0x21] sm:$0xff]  ;;  %s5040_s23 = sld [smem:[#allocation2 + $0xd0]] }
 0x341   : > { %v2273_v22 = vmul.f32 %v4629_v48, %v2272_v37 }
 0x344   : > { %1930 = vrot.lane.b32.xlu1 %v1926_v29, %s5782_s6  ;;  %v1614_v29 = vmul.f32 %v4634_v50, %v1612_v56  ;;  %5790 = sst [smem:[#allocation28_spill]] %s5130_s11 }
 0x346   : > { %v1616_v20 = vadd.f32 %v1614_v29, %v1610_v42  ;;  %v1716_v42 = vmul.f32 %v4791_v52, %v1714_v25  ;;  %5788 = sst [smem:[#allocation26_spill]] %s5040_s23 }
 0x348   : > { %1932 = vrot.lane.b32.xlu1 %v1927_v57, %s5782_s6  ;;  %v2286_v57 = vstv %s4695_s10  ;;  %v1630_v56 = vadd.f32 %v4598_v26, %v1616_v20  ;;  %s5059_s10 = sld [smem:[#allocation2 + $0x9d]] }
 0x34a   : > { %v1644_v26 = vadd.f32 %v4616_v41, %v1630_v56 }
 0x34c   : > { %1950 = vrot.lane.b32.xlu1 %v1946_v38, %s5781_s0  ;;  %v2287_v38 = vmul.f32 %v4629_v48, %v2286_v57 }
 0x350   : > { %1952 = vrot.lane.b32.xlu1 %v1947_v60, %s5781_s0  ;;  %v1745_v60 = vadd.f32 %v1740_v63, %v1731_v45 }
 0x352   : > { %v1751_v36 = vadd.f32 %v1749_v44, %v1745_v60  ;;  %v4806_v60 = vld [vmem:[%s3574_s8 + $0x18] sm:$0xff] }
 0x354   : > { %1964 = vrot.lane.b32.xlu1 %v1960_v1, %s5782_s6  ;;  %v2613_v1 = vstv %s4719_s16  ;;  %v1765_v41 = vadd.f32 %v1760_v11, %v1751_v36  ;;  %v4812_v11 = vld [vmem:[%s3574_s8 + $0x22] sm:$0xff]  ;;  %v2647_v36 = vstv %s4787_s9  ;;  %s5077_s16 = sld [smem:[#allocation2 + $0xc0]] }
 0x355   : > { %v2614_v39 = vmul.f32 %v4629_v48, %v2613_v1  ;;  %s5158_s9 = sld [smem:[#allocation2 + $0xd4]] }
 0x358   : > { %1966 = vrot.lane.b32.xlu1 %v1961_v34, %s5782_s6  ;;  %v1648_v34 = vmul.f32 %v4641_v12, %v1646_v23  ;;  %v1782_v23 = vstv %s4736_s26  ;;  %s4852_s26 = sld [smem:[#allocation2 + $0x94]] }
 0x35a   : > { %v1650_v2 = vadd.f32 %v1648_v34, %v1644_v26  ;;  %v1750_v26 = vmul.f32 %v4812_v11, %v1748_v30 }
 0x35b   : > { %5791 = sst [smem:[#allocation29_spill]] %s5158_s9 }
 0x35c   : > { %1986 = vrot.lane.b32.xlu1 %v1981_v40, %s5781_s0 }
 0x360   : > { %1998 = vrot.lane.b32.xlu1 %v1994_v19, %s5782_s6  ;;  %v1774_v19 = vpop.permute.xlu0 %1773 }
 0x364   : > { %2000 = vrot.lane.b32.xlu1 %v1995_v31, %s5782_s6  ;;  %v4759_v31 = vld [vmem:[%s3574_s8 + $0x2] sm:$0xff]  ;;  %v1794_v10 = vpop.permute.xlu0 %1793 }
 0x365   : > { %v2307_v32 = vmul.f32 %v4759_v31, %v2306_v15  ;;  %v2648_v30 = vmul.f32 %v4759_v31, %v2647_v36 }
 0x368   : > { %2243 = vrot.lane.b32.xlu1 %v2239_v21, %s5781_s0  ;;  %v1682_v21 = vmul.f32 %v4765_v43, %v1680_v61  ;;  %v2321_v61 = vmul.f32 %v4759_v31, %v2320_v9  ;;  %v1808_v25 = vpop.permute.xlu0 %1807 }
 0x36c   : > { %2245 = vrot.lane.b32.xlu1 %v2240_v4, %s5781_s0  ;;  %v1779_v4 = vadd.f32 %v1774_v19, %v1765_v41  ;;  %v1828_v19 = vpop.permute.xlu0 %1827 }
 0x370   : > { %2257 = vrot.lane.b32.xlu1 %v2253_v3, %s5782_s6  ;;  %v1783_v3 = vmul.f32 %v4774_v58, %v1782_v23 }
 0x374   : > { %2570 = vrot.lane.b32.xlu1 %v2566_v17, %s5781_s0 }
 0x378   : > { %2584 = vrot.lane.b32.xlu1 %v2580_v51, %s5782_s6  ;;  %v1785_v51 = vadd.f32 %v1783_v3, %v1779_v4 }
 0x37a   : > { %v1799_v45 = vadd.f32 %v1794_v10, %v1785_v51  ;;  %v2354_v10 = vstv %s4831_s12  ;;  %s5197_s12 = sld [smem:[#allocation2 + $0xbc]] }
 0x37c   : > { %2277 = vrot.lane.b32.xlu1 %v2273_v22, %s5781_s0  ;;  %v2634_v22 = vmul.f32 %v4759_v31, %v2633_v5  ;;  %v1813_v34 = vadd.f32 %v1808_v25, %v1799_v45  ;;  %v2355_v45 = vmul.f32 %v4806_v60, %v2354_v10  ;;  %v2667_v25 = vstv %s4844_s24  ;;  %s5210_s24 = sld [smem:[#allocation2 + $0xd6]] }
 0x380   : > { %2291 = vrot.lane.b32.xlu1 %v2287_v38, %s5782_s6  ;;  %v1816_v38 = vstv %s4780_s27  ;;  %s4824_s27 = sld [smem:[#allocation2 + $0x84]] }
 0x384   : > { %v1566_v14 = vpop.xlane.xlu1 %1565  ;;  %2604 = vrot.lane.b32.xlu1 %v2600_v49, %s5781_s0 }
 0x385   : > { %v1567_v40 = vrot.slane %v1566_v14, 4 }
 0x387   : > { %v1568_v27 = vadd.f32 %v1567_v40, %v1566_v14  ;;  %v4821_v14 = vld [vmem:[%s3574_s8 + $0x31] sm:$0xff] }
 0x388   : > { %v1660_v7 = vpop.permute.xlu1 %1659  ;;  %2618 = vrot.lane.b32.xlu1 %v2614_v39, %s5782_s6  ;;  %v1817_v39 = vmul.f32 %v4821_v14, %v1816_v38 }
 0x389   : > { %v1664_v13 = vadd.f32 %v1660_v7, %v1650_v2  ;;  %v1569_v35 = vrot.slane %v1568_v27, 2  ;;  %v2027_v2 = vstv %s4801_s20  ;;  %s5173_s20 = sld [smem:[#allocation2 + $0xa1]] }
 0x38a   : > { %v1819_v7 = vadd.f32 %v1817_v39, %v1813_v34  ;;  %v2028_v4 = vmul.f32 %v4806_v60, %v2027_v2  ;;  %v2047_v34 = vstv %s4852_s26  ;;  %s5227_s26 = sld [smem:[#allocation2 + $0xd7]] }
 0x38b   : > { %v1678_v46 = vadd.f32 %v4653_v6, %v1664_v13  ;;  %v1570_v59 = vadd.f32 %v1569_v35, %v1568_v27  ;;  %v4834_v13 = vld [vmem:[%s3574_s8 + $0x38] sm:$0xff] }
 0x38c   : > { %v1708_v18 = vpop.permute.xlu1 %1707  ;;  %2311 = vrot.lane.b32.xlu1 %v2307_v32, %s5781_s0 }
 0x38d   : > { %v1684_v17 = vadd.f32 %v1682_v21, %v1678_v46  ;;  %v1571_v53 = vrot.slane %v1570_v59, 1  ;;  %v1784_v21 = vmul.f32 %v4834_v13, %v1782_v23  ;;  %v2340_v46 = vstv %s4818_s7  ;;  %s5184_s7 = sld [smem:[#allocation2 + $0xbb]] }
 0x38e   : > { %v2341_v23 = vmul.f32 %v4806_v60, %v2340_v46 }
 0x38f   : > { %v1698_v6 = vadd.f32 %v4677_v16, %v1684_v17  ;;  %v1572_v29 = vadd.f32 %v1571_v53, %v1570_v59  ;;  %v2013_v16 = vstv %s4771_s30  ;;  %v1833_v59 = vadd.f32 %v1828_v19, %v1819_v7  ;;  %v4884_v7 = vld [vmem:[%s3574_s8 + $0x19] sm:$0xff]  ;;  %s5147_s30 = sld [smem:[#allocation2 + $0xa0]] }
 0x390   : > { %v1728_v0 = vpop.permute.xlu1 %1727  ;;  %2325 = vrot.lane.b32.xlu1 %v2321_v61, %s5782_s6  ;;  %v2014_v44 = vmul.f32 %v4806_v60, %v2013_v16  ;;  %v1842_v61 = vpop.permute.xlu0 %1841  ;;  %v1850_v17 = vstv %s4824_s27  ;;  %s4867_s27 = sld [smem:[#allocation2 + $0xc8]] }
 0x391   : > { %v1712_v20 = vadd.f32 %v1708_v18, %v1698_v6  ;;  %3232 = vpush %v1572_v29  ;;  %v1847_v51 = vadd.f32 %v1842_v61, %v1833_v59  ;;  %v4855_v6 = vld [vmem:[%s3574_s8 + $0x32] sm:$0xff]  ;;  %v1884_v59 = vstv %s4869_s29  ;;  %s4905_s29 = sld [smem:[#allocation2 + $0xca]] }
 0x393   : > { %v1718_v63 = vadd.f32 %v1716_v42, %v1712_v20  ;;  %v1851_v42 = vmul.f32 %v4855_v6, %v1850_v17 }
 0x394   : > { %v1742_v56 = vpop.permute.xlu1 %1741  ;;  %2638 = vrot.lane.b32.xlu1 %v2634_v22, %s5781_s0 }
 0x395   : > { %v1732_v49 = vadd.f32 %v1728_v0, %v1718_v63  ;;  %v4859_v0 = vld [vmem:[%s3574_s8 + $0x39] sm:$0xff] }
 0x396   : > { %v1818_v22 = vmul.f32 %v4859_v0, %v1816_v38 }
 0x397   : > { %v1746_v40 = vadd.f32 %v1742_v56, %v1732_v49  ;;  %v1862_v56 = vpop.permute.xlu0 %1861 }
 0x398   : > { %v1762_v41 = vpop.permute.xlu1 %1761  ;;  %2018 = vrot.lane.b32.xlu1 %v2014_v44, %s5781_s0  ;;  %v1853_v44 = vadd.f32 %v1851_v42, %v1847_v51 }
 0x399   : > { %v1752_v27 = vadd.f32 %v1750_v26, %v1746_v40  ;;  %v2668_v26 = vmul.f32 %v4806_v60, %v2667_v25 }
 0x39a   : > { %v1867_v39 = vadd.f32 %v1862_v56, %v1853_v44 }
 0x39b   : > { %v1766_v32 = vadd.f32 %v1762_v41, %v1752_v27  ;;  %v4879_v41 = vld [vmem:[%s3574_s8 + $0x3a] sm:$0xff]  ;;  %v1876_v27 = vpop.permute.xlu0 %1875  ;;  %s4961_s8 = sld [smem:[#allocation2 + $0xcd]] }
 0x39c   : > { %v1776_v35 = vpop.permute.xlu1 %1775  ;;  %2652 = vrot.lane.b32.xlu1 %v2648_v30, %s5782_s6  ;;  %v1852_v30 = vmul.f32 %v4879_v41, %v1850_v17  ;;  %v2061_v17 = vstv %s4876_s18  ;;  %s5261_s18 = sld [smem:[#allocation2 + $0xae]] }
 0x39d   : > { %v1780_v3 = vadd.f32 %v1776_v35, %v1766_v32  ;;  %v2048_v32 = vmul.f32 %v4884_v7, %v2047_v34  ;;  %v2681_v35 = vstv %s4867_s27  ;;  %v2062_v42 = vmul.f32 %v4884_v7, %v2061_v17  ;;  %s5277_s27 = sld [smem:[#allocation2 + $0xc9]] }
 0x39e   : > { %v2682_v61 = vmul.f32 %v4806_v60, %v2681_v35 }
 0x39f   : > { %v1786_v18 = vadd.f32 %v1784_v21, %v1780_v3 }
 0x3a0   : > { %v1796_v53 = vpop.permute.xlu1 %1795  ;;  %2032 = vrot.lane.b32.xlu1 %v2028_v4, %s5782_s6  ;;  %v1881_v4 = vadd.f32 %v1876_v27, %v1867_v39  ;;  %v2701_v27 = vstv %s4905_s29  ;;  %s5280_s29 = sld [smem:[#allocation2 + $0x8a]] }
 0x3a1   : > { %v1800_v29 = vadd.f32 %v1796_v53, %v1786_v18  ;;  %5784 = sst [smem:[#allocation22_spill]] %s4961_s8 }
 0x3a2   : > { %v1885_v53 = vadd.f32 %v1884_v59, %v1881_v4 }
 0x3a4   : > { %v1810_v20 = vpop.permute.xlu1 %1809  ;;  %2345 = vrot.lane.b32.xlu1 %v2341_v23, %s5781_s0 }
 0x3a5   : > { %v1814_v63 = vadd.f32 %v1810_v20, %v1800_v29  ;;  %v1887_v20 = vmax.f32 %v1885_v53, 0.0  ;;  %v2095_v53 = vstv %s4934_s19  ;;  %s4973_s19 = sld [smem:[#allocation2 + $0x9a]] }
 0x3a7   : > { %v1820_v49 = vadd.f32 %v1818_v22, %v1814_v63  ;;  %v2374_v22 = vstv %s4890_s21  ;;  %s5263_s21 = sld [smem:[#allocation2 + $0x87]] }
 0x3a8   : > { %v1830_v38 = vpop.permute.xlu1 %1829  ;;  %2359 = vrot.lane.b32.xlu1 %v2355_v45, %s5782_s6  ;;  %v2375_v56 = vmul.f32 %v4884_v7, %v2374_v22 }
 0x3a9   : > { %v1834_v40 = vadd.f32 %v1830_v38, %v1820_v49  ;;  %v2388_v49 = vstv %s4898_s5  ;;  %v1889_v38 = vsel %vm580_vm0, %v1887_v20, 0.0  ;;  %v1980_v20 = vmul.f32 %v4759_v31, %v1979_v47 }
 0x3ab   : > { %5785 = sst [smem:[#allocation23_spill]] %s4973_s19 }
 0x3ac   : > { %v1844_v19 = vpop.permute.xlu1 %1843  ;;  %2672 = vrot.lane.b32.xlu1 %v2668_v26, %s5781_s0  ;;  %s5794_s5 = sld [smem:[#allocation23_spill]] }
 0x3ad   : > { %v1848_v21 = vadd.f32 %v1844_v19, %v1834_v40 }
 0x3af   : > { %v1854_v3 = vadd.f32 %v1852_v30, %v1848_v21  ;;  %v2389_v30 = vmul.f32 %v4884_v7, %v2388_v49  ;;  %v2081_v21 = vstv %s4914_s28  ;;  %s5312_s28 = sld [smem:[#allocation2 + $0x8d]] }
 0x3b0   : > { %v1864_v18 = vpop.permute.xlu1 %1863  ;;  %2052 = vrot.lane.b32.xlu1 %v2048_v32, %s5781_s0  ;;  %v2702_v32 = vmul.f32 %v4884_v7, %v2701_v27 }
 0x3b1   : > { %v1868_v23 = vadd.f32 %v1864_v18, %v1854_v3  ;;  %v2082_v3 = vmul.f32 %v4731_v54, %v2081_v21 }
 0x3b4   : > { %v1878_v51 = vpop.permute.xlu1 %1877  ;;  %2686 = vrot.lane.b32.xlu1 %v2682_v61, %s5782_s6 }
 0x3b5   : > { %v1882_v29 = vadd.f32 %v1878_v51, %v1868_v23  ;;  %v2096_v51 = vmul.f32 %v4731_v54, %v2095_v53 }
 0x3b7   : > { %v1886_v45 = vadd.f32 %v1884_v59, %v1882_v29  ;;  %v2715_v59 = vstv %s4925_s22  ;;  %s5338_s22 = sld [smem:[#allocation2 + $0x93]] }
 0x3b8   : > { %v4907_v63 = vpop.permute.xlu1 %1916  ;;  %2066 = vrot.lane.b32.xlu1 %v2062_v42, %s5782_s6  ;;  %v2716_v61 = vmul.f32 %v4884_v7, %v2715_v59  ;;  %v2408_v42 = vstv %s4943_s4  ;;  %s5795_s4 = sld [smem:[#allocation24_spill]] }
 0x3b9   : > { %v1888_v44 = vmax.f32 %v1886_v45, 0.0  ;;  %v2409_v45 = vmul.f32 %v4731_v54, %v2408_v42 }
 0x3bb   : > { %v1890_v26 = vsel %vm580_vm0, %v1888_v44, 0.0 }
 0x3bc   : > { %v4918_v39 = vpop.permute.xlu1 %1918  ;;  %v1891_v40 = vadd.f32 %v1890_v26, %v1889_v38  ;;  %2379 = vrot.lane.b32.xlu1 %v2375_v56, %s5781_s0  ;;  %v2422_v56 = vstv %s4952_s3  ;;  %v2254_v38 = vmul.f32 %v4671_v24, %v2252_v55  ;;  %v2735_v26 = vstv %s4961_s8  ;;  %s5014_s8 = sld [smem:[#allocation2 + $0xa2]] }
 0x3bd   : > { %v2423_v47 = vmul.f32 %v4731_v54, %v2422_v56  ;;  %v2736_v55 = vmul.f32 %v4731_v54, %v2735_v26  ;;  %s5326_s3 = sld [smem:[#allocation2 + $0x90]] }
 0x3be   : > { %1892 = vadd.xlane.f32.xlu0 %v1891_v40 }
 0x3c0   : > { %v4927_v19 = vpop.permute.xlu1 %1930  ;;  %2393 = vrot.lane.b32.xlu1 %v2389_v30, %s5782_s6  ;;  %v2567_v30 = vmul.f32 %v4671_v24, %v2565_v28 }
 0x3c4   : > { %v4936_v4 = vpop.permute.xlu1 %1932  ;;  %2706 = vrot.lane.b32.xlu1 %v2702_v32, %s5781_s0  ;;  %v5742_v32 = vstv %s4973_s19  ;;  %s5029_s19 = sld [smem:[#allocation2 + $0xbd]] }
 0x3c5   : > { %v2116_v28 = vmul.f32 %v4774_v58, %v5742_v32 }
 0x3c8   : > { %v4945_v18 = vpop.permute.xlu1 %1950  ;;  %2086 = vrot.lane.b32.xlu1 %v2082_v3, %s5781_s0 }
 0x3cc   : > { %v4954_v23 = vpop.permute.xlu1 %1952  ;;  %2720 = vrot.lane.b32.xlu1 %v2716_v61, %s5782_s6  ;;  %v2581_v61 = vmul.f32 %v4671_v24, %v2579_v33  ;;  %v2274_v33 = vmul.f32 %v4634_v50, %v2272_v37  ;;  %v2288_v37 = vmul.f32 %v4634_v50, %v2286_v57  ;;  %v2601_v57 = vmul.f32 %v4634_v50, %v2599_v8 }
 0x3cd   : > { %v2615_v8 = vmul.f32 %v4634_v50, %v2613_v1  ;;  %v2308_v1 = vmul.f32 %v4641_v12, %v2306_v15  ;;  %v2322_v15 = vmul.f32 %v4641_v12, %v2320_v9  ;;  %v2635_v9 = vmul.f32 %v4641_v12, %v2633_v5 }
 0x3ce   : > { %v2015_v5 = vmul.f32 %v4765_v43, %v2013_v16  ;;  %v2649_v16 = vmul.f32 %v4641_v12, %v2647_v36  ;;  %v2029_v12 = vmul.f32 %v4765_v43, %v2027_v2  ;;  %v2342_v2 = vmul.f32 %v4765_v43, %v2340_v46 }
 0x3cf   : > { %v2356_v46 = vmul.f32 %v4765_v43, %v2354_v10  ;;  %v2669_v10 = vmul.f32 %v4765_v43, %v2667_v25  ;;  %v2049_v25 = vmul.f32 %v4791_v52, %v2047_v34  ;;  %v2683_v34 = vmul.f32 %v4765_v43, %v2681_v35 }
 0x3d0   : > { %v4963_v29 = vpop.permute.xlu1 %1964  ;;  %2100 = vrot.lane.b32.xlu1 %v2096_v51, %s5782_s6  ;;  %v5739_v51 = vstv %s4986_s25  ;;  %s5043_s25 = sld [smem:[#allocation2 + $0xa5]]  ;;  %v2063_v35 = vmul.f32 %v4791_v52, %v2061_v17 }
 0x3d4   : > { %v4975_v44 = vpop.permute.xlu1 %1966  ;;  %1984 = vrot.lane.b32.xlu0 %v1980_v20, %s5781_s0  ;;  %2413 = vrot.lane.b32.xlu1 %v2409_v45, %s5781_s0  ;;  %v2750_v45 = vmul.f32 %v4731_v54, %v5739_v51 }
 0x3d6   : > { %v2266_v32 = vstv %s5043_s25 }
 0x3d8   : > { %v4988_v40 = vpop.permute.xlu1 %1986  ;;  %2259 = vrot.lane.b32.xlu0 %v2254_v38, %s5782_s6  ;;  %2427 = vrot.lane.b32.xlu1 %v2423_v47, %s5782_s6  ;;  %v5738_v38 = vstv %s4999_s14 }
 0x3d9   : > { %v2130_v54 = vmul.f32 %v4774_v58, %v5738_v38  ;;  %v2561_v38 = vstv %s5029_s19 }
 0x3dc   : > { %v5001_v3 = vpop.permute.xlu1 %1998  ;;  %2572 = vrot.lane.b32.xlu0 %v2567_v30, %s5781_s0  ;;  %2740 = vrot.lane.b32.xlu1 %v2736_v55, %s5781_s0  ;;  %v5740_v30 = vstv %s5012_s15  ;;  %v5741_v55 = vstv %s5014_s8 }
 0x3e0   : > { %v5016_v20 = vpop.permute.xlu1 %2000  ;;  %2586 = vrot.lane.b32.xlu0 %v2581_v61, %s5782_s6  ;;  %2120 = vrot.lane.b32.xlu1 %v2116_v28, %s5781_s0  ;;  %v2443_v28 = vmul.f32 %v4774_v58, %v5740_v30  ;;  %v2562_v30 = vmul.f32 %v4608_v62, %v2561_v38 }
 0x3e4   : > { %v2244_v47 = vpop.permute.xlu1 %2243  ;;  %2279 = vrot.lane.b32.xlu0 %v2274_v33, %s5781_s0  ;;  %2754 = vrot.lane.b32.xlu1 %v2750_v45, %s5782_s6  ;;  %v2235_v33 = vmul.f32 %v4608_v62, %v5741_v55  ;;  %v5743_v45 = vstv %s5027_s1  ;;  %v2769_v55 = vstv %s5040_s23  ;;  %s5091_s1 = sld [smem:[#allocation2 + $0x9e]] }
 0x3e5   : > { %s5105_s23 = sld [smem:[#allocation2 + $0xa8]] }
 0x3e8   : > { %v5045_v61 = vpop.permute.xlu1 %2245  ;;  %2293 = vrot.lane.b32.xlu0 %v2288_v37, %s5782_s6  ;;  %2134 = vrot.lane.b32.xlu1 %v2130_v54, %s5782_s6  ;;  %v2457_v37 = vmul.f32 %v4774_v58, %v5743_v45  ;;  %v2249_v54 = vadd.f32 %v2244_v47, %v2235_v33  ;;  %v2770_v47 = vmul.f32 %v4774_v58, %v2769_v55  ;;  %v2149_v45 = vstv %s5059_s10  ;;  %s5544_s10 = sld [smem:[#allocation2 + $0xb4]] }
 0x3e9   : > { %v2267_v33 = vmul.f32 %v4629_v48, %v2266_v32 }
 0x3ec   : > { %v2258_v51 = vpop.permute.xlu1 %2257  ;;  %2606 = vrot.lane.b32.xlu0 %v2601_v57, %s5781_s0  ;;  %2447 = vrot.lane.b32.xlu1 %v2443_v28, %s5781_s0 }
 0x3ed   : > { %v2263_v57 = vadd.f32 %v2258_v51, %v2249_v54  ;;  %v2150_v51 = vmul.f32 %v4821_v14, %v2149_v45  ;;  %v2783_v54 = vstv %s5074_s13  ;;  %s5133_s13 = sld [smem:[#allocation2 + $0xc3]] }
 0x3f0   : > { %v2571_v50 = vpop.permute.xlu1 %2570  ;;  %2620 = vrot.lane.b32.xlu0 %v2615_v8, %s5782_s6  ;;  %2461 = vrot.lane.b32.xlu1 %v2457_v37, %s5782_s6  ;;  %v2269_v37 = vadd.f32 %v2267_v33, %v2263_v57  ;;  %v2163_v33 = vstv %s5091_s1  ;;  %s5530_s1 = sld [smem:[#allocation2 + $0x99]] }
 0x3f1   : > { %v2576_v28 = vadd.f32 %v2571_v50, %v2562_v30  ;;  %v2593_v50 = vstv %s5077_s16  ;;  %s5560_s16 = sld [smem:[#allocation2 + $0xcf]] }
 0x3f4   : > { %v2585_v8 = vpop.permute.xlu1 %2584  ;;  %2313 = vrot.lane.b32.xlu0 %v2308_v1, %s5781_s0  ;;  %2774 = vrot.lane.b32.xlu1 %v2770_v47, %s5781_s0  ;;  %v2784_v47 = vmul.f32 %v4774_v58, %v2783_v54  ;;  %v2164_v58 = vmul.f32 %v4821_v14, %v2163_v33 }
 0x3f5   : > { %v2590_v30 = vadd.f32 %v2585_v8, %v2576_v28  ;;  %v2594_v28 = vmul.f32 %v4629_v48, %v2593_v50 }
 0x3f8   : > { %v2278_v1 = vpop.permute.xlu1 %2277  ;;  %2327 = vrot.lane.b32.xlu0 %v2322_v15, %s5782_s6  ;;  %2154 = vrot.lane.b32.xlu1 %v2150_v51, %s5781_s0  ;;  %v2596_v51 = vadd.f32 %v2594_v28, %v2590_v30  ;;  %v2490_v28 = vstv %s5119_s2  ;;  %s5574_s2 = sld [smem:[#allocation2 + $0xb7]] }
 0x3f9   : > { %v2283_v57 = vadd.f32 %v2278_v1, %v2269_v37  ;;  %v5747_v37 = vstv %s5102_s17  ;;  %v2300_v1 = vstv %s5105_s23  ;;  %v2491_v36 = vmul.f32 %v4821_v14, %v2490_v28  ;;  %s5535_s23 = sld [smem:[#allocation2 + $0xcc]] }
 0x3fa   : > { %v2477_v30 = vmul.f32 %v4821_v14, %v5747_v37 }
 0x3fc   : > { %v2292_v8 = vpop.permute.xlu1 %2291  ;;  %2640 = vrot.lane.b32.xlu0 %v2635_v9, %s5781_s0  ;;  %2788 = vrot.lane.b32.xlu1 %v2784_v47, %s5782_s6 }
 0x3fd   : > { %v2297_v15 = vadd.f32 %v2292_v8, %v2283_v57  ;;  %v2301_v57 = vmul.f32 %v4759_v31, %v2300_v1 }
 0x400   : > { %v2605_v9 = vpop.permute.xlu1 %2604  ;;  %2020 = vrot.lane.b32.xlu0 %v2015_v5, %s5781_s0  ;;  %2168 = vrot.lane.b32.xlu1 %v2164_v58, %s5782_s6  ;;  %v2303_v58 = vadd.f32 %v2301_v57, %v2297_v15 }
 0x401   : > { %v2610_v47 = vadd.f32 %v2605_v9, %v2596_v51  ;;  %v2803_v51 = vstv %s5130_s11  ;;  %v2627_v9 = vstv %s5133_s13  ;;  %s5186_s11 = sld [smem:[#allocation2 + $0xab]] }
 0x402   : > { %v2628_v15 = vmul.f32 %v4759_v31, %v2627_v9  ;;  %s5554_s13 = sld [smem:[#allocation2 + $0x9c]] }
 0x404   : > { %v2619_v8 = vpop.permute.xlu1 %2618  ;;  %2654 = vrot.lane.b32.xlu0 %v2649_v16, %s5782_s6  ;;  %2481 = vrot.lane.b32.xlu1 %v2477_v30, %s5781_s0  ;;  %v2804_v16 = vmul.f32 %v4821_v14, %v2803_v51 }
 0x405   : > { %v2624_v5 = vadd.f32 %v2619_v8, %v2610_v47  ;;  %v2183_v47 = vstv %s5147_s30  ;;  %s5591_s30 = sld [smem:[#allocation2 + $0xba]] }
 0x408   : > { %v2312_v37 = vpop.permute.xlu1 %2311  ;;  %2034 = vrot.lane.b32.xlu0 %v2029_v12, %s5782_s6  ;;  %2495 = vrot.lane.b32.xlu1 %v2491_v36, %s5782_s6  ;;  %v2630_v12 = vadd.f32 %v2628_v15, %v2624_v5  ;;  %v2817_v36 = vstv %s5158_s9  ;;  %s5213_s9 = sld [smem:[#allocation2 + $0xc6]] }
 0x409   : > { %v2317_v30 = vadd.f32 %v2312_v37, %v2303_v58  ;;  %v2184_v37 = vmul.f32 %v4855_v6, %v2183_v47  ;;  %v2818_v5 = vmul.f32 %v4821_v14, %v2817_v36  ;;  %v5750_v14 = vstv %s5184_s7 }
 0x40c   : > { %v2326_v57 = vpop.permute.xlu1 %2325  ;;  %2347 = vrot.lane.b32.xlu0 %v2342_v2, %s5781_s0  ;;  %2808 = vrot.lane.b32.xlu1 %v2804_v16, %s5781_s0  ;;  %v2197_v16 = vstv %s5173_s20  ;;  %s5613_s20 = sld [smem:[#allocation2 + $0xd5]] }
 0x40d   : > { %v2331_v8 = vadd.f32 %v2326_v57, %v2317_v30  ;;  %v2198_v15 = vmul.f32 %v4855_v6, %v2197_v16  ;;  %v5751_v57 = vstv %s5186_s11 }
 0x410   : > { %v2639_v58 = vpop.permute.xlu1 %2638  ;;  %2361 = vrot.lane.b32.xlu0 %v2356_v46, %s5782_s6  ;;  %2188 = vrot.lane.b32.xlu1 %v2184_v37, %s5781_s0  ;;  %v2511_v37 = vmul.f32 %v4855_v6, %v5750_v14 }
 0x411   : > { %v2644_v2 = vadd.f32 %v2639_v58, %v2630_v12  ;;  %v2335_v58 = vmul.f32 %v4806_v60, %v5751_v57  ;;  %v2376_v57 = vmul.f32 %v4791_v52, %v2374_v22 }
 0x414   : > { %v5199_v30 = vpop.permute.xlu1 %2018  ;;  %2674 = vrot.lane.b32.xlu0 %v2669_v10, %s5781_s0  ;;  %2822 = vrot.lane.b32.xlu1 %v2818_v5, %s5782_s6  ;;  %v5752_v10 = vstv %s5197_s12 }
 0x418   : > { %v2653_v46 = vpop.permute.xlu1 %2652  ;;  %2054 = vrot.lane.b32.xlu0 %v2049_v25, %s5781_s0  ;;  %2202 = vrot.lane.b32.xlu1 %v2198_v15, %s5782_s6  ;;  %v2337_v25 = vadd.f32 %v2335_v58, %v2331_v8  ;;  %v2837_v15 = vstv %s5210_s24  ;;  %v2390_v58 = vmul.f32 %v4791_v52, %v2388_v49  ;;  %v2703_v49 = vmul.f32 %v4791_v52, %v2701_v27  ;;  %s3227_s24 = spop %3226 }
 0x419   : > { %v2658_v12 = vadd.f32 %v2653_v46, %v2644_v2  ;;  %v2525_v2 = vmul.f32 %v4855_v6, %v5752_v10  ;;  %v2661_v46 = vstv %s5213_s9  ;;  %v2838_v17 = vmul.f32 %v4855_v6, %v2837_v15  ;;  %s5605_s9 = sld [smem:[#allocation5 + $0x5]] }
 0x41a   : > { %v2851_v10 = vstv %s5227_s26  ;;  %s3229_s26 = spop %3228 }
 0x41b   : > { %v2852_v22 = vmul.f32 %v4855_v6, %v2851_v10 }
 0x41c   : > { %v5229_v5 = vpop.permute.xlu1 %2032  ;;  %2688 = vrot.lane.b32.xlu0 %v2683_v34, %s5782_s6  ;;  %2515 = vrot.lane.b32.xlu1 %v2511_v37, %s5781_s0  ;;  %v2662_v37 = vmul.f32 %v4806_v60, %v2661_v46 }
 0x420   : > { %v2346_v14 = vpop.permute.xlu1 %2345  ;;  %2068 = vrot.lane.b32.xlu0 %v2063_v35, %s5782_s6  ;;  %2529 = vrot.lane.b32.xlu1 %v2525_v2, %s5782_s6  ;;  %v2664_v2 = vadd.f32 %v2662_v37, %v2658_v12  ;;  %v2083_v12 = vmul.f32 %v4812_v11, %v2081_v21 }
 0x421   : > { %v2351_v34 = vadd.f32 %v2346_v14, %v2337_v25  ;;  %v2368_v25 = vstv %s5261_s18  ;;  %s593_s18 = smul.f32 0.00390625, %s3227_s24  ;;  %s5815_s24 = sld [smem:[#allocation15_spill]] }
 0x422   : > { %v2369_v21 = vmul.f32 %v4884_v7, %v2368_v25 }
 0x424   : > { %v2360_v8 = vpop.permute.xlu1 %2359  ;;  %2381 = vrot.lane.b32.xlu0 %v2376_v57, %s5781_s0  ;;  %2842 = vrot.lane.b32.xlu1 %v2838_v17, %s5781_s0  ;;  %v1907_v17 = vstv %s5263_s21  ;;  %s3231_s21 = spop %3230 }
 0x425   : > { %v2365_v35 = vadd.f32 %v2360_v8, %v2351_v34  ;;  %v2717_v34 = vmul.f32 %v4791_v52, %v2715_v59  ;;  %v1908_v8 = vmul.f32 %v4608_v62, %v1907_v17  ;;  %v2695_v59 = vstv %s5277_s27  ;;  %s920_s27 = smul.f32 0.00390625, %s3229_s26 }
 0x426   : > { %v2410_v62 = vmul.f32 %v4812_v11, %v2408_v42  ;;  %v2424_v42 = vmul.f32 %v4812_v11, %v2422_v56 }
 0x428   : > { %v2673_v14 = vpop.permute.xlu1 %2672  ;;  %2395 = vrot.lane.b32.xlu0 %v2390_v58, %s5782_s6  ;;  %2856 = vrot.lane.b32.xlu1 %v2852_v22, %s5782_s6  ;;  %v2097_v22 = vmul.f32 %v4812_v11, %v2095_v53 }
 0x429   : > { %v2678_v6 = vadd.f32 %v2673_v14, %v2664_v2  ;;  %v2371_v2 = vadd.f32 %v2369_v21, %v2365_v35  ;;  %v1922_v14 = vadd.f32 %v4907_v63, %v1908_v8 }
 0x42c   : > { %v5270_v57 = vpop.permute.xlu1 %2052  ;;  %2708 = vrot.lane.b32.xlu0 %v2703_v49, %s5781_s0  ;;  %v1939_v49 = vstv %s5280_s29  ;;  %s3233_s29 = spop %3232 }
 0x42d   : > { %v1940_v53 = vmul.f32 %v4629_v48, %v1939_v49  ;;  %v2737_v48 = vmul.f32 %v4812_v11, %v2735_v26  ;;  %s1574_s19 = smul.f32 0.00390625, %s3233_s29 }
 0x430   : > { %v2687_v27 = vpop.permute.xlu1 %2686  ;;  %2088 = vrot.lane.b32.xlu0 %v2083_v12, %s5781_s0 }
 0x431   : > { %v2692_v37 = vadd.f32 %v2687_v27, %v2678_v6  ;;  %v2696_v27 = vmul.f32 %v4884_v7, %v2695_v59 }
 0x433   : > { %v2698_v21 = vadd.f32 %v2696_v27, %v2692_v37  ;;  %v5796_v37 = vstv %s5794_s5  ;;  %s5801_s5 = sld [smem:[#allocation20_spill]] }
 0x434   : > { %v5292_v58 = vpop.permute.xlu1 %2066  ;;  %2722 = vrot.lane.b32.xlu0 %v2717_v34, %s5782_s6  ;;  %v1936_v34 = vadd.f32 %v4927_v19, %v1922_v14  ;;  %v1973_v14 = vstv %s5312_s28 }
 0x435   : > { %v1974_v26 = vmul.f32 %v4759_v31, %v1973_v14  ;;  %v2007_v31 = vstv %s5326_s3  ;;  %s5812_s3 = sld [smem:[#allocation33_spill]] }
 0x436   : > { %v1942_v8 = vadd.f32 %v1940_v53, %v1936_v34  ;;  %v5797_v34 = vstv %s5795_s4 }
 0x437   : > { %v2751_v53 = vmul.f32 %v4812_v11, %v5797_v34  ;;  %v5799_v11 = vstv %s4999_s14 }
 0x438   : > { %v2380_v6 = vpop.permute.xlu1 %2379  ;;  %2102 = vrot.lane.b32.xlu0 %v2097_v22, %s5782_s6 }
 0x439   : > { %v2385_v12 = vadd.f32 %v2380_v6, %v2371_v2  ;;  %v1956_v2 = vadd.f32 %v4945_v18, %v1942_v8  ;;  %v2117_v6 = vmul.f32 %v4834_v13, %v5796_v37 }
 0x43c   : > { %v2394_v63 = vpop.permute.xlu1 %2393  ;;  %2415 = vrot.lane.b32.xlu0 %v2410_v62, %s5781_s0  ;;  %v1970_v62 = vadd.f32 %v4963_v29, %v1956_v2 }
 0x43d   : > { %v5318_v35 = vadd.f32 %v2394_v63, %v2385_v12 }
 0x43e   : > { %v1976_v8 = vadd.f32 %v1974_v26, %v1970_v62  ;;  %v2041_v26 = vstv %s5338_s22  ;;  %s1247_s22 = smul.f32 0.00390625, %s3231_s21 }
 0x440   : > { %v2707_v22 = vpop.permute.xlu1 %2706  ;;  %2429 = vrot.lane.b32.xlu0 %v2424_v42, %s5782_s6  ;;  %v5798_v42 = vstv %s5014_s8  ;;  %s5800_s8 = sld [smem:[#allocation25_spill]] }
 0x441   : > { %v2712_v19 = vadd.f32 %v2707_v22, %v2698_v21  ;;  %v2236_v29 = vmul.f32 %v4671_v24, %v5798_v42 }
 0x444   : > { %v5328_v56 = vpop.permute.xlu1 %2086  ;;  %2742 = vrot.lane.b32.xlu0 %v2737_v48, %s5781_s0  ;;  %v2008_v48 = vmul.f32 %v4806_v60, %v2007_v31 }
 0x447   : > { %v1893_v12 = vpop.xlane.xlu0 %1892 }
 0x448   : > { %v1894_v18 = vrot.slane %v1893_v12, 4  ;;  %v2721_v27 = vpop.permute.xlu1 %2720  ;;  %2122 = vrot.lane.b32.xlu0 %v2117_v6, %s5781_s0  ;;  %v2250_v6 = vadd.f32 %v5045_v61, %v2236_v29  ;;  %v2563_v61 = vmul.f32 %v4671_v24, %v2561_v38  ;;  %v1909_v38 = vmul.f32 %v4671_v24, %v1907_v17 }
 0x449   : > { %v5344_v63 = vadd.f32 %v2721_v27, %v2712_v19  ;;  %v2131_v19 = vmul.f32 %v4834_v13, %v5799_v11  ;;  %v3340_v11 = vld [vmem:[%s5801_s5 + $0x9] sm:$0xff]  ;;  %v2151_v24 = vmul.f32 %v4859_v0, %v2149_v45 }
 0x44a   : > { %v1895_v21 = vadd.f32 %v1894_v18, %v1893_v12  ;;  %v3341_v45 = vld [vmem:[%s5801_s5 + $0xa] sm:$0xff] }
 0x44b   : > { %v1985_v22 = vpop.permute.xlu0 %1984 }
 0x44c   : > { %v1990_v2 = vadd.f32 %v1985_v22, %v1976_v8  ;;  %2756 = vrot.lane.b32.xlu0 %v2751_v53, %s5782_s6  ;;  %v1896_v37 = vrot.slane %v1895_v21, 2  ;;  %v5802_v53 = vstv %s5012_s15  ;;  %s5817_s15 = sld [smem:[#allocation35_spill]] }
 0x44d   : > { %v2444_v42 = vmul.f32 %v4834_v13, %v5802_v53 }
 0x44e   : > { %v2004_v12 = vadd.f32 %v5001_v3, %v1990_v2  ;;  %v1897_v62 = vadd.f32 %v1896_v37, %v1895_v21  ;;  %v2042_v3 = vmul.f32 %v4884_v7, %v2041_v26  ;;  %v2268_v7 = vmul.f32 %v3340_v11, %v2266_v32 }
 0x44f   : > { %v2260_v18 = vpop.permute.xlu0 %2259  ;;  %v1923_v32 = vadd.f32 %v4918_v39, %v1909_v38  ;;  %v2785_v39 = vmul.f32 %v4834_v13, %v2783_v54  ;;  %v5807_v54 = vstv %s5102_s17  ;;  %s5572_s17 = sld [smem:[#allocation2 + $0x9f]] }
 0x450   : > { %v2010_v27 = vadd.f32 %v2008_v48, %v2004_v12  ;;  %v2264_v60 = vadd.f32 %v2260_v18, %v2250_v6  ;;  %v1898_v34 = vrot.slane %v1897_v62, 1  ;;  %2136 = vrot.lane.b32.xlu0 %v2131_v19, %s5782_s6  ;;  %v5804_v48 = vstv %s5800_s8 }
 0x451   : > { %v2458_v2 = vmul.f32 %v4834_v13, %v5804_v48  ;;  %v2771_v12 = vmul.f32 %v4834_v13, %v2769_v55  ;;  %v1937_v55 = vadd.f32 %v4936_v4, %v1923_v32  ;;  %v2165_v4 = vmul.f32 %v4859_v0, %v2163_v33 }
 0x452   : > { %v2024_v8 = vadd.f32 %v5199_v30, %v2010_v27  ;;  %v1899_v29 = vadd.f32 %v1898_v34, %v1897_v62  ;;  %v2270_v18 = vadd.f32 %v2268_v7, %v2264_v60  ;;  %v1975_v33 = vmul.f32 %v3341_v45, %v1973_v14 }
 0x453   : > { %v2573_v21 = vpop.permute.xlu0 %2572  ;;  %v5809_v32 = vstv %s5186_s11  ;;  %s5587_s11 = sld [smem:[#allocation2 + $0xd2]] }
 0x454   : > { %v2038_v22 = vadd.f32 %v5229_v5, %v2024_v8  ;;  %3234 = vpush %v1899_v29  ;;  %2449 = vrot.lane.b32.xlu0 %v2444_v42, %s5781_s0  ;;  %v2577_v30 = vadd.f32 %v2573_v21, %v2563_v61  ;;  %v2478_v29 = vmul.f32 %v4859_v0, %v5807_v54 }
 0x456   : > { %v2044_v37 = vadd.f32 %v2042_v3, %v2038_v22 }
 0x457   : > { %v2587_v19 = vpop.permute.xlu0 %2586 }
 0x458   : > { %v2058_v5 = vadd.f32 %v5270_v57, %v2044_v37  ;;  %v2591_v6 = vadd.f32 %v2587_v19, %v2577_v30  ;;  %2463 = vrot.lane.b32.xlu0 %v2458_v2, %s5782_s6  ;;  %v2595_v57 = vmul.f32 %v3340_v11, %v2593_v50  ;;  %v2302_v50 = vmul.f32 %v3341_v45, %v2300_v1 }
 0x459   : > { %v2629_v1 = vmul.f32 %v3341_v45, %v2627_v9  ;;  %v2043_v45 = vmul.f32 %v4791_v52, %v2041_v26 }
 0x45a   : > { %v5388_v62 = vadd.f32 %v5292_v58, %v2058_v5  ;;  %v1941_v58 = vmul.f32 %v3340_v11, %v1939_v49  ;;  %v2597_v53 = vadd.f32 %v2595_v57, %v2591_v6  ;;  %v2009_v6 = vmul.f32 %v4765_v43, %v2007_v31 }
 0x45b   : > { %v2280_v27 = vpop.permute.xlu0 %2279  ;;  %v2336_v31 = vmul.f32 %v4765_v43, %v5809_v32 }
 0x45c   : > { %v2284_v34 = vadd.f32 %v2280_v27, %v2270_v18  ;;  %2776 = vrot.lane.b32.xlu0 %v2771_v12, %s5781_s0  ;;  %v1943_v8 = vadd.f32 %v1941_v58, %v1937_v55 }
 0x45e   : > { %v1957_v61 = vadd.f32 %v4954_v23, %v1943_v8  ;;  %v2492_v23 = vmul.f32 %v4859_v0, %v2490_v28  ;;  %v2185_v28 = vmul.f32 %v4879_v41, %v2183_v47 }
 0x45f   : > { %v2294_v17 = vpop.permute.xlu0 %2293 }
 0x460   : > { %v2298_v60 = vadd.f32 %v2294_v17, %v2284_v34  ;;  %2156 = vrot.lane.b32.xlu0 %v2151_v24, %s5781_s0  ;;  %v1971_v48 = vadd.f32 %v4975_v44, %v1957_v61  ;;  %v2805_v44 = vmul.f32 %v4859_v0, %v2803_v51  ;;  %v2819_v51 = vmul.f32 %v4859_v0, %v2817_v36 }
 0x461   : > { %v5810_v0 = vstv %s5184_s7  ;;  %s5627_s7 = sld [smem:[#allocation5 + $0x6]] }
 0x462   : > { %v2304_v21 = vadd.f32 %v2302_v50, %v2298_v60  ;;  %v1977_v30 = vadd.f32 %v1975_v33, %v1971_v48  ;;  %v2512_v36 = vmul.f32 %v4879_v41, %v5810_v0 }
 0x463   : > { %v2607_v42 = vpop.permute.xlu0 %2606 }
 0x464   : > { %v2611_v3 = vadd.f32 %v2607_v42, %v2597_v53  ;;  %2790 = vrot.lane.b32.xlu0 %v2785_v39, %s5782_s6  ;;  %v1991_v19 = vadd.f32 %v4988_v40, %v1977_v30  ;;  %v5442_v40 = vpop.permute.xlu1 %2100  ;;  %v2663_v39 = vmul.f32 %v4765_v43, %v2661_v46  ;;  %v2853_v43 = vmul.f32 %v4879_v41, %v2851_v10 }
 0x466   : > { %v2005_v5 = vadd.f32 %v5016_v20, %v1991_v19  ;;  %v2199_v20 = vmul.f32 %v4879_v41, %v2197_v16  ;;  %v5811_v16 = vstv %s5197_s12  ;;  %s5636_s12 = sld [smem:[#allocation5 + $0x7]] }
 0x467   : > { %v2621_v49 = vpop.permute.xlu0 %2620  ;;  %v2526_v60 = vmul.f32 %v4879_v41, %v5811_v16 }
 0x468   : > { %v2625_v13 = vadd.f32 %v2621_v49, %v2611_v3  ;;  %2170 = vrot.lane.b32.xlu0 %v2165_v4, %s5782_s6  ;;  %v2011_v18 = vadd.f32 %v2009_v6, %v2005_v5  ;;  %v5455_v57 = vpop.permute.xlu1 %2413  ;;  %v2839_v3 = vmul.f32 %v4879_v41, %v2837_v15 }
 0x46a   : > { %v2631_v7 = vadd.f32 %v2629_v1, %v2625_v13 }
 0x46b   : > { %v2314_v22 = vpop.permute.xlu0 %2313 }
 0x46c   : > { %v2318_v2 = vadd.f32 %v2314_v22, %v2304_v21  ;;  %2483 = vrot.lane.b32.xlu0 %v2478_v29, %s5781_s0  ;;  %v5464_v53 = vpop.permute.xlu1 %2427  ;;  %v2370_v21 = vmul.f32 %v4791_v52, %v2368_v25 }
 0x46f   : > { %v2328_v37 = vpop.permute.xlu0 %2327 }
 0x470   : > { %v2332_v11 = vadd.f32 %v2328_v37, %v2318_v2  ;;  %2497 = vrot.lane.b32.xlu0 %v2492_v23, %s5782_s6  ;;  %v5477_v46 = vpop.permute.xlu1 %2740  ;;  %v3342_v23 = vld [vmem:[%s5801_s5 + $0x21] sm:$0xff] }
 0x471   : > { %v2697_v1 = vmul.f32 %v3342_v23, %v2695_v59 }
 0x472   : > { %v2338_v17 = vadd.f32 %v2336_v31, %v2332_v11 }
 0x473   : > { %v2641_v14 = vpop.permute.xlu0 %2640 }
 0x474   : > { %v2645_v38 = vadd.f32 %v2641_v14, %v2631_v7  ;;  %2810 = vrot.lane.b32.xlu0 %v2805_v44, %s5781_s0  ;;  %v5480_v15 = vpop.permute.xlu1 %2120 }
 0x477   : > { %v2021_v9 = vpop.permute.xlu0 %2020 }
 0x478   : > { %2190 = vrot.lane.b32.xlu0 %v2185_v28, %s5781_s0  ;;  %v2025_v47 = vadd.f32 %v2021_v9, %v2011_v18  ;;  %v5487_v41 = vpop.permute.xlu1 %2754 }
 0x47b   : > { %v2655_v12 = vpop.permute.xlu0 %2654 }
 0x47c   : > { %v2659_v27 = vadd.f32 %v2655_v12, %v2645_v38  ;;  %2824 = vrot.lane.b32.xlu0 %v2819_v51, %s5782_s6  ;;  %v5492_v37 = vpop.permute.xlu1 %2134 }
 0x47e   : > { %v2665_v4 = vadd.f32 %v2663_v39, %v2659_v27 }
 0x47f   : > { %v2035_v34 = vpop.permute.xlu0 %2034 }
 0x480   : > { %v2039_v24 = vadd.f32 %v2035_v34, %v2025_v47  ;;  %2204 = vrot.lane.b32.xlu0 %v2199_v20, %s5782_s6  ;;  %v5496_v52 = vpop.permute.xlu1 %2447  ;;  %v3343_v34 = vld [vmem:[%s5801_s5 + $0x1a] sm:$0xff] }
 0x482   : > { %v2045_v61 = vadd.f32 %v2043_v45, %v2039_v24 }
 0x483   : > { %v2348_v55 = vpop.permute.xlu0 %2347 }
 0x484   : > { %v2352_v58 = vadd.f32 %v2348_v55, %v2338_v17  ;;  %2517 = vrot.lane.b32.xlu0 %v2512_v36, %s5781_s0  ;;  %v5498_v19 = vpop.permute.xlu1 %2461 }
 0x485   : > { %s3235_s8 = spop %3234 }
 0x487   : > { %v2362_v42 = vpop.permute.xlu0 %2361 }
 0x488   : > { %v2366_v8 = vadd.f32 %v2362_v42, %v2352_v58  ;;  %2531 = vrot.lane.b32.xlu0 %v2526_v60, %s5782_s6  ;;  %v5502_v5 = vpop.permute.xlu1 %2774  ;;  %v2109_v42 = vstv %s5530_s1 }
 0x48a   : > { %v2372_v10 = vadd.f32 %v2370_v21, %v2366_v8 }
 0x48b   : > { %v2675_v50 = vpop.permute.xlu0 %2674 }
 0x48c   : > { %v2679_v49 = vadd.f32 %v2675_v50, %v2665_v4  ;;  %2844 = vrot.lane.b32.xlu0 %v2839_v3, %s5781_s0  ;;  %v5506_v6 = vpop.permute.xlu1 %2154  ;;  %s5514_s0 = sld [smem:[#allocation2 + $0x96]]  ;;  %v3344_v3 = vld [vmem:[%s5801_s5 + $0x30] sm:$0xff] }
 0x48d   : > { %v2110_v4 = vmul.f32 %v3344_v3, %v2109_v42 }
 0x48f   : > { %v2055_v13 = vpop.permute.xlu0 %2054 }
 0x490   : > { %v2059_v54 = vadd.f32 %v2055_v13, %v2045_v61  ;;  %2858 = vrot.lane.b32.xlu0 %v2853_v43, %s5782_s6  ;;  %v5512_v18 = vpop.permute.xlu1 %2788  ;;  %s5523_s6 = sld [smem:[#allocation2 + $0xb1]]  ;;  %v3345_v43 = vld [vmem:[%s5801_s5 + $0x22] sm:$0xff] }
 0x492   : > { %v2075_v32 = vstv %s5514_s0 }
 0x493   : > { %v2689_v29 = vpop.permute.xlu0 %2688  ;;  %v2076_v24 = vmul.f32 %v3343_v34, %v2075_v32  ;;  %v2077_v61 = vmul.f32 %v3345_v43, %v2075_v32 }
 0x494   : > { %v2693_v26 = vadd.f32 %v2689_v29, %v2679_v49  ;;  %v5518_v20 = vpop.permute.xlu1 %2168  ;;  %v2729_v49 = vstv %s5535_s23  ;;  %s3455_s23 = smov [#allocation7]  }
 0x495   : > { %v2078_v17 = vadd.f32 %v2076_v24, %v5388_v62  ;;  %v2730_v13 = vmul.f32 %v3343_v34, %v2729_v49 }
 0x496   : > { %v2699_v44 = vadd.f32 %v2697_v1, %v2693_v26  ;;  %v2402_v55 = vstv %s5523_s6  ;;  %s5813_s6 = sld [smem:[#allocation34_spill]] }
 0x497   : > { %v2069_v22 = vpop.permute.xlu0 %2068  ;;  %v2092_v60 = vadd.f32 %v5328_v56, %v2078_v17  ;;  %v2403_v39 = vmul.f32 %v3343_v34, %v2402_v55 }
 0x498   : > { %v5485_v48 = vadd.f32 %v2069_v22, %v2059_v54  ;;  %v5528_v0 = vpop.permute.xlu1 %2481  ;;  %v2732_v22 = vadd.f32 %v2730_v13, %v5344_v63 }
 0x499   : > { %v2106_v62 = vadd.f32 %v5442_v40, %v2092_v60  ;;  %v2405_v50 = vadd.f32 %v2403_v39, %v5318_v35  ;;  %v2436_v40 = vstv %s5544_s10  ;;  %v2177_v60 = vstv %s5572_s17  ;;  %s1901_s10 = smul.f32 0.00390625, %s3235_s8  ;;  %s5814_s17 = sld [smem:[#allocation12_spill]] }
 0x49a   : > { %v2079_v35 = vadd.f32 %v2077_v61, %v5485_v48  ;;  %v3346_v48 = vld [vmem:[%s5801_s5 + $0x38] sm:$0xff]  ;;  %v2746_v63 = vadd.f32 %v5477_v46, %v2732_v22  ;;  %s3222_s8 = sshll.u32 %s5815_s24, 4 }
 0x49b   : > { %v2382_v33 = vpop.permute.xlu0 %2381  ;;  %v2112_v54 = vadd.f32 %v2110_v4, %v2106_v62  ;;  %v2419_v29 = vadd.f32 %v5455_v57, %v2405_v50  ;;  %v2143_v57 = vstv %s5554_s13  ;;  %v2470_v4 = vstv %s5574_s2  ;;  %s2900_s0 = scalar_lea.hbm %s5817_s15, %s3222_s8 }
 0x49c   : > { %v2386_v2 = vadd.f32 %v2382_v33, %v2372_v10  ;;  %v5538_v58 = vpop.permute.xlu1 %2495  ;;  %v2760_v17 = vadd.f32 %v5487_v41, %v2746_v63  ;;  %v2731_v50 = vmul.f32 %v3345_v43, %v2729_v49  ;;  %v2438_v13 = vmul.f32 %v3346_v48, %v2436_v40  ;;  %v3350_v63 = vld [vmem:[%s5801_s5 + $0x3a] sm:$0xff] }
 0x49d   : > { %v2126_v10 = vadd.f32 %v5480_v15, %v2112_v54  ;;  %v2433_v33 = vadd.f32 %v5464_v53, %v2419_v29  ;;  %v3347_v53 = vld [vmem:[%s5801_s5 + $0x31] sm:$0xff]  ;;  %v3348_v54 = vld [vmem:[%s5801_s5 + $0x39] sm:$0xff] }
 0x49e   : > { %v2471_v22 = vmul.f32 %v3347_v53, %v2470_v4 }
 0x49f   : > { %v2396_v30 = vpop.permute.xlu0 %2395  ;;  %v2140_v15 = vadd.f32 %v5492_v37, %v2126_v10  ;;  %v2797_v10 = vstv %s5587_s11  ;;  %s242_s21 = sand.u32 1, %s5814_s17  }
 0x4a0   : > { %v5494_v11 = vadd.f32 %v2396_v30, %v2386_v2  ;;  %v5550_v45 = vpop.permute.xlu1 %2808  ;;  %v2437_v2 = vmul.f32 %v3344_v3, %v2436_v40 }
 0x4a2   : > { %v2439_v32 = vadd.f32 %v2437_v2, %v2433_v33  ;;  %v2504_v2 = vstv %s5591_s30 }
 0x4a3   : > { %v2709_v7 = vpop.permute.xlu0 %2708 }
 0x4a4   : > { %v2713_v14 = vadd.f32 %v2709_v7, %v2699_v44  ;;  %v5563_v26 = vpop.permute.xlu1 %2188  ;;  %v2404_v44 = vmul.f32 %v3345_v43, %v2402_v55  ;;  %v2111_v7 = vmul.f32 %v3346_v48, %v2109_v42  ;;  %v2453_v37 = vadd.f32 %v5496_v52, %v2439_v32 }
 0x4a5   : > { %v2145_v52 = vmul.f32 %v3348_v54, %v2143_v57 }
 0x4a7   : > { %v2089_v25 = vpop.permute.xlu0 %2088 }
 0x4a8   : > { %v2093_v23 = vadd.f32 %v2089_v25, %v2079_v35  ;;  %v2763_v25 = vstv %s5560_s16  ;;  %v3349_v35 = vld [vmem:[%s5801_s5 + $0x32] sm:$0xff]  ;;  %s243_s5 = scalar_lea.vmem [#allocation7], %s242_s21 }
 0x4a9   : > { %v2764_v46 = vmul.f32 %v3344_v3, %v2763_v25  ;;  %s2902_s14 = sshll.u32 %s243_s5, 4  ;;  %s2903_s14 = int_to_ptr.vmem [resolvable:$true] %s2902_s14 }
 0x4aa   : > { %s3381_s1 = scalar_lea.vmem %s2903_s14, 16 }
 0x4ab   : > { %v2723_v38 = vpop.permute.xlu0 %2722  ;;  %v2766_v29 = vadd.f32 %v2764_v46, %v2760_v17  ;;  %p3382_p10 = scmp.ne.s32.totalorder %s2903_s14, %s3381_s1 }
 0x4ac   : > { %v5500_v28 = vadd.f32 %v2723_v38, %v2713_v14  ;;  %v2144_v14 = vmul.f32 %v3347_v53, %v2143_v57  ;;  %v5582_v38 = vpop.permute.xlu1 %2822 }
 0x4ad   : > { %v2780_v40 = vadd.f32 %v5502_v5, %v2766_v29  ;;  %v2179_v5 = vmul.f32 %v3350_v63, %v2177_v60 }
 0x4ae   : > { %v2146_v55 = vadd.f32 %v2144_v14, %v2140_v15 }
 0x4af   : > { %v2103_v9 = vpop.permute.xlu0 %2102 }
 0x4b0   : > { %v2107_v30 = vadd.f32 %v2103_v9, %v2093_v23  ;;  %v2406_v9 = vadd.f32 %v2404_v44, %v5494_v11  ;;  %v2160_v62 = vadd.f32 %v5506_v6, %v2146_v55  ;;  %v2203_v11 = vpop.permute.xlu1 %2202  ;;  %v2467_v6 = vadd.f32 %v5498_v19, %v2453_v37 }
 0x4b1   : > { %v2765_v44 = vmul.f32 %v3346_v48, %v2763_v25  ;;  %v2211_v48 = vstv %s5605_s9  ;;  %v2505_v25 = vmul.f32 %v3349_v35, %v2504_v2 }
 0x4b2   : > { %v2113_v24 = vadd.f32 %v2111_v7, %v2107_v30  ;;  %v2473_v57 = vadd.f32 %v2471_v22, %v2467_v6  ;;  %v2472_v7 = vmul.f32 %v3348_v54, %v2470_v4  ;;  %v2506_v4 = vmul.f32 %v3350_v63, %v2504_v2 }
 0x4b3   : > { %v5504_v59 = vpop.permute.xlu0 %2415 }
 0x4b4   : > { %v2420_v39 = vadd.f32 %v5504_v59, %v2406_v9  ;;  %v2174_v59 = vadd.f32 %v5518_v20, %v2160_v62  ;;  %v2516_v20 = vpop.permute.xlu1 %2515  ;;  %v2487_v14 = vadd.f32 %v5528_v0, %v2473_v57 }
 0x4b7   : > { %v5508_v51 = vpop.permute.xlu0 %2429 }
 0x4b8   : > { %v2434_v41 = vadd.f32 %v5508_v51, %v2420_v39  ;;  %v2733_v51 = vadd.f32 %v2731_v50, %v5500_v28  ;;  %v2530_v17 = vpop.permute.xlu1 %2529 }
 0x4bb   : > { %v5510_v12 = vpop.permute.xlu0 %2742 }
 0x4bc   : > { %v2747_v19 = vadd.f32 %v5510_v12, %v2733_v51 }
 0x4bf   : > { %v5516_v27 = vpop.permute.xlu0 %2122 }
 0x4c0   : > { %v2127_v42 = vadd.f32 %v5516_v27, %v2113_v24  ;;  %v2178_v27 = vmul.f32 %v3349_v35, %v2177_v60  ;;  %v2798_v24 = vmul.f32 %v3347_v53, %v2797_v10  ;;  %v2831_v60 = vstv %s5613_s20 }
 0x4c1   : > { %v2832_v29 = vmul.f32 %v3349_v35, %v2831_v60  ;;  %v2833_v57 = vmul.f32 %v3350_v63, %v2831_v60 }
 0x4c2   : > { %v2180_v33 = vadd.f32 %v2178_v27, %v2174_v59  ;;  %v2843_v59 = vpop.permute.xlu1 %2842 }
 0x4c3   : > { %v5520_v47 = vpop.permute.xlu0 %2756 }
 0x4c4   : > { %v2194_v28 = vadd.f32 %v5563_v26, %v2180_v33  ;;  %v2761_v32 = vadd.f32 %v5520_v47, %v2747_v19  ;;  %v2501_v26 = vadd.f32 %v5538_v58, %v2487_v14 }
 0x4c6   : > { %v2767_v0 = vadd.f32 %v2765_v44, %v2761_v32  ;;  %v2507_v39 = vadd.f32 %v2505_v25, %v2501_v26 }
 0x4c7   : > { %v5525_v31 = vpop.permute.xlu0 %2136 }
 0x4c8   : > { %v2141_v3 = vadd.f32 %v5525_v31, %v2127_v42  ;;  %v2440_v31 = vadd.f32 %v2438_v13, %v2434_v41  ;;  %v2799_v42 = vmul.f32 %v3348_v54, %v2797_v10 }
 0x4ca   : > { %v2147_v43 = vadd.f32 %v2145_v52, %v2141_v3 }
 0x4cb   : > { %v5532_v36 = vpop.permute.xlu0 %2449 }
 0x4cc   : > { %v2454_v23 = vadd.f32 %v5532_v36, %v2440_v31  ;;  %v2794_v36 = vadd.f32 %v5512_v18, %v2780_v40 }
 0x4ce   : > { %v2800_v37 = vadd.f32 %v2798_v24, %v2794_v36 }
 0x4cf   : > { %v5540_v16 = vpop.permute.xlu0 %2463 }
 0x4d0   : > { %v2468_v9 = vadd.f32 %v5540_v16, %v2454_v23  ;;  %v2814_v58 = vadd.f32 %v5550_v45, %v2800_v37 }
 0x4d2   : > { %v2474_v55 = vadd.f32 %v2472_v7, %v2468_v9  ;;  %v2828_v13 = vadd.f32 %v5582_v38, %v2814_v58 }
 0x4d3   : > { %v5546_v8 = vpop.permute.xlu0 %2776 }
 0x4d4   : > { %v2834_v51 = vadd.f32 %v2832_v29, %v2828_v13  ;;  %v595_v29 = vstv %s593_s18 }
 0x4d6   : > { %v2848_v33 = vadd.f32 %v2843_v59, %v2834_v51  ;;  %v921_v59 = vld [vmem:[%s5812_s3 + $0x1] sm:$0x1]  ;;  %v1576_v51 = vstv %s1574_s19 }
 0x4d7   : > { %v5556_v56 = vpop.permute.xlu0 %2156 }
 0x4d8   : > { %v2161_v30 = vadd.f32 %v5556_v56, %v2147_v43  ;;  %v2208_v56 = vadd.f32 %v2203_v11, %v2194_v28  ;;  %v2521_v11 = vadd.f32 %v2516_v20, %v2507_v39  ;;  %v2857_v43 = vpop.permute.xlu1 %2856  ;;  %v2865_v28 = vstv %s5636_s12 }
 0x4d9   : > { %v2862_v23 = vadd.f32 %v2857_v43, %v2848_v33 }
 0x4da   : > { %v2212_v16 = vadd.f32 %v2211_v48, %v2208_v56 }
 0x4db   : > { %v5565_v21 = vpop.permute.xlu0 %2790 }
 0x4dc   : > { %v2214_v52 = vmax.f32 %v2212_v16, 0.0 }
 0x4de   : > { %v2216_v31 = vsel %vm580_vm0, %v2214_v52, 0.0  ;;  %v594_v52 = vld [vmem:[%s5812_s3] sm:$0x1] }
 0x4df   : > { %v5576_v1 = vpop.permute.xlu0 %2170 }
 0x4e0   : > { %v2175_v12 = vadd.f32 %v5576_v1, %v2161_v30  ;;  %v2781_v1 = vadd.f32 %v5546_v8, %v2767_v0  ;;  %v2535_v8 = vadd.f32 %v2530_v17, %v2521_v11 }
 0x4e2   : > { %v2181_v47 = vadd.f32 %v2179_v5, %v2175_v12  ;;  %v2795_v50 = vadd.f32 %v5565_v21, %v2781_v1 }
 0x4e3   : > { %v5585_v34 = vpop.permute.xlu0 %2483 }
 0x4e4   : > { %v2488_v18 = vadd.f32 %v5585_v34, %v2474_v55  ;;  %v2538_v34 = vstv %s5627_s7  ;;  %v2801_v45 = vadd.f32 %v2799_v42, %v2795_v50 }
 0x4e5   : > { %v2539_v21 = vadd.f32 %v2538_v34, %v2535_v8  ;;  %v922_v8 = vstv %s920_s27 }
 0x4e7   : > { %v2498_v61 = vpop.permute.xlu0 %2497  ;;  %v2541_v19 = vmax.f32 %v2539_v21, 0.0 }
 0x4e8   : > { %v2502_v41 = vadd.f32 %v2498_v61, %v2488_v18 }
 0x4e9   : > { %v2543_v14 = vsel %vm580_vm0, %v2541_v19, 0.0 }
 0x4ea   : > { %v2508_v22 = vadd.f32 %v2506_v4, %v2502_v41 }
 0x4eb   : > { %v5607_v49 = vpop.permute.xlu0 %2810 }
 0x4ec   : > { %v2815_v61 = vadd.f32 %v5607_v49, %v2801_v45  ;;  %v1249_v45 = vstv %s1247_s22  ;;  %s5816_s22 = sld [smem:[#allocation18_spill]] }
 0x4ef   : > { %v2191_v15 = vpop.permute.xlu0 %2190 }
 0x4f0   : > { %v2195_v53 = vadd.f32 %v2191_v15, %v2181_v47  ;;  %v2866_v15 = vadd.f32 %v2865_v28, %v2862_v23 }
 0x4f2   : > { %v2868_v24 = vmax.f32 %v2866_v15, 0.0  ;;  %p5818_p12 = scmp.ne.s32.totalorder %s5816_s22, 0 }
 0x4f3   : > { %v2825_v46 = vpop.permute.xlu0 %2824 }
 0x4f4   : > { %v2829_v2 = vadd.f32 %v2825_v46, %v2815_v61  ;;  %v2870_v26 = vsel %vm580_vm0, %v2868_v24, 0.0  ;;  %v1902_v61 = vld [vmem:[%s5812_s3 + $0x4] sm:$0x1]  ;;  %p3383_p0 = pnand %p3382_p10, %p5818_p12 }
 0x4f6   : > { %v2835_v5 = vadd.f32 %v2833_v57, %v2829_v2  ;;  %p3384_p7 = pneg %p3383_p0 }
 0x4f7   : > { %v2205_v62 = vpop.permute.xlu0 %2204 }
 0x4f8   : > { %v2209_v3 = vadd.f32 %v2205_v62, %v2195_v53 }
 0x4fa   : > { %v2213_v27 = vadd.f32 %v2211_v48, %v2209_v3 }
 0x4fb   : > { %v2518_v6 = vpop.permute.xlu0 %2517 }
 0x4fc   : > { %v2215_v54 = vmax.f32 %v2213_v27, 0.0  ;;  %v2522_v38 = vadd.f32 %v2518_v6, %v2508_v22  ;;  %v596_v27 = vmul.f32 %v595_v29, %v594_v52  ;;  %v1248_v6 = vld [vmem:[%s5812_s3 + $0x2] sm:$0x1]  ;;  %v1575_v22 = vld [vmem:[%s5812_s3 + $0x3] sm:$0x1] }
 0x4fd   : > { %v1250_v21 = vmul.f32 %v1249_v45, %v1248_v6  ;;  %v1577_v43 = vmul.f32 %v1576_v51, %v1575_v22 }
 0x4fe   : > { %v2217_v35 = vsel %vm580_vm0, %v2215_v54, 0.0  ;;  %v923_v54 = vmul.f32 %v922_v8, %v921_v59 }
 0x4ff   : > { %v2532_v40 = vpop.permute.xlu0 %2531  ;;  %v2218_v10 = vadd.f32 %v2217_v35, %v2216_v31 }
 0x500   : > { %v2536_v20 = vadd.f32 %v2532_v40, %v2522_v38  ;;  %v1903_v38 = vstv %s1901_s10  ;;  %v2229_v40 = vld [vmem:[%s5812_s3 + $0x5] sm:$0x1]  ;;  %s3385_s10 = sshll.u32 %s3455_s23, 4  ;;  %s3386_s10 = int_to_ptr.vmem [resolvable:$false] %s3385_s10 }
 0x501   : > { %2219 = vadd.xlane.f32.xlu1 %v2218_v10  ;;  %v1904_v2 = vmul.f32 %v1903_v38, %v1902_v61  ;;  %s3387_s13 = scalar_lea.vmem %s3386_s10, 32  ;;  %p3388_p8 = scmp.lt.s32.totalorder %s2903_s14, %s3386_s10 }
 0x502   : > { %v2540_v30 = vadd.f32 %v2538_v34, %v2536_v20  ;;  %v269_v34 = vld [vmem:[%s5813_s6] sm:$0x1]  ;;  %v2556_v20 = vld [vmem:[%s5812_s3 + $0x6] sm:$0x1]  ;;  %s2890_s6 = scalar_lea.sflag [#allocation3], %s242_s21  ;;  %p3389_p11 = scmp.lt.s32.totalorder %s3387_s13, %s3381_s1 }
 0x503   : > { %v2845_v44 = vpop.permute.xlu0 %2844  ;;  %v597_v31 = vadd.f32 %v596_v27, %v269_v34 }
 0x504   : > { %v2542_v7 = vmax.f32 %v2540_v30, 0.0  ;;  %v2849_v49 = vadd.f32 %v2845_v44, %v2835_v5  ;;  %v2883_v44 = vld [vmem:[%s5812_s3 + $0x7] sm:$0x1]  ;;  %p3390_p13 = por %p3389_p11, %p3388_p8 }
 0x505   : > { %v924_v35 = vadd.f32 %v923_v54, %v597_v31 }
 0x506   : > { %v2544_v32 = vsel %vm580_vm0, %v2542_v7, 0.0  ;;  %p3391_p1 = pnand %p3390_p13, %p3384_p7 }
 0x507   : > { %v2859_v9 = vpop.permute.xlu0 %2858  ;;  %v2545_v12 = vadd.f32 %v2544_v32, %v2543_v14  ;;  %v1251_v33 = vadd.f32 %v1250_v21, %v924_v35 }
 0x508   : > { %v2863_v36 = vadd.f32 %v2859_v9, %v2849_v49 }
 0x509   : > { %2546 = vadd.xlane.f32.xlu0 %v2545_v12  ;;  %v1578_v19 = vadd.f32 %v1577_v43, %v1251_v33 }
 0x50a   : > { %v2867_v63 = vadd.f32 %v2865_v28, %v2863_v36 }
 0x50b   : > { %v1905_v30 = vadd.f32 %v1904_v2, %v1578_v19 }
 0x50c   : > { %v2869_v56 = vmax.f32 %v2867_v63, 0.0 }
 0x50e   : > { %v2871_v48 = vsel %vm580_vm0, %v2869_v56, 0.0 }
 0x50f   : > { %v2872_v25 = vadd.f32 %v2871_v48, %v2870_v26 }
 0x511   : > { %2873 = vadd.xlane.f32.xlu0 %v2872_v25 }
 0x58a   : > { %v2220_v17 = vpop.xlane.xlu1 %2219 }
 0x58b   : > { %v2221_v46 = vrot.slane %v2220_v17, 4 }
 0x58d   : > { %v2222_v0 = vadd.f32 %v2221_v46, %v2220_v17 }
 0x58f   : > { %v2223_v55 = vrot.slane %v2222_v0, 2 }
 0x591   : > { %v2224_v47 = vadd.f32 %v2223_v55, %v2222_v0 }
 0x592   : > { %v2547_v37 = vpop.xlane.xlu0 %2546 }
 0x593   : > { %v2548_v16 = vrot.slane %v2547_v37, 4  ;;  %v2225_v60 = vrot.slane %v2224_v47, 1 }
 0x595   : > { %v2549_v39 = vadd.f32 %v2548_v16, %v2547_v37  ;;  %v2226_v1 = vadd.f32 %v2225_v60, %v2224_v47 }
 0x597   : > { %v2550_v18 = vrot.slane %v2549_v39, 2  ;;  %3236 = vpush %v2226_v1 }
 0x599   : > { %v2551_v53 = vadd.f32 %v2550_v18, %v2549_v39 }
 0x59a   : > { %v2874_v58 = vpop.xlane.xlu0 %2873 }
 0x59b   : > { %v2875_v42 = vrot.slane %v2874_v58, 4  ;;  %v2552_v62 = vrot.slane %v2551_v53, 1 }
 0x59d   : > { %v2876_v4 = vadd.f32 %v2875_v42, %v2874_v58  ;;  %v2553_v11 = vadd.f32 %v2552_v62, %v2551_v53 }
 0x59f   : > { %v2877_v50 = vrot.slane %v2876_v4, 2  ;;  %3238 = vpush %v2553_v11 }
 0x5a1   : > { %v2878_v41 = vadd.f32 %v2877_v50, %v2876_v4 }
 0x5a3   : > { %v2879_v3 = vrot.slane %v2878_v41, 1 }
 0x5a5   : > { %v2880_v13 = vadd.f32 %v2879_v3, %v2878_v41 }
 0x5a7   : > { %3240 = vpush %v2880_v13 }
 0x5c8   : > { %s3237_s25 = spop %3236 }
 0x5c9   : > { %s2228_s2 = smul.f32 0.00390625, %s3237_s25 }
 0x5cb   : > { %v2230_v10 = vstv %s2228_s2 }
 0x5cc   : > { %v2231_v23 = vmul.f32 %v2230_v10, %v2229_v40 }
 0x5ce   : > { %v2232_v7 = vadd.f32 %v2231_v23, %v1905_v30 }
 0x5d0   : > { %s3239_s11 = spop %3238 }
 0x5d1   : > { %s2555_s20 = smul.f32 0.00390625, %s3239_s11 }
 0x5d3   : > { %v2557_v57 = vstv %s2555_s20 }
 0x5d4   : > { %v2558_v28 = vmul.f32 %v2557_v57, %v2556_v20 }
 0x5d6   : > { %v2559_v15 = vadd.f32 %v2558_v28, %v2232_v7 }
 0x5d8   : > { %s3241_s27 = spop %3240 }
 0x5d9   : > { %s2882_s29 = smul.f32 0.00390625, %s3241_s27 }
 0x5db   : > { %v2884_v5 = vstv %s2882_s29 }
 0x5dc   : > { %v2885_v49 = vmul.f32 %v2884_v5, %v2883_v44 }
 0x5de   : > { %v2886_v14 = vadd.f32 %v2885_v49, %v2559_v15 }
 0x5e0   : > { %2888 = vst.msk [vmem:[%s243_s5] sm:$0x1] %vm2887_vm1, %v2886_v14 }
 0x5e1   : > { %3394 = shalt.err (!%p3391_p1)
}
 0x5e2   : > { %s3395_s16 = scalar_lea.hbm %s2900_s0, 16  ;;  %s3399_s11 = scalar_lea.hbm %s5817_s15, 32 }
 0x5e3   : > { %p3396_p2 = scmp.ne.s32.totalorder %s2900_s0, %s3395_s16  ;;  %p3400_p9 = scmp.lt.s32.totalorder %s2900_s0, %s5817_s15 }
 0x5e4   : > { %p3401_p5 = scmp.lt.s32.totalorder %s3399_s11, %s3395_s16 }
 0x5e5   : > { %p3397_p3 = pnand %p3396_p2, %p5818_p12 }
 0x5e6   : > { %p3402_p6 = por %p3401_p5, %p3400_p9 }
 0x5e7   : > { %p3398_p4 = pneg %p3397_p3 }
 0x5e9   : > { %p3403_p10 = pnand %p3402_p6, %p3398_p4 }
 0x5eb   : > { %3406 = shalt.err (!%p3403_p10)
}
 0x5ec   : > { %3250 = dma.vmem_to_hbm [thread:$0]  (%p5818_p12), %s2903_s14, 16, %s2900_s0, %s2890_s6  }
 0x5ed PF: > { %s5819_s20 = sld [smem:[#allocation14_spill]] }
 0x5ee   : > { %s5820_s7 = sld [smem:[#allocation11_spill]] }
 0x5ef   : > { %s5821_s12 = sld [smem:[#allocation19_spill]] }
 0x5f3   : > { %p3267_p0 = scmp.ge.s32.totalorder %s5819_s20, 2 }
 0x5f4   : > { %s2914_s24 = sand.u32 1, %s5820_s7  }
 0x5f5   : > { %p5822_p7 = scmp.ne.s32.totalorder %s5821_s12, 0  ;;  %s2915_s26 = scalar_lea.sflag [#allocation3], %s2914_s24 }
 0x5f7   : > { %p3260_p8 = pnand %p3267_p0, %p5822_p7 }
 0x5f9   : > { %p3261_p11 = pneg %p3260_p8 }
 0x5fb   : > { %3432 = dma.done.wait (%p3261_p11), %s2915_s26, 16  }
 0x5fc   : > { %3434 = vsyncadd (%p3261_p11), %s2915_s26, 4294967280  ;;  %s5823_s21 = sld [smem:[#allocation16_spill]] }
 0x5fd   : > { %s5824_s18 = sld [smem:[#allocation12_spill]] }
 0x5fe   : > { %s5825_s19 = sld [smem:[#allocation13_spill]] }
 0x5ff   : > { %s5826_s20 = sld [smem:[#allocation17_spill]] }
 0x602   : > { %p17_p13 = scmp.ge.s32.totalorder %s5823_s21, 4  }
 0x604   :  { %19 = sbr.rel (!%p17_p13) target bundleno = 12 (0xc), region = 86 }
 0x609   :  { %2919 = vsyncpa [#allocation3], 1 }
 0x60a   :  { %2921 = vsyncpa [#allocation3 + $0x1], 1 }
 0x60b   :  { %2922 = vsyncpa [#allocation4], 1 }
 0x60c   :  { %2924 = vsyncpa [#allocation4 + $0x1], 1 }
 0x60d   :  { %2925 = vsyncpa [#allocation6], 1 }

</bundles_post_ra>
